<compile_context>
chip_gen: v7x
topology: tpu7x:2x2x1
jax: 0.10.0
libtpu: 0.0.40
codegen_flags: <defaults>
</compile_context>

<pallas_src>
import numpy as np
import jax
import jax.numpy as jnp
from jax import lax
from jax.experimental import pallas as pl
from jax.experimental.pallas import tpu as pltpu

C = 128  # lane-dense channel width used inside the kernel


# ---------------------------------------------------------------------------
# Fused kernel
# ---------------------------------------------------------------------------
def _build_fused_kernel(H, W):
    Wp = W + 2            # padded width  (1 left + 1 right halo column)
    HWp = H * Wp          # rows of each conv "accumulator" block
    # tap offsets in the flattened (row-major) padded buffer
    offs = [dy * Wp + dx for dy in range(3) for dx in range(3)]

    def kernel(x_ref, w1_ref, b1_ref, w2_ref, b2_ref, w3_ref, b3_ref,
               w4_ref, mask_ref, feat_ref, obj_ref, buf_ref, acc_ref):
        # x_ref   : (Hq*Wp, 128) bf16  flat spatially+channel padded input image
        # wN_ref  : (9, 128, 128) bf16 3x3 weights, tap-major, channel padded
        # bN_ref  : (1, 128) f32       biases (channel padded)
        # w4_ref  : (1, 128) f32       1x1 conv weight (row vector)
        # mask_ref: (H*Wp, 1) f32      1.0 on valid columns, 0.0 on halo columns
        # feat_ref: (H*Wp, 128) f32    conv3 output (lane-dense slab)
        # obj_ref : (H*Wp, 1) f32      conv4 output
        # buf_ref : (Hq*Wp, 128) bf16  VMEM ping/pong activation buffer (padded)
        # acc_ref : (H*Wp, 128) f32    VMEM matmul accumulator

        def conv3x3(src_ref, w_ref):
            # 9 row-shifted (HWp,128) x (128,128) bf16 MXU matmuls, f32 accumulate.
            acc_ref[...] = jnp.dot(src_ref[pl.ds(offs[0], HWp), :], w_ref[0],
                                   preferred_element_type=jnp.float32)
            for t in range(1, 9):
                acc_ref[...] += jnp.dot(src_ref[pl.ds(offs[t], HWp), :], w_ref[t],
                                        preferred_element_type=jnp.float32)

        def bias_relu_store(b_ref):
            # mask zeroes the values that land on the halo columns of `buf`,
            # keeping the zero-padding invariant for the next conv.
            y = jnp.maximum(acc_ref[...] + b_ref[...], 0.0) * mask_ref[...]
            buf_ref[pl.ds(Wp + 1, HWp), :] = y.astype(buf_ref.dtype)

        # Zero the padded activation buffer once per image (halo must be 0).
        buf_ref[...] = jnp.zeros_like(buf_ref)

        # conv1 (channel-padded Cin->128), conv2 (128->128)
        conv3x3(x_ref, w1_ref)
        bias_relu_store(b1_ref)
        conv3x3(buf_ref, w2_ref)
        bias_relu_store(b2_ref)          # in-place: all reads of buf precede this store

        # conv3 -> feat, with conv4 fused as a lane reduction on the resident acc
        conv3x3(buf_ref, w3_ref)
        feat = jnp.maximum(acc_ref[...] + b3_ref[...], 0.0)          # (HWp,128) f32
        feat_ref[...] = feat.astype(feat_ref.dtype)                  # lane-dense store
        obj_ref[...] = jnp.sum(feat * w4_ref[...], axis=-1,
                               keepdims=True).astype(obj_ref.dtype)  # 1x1 conv, no bias

    return kernel


# ---------------------------------------------------------------------------
# Wrapper: padding/packing once at the boundary + pallas_call
# ---------------------------------------------------------------------------
def object_pre_forward(x_nchw, params):
    """Forward pass. Input / outputs are NCHW to match PyTorch semantics."""
    N, Cin, H, W = x_nchw.shape
    assert Cin <= C, "TODO(synk): Cin > 128 needs channel tiling of conv1"
    Wp, Hq = W + 2, H + 3          # +1 top halo row, +2 bottom rows (halo + tap slack)
    L, HWp = Hq * Wp, H * Wp

    # --- one-time boundary packing (small input; no per-layer pads) -----------
    x = jnp.transpose(x_nchw, (0, 2, 3, 1))                       # NCHW -> NHWC
    xp = jnp.pad(x, ((0, 0), (1, 2), (1, 1), (0, C - Cin)))       # spatial + channel pad
    xp = xp.reshape(N, L, C).astype(jnp.bfloat16)

    def prep_w(w):                 # (3,3,ci,co) -> (9,128,128) bf16, zero-padded channels
        ci, co = w.shape[2], w.shape[3]
        wz = jnp.pad(w, ((0, 0), (0, 0), (0, C - ci), (0, C - co)))
        return wz.reshape(9, C, C).astype(jnp.bfloat16)

    def prep_b(b):
        return jnp.pad(b, (0, C - b.shape[0])).reshape(1, C).astype(jnp.float32)

    w1, w2, w3 = prep_w(params["w1"]), prep_w(params["w2"]), prep_w(params["w3"])
    b1, b2, b3 = prep_b(params["b1"]), prep_b(params["b2"]), prep_b(params["b3"])
    w4 = params["w4"].astype(jnp.float32).reshape(1, C)           # (128,1) -> (1,128)

    # valid-column mask for the flat padded layout
    mask = ((jnp.arange(HWp) % Wp) < W).astype(jnp.float32).reshape(HWp, 1)

    kernel = _build_fused_kernel(H, W)
    feat_flat, obj_flat = pl.pallas_call(
        kernel,
        out_shape=(jax.ShapeDtypeStruct((N, HWp, C), jnp.float32),
                   jax.ShapeDtypeStruct((N, HWp, 1), jnp.float32)),
        grid=(N,),
        in_specs=[
            pl.BlockSpec((None, L, C), lambda n: (n, 0, 0)),      # x (per image)
            pl.BlockSpec((9, C, C), lambda n: (0, 0, 0)),         # w1
            pl.BlockSpec((1, C), lambda n: (0, 0)),               # b1
            pl.BlockSpec((9, C, C), lambda n: (0, 0, 0)),         # w2
            pl.BlockSpec((1, C), lambda n: (0, 0)),               # b2
            pl.BlockSpec((9, C, C), lambda n: (0, 0, 0)),         # w3
            pl.BlockSpec((1, C), lambda n: (0, 0)),               # b3
            pl.BlockSpec((1, C), lambda n: (0, 0)),               # w4
            pl.BlockSpec((HWp, 1), lambda n: (0, 0)),             # column mask
        ],
        out_specs=(pl.BlockSpec((None, HWp, C), lambda n: (n, 0, 0)),   # feat
                   pl.BlockSpec((None, HWp, 1), lambda n: (n, 0, 0))),  # conv4 out
        scratch_shapes=[pltpu.VMEM((L, C), jnp.bfloat16),         # padded activation buf
                        pltpu.VMEM((HWp, C), jnp.float32)],       # f32 accumulator
        compiler_params=pltpu.CompilerParams(
            dimension_semantics=("parallel",)),
    )(xp, w1, b1, w2, b2, w3, b3, w4, mask)

    # unpack the flat padded layouts (cheap XLA slices on small tensors)
    feat = feat_flat.reshape(N, H, Wp, C)[:, :, :W, :]            # (N,H,W,128)
    obj = obj_flat.reshape(N, H, Wp)[:, :, :W]                    # (N,H,W)
    return obj[:, None, :, :], jnp.transpose(feat, (0, 3, 1, 2))  # NCHW outputs


# ---------------------------------------------------------------------------
# Pure-JAX reference (f32, XLA convs) for correctness checking
# ---------------------------------------------------------------------------
def _ref_forward(x_nchw, params):
    dn = ("NHWC", "HWIO", "NHWC")
    x = jnp.transpose(x_nchw, (0, 2, 3, 1))

    def conv(y, w, b, pad):
        o = lax.conv_general_dilated(y, w, (1, 1), [(pad, pad), (pad, pad)],
                                     dimension_numbers=dn)
        return o if b is None else o + b

    x = jax.nn.relu(conv(x, params["w1"], params["b1"], 1))
    x = jax.nn.relu(conv(x, params["w2"], params["b2"], 1))
    feat = jax.nn.relu(conv(x, params["w3"], params["b3"], 1))
    w4 = params["w4"].reshape(1, 1, params["w4"].shape[0], params["w4"].shape[1])
    out = conv(feat, w4, None, 0)
    return jnp.transpose(out, (0, 3, 1, 2)), jnp.transpose(feat, (0, 3, 1, 2))


# ---------------------------------------------------------------------------
if __name__ == "__main__":
    # Small shapes consistent with the module: dout_base_model = 4
    N, Cdim, H, W = 2, 4, 16, 16

    key = jax.random.PRNGKey(0)
    k_x, k1, k2, k3, k4, kb1, kb2, kb3 = jax.random.split(key, 8)
    s = 0.1  # weight scale chosen so activations are O(0.1-1) -> meaningful bf16 check

    params = {
        "w1": jax.random.normal(k1, (3, 3, Cdim, Cdim), jnp.float32) * s,
        "b1": jax.random.normal(kb1, (Cdim,), jnp.float32) * s,
        "w2": jax.random.normal(k2, (3, 3, Cdim, 128), jnp.float32) * s,
        "b2": jax.random.normal(kb2, (128,), jnp.float32) * s,
        "w3": jax.random.normal(k3, (3, 3, 128, 128), jnp.float32) * s,
        "b3": jax.random.normal(kb3, (128,), jnp.float32) * s,
        "w4": jax.random.normal(k4, (128, 1), jnp.float32) * s,
    }
    x = jax.random.normal(k_x, (N, Cdim, H, W), jnp.float32)

    fwd = jax.jit(object_pre_forward)
    out, feat = jax.block_until_ready(fwd(x, params))

    assert out.shape == (N, 1, H, W), out.shape
    assert feat.shape == (N, 128, H, W), feat.shape

    # correctness vs. f32 XLA conv reference (bf16 MXU operands => loosened tol)
    ref_out, ref_feat = jax.block_until_ready(_ref_forward(x, params))
    np.testing.assert_allclose(np.asarray(out), np.asarray(ref_out),
                               rtol=5e-2, atol=2e-2)
    np.testing.assert_allclose(np.asarray(feat), np.asarray(ref_feat),
                               rtol=5e-2, atol=2e-2)

    print("KERNEL_OK")
</pallas_src>

<mosaic_0001>
module attributes {stable_mosaic.version = 11 : i64} {
  func.func @kernel(%arg0: i32, %arg1: memref<1x342x128xbf16, #tpu.memory_space<vmem>>, %arg2: memref<9x128x128xbf16, #tpu.memory_space<vmem>>, %arg3: memref<1x128xf32, #tpu.memory_space<vmem>>, %arg4: memref<9x128x128xbf16, #tpu.memory_space<vmem>>, %arg5: memref<1x128xf32, #tpu.memory_space<vmem>>, %arg6: memref<9x128x128xbf16, #tpu.memory_space<vmem>>, %arg7: memref<1x128xf32, #tpu.memory_space<vmem>>, %arg8: memref<1x128xf32, #tpu.memory_space<vmem>>, %arg9: memref<288x1xf32, #tpu.memory_space<vmem>>, %arg10: memref<1x288x128xf32, #tpu.memory_space<vmem>>, %arg11: memref<1x288x1xf32, #tpu.memory_space<vmem>>, %arg12: memref<342x128xbf16, #tpu.memory_space<vmem>>, %arg13: memref<288x128xf32, #tpu.memory_space<vmem>>) attributes {dimension_semantics = [#tpu.dimension_semantics<parallel>], iteration_bounds = array<i64: 2>, scalar_prefetch = 0 : i64, scratch_operands = 2 : i64, tpu.core_type = #tpu.core_type<tc>, window_params = [{transform_indices = @transform_0, window_bounds = array<i64: 1, 342, 128>}, {pipeline_mode = #tpu.pipeline_mode<synchronous>, transform_indices = @transform_1, window_bounds = array<i64: 9, 128, 128>}, {pipeline_mode = #tpu.pipeline_mode<synchronous>, transform_indices = @transform_2, window_bounds = array<i64: 1, 128>}, {pipeline_mode = #tpu.pipeline_mode<synchronous>, transform_indices = @transform_3, window_bounds = array<i64: 9, 128, 128>}, {pipeline_mode = #tpu.pipeline_mode<synchronous>, transform_indices = @transform_4, window_bounds = array<i64: 1, 128>}, {pipeline_mode = #tpu.pipeline_mode<synchronous>, transform_indices = @transform_5, window_bounds = array<i64: 9, 128, 128>}, {pipeline_mode = #tpu.pipeline_mode<synchronous>, transform_indices = @transform_6, window_bounds = array<i64: 1, 128>}, {pipeline_mode = #tpu.pipeline_mode<synchronous>, transform_indices = @transform_7, window_bounds = array<i64: 1, 128>}, {pipeline_mode = #tpu.pipeline_mode<synchronous>, transform_indices = @transform_8, window_bounds = array<i64: 288, 1>}, {transform_indices = @transform_9, window_bounds = array<i64: 1, 288, 128>}, {transform_indices = @transform_10, window_bounds = array<i64: 1, 288, 1>}]} {
    %cst = arith.constant 0.000000e+00 : bf16
    %0 = vector.broadcast %cst : bf16 to vector<342x128xbf16>
    %c0 = arith.constant 0 : index
    %c0_0 = arith.constant 0 : index
    %1 = vector.load %arg12[%c0, %c0_0] : memref<342x128xbf16, #tpu.memory_space<vmem>>, vector<342x128xbf16>
    tpu.vector_store %arg12[%c0, %c0_0], %0 {strides = array<i32>} : memref<342x128xbf16, #tpu.memory_space<vmem>>, vector<342x128xbf16>,
    %c0_1 = arith.constant 0 : index
    %c0_2 = arith.constant 0 : index
    %c0_3 = arith.constant 0 : index
    %2 = vector.load %arg1[%c0_1, %c0_2, %c0_3] : memref<1x342x128xbf16, #tpu.memory_space<vmem>>, vector<1x288x128xbf16>
    %3 = vector.shape_cast %2 : vector<1x288x128xbf16> to vector<288x128xbf16>
    %c0_4 = arith.constant 0 : index
    %c0_5 = arith.constant 0 : index
    %c0_6 = arith.constant 0 : index
    %4 = vector.load %arg2[%c0_4, %c0_5, %c0_6] : memref<9x128x128xbf16, #tpu.memory_space<vmem>>, vector<1x128x128xbf16>
    %5 = vector.shape_cast %4 : vector<1x128x128xbf16> to vector<128x128xbf16>
    %cst_7 = arith.constant dense<0.000000e+00> : vector<288x128xf32>
    %6 = tpu.matmul %3, %5, %cst_7 {dimension_numbers = #tpu.dot_dimension_numbers<[1], [0], [0], [1], [0, 0, 1, 1], [], []>} : vector<288x128xbf16>, vector<128x128xbf16>, vector<288x128xf32> -> vector<288x128xf32>
    %c0_8 = arith.constant 0 : index
    %c0_9 = arith.constant 0 : index
    %7 = vector.load %arg13[%c0_8, %c0_9] : memref<288x128xf32, #tpu.memory_space<vmem>>, vector<288x128xf32>
    tpu.vector_store %arg13[%c0_8, %c0_9], %6 {strides = array<i32>} : memref<288x128xf32, #tpu.memory_space<vmem>>, vector<288x128xf32>,
    %c0_10 = arith.constant 0 : index
    %c0_11 = arith.constant 0 : index
    %8 = vector.load %arg13[%c0_10, %c0_11] : memref<288x128xf32, #tpu.memory_space<vmem>>, vector<288x128xf32>
    %c0_12 = arith.constant 0 : index
    %c1 = arith.constant 1 : index
    %c0_13 = arith.constant 0 : index
    %9 = vector.load %arg1[%c0_12, %c1, %c0_13] : memref<1x342x128xbf16, #tpu.memory_space<vmem>>, vector<1x288x128xbf16>
    %10 = vector.shape_cast %9 : vector<1x288x128xbf16> to vector<288x128xbf16>
    %c1_14 = arith.constant 1 : index
    %c0_15 = arith.constant 0 : index
    %c0_16 = arith.constant 0 : index
    %11 = vector.load %arg2[%c1_14, %c0_15, %c0_16] : memref<9x128x128xbf16, #tpu.memory_space<vmem>>, vector<1x128x128xbf16>
    %12 = vector.shape_cast %11 : vector<1x128x128xbf16> to vector<128x128xbf16>
    %cst_17 = arith.constant dense<0.000000e+00> : vector<288x128xf32>
    %13 = tpu.matmul %10, %12, %cst_17 {dimension_numbers = #tpu.dot_dimension_numbers<[1], [0], [0], [1], [0, 0, 1, 1], [], []>} : vector<288x128xbf16>, vector<128x128xbf16>, vector<288x128xf32> -> vector<288x128xf32>
    %14 = arith.addf %8, %13 : vector<288x128xf32>
    %c0_18 = arith.constant 0 : index
    %c0_19 = arith.constant 0 : index
    %15 = vector.load %arg13[%c0_18, %c0_19] : memref<288x128xf32, #tpu.memory_space<vmem>>, vector<288x128xf32>
    tpu.vector_store %arg13[%c0_18, %c0_19], %14 {strides = array<i32>} : memref<288x128xf32, #tpu.memory_space<vmem>>, vector<288x128xf32>,
    %c0_20 = arith.constant 0 : index
    %c0_21 = arith.constant 0 : index
    %16 = vector.load %arg13[%c0_20, %c0_21] : memref<288x128xf32, #tpu.memory_space<vmem>>, vector<288x128xf32>
    %c0_22 = arith.constant 0 : index
    %c2 = arith.constant 2 : index
    %c0_23 = arith.constant 0 : index
    %17 = vector.load %arg1[%c0_22, %c2, %c0_23] : memref<1x342x128xbf16, #tpu.memory_space<vmem>>, vector<1x288x128xbf16>
    %18 = vector.shape_cast %17 : vector<1x288x128xbf16> to vector<288x128xbf16>
    %c2_24 = arith.constant 2 : index
    %c0_25 = arith.constant 0 : index
    %c0_26 = arith.constant 0 : index
    %19 = vector.load %arg2[%c2_24, %c0_25, %c0_26] : memref<9x128x128xbf16, #tpu.memory_space<vmem>>, vector<1x128x128xbf16>
    %20 = vector.shape_cast %19 : vector<1x128x128xbf16> to vector<128x128xbf16>
    %cst_27 = arith.constant dense<0.000000e+00> : vector<288x128xf32>
    %21 = tpu.matmul %18, %20, %cst_27 {dimension_numbers = #tpu.dot_dimension_numbers<[1], [0], [0], [1], [0, 0, 1, 1], [], []>} : vector<288x128xbf16>, vector<128x128xbf16>, vector<288x128xf32> -> vector<288x128xf32>
    %22 = arith.addf %16, %21 : vector<288x128xf32>
    %c0_28 = arith.constant 0 : index
    %c0_29 = arith.constant 0 : index
    %23 = vector.load %arg13[%c0_28, %c0_29] : memref<288x128xf32, #tpu.memory_space<vmem>>, vector<288x128xf32>
    tpu.vector_store %arg13[%c0_28, %c0_29], %22 {strides = array<i32>} : memref<288x128xf32, #tpu.memory_space<vmem>>, vector<288x128xf32>,
    %c0_30 = arith.constant 0 : index
    %c0_31 = arith.constant 0 : index
    %24 = vector.load %arg13[%c0_30, %c0_31] : memref<288x128xf32, #tpu.memory_space<vmem>>, vector<288x128xf32>
    %c0_32 = arith.constant 0 : index
    %c18 = arith.constant 18 : index
    %c0_33 = arith.constant 0 : index
    %25 = vector.load %arg1[%c0_32, %c18, %c0_33] : memref<1x342x128xbf16, #tpu.memory_space<vmem>>, vector<1x288x128xbf16>
    %26 = vector.shape_cast %25 : vector<1x288x128xbf16> to vector<288x128xbf16>
    %c3 = arith.constant 3 : index
    %c0_34 = arith.constant 0 : index
    %c0_35 = arith.constant 0 : index
    %27 = vector.load %arg2[%c3, %c0_34, %c0_35] : memref<9x128x128xbf16, #tpu.memory_space<vmem>>, vector<1x128x128xbf16>
    %28 = vector.shape_cast %27 : vector<1x128x128xbf16> to vector<128x128xbf16>
    %cst_36 = arith.constant dense<0.000000e+00> : vector<288x128xf32>
    %29 = tpu.matmul %26, %28, %cst_36 {dimension_numbers = #tpu.dot_dimension_numbers<[1], [0], [0], [1], [0, 0, 1, 1], [], []>} : vector<288x128xbf16>, vector<128x128xbf16>, vector<288x128xf32> -> vector<288x128xf32>
    %30 = arith.addf %24, %29 : vector<288x128xf32>
    %c0_37 = arith.constant 0 : index
    %c0_38 = arith.constant 0 : index
    %31 = vector.load %arg13[%c0_37, %c0_38] : memref<288x128xf32, #tpu.memory_space<vmem>>, vector<288x128xf32>
    tpu.vector_store %arg13[%c0_37, %c0_38], %30 {strides = array<i32>} : memref<288x128xf32, #tpu.memory_space<vmem>>, vector<288x128xf32>,
    %c0_39 = arith.constant 0 : index
    %c0_40 = arith.constant 0 : index
    %32 = vector.load %arg13[%c0_39, %c0_40] : memref<288x128xf32, #tpu.memory_space<vmem>>, vector<288x128xf32>
    %c0_41 = arith.constant 0 : index
    %c19 = arith.constant 19 : index
    %c0_42 = arith.constant 0 : index
    %33 = vector.load %arg1[%c0_41, %c19, %c0_42] : memref<1x342x128xbf16, #tpu.memory_space<vmem>>, vector<1x288x128xbf16>
    %34 = vector.shape_cast %33 : vector<1x288x128xbf16> to vector<288x128xbf16>
    %c4 = arith.constant 4 : index
    %c0_43 = arith.constant 0 : index
    %c0_44 = arith.constant 0 : index
    %35 = vector.load %arg2[%c4, %c0_43, %c0_44] : memref<9x128x128xbf16, #tpu.memory_space<vmem>>, vector<1x128x128xbf16>
    %36 = vector.shape_cast %35 : vector<1x128x128xbf16> to vector<128x128xbf16>
    %cst_45 = arith.constant dense<0.000000e+00> : vector<288x128xf32>
    %37 = tpu.matmul %34, %36, %cst_45 {dimension_numbers = #tpu.dot_dimension_numbers<[1], [0], [0], [1], [0, 0, 1, 1], [], []>} : vector<288x128xbf16>, vector<128x128xbf16>, vector<288x128xf32> -> vector<288x128xf32>
    %38 = arith.addf %32, %37 : vector<288x128xf32>
    %c0_46 = arith.constant 0 : index
    %c0_47 = arith.constant 0 : index
    %39 = vector.load %arg13[%c0_46, %c0_47] : memref<288x128xf32, #tpu.memory_space<vmem>>, vector<288x128xf32>
    tpu.vector_store %arg13[%c0_46, %c0_47], %38 {strides = array<i32>} : memref<288x128xf32, #tpu.memory_space<vmem>>, vector<288x128xf32>,
    %c0_48 = arith.constant 0 : index
    %c0_49 = arith.constant 0 : index
    %40 = vector.load %arg13[%c0_48, %c0_49] : memref<288x128xf32, #tpu.memory_space<vmem>>, vector<288x128xf32>
    %c0_50 = arith.constant 0 : index
    %c20 = arith.constant 20 : index
    %c0_51 = arith.constant 0 : index
    %41 = vector.load %arg1[%c0_50, %c20, %c0_51] : memref<1x342x128xbf16, #tpu.memory_space<vmem>>, vector<1x288x128xbf16>
    %42 = vector.shape_cast %41 : vector<1x288x128xbf16> to vector<288x128xbf16>
    %c5 = arith.constant 5 : index
    %c0_52 = arith.constant 0 : index
    %c0_53 = arith.constant 0 : index
    %43 = vector.load %arg2[%c5, %c0_52, %c0_53] : memref<9x128x128xbf16, #tpu.memory_space<vmem>>, vector<1x128x128xbf16>
    %44 = vector.shape_cast %43 : vector<1x128x128xbf16> to vector<128x128xbf16>
    %cst_54 = arith.constant dense<0.000000e+00> : vector<288x128xf32>
    %45 = tpu.matmul %42, %44, %cst_54 {dimension_numbers = #tpu.dot_dimension_numbers<[1], [0], [0], [1], [0, 0, 1, 1], [], []>} : vector<288x128xbf16>, vector<128x128xbf16>, vector<288x128xf32> -> vector<288x128xf32>
    %46 = arith.addf %40, %45 : vector<288x128xf32>
    %c0_55 = arith.constant 0 : index
    %c0_56 = arith.constant 0 : index
    %47 = vector.load %arg13[%c0_55, %c0_56] : memref<288x128xf32, #tpu.memory_space<vmem>>, vector<288x128xf32>
    tpu.vector_store %arg13[%c0_55, %c0_56], %46 {strides = array<i32>} : memref<288x128xf32, #tpu.memory_space<vmem>>, vector<288x128xf32>,
    %c0_57 = arith.constant 0 : index
    %c0_58 = arith.constant 0 : index
    %48 = vector.load %arg13[%c0_57, %c0_58] : memref<288x128xf32, #tpu.memory_space<vmem>>, vector<288x128xf32>
    %c0_59 = arith.constant 0 : index
    %c36 = arith.constant 36 : index
    %c0_60 = arith.constant 0 : index
    %49 = vector.load %arg1[%c0_59, %c36, %c0_60] : memref<1x342x128xbf16, #tpu.memory_space<vmem>>, vector<1x288x128xbf16>
    %50 = vector.shape_cast %49 : vector<1x288x128xbf16> to vector<288x128xbf16>
    %c6 = arith.constant 6 : index
    %c0_61 = arith.constant 0 : index
    %c0_62 = arith.constant 0 : index
    %51 = vector.load %arg2[%c6, %c0_61, %c0_62] : memref<9x128x128xbf16, #tpu.memory_space<vmem>>, vector<1x128x128xbf16>
    %52 = vector.shape_cast %51 : vector<1x128x128xbf16> to vector<128x128xbf16>
    %cst_63 = arith.constant dense<0.000000e+00> : vector<288x128xf32>
    %53 = tpu.matmul %50, %52, %cst_63 {dimension_numbers = #tpu.dot_dimension_numbers<[1], [0], [0], [1], [0, 0, 1, 1], [], []>} : vector<288x128xbf16>, vector<128x128xbf16>, vector<288x128xf32> -> vector<288x128xf32>
    %54 = arith.addf %48, %53 : vector<288x128xf32>
    %c0_64 = arith.constant 0 : index
    %c0_65 = arith.constant 0 : index
    %55 = vector.load %arg13[%c0_64, %c0_65] : memref<288x128xf32, #tpu.memory_space<vmem>>, vector<288x128xf32>
    tpu.vector_store %arg13[%c0_64, %c0_65], %54 {strides = array<i32>} : memref<288x128xf32, #tpu.memory_space<vmem>>, vector<288x128xf32>,
    %c0_66 = arith.constant 0 : index
    %c0_67 = arith.constant 0 : index
    %56 = vector.load %arg13[%c0_66, %c0_67] : memref<288x128xf32, #tpu.memory_space<vmem>>, vector<288x128xf32>
    %c0_68 = arith.constant 0 : index
    %c37 = arith.constant 37 : index
    %c0_69 = arith.constant 0 : index
    %57 = vector.load %arg1[%c0_68, %c37, %c0_69] : memref<1x342x128xbf16, #tpu.memory_space<vmem>>, vector<1x288x128xbf16>
    %58 = vector.shape_cast %57 : vector<1x288x128xbf16> to vector<288x128xbf16>
    %c7 = arith.constant 7 : index
    %c0_70 = arith.constant 0 : index
    %c0_71 = arith.constant 0 : index
    %59 = vector.load %arg2[%c7, %c0_70, %c0_71] : memref<9x128x128xbf16, #tpu.memory_space<vmem>>, vector<1x128x128xbf16>
    %60 = vector.shape_cast %59 : vector<1x128x128xbf16> to vector<128x128xbf16>
    %cst_72 = arith.constant dense<0.000000e+00> : vector<288x128xf32>
    %61 = tpu.matmul %58, %60, %cst_72 {dimension_numbers = #tpu.dot_dimension_numbers<[1], [0], [0], [1], [0, 0, 1, 1], [], []>} : vector<288x128xbf16>, vector<128x128xbf16>, vector<288x128xf32> -> vector<288x128xf32>
    %62 = arith.addf %56, %61 : vector<288x128xf32>
    %c0_73 = arith.constant 0 : index
    %c0_74 = arith.constant 0 : index
    %63 = vector.load %arg13[%c0_73, %c0_74] : memref<288x128xf32, #tpu.memory_space<vmem>>, vector<288x128xf32>
    tpu.vector_store %arg13[%c0_73, %c0_74], %62 {strides = array<i32>} : memref<288x128xf32, #tpu.memory_space<vmem>>, vector<288x128xf32>,
    %c0_75 = arith.constant 0 : index
    %c0_76 = arith.constant 0 : index
    %64 = vector.load %arg13[%c0_75, %c0_76] : memref<288x128xf32, #tpu.memory_space<vmem>>, vector<288x128xf32>
    %c0_77 = arith.constant 0 : index
    %c38 = arith.constant 38 : index
    %c0_78 = arith.constant 0 : index
    %65 = vector.load %arg1[%c0_77, %c38, %c0_78] : memref<1x342x128xbf16, #tpu.memory_space<vmem>>, vector<1x288x128xbf16>
    %66 = vector.shape_cast %65 : vector<1x288x128xbf16> to vector<288x128xbf16>
    %c8 = arith.constant 8 : index
    %c0_79 = arith.constant 0 : index
    %c0_80 = arith.constant 0 : index
    %67 = vector.load %arg2[%c8, %c0_79, %c0_80] : memref<9x128x128xbf16, #tpu.memory_space<vmem>>, vector<1x128x128xbf16>
    %68 = vector.shape_cast %67 : vector<1x128x128xbf16> to vector<128x128xbf16>
    %cst_81 = arith.constant dense<0.000000e+00> : vector<288x128xf32>
    %69 = tpu.matmul %66, %68, %cst_81 {dimension_numbers = #tpu.dot_dimension_numbers<[1], [0], [0], [1], [0, 0, 1, 1], [], []>} : vector<288x128xbf16>, vector<128x128xbf16>, vector<288x128xf32> -> vector<288x128xf32>
    %70 = arith.addf %64, %69 : vector<288x128xf32>
    %c0_82 = arith.constant 0 : index
    %c0_83 = arith.constant 0 : index
    %71 = vector.load %arg13[%c0_82, %c0_83] : memref<288x128xf32, #tpu.memory_space<vmem>>, vector<288x128xf32>
    tpu.vector_store %arg13[%c0_82, %c0_83], %70 {strides = array<i32>} : memref<288x128xf32, #tpu.memory_space<vmem>>, vector<288x128xf32>,
    %c0_84 = arith.constant 0 : index
    %c0_85 = arith.constant 0 : index
    %72 = vector.load %arg13[%c0_84, %c0_85] : memref<288x128xf32, #tpu.memory_space<vmem>>, vector<288x128xf32>
    %c0_86 = arith.constant 0 : index
    %c0_87 = arith.constant 0 : index
    %73 = vector.load %arg3[%c0_86, %c0_87] : memref<1x128xf32, #tpu.memory_space<vmem>>, vector<1x128xf32>
    %74 = vector.broadcast %73 : vector<1x128xf32> to vector<288x128xf32>
    %75 = arith.addf %72, %74 : vector<288x128xf32>
    %cst_88 = arith.constant 0.000000e+00 : f32
    %76 = vector.broadcast %cst_88 : f32 to vector<288x128xf32>
    %77 = arith.maximumf %75, %76 : vector<288x128xf32>
    %c0_89 = arith.constant 0 : index
    %c0_90 = arith.constant 0 : index
    %78 = vector.load %arg9[%c0_89, %c0_90] : memref<288x1xf32, #tpu.memory_space<vmem>>, vector<288x1xf32>
    %79 = vector.broadcast %78 : vector<288x1xf32> to vector<288x128xf32>
    %80 = arith.mulf %77, %79 : vector<288x128xf32>
    %81 = arith.truncf %80 : vector<288x128xf32> to vector<288x128xbf16>
    %c19_91 = arith.constant 19 : index
    %c0_92 = arith.constant 0 : index
    %82 = vector.load %arg12[%c19_91, %c0_92] : memref<342x128xbf16, #tpu.memory_space<vmem>>, vector<288x128xbf16>
    tpu.vector_store %arg12[%c19_91, %c0_92], %81 {strides = array<i32>} : memref<342x128xbf16, #tpu.memory_space<vmem>>, vector<288x128xbf16>,
    %c0_93 = arith.constant 0 : index
    %c0_94 = arith.constant 0 : index
    %83 = vector.load %arg12[%c0_93, %c0_94] : memref<342x128xbf16, #tpu.memory_space<vmem>>, vector<288x128xbf16>
    %c0_95 = arith.constant 0 : index
    %c0_96 = arith.constant 0 : index
    %c0_97 = arith.constant 0 : index
    %84 = vector.load %arg4[%c0_95, %c0_96, %c0_97] : memref<9x128x128xbf16, #tpu.memory_space<vmem>>, vector<1x128x128xbf16>
    %85 = vector.shape_cast %84 : vector<1x128x128xbf16> to vector<128x128xbf16>
    %cst_98 = arith.constant dense<0.000000e+00> : vector<288x128xf32>
    %86 = tpu.matmul %83, %85, %cst_98 {dimension_numbers = #tpu.dot_dimension_numbers<[1], [0], [0], [1], [0, 0, 1, 1], [], []>} : vector<288x128xbf16>, vector<128x128xbf16>, vector<288x128xf32> -> vector<288x128xf32>
    %c0_99 = arith.constant 0 : index
    %c0_100 = arith.constant 0 : index
    %87 = vector.load %arg13[%c0_99, %c0_100] : memref<288x128xf32, #tpu.memory_space<vmem>>, vector<288x128xf32>
    tpu.vector_store %arg13[%c0_99, %c0_100], %86 {strides = array<i32>} : memref<288x128xf32, #tpu.memory_space<vmem>>, vector<288x128xf32>,
    %c0_101 = arith.constant 0 : index
    %c0_102 = arith.constant 0 : index
    %88 = vector.load %arg13[%c0_101, %c0_102] : memref<288x128xf32, #tpu.memory_space<vmem>>, vector<288x128xf32>
    %c1_103 = arith.constant 1 : index
    %c0_104 = arith.constant 0 : index
    %89 = vector.load %arg12[%c1_103, %c0_104] : memref<342x128xbf16, #tpu.memory_space<vmem>>, vector<288x128xbf16>
    %c1_105 = arith.constant 1 : index
    %c0_106 = arith.constant 0 : index
    %c0_107 = arith.constant 0 : index
    %90 = vector.load %arg4[%c1_105, %c0_106, %c0_107] : memref<9x128x128xbf16, #tpu.memory_space<vmem>>, vector<1x128x128xbf16>
    %91 = vector.shape_cast %90 : vector<1x128x128xbf16> to vector<128x128xbf16>
    %cst_108 = arith.constant dense<0.000000e+00> : vector<288x128xf32>
    %92 = tpu.matmul %89, %91, %cst_108 {dimension_numbers = #tpu.dot_dimension_numbers<[1], [0], [0], [1], [0, 0, 1, 1], [], []>} : vector<288x128xbf16>, vector<128x128xbf16>, vector<288x128xf32> -> vector<288x128xf32>
    %93 = arith.addf %88, %92 : vector<288x128xf32>
    %c0_109 = arith.constant 0 : index
    %c0_110 = arith.constant 0 : index
    %94 = vector.load %arg13[%c0_109, %c0_110] : memref<288x128xf32, #tpu.memory_space<vmem>>, vector<288x128xf32>
    tpu.vector_store %arg13[%c0_109, %c0_110], %93 {strides = array<i32>} : memref<288x128xf32, #tpu.memory_space<vmem>>, vector<288x128xf32>,
    %c0_111 = arith.constant 0 : index
    %c0_112 = arith.constant 0 : index
    %95 = vector.load %arg13[%c0_111, %c0_112] : memref<288x128xf32, #tpu.memory_space<vmem>>, vector<288x128xf32>
    %c2_113 = arith.constant 2 : index
    %c0_114 = arith.constant 0 : index
    %96 = vector.load %arg12[%c2_113, %c0_114] : memref<342x128xbf16, #tpu.memory_space<vmem>>, vector<288x128xbf16>
    %c2_115 = arith.constant 2 : index
    %c0_116 = arith.constant 0 : index
    %c0_117 = arith.constant 0 : index
    %97 = vector.load %arg4[%c2_115, %c0_116, %c0_117] : memref<9x128x128xbf16, #tpu.memory_space<vmem>>, vector<1x128x128xbf16>
    %98 = vector.shape_cast %97 : vector<1x128x128xbf16> to vector<128x128xbf16>
    %cst_118 = arith.constant dense<0.000000e+00> : vector<288x128xf32>
    %99 = tpu.matmul %96, %98, %cst_118 {dimension_numbers = #tpu.dot_dimension_numbers<[1], [0], [0], [1], [0, 0, 1, 1], [], []>} : vector<288x128xbf16>, vector<128x128xbf16>, vector<288x128xf32> -> vector<288x128xf32>
    %100 = arith.addf %95, %99 : vector<288x128xf32>
    %c0_119 = arith.constant 0 : index
    %c0_120 = arith.constant 0 : index
    %101 = vector.load %arg13[%c0_119, %c0_120] : memref<288x128xf32, #tpu.memory_space<vmem>>, vector<288x128xf32>
    tpu.vector_store %arg13[%c0_119, %c0_120], %100 {strides = array<i32>} : memref<288x128xf32, #tpu.memory_space<vmem>>, vector<288x128xf32>,
    %c0_121 = arith.constant 0 : index
    %c0_122 = arith.constant 0 : index
    %102 = vector.load %arg13[%c0_121, %c0_122] : memref<288x128xf32, #tpu.memory_space<vmem>>, vector<288x128xf32>
    %c18_123 = arith.constant 18 : index
    %c0_124 = arith.constant 0 : index
    %103 = vector.load %arg12[%c18_123, %c0_124] : memref<342x128xbf16, #tpu.memory_space<vmem>>, vector<288x128xbf16>
    %c3_125 = arith.constant 3 : index
    %c0_126 = arith.constant 0 : index
    %c0_127 = arith.constant 0 : index
    %104 = vector.load %arg4[%c3_125, %c0_126, %c0_127] : memref<9x128x128xbf16, #tpu.memory_space<vmem>>, vector<1x128x128xbf16>
    %105 = vector.shape_cast %104 : vector<1x128x128xbf16> to vector<128x128xbf16>
    %cst_128 = arith.constant dense<0.000000e+00> : vector<288x128xf32>
    %106 = tpu.matmul %103, %105, %cst_128 {dimension_numbers = #tpu.dot_dimension_numbers<[1], [0], [0], [1], [0, 0, 1, 1], [], []>} : vector<288x128xbf16>, vector<128x128xbf16>, vector<288x128xf32> -> vector<288x128xf32>
    %107 = arith.addf %102, %106 : vector<288x128xf32>
    %c0_129 = arith.constant 0 : index
    %c0_130 = arith.constant 0 : index
    %108 = vector.load %arg13[%c0_129, %c0_130] : memref<288x128xf32, #tpu.memory_space<vmem>>, vector<288x128xf32>
    tpu.vector_store %arg13[%c0_129, %c0_130], %107 {strides = array<i32>} : memref<288x128xf32, #tpu.memory_space<vmem>>, vector<288x128xf32>,
    %c0_131 = arith.constant 0 : index
    %c0_132 = arith.constant 0 : index
    %109 = vector.load %arg13[%c0_131, %c0_132] : memref<288x128xf32, #tpu.memory_space<vmem>>, vector<288x128xf32>
    %c19_133 = arith.constant 19 : index
    %c0_134 = arith.constant 0 : index
    %110 = vector.load %arg12[%c19_133, %c0_134] : memref<342x128xbf16, #tpu.memory_space<vmem>>, vector<288x128xbf16>
    %c4_135 = arith.constant 4 : index
    %c0_136 = arith.constant 0 : index
    %c0_137 = arith.constant 0 : index
    %111 = vector.load %arg4[%c4_135, %c0_136, %c0_137] : memref<9x128x128xbf16, #tpu.memory_space<vmem>>, vector<1x128x128xbf16>
    %112 = vector.shape_cast %111 : vector<1x128x128xbf16> to vector<128x128xbf16>
    %cst_138 = arith.constant dense<0.000000e+00> : vector<288x128xf32>
    %113 = tpu.matmul %110, %112, %cst_138 {dimension_numbers = #tpu.dot_dimension_numbers<[1], [0], [0], [1], [0, 0, 1, 1], [], []>} : vector<288x128xbf16>, vector<128x128xbf16>, vector<288x128xf32> -> vector<288x128xf32>
    %114 = arith.addf %109, %113 : vector<288x128xf32>
    %c0_139 = arith.constant 0 : index
    %c0_140 = arith.constant 0 : index
    %115 = vector.load %arg13[%c0_139, %c0_140] : memref<288x128xf32, #tpu.memory_space<vmem>>, vector<288x128xf32>
    tpu.vector_store %arg13[%c0_139, %c0_140], %114 {strides = array<i32>} : memref<288x128xf32, #tpu.memory_space<vmem>>, vector<288x128xf32>,
    %c0_141 = arith.constant 0 : index
    %c0_142 = arith.constant 0 : index
    %116 = vector.load %arg13[%c0_141, %c0_142] : memref<288x128xf32, #tpu.memory_space<vmem>>, vector<288x128xf32>
    %c20_143 = arith.constant 20 : index
    %c0_144 = arith.constant 0 : index
    %117 = vector.load %arg12[%c20_143, %c0_144] : memref<342x128xbf16, #tpu.memory_space<vmem>>, vector<288x128xbf16>
    %c5_145 = arith.constant 5 : index
    %c0_146 = arith.constant 0 : index
    %c0_147 = arith.constant 0 : index
    %118 = vector.load %arg4[%c5_145, %c0_146, %c0_147] : memref<9x128x128xbf16, #tpu.memory_space<vmem>>, vector<1x128x128xbf16>
    %119 = vector.shape_cast %118 : vector<1x128x128xbf16> to vector<128x128xbf16>
    %cst_148 = arith.constant dense<0.000000e+00> : vector<288x128xf32>
    %120 = tpu.matmul %117, %119, %cst_148 {dimension_numbers = #tpu.dot_dimension_numbers<[1], [0], [0], [1], [0, 0, 1, 1], [], []>} : vector<288x128xbf16>, vector<128x128xbf16>, vector<288x128xf32> -> vector<288x128xf32>
    %121 = arith.addf %116, %120 : vector<288x128xf32>
    %c0_149 = arith.constant 0 : index
    %c0_150 = arith.constant 0 : index
    %122 = vector.load %arg13[%c0_149, %c0_150] : memref<288x128xf32, #tpu.memory_space<vmem>>, vector<288x128xf32>
    tpu.vector_store %arg13[%c0_149, %c0_150], %121 {strides = array<i32>} : memref<288x128xf32, #tpu.memory_space<vmem>>, vector<288x128xf32>,
    %c0_151 = arith.constant 0 : index
    %c0_152 = arith.constant 0 : index
    %123 = vector.load %arg13[%c0_151, %c0_152] : memref<288x128xf32, #tpu.memory_space<vmem>>, vector<288x128xf32>
    %c36_153 = arith.constant 36 : index
    %c0_154 = arith.constant 0 : index
    %124 = vector.load %arg12[%c36_153, %c0_154] : memref<342x128xbf16, #tpu.memory_space<vmem>>, vector<288x128xbf16>
    %c6_155 = arith.constant 6 : index
    %c0_156 = arith.constant 0 : index
    %c0_157 = arith.constant 0 : index
    %125 = vector.load %arg4[%c6_155, %c0_156, %c0_157] : memref<9x128x128xbf16, #tpu.memory_space<vmem>>, vector<1x128x128xbf16>
    %126 = vector.shape_cast %125 : vector<1x128x128xbf16> to vector<128x128xbf16>
    %cst_158 = arith.constant dense<0.000000e+00> : vector<288x128xf32>
    %127 = tpu.matmul %124, %126, %cst_158 {dimension_numbers = #tpu.dot_dimension_numbers<[1], [0], [0], [1], [0, 0, 1, 1], [], []>} : vector<288x128xbf16>, vector<128x128xbf16>, vector<288x128xf32> -> vector<288x128xf32>
    %128 = arith.addf %123, %127 : vector<288x128xf32>
    %c0_159 = arith.constant 0 : index
    %c0_160 = arith.constant 0 : index
    %129 = vector.load %arg13[%c0_159, %c0_160] : memref<288x128xf32, #tpu.memory_space<vmem>>, vector<288x128xf32>
    tpu.vector_store %arg13[%c0_159, %c0_160], %128 {strides = array<i32>} : memref<288x128xf32, #tpu.memory_space<vmem>>, vector<288x128xf32>,
    %c0_161 = arith.constant 0 : index
    %c0_162 = arith.constant 0 : index
    %130 = vector.load %arg13[%c0_161, %c0_162] : memref<288x128xf32, #tpu.memory_space<vmem>>, vector<288x128xf32>
    %c37_163 = arith.constant 37 : index
    %c0_164 = arith.constant 0 : index
    %131 = vector.load %arg12[%c37_163, %c0_164] : memref<342x128xbf16, #tpu.memory_space<vmem>>, vector<288x128xbf16>
    %c7_165 = arith.constant 7 : index
    %c0_166 = arith.constant 0 : index
    %c0_167 = arith.constant 0 : index
    %132 = vector.load %arg4[%c7_165, %c0_166, %c0_167] : memref<9x128x128xbf16, #tpu.memory_space<vmem>>, vector<1x128x128xbf16>
    %133 = vector.shape_cast %132 : vector<1x128x128xbf16> to vector<128x128xbf16>
    %cst_168 = arith.constant dense<0.000000e+00> : vector<288x128xf32>
    %134 = tpu.matmul %131, %133, %cst_168 {dimension_numbers = #tpu.dot_dimension_numbers<[1], [0], [0], [1], [0, 0, 1, 1], [], []>} : vector<288x128xbf16>, vector<128x128xbf16>, vector<288x128xf32> -> vector<288x128xf32>
    %135 = arith.addf %130, %134 : vector<288x128xf32>
    %c0_169 = arith.constant 0 : index
    %c0_170 = arith.constant 0 : index
    %136 = vector.load %arg13[%c0_169, %c0_170] : memref<288x128xf32, #tpu.memory_space<vmem>>, vector<288x128xf32>
    tpu.vector_store %arg13[%c0_169, %c0_170], %135 {strides = array<i32>} : memref<288x128xf32, #tpu.memory_space<vmem>>, vector<288x128xf32>,
    %c0_171 = arith.constant 0 : index
    %c0_172 = arith.constant 0 : index
    %137 = vector.load %arg13[%c0_171, %c0_172] : memref<288x128xf32, #tpu.memory_space<vmem>>, vector<288x128xf32>
    %c38_173 = arith.constant 38 : index
    %c0_174 = arith.constant 0 : index
    %138 = vector.load %arg12[%c38_173, %c0_174] : memref<342x128xbf16, #tpu.memory_space<vmem>>, vector<288x128xbf16>
    %c8_175 = arith.constant 8 : index
    %c0_176 = arith.constant 0 : index
    %c0_177 = arith.constant 0 : index
    %139 = vector.load %arg4[%c8_175, %c0_176, %c0_177] : memref<9x128x128xbf16, #tpu.memory_space<vmem>>, vector<1x128x128xbf16>
    %140 = vector.shape_cast %139 : vector<1x128x128xbf16> to vector<128x128xbf16>
    %cst_178 = arith.constant dense<0.000000e+00> : vector<288x128xf32>
    %141 = tpu.matmul %138, %140, %cst_178 {dimension_numbers = #tpu.dot_dimension_numbers<[1], [0], [0], [1], [0, 0, 1, 1], [], []>} : vector<288x128xbf16>, vector<128x128xbf16>, vector<288x128xf32> -> vector<288x128xf32>
    %142 = arith.addf %137, %141 : vector<288x128xf32>
    %c0_179 = arith.constant 0 : index
    %c0_180 = arith.constant 0 : index
    %143 = vector.load %arg13[%c0_179, %c0_180] : memref<288x128xf32, #tpu.memory_space<vmem>>, vector<288x128xf32>
    tpu.vector_store %arg13[%c0_179, %c0_180], %142 {strides = array<i32>} : memref<288x128xf32, #tpu.memory_space<vmem>>, vector<288x128xf32>,
    %c0_181 = arith.constant 0 : index
    %c0_182 = arith.constant 0 : index
    %144 = vector.load %arg13[%c0_181, %c0_182] : memref<288x128xf32, #tpu.memory_space<vmem>>, vector<288x128xf32>
    %c0_183 = arith.constant 0 : index
    %c0_184 = arith.constant 0 : index
    %145 = vector.load %arg5[%c0_183, %c0_184] : memref<1x128xf32, #tpu.memory_space<vmem>>, vector<1x128xf32>
    %146 = vector.broadcast %145 : vector<1x128xf32> to vector<288x128xf32>
    %147 = arith.addf %144, %146 : vector<288x128xf32>
    %cst_185 = arith.constant 0.000000e+00 : f32
    %148 = vector.broadcast %cst_185 : f32 to vector<288x128xf32>
    %149 = arith.maximumf %147, %148 : vector<288x128xf32>
    %c0_186 = arith.constant 0 : index
    %c0_187 = arith.constant 0 : index
    %150 = vector.load %arg9[%c0_186, %c0_187] : memref<288x1xf32, #tpu.memory_space<vmem>>, vector<288x1xf32>
    %151 = vector.broadcast %150 : vector<288x1xf32> to vector<288x128xf32>
    %152 = arith.mulf %149, %151 : vector<288x128xf32>
    %153 = arith.truncf %152 : vector<288x128xf32> to vector<288x128xbf16>
    %c19_188 = arith.constant 19 : index
    %c0_189 = arith.constant 0 : index
    %154 = vector.load %arg12[%c19_188, %c0_189] : memref<342x128xbf16, #tpu.memory_space<vmem>>, vector<288x128xbf16>
    tpu.vector_store %arg12[%c19_188, %c0_189], %153 {strides = array<i32>} : memref<342x128xbf16, #tpu.memory_space<vmem>>, vector<288x128xbf16>,
    %c0_190 = arith.constant 0 : index
    %c0_191 = arith.constant 0 : index
    %155 = vector.load %arg12[%c0_190, %c0_191] : memref<342x128xbf16, #tpu.memory_space<vmem>>, vector<288x128xbf16>
    %c0_192 = arith.constant 0 : index
    %c0_193 = arith.constant 0 : index
    %c0_194 = arith.constant 0 : index
    %156 = vector.load %arg6[%c0_192, %c0_193, %c0_194] : memref<9x128x128xbf16, #tpu.memory_space<vmem>>, vector<1x128x128xbf16>
    %157 = vector.shape_cast %156 : vector<1x128x128xbf16> to vector<128x128xbf16>
    %cst_195 = arith.constant dense<0.000000e+00> : vector<288x128xf32>
    %158 = tpu.matmul %155, %157, %cst_195 {dimension_numbers = #tpu.dot_dimension_numbers<[1], [0], [0], [1], [0, 0, 1, 1], [], []>} : vector<288x128xbf16>, vector<128x128xbf16>, vector<288x128xf32> -> vector<288x128xf32>
    %c0_196 = arith.constant 0 : index
    %c0_197 = arith.constant 0 : index
    %159 = vector.load %arg13[%c0_196, %c0_197] : memref<288x128xf32, #tpu.memory_space<vmem>>, vector<288x128xf32>
    tpu.vector_store %arg13[%c0_196, %c0_197], %158 {strides = array<i32>} : memref<288x128xf32, #tpu.memory_space<vmem>>, vector<288x128xf32>,
    %c0_198 = arith.constant 0 : index
    %c0_199 = arith.constant 0 : index
    %160 = vector.load %arg13[%c0_198, %c0_199] : memref<288x128xf32, #tpu.memory_space<vmem>>, vector<288x128xf32>
    %c1_200 = arith.constant 1 : index
    %c0_201 = arith.constant 0 : index
    %161 = vector.load %arg12[%c1_200, %c0_201] : memref<342x128xbf16, #tpu.memory_space<vmem>>, vector<288x128xbf16>
    %c1_202 = arith.constant 1 : index
    %c0_203 = arith.constant 0 : index
    %c0_204 = arith.constant 0 : index
    %162 = vector.load %arg6[%c1_202, %c0_203, %c0_204] : memref<9x128x128xbf16, #tpu.memory_space<vmem>>, vector<1x128x128xbf16>
    %163 = vector.shape_cast %162 : vector<1x128x128xbf16> to vector<128x128xbf16>
    %cst_205 = arith.constant dense<0.000000e+00> : vector<288x128xf32>
    %164 = tpu.matmul %161, %163, %cst_205 {dimension_numbers = #tpu.dot_dimension_numbers<[1], [0], [0], [1], [0, 0, 1, 1], [], []>} : vector<288x128xbf16>, vector<128x128xbf16>, vector<288x128xf32> -> vector<288x128xf32>
    %165 = arith.addf %160, %164 : vector<288x128xf32>
    %c0_206 = arith.constant 0 : index
    %c0_207 = arith.constant 0 : index
    %166 = vector.load %arg13[%c0_206, %c0_207] : memref<288x128xf32, #tpu.memory_space<vmem>>, vector<288x128xf32>
    tpu.vector_store %arg13[%c0_206, %c0_207], %165 {strides = array<i32>} : memref<288x128xf32, #tpu.memory_space<vmem>>, vector<288x128xf32>,
    %c0_208 = arith.constant 0 : index
    %c0_209 = arith.constant 0 : index
    %167 = vector.load %arg13[%c0_208, %c0_209] : memref<288x128xf32, #tpu.memory_space<vmem>>, vector<288x128xf32>
    %c2_210 = arith.constant 2 : index
    %c0_211 = arith.constant 0 : index
    %168 = vector.load %arg12[%c2_210, %c0_211] : memref<342x128xbf16, #tpu.memory_space<vmem>>, vector<288x128xbf16>
    %c2_212 = arith.constant 2 : index
    %c0_213 = arith.constant 0 : index
    %c0_214 = arith.constant 0 : index
    %169 = vector.load %arg6[%c2_212, %c0_213, %c0_214] : memref<9x128x128xbf16, #tpu.memory_space<vmem>>, vector<1x128x128xbf16>
    %170 = vector.shape_cast %169 : vector<1x128x128xbf16> to vector<128x128xbf16>
    %cst_215 = arith.constant dense<0.000000e+00> : vector<288x128xf32>
    %171 = tpu.matmul %168, %170, %cst_215 {dimension_numbers = #tpu.dot_dimension_numbers<[1], [0], [0], [1], [0, 0, 1, 1], [], []>} : vector<288x128xbf16>, vector<128x128xbf16>, vector<288x128xf32> -> vector<288x128xf32>
    %172 = arith.addf %167, %171 : vector<288x128xf32>
    %c0_216 = arith.constant 0 : index
    %c0_217 = arith.constant 0 : index
    %173 = vector.load %arg13[%c0_216, %c0_217] : memref<288x128xf32, #tpu.memory_space<vmem>>, vector<288x128xf32>
    tpu.vector_store %arg13[%c0_216, %c0_217], %172 {strides = array<i32>} : memref<288x128xf32, #tpu.memory_space<vmem>>, vector<288x128xf32>,
    %c0_218 = arith.constant 0 : index
    %c0_219 = arith.constant 0 : index
    %174 = vector.load %arg13[%c0_218, %c0_219] : memref<288x128xf32, #tpu.memory_space<vmem>>, vector<288x128xf32>
    %c18_220 = arith.constant 18 : index
    %c0_221 = arith.constant 0 : index
    %175 = vector.load %arg12[%c18_220, %c0_221] : memref<342x128xbf16, #tpu.memory_space<vmem>>, vector<288x128xbf16>
    %c3_222 = arith.constant 3 : index
    %c0_223 = arith.constant 0 : index
    %c0_224 = arith.constant 0 : index
    %176 = vector.load %arg6[%c3_222, %c0_223, %c0_224] : memref<9x128x128xbf16, #tpu.memory_space<vmem>>, vector<1x128x128xbf16>
    %177 = vector.shape_cast %176 : vector<1x128x128xbf16> to vector<128x128xbf16>
    %cst_225 = arith.constant dense<0.000000e+00> : vector<288x128xf32>
    %178 = tpu.matmul %175, %177, %cst_225 {dimension_numbers = #tpu.dot_dimension_numbers<[1], [0], [0], [1], [0, 0, 1, 1], [], []>} : vector<288x128xbf16>, vector<128x128xbf16>, vector<288x128xf32> -> vector<288x128xf32>
    %179 = arith.addf %174, %178 : vector<288x128xf32>
    %c0_226 = arith.constant 0 : index
    %c0_227 = arith.constant 0 : index
    %180 = vector.load %arg13[%c0_226, %c0_227] : memref<288x128xf32, #tpu.memory_space<vmem>>, vector<288x128xf32>
    tpu.vector_store %arg13[%c0_226, %c0_227], %179 {strides = array<i32>} : memref<288x128xf32, #tpu.memory_space<vmem>>, vector<288x128xf32>,
    %c0_228 = arith.constant 0 : index
    %c0_229 = arith.constant 0 : index
    %181 = vector.load %arg13[%c0_228, %c0_229] : memref<288x128xf32, #tpu.memory_space<vmem>>, vector<288x128xf32>
    %c19_230 = arith.constant 19 : index
    %c0_231 = arith.constant 0 : index
    %182 = vector.load %arg12[%c19_230, %c0_231] : memref<342x128xbf16, #tpu.memory_space<vmem>>, vector<288x128xbf16>
    %c4_232 = arith.constant 4 : index
    %c0_233 = arith.constant 0 : index
    %c0_234 = arith.constant 0 : index
    %183 = vector.load %arg6[%c4_232, %c0_233, %c0_234] : memref<9x128x128xbf16, #tpu.memory_space<vmem>>, vector<1x128x128xbf16>
    %184 = vector.shape_cast %183 : vector<1x128x128xbf16> to vector<128x128xbf16>
    %cst_235 = arith.constant dense<0.000000e+00> : vector<288x128xf32>
    %185 = tpu.matmul %182, %184, %cst_235 {dimension_numbers = #tpu.dot_dimension_numbers<[1], [0], [0], [1], [0, 0, 1, 1], [], []>} : vector<288x128xbf16>, vector<128x128xbf16>, vector<288x128xf32> -> vector<288x128xf32>
    %186 = arith.addf %181, %185 : vector<288x128xf32>
    %c0_236 = arith.constant 0 : index
    %c0_237 = arith.constant 0 : index
    %187 = vector.load %arg13[%c0_236, %c0_237] : memref<288x128xf32, #tpu.memory_space<vmem>>, vector<288x128xf32>
    tpu.vector_store %arg13[%c0_236, %c0_237], %186 {strides = array<i32>} : memref<288x128xf32, #tpu.memory_space<vmem>>, vector<288x128xf32>,
    %c0_238 = arith.constant 0 : index
    %c0_239 = arith.constant 0 : index
    %188 = vector.load %arg13[%c0_238, %c0_239] : memref<288x128xf32, #tpu.memory_space<vmem>>, vector<288x128xf32>
    %c20_240 = arith.constant 20 : index
    %c0_241 = arith.constant 0 : index
    %189 = vector.load %arg12[%c20_240, %c0_241] : memref<342x128xbf16, #tpu.memory_space<vmem>>, vector<288x128xbf16>
    %c5_242 = arith.constant 5 : index
    %c0_243 = arith.constant 0 : index
    %c0_244 = arith.constant 0 : index
    %190 = vector.load %arg6[%c5_242, %c0_243, %c0_244] : memref<9x128x128xbf16, #tpu.memory_space<vmem>>, vector<1x128x128xbf16>
    %191 = vector.shape_cast %190 : vector<1x128x128xbf16> to vector<128x128xbf16>
    %cst_245 = arith.constant dense<0.000000e+00> : vector<288x128xf32>
    %192 = tpu.matmul %189, %191, %cst_245 {dimension_numbers = #tpu.dot_dimension_numbers<[1], [0], [0], [1], [0, 0, 1, 1], [], []>} : vector<288x128xbf16>, vector<128x128xbf16>, vector<288x128xf32> -> vector<288x128xf32>
    %193 = arith.addf %188, %192 : vector<288x128xf32>
    %c0_246 = arith.constant 0 : index
    %c0_247 = arith.constant 0 : index
    %194 = vector.load %arg13[%c0_246, %c0_247] : memref<288x128xf32, #tpu.memory_space<vmem>>, vector<288x128xf32>
    tpu.vector_store %arg13[%c0_246, %c0_247], %193 {strides = array<i32>} : memref<288x128xf32, #tpu.memory_space<vmem>>, vector<288x128xf32>,
    %c0_248 = arith.constant 0 : index
    %c0_249 = arith.constant 0 : index
    %195 = vector.load %arg13[%c0_248, %c0_249] : memref<288x128xf32, #tpu.memory_space<vmem>>, vector<288x128xf32>
    %c36_250 = arith.constant 36 : index
    %c0_251 = arith.constant 0 : index
    %196 = vector.load %arg12[%c36_250, %c0_251] : memref<342x128xbf16, #tpu.memory_space<vmem>>, vector<288x128xbf16>
    %c6_252 = arith.constant 6 : index
    %c0_253 = arith.constant 0 : index
    %c0_254 = arith.constant 0 : index
    %197 = vector.load %arg6[%c6_252, %c0_253, %c0_254] : memref<9x128x128xbf16, #tpu.memory_space<vmem>>, vector<1x128x128xbf16>
    %198 = vector.shape_cast %197 : vector<1x128x128xbf16> to vector<128x128xbf16>
    %cst_255 = arith.constant dense<0.000000e+00> : vector<288x128xf32>
    %199 = tpu.matmul %196, %198, %cst_255 {dimension_numbers = #tpu.dot_dimension_numbers<[1], [0], [0], [1], [0, 0, 1, 1], [], []>} : vector<288x128xbf16>, vector<128x128xbf16>, vector<288x128xf32> -> vector<288x128xf32>
    %200 = arith.addf %195, %199 : vector<288x128xf32>
    %c0_256 = arith.constant 0 : index
    %c0_257 = arith.constant 0 : index
    %201 = vector.load %arg13[%c0_256, %c0_257] : memref<288x128xf32, #tpu.memory_space<vmem>>, vector<288x128xf32>
    tpu.vector_store %arg13[%c0_256, %c0_257], %200 {strides = array<i32>} : memref<288x128xf32, #tpu.memory_space<vmem>>, vector<288x128xf32>,
    %c0_258 = arith.constant 0 : index
    %c0_259 = arith.constant 0 : index
    %202 = vector.load %arg13[%c0_258, %c0_259] : memref<288x128xf32, #tpu.memory_space<vmem>>, vector<288x128xf32>
    %c37_260 = arith.constant 37 : index
    %c0_261 = arith.constant 0 : index
    %203 = vector.load %arg12[%c37_260, %c0_261] : memref<342x128xbf16, #tpu.memory_space<vmem>>, vector<288x128xbf16>
    %c7_262 = arith.constant 7 : index
    %c0_263 = arith.constant 0 : index
    %c0_264 = arith.constant 0 : index
    %204 = vector.load %arg6[%c7_262, %c0_263, %c0_264] : memref<9x128x128xbf16, #tpu.memory_space<vmem>>, vector<1x128x128xbf16>
    %205 = vector.shape_cast %204 : vector<1x128x128xbf16> to vector<128x128xbf16>
    %cst_265 = arith.constant dense<0.000000e+00> : vector<288x128xf32>
    %206 = tpu.matmul %203, %205, %cst_265 {dimension_numbers = #tpu.dot_dimension_numbers<[1], [0], [0], [1], [0, 0, 1, 1], [], []>} : vector<288x128xbf16>, vector<128x128xbf16>, vector<288x128xf32> -> vector<288x128xf32>
    %207 = arith.addf %202, %206 : vector<288x128xf32>
    %c0_266 = arith.constant 0 : index
    %c0_267 = arith.constant 0 : index
    %208 = vector.load %arg13[%c0_266, %c0_267] : memref<288x128xf32, #tpu.memory_space<vmem>>, vector<288x128xf32>
    tpu.vector_store %arg13[%c0_266, %c0_267], %207 {strides = array<i32>} : memref<288x128xf32, #tpu.memory_space<vmem>>, vector<288x128xf32>,
    %c0_268 = arith.constant 0 : index
    %c0_269 = arith.constant 0 : index
    %209 = vector.load %arg13[%c0_268, %c0_269] : memref<288x128xf32, #tpu.memory_space<vmem>>, vector<288x128xf32>
    %c38_270 = arith.constant 38 : index
    %c0_271 = arith.constant 0 : index
    %210 = vector.load %arg12[%c38_270, %c0_271] : memref<342x128xbf16, #tpu.memory_space<vmem>>, vector<288x128xbf16>
    %c8_272 = arith.constant 8 : index
    %c0_273 = arith.constant 0 : index
    %c0_274 = arith.constant 0 : index
    %211 = vector.load %arg6[%c8_272, %c0_273, %c0_274] : memref<9x128x128xbf16, #tpu.memory_space<vmem>>, vector<1x128x128xbf16>
    %212 = vector.shape_cast %211 : vector<1x128x128xbf16> to vector<128x128xbf16>
    %cst_275 = arith.constant dense<0.000000e+00> : vector<288x128xf32>
    %213 = tpu.matmul %210, %212, %cst_275 {dimension_numbers = #tpu.dot_dimension_numbers<[1], [0], [0], [1], [0, 0, 1, 1], [], []>} : vector<288x128xbf16>, vector<128x128xbf16>, vector<288x128xf32> -> vector<288x128xf32>
    %214 = arith.addf %209, %213 : vector<288x128xf32>
    %c0_276 = arith.constant 0 : index
    %c0_277 = arith.constant 0 : index
    %215 = vector.load %arg13[%c0_276, %c0_277] : memref<288x128xf32, #tpu.memory_space<vmem>>, vector<288x128xf32>
    tpu.vector_store %arg13[%c0_276, %c0_277], %214 {strides = array<i32>} : memref<288x128xf32, #tpu.memory_space<vmem>>, vector<288x128xf32>,
    %c0_278 = arith.constant 0 : index
    %c0_279 = arith.constant 0 : index
    %216 = vector.load %arg13[%c0_278, %c0_279] : memref<288x128xf32, #tpu.memory_space<vmem>>, vector<288x128xf32>
    %c0_280 = arith.constant 0 : index
    %c0_281 = arith.constant 0 : index
    %217 = vector.load %arg7[%c0_280, %c0_281] : memref<1x128xf32, #tpu.memory_space<vmem>>, vector<1x128xf32>
    %218 = vector.broadcast %217 : vector<1x128xf32> to vector<288x128xf32>
    %219 = arith.addf %216, %218 : vector<288x128xf32>
    %cst_282 = arith.constant 0.000000e+00 : f32
    %220 = vector.broadcast %cst_282 : f32 to vector<288x128xf32>
    %221 = arith.maximumf %219, %220 : vector<288x128xf32>
    %c0_283 = arith.constant 0 : index
    %c0_284 = arith.constant 0 : index
    %c0_285 = arith.constant 0 : index
    %222 = vector.load %arg10[%c0_283, %c0_284, %c0_285] : memref<1x288x128xf32, #tpu.memory_space<vmem>>, vector<1x288x128xf32>
    %223 = vector.shape_cast %222 : vector<1x288x128xf32> to vector<288x128xf32>
    %224 = vector.shape_cast %221 : vector<288x128xf32> to vector<1x288x128xf32>
    tpu.vector_store %arg10[%c0_283, %c0_284, %c0_285], %224 {strides = array<i32>} : memref<1x288x128xf32, #tpu.memory_space<vmem>>, vector<1x288x128xf32>,
    %c0_286 = arith.constant 0 : index
    %c0_287 = arith.constant 0 : index
    %225 = vector.load %arg8[%c0_286, %c0_287] : memref<1x128xf32, #tpu.memory_space<vmem>>, vector<1x128xf32>
    %226 = vector.broadcast %225 : vector<1x128xf32> to vector<288x128xf32>
    %227 = arith.mulf %221, %226 : vector<288x128xf32>
    %cst_288 = arith.constant dense<0.000000e+00> : vector<288xf32>
    %228 = vector.multi_reduction <add>, %227, %cst_288 [1] : vector<288x128xf32> to vector<288xf32>
    %229 = vector.shape_cast %228 : vector<288xf32> to vector<288x1xf32>
    %c0_289 = arith.constant 0 : index
    %c0_290 = arith.constant 0 : index
    %c0_291 = arith.constant 0 : index
    %230 = vector.load %arg11[%c0_289, %c0_290, %c0_291] : memref<1x288x1xf32, #tpu.memory_space<vmem>>, vector<1x288x1xf32>
    %231 = vector.shape_cast %230 : vector<1x288x1xf32> to vector<288x1xf32>
    %232 = vector.shape_cast %229 : vector<288x1xf32> to vector<1x288x1xf32>
    tpu.vector_store %arg11[%c0_289, %c0_290, %c0_291], %232 {strides = array<i32>} : memref<1x288x1xf32, #tpu.memory_space<vmem>>, vector<1x288x1xf32>,
    return
  }
  func.func @transform_0(%arg0: i32) -> (i32, i32, i32) {
    %c0_i32 = arith.constant 0 : i32
    %c0_i32_0 = arith.constant 0 : i32
    %c0_i32_1 = arith.constant 0 : i32
    return %arg0, %c0_i32, %c0_i32_0 : i32, i32, i32
  }
  func.func @transform_1(%arg0: i32) -> (i32, i32, i32) {
    %c0_i32 = arith.constant 0 : i32
    %c0_i32_0 = arith.constant 0 : i32
    %c0_i32_1 = arith.constant 0 : i32
    %c0_i32_2 = arith.constant 0 : i32
    return %c0_i32, %c0_i32_0, %c0_i32_1 : i32, i32, i32
  }
  func.func @transform_2(%arg0: i32) -> (i32, i32) {
    %c0_i32 = arith.constant 0 : i32
    %c0_i32_0 = arith.constant 0 : i32
    %c0_i32_1 = arith.constant 0 : i32
    return %c0_i32, %c0_i32_0 : i32, i32
  }
  func.func @transform_3(%arg0: i32) -> (i32, i32, i32) {
    %c0_i32 = arith.constant 0 : i32
    %c0_i32_0 = arith.constant 0 : i32
    %c0_i32_1 = arith.constant 0 : i32
    %c0_i32_2 = arith.constant 0 : i32
    return %c0_i32, %c0_i32_0, %c0_i32_1 : i32, i32, i32
  }
  func.func @transform_4(%arg0: i32) -> (i32, i32) {
    %c0_i32 = arith.constant 0 : i32
    %c0_i32_0 = arith.constant 0 : i32
    %c0_i32_1 = arith.constant 0 : i32
    return %c0_i32, %c0_i32_0 : i32, i32
  }
  func.func @transform_5(%arg0: i32) -> (i32, i32, i32) {
    %c0_i32 = arith.constant 0 : i32
    %c0_i32_0 = arith.constant 0 : i32
    %c0_i32_1 = arith.constant 0 : i32
    %c0_i32_2 = arith.constant 0 : i32
    return %c0_i32, %c0_i32_0, %c0_i32_1 : i32, i32, i32
  }
  func.func @transform_6(%arg0: i32) -> (i32, i32) {
    %c0_i32 = arith.constant 0 : i32
    %c0_i32_0 = arith.constant 0 : i32
    %c0_i32_1 = arith.constant 0 : i32
    return %c0_i32, %c0_i32_0 : i32, i32
  }
  func.func @transform_7(%arg0: i32) -> (i32, i32) {
    %c0_i32 = arith.constant 0 : i32
    %c0_i32_0 = arith.constant 0 : i32
    %c0_i32_1 = arith.constant 0 : i32
    return %c0_i32, %c0_i32_0 : i32, i32
  }
  func.func @transform_8(%arg0: i32) -> (i32, i32) {
    %c0_i32 = arith.constant 0 : i32
    %c0_i32_0 = arith.constant 0 : i32
    %c0_i32_1 = arith.constant 0 : i32
    return %c0_i32, %c0_i32_0 : i32, i32
  }
  func.func @transform_9(%arg0: i32) -> (i32, i32, i32) {
    %c0_i32 = arith.constant 0 : i32
    %c0_i32_0 = arith.constant 0 : i32
    %c0_i32_1 = arith.constant 0 : i32
    return %arg0, %c0_i32, %c0_i32_0 : i32, i32, i32
  }
  func.func @transform_10(%arg0: i32) -> (i32, i32, i32) {
    %c0_i32 = arith.constant 0 : i32
    %c0_i32_0 = arith.constant 0 : i32
    %c0_i32_1 = arith.constant 0 : i32
    return %arg0, %c0_i32, %c0_i32_0 : i32, i32, i32
  }
}

</mosaic_0001>

<bundles_post_ra>
// kernel: object_pre_forward.1
= control target key start
LH: loop header
LB: loop body
LE: loop exit
PB: predicated region body
PF: predicated region fallthrough
CT: control target
= control target key end

     0   :  { %s22949_s13 = smov 0   ;;  %s25956_s0 = inlined_call_operand.vmem [shape: bf16[2,342,128], index: 0, kind: input, shape index: {}]   ;;  %s25957_s1 = inlined_call_operand.vmem [shape: bf16[9,128,128], index: 1, kind: input, shape index: {}]   ;;  %s25958_s2 = inlined_call_operand.vmem [shape: f32[1,128], index: 2, kind: input, shape index: {}]   ;;  %s25959_s3 = inlined_call_operand.vmem [shape: bf16[9,128,128], index: 3, kind: input, shape index: {}]   ;;  %s25960_s4 = inlined_call_operand.vmem [shape: f32[1,128], index: 4, kind: input, shape index: {}]   ;;  %s25961_s5 = inlined_call_operand.vmem [shape: bf16[9,128,128], index: 5, kind: input, shape index: {}]   ;;  %s25962_s6 = inlined_call_operand.vmem [shape: f32[1,128], index: 6, kind: input, shape index: {}]   ;;  %s25963_s7 = inlined_call_operand.vmem [shape: f32[1,128], index: 7, kind: input, shape index: {}]   ;;  %s25964_s8 = inlined_call_operand.vmem [shape: f32[288,1], index: 8, kind: input, shape index: {}]   ;;  %s25965_s9 = inlined_call_operand.vmem [shape: f32[2,288,128], index: 9, kind: output, shape index: {0}]   ;;  %s25966_s10 = inlined_call_operand.vmem [shape: f32[2,288,1], index: 10, kind: output, shape index: {1}]  }
   0x1 LB: > { %s17880_s14 = sadd.s32 4294967295, %s22891_s13   ;;  %p17884_p0 = scmp.ge.s32.totalorder %s22891_s13, 1  ;;  %s22891_s13 = sphi %s22949_s13, %s21_s13  }
   0x2   : > { %p315_p1 = scmp.lt.s32.totalorder %s22891_s13, 3 }
   0x4   : > { %p316_p2 = pnand %p17884_p0, %p315_p1 }
   0x6   : > { %319 = sbr.rel (%p316_p2) target bundleno = 2421 (0x975), region = 56 }
   0xd   : > { %v22147_v0 = vld [vmem:[%s25957_s1] sm:$0xff]   ;;  %v22149_v2 = vld [vmem:[%s25957_s1 + $0x8] sm:$0xff]   ;;  %p358_p3 = scmp.lt.s32.totalorder %s17880_s14, 1  ;;  %v22151_v4 = vld [vmem:[%s25957_s1 + $0x10] sm:$0xff]   ;;  %vm2739_vm0 = vsmask.f32 6400 }
   0xe   : > { %v22148_v1 = vld [vmem:[%s25957_s1 + $0x100] sm:$0xff]   ;;  %19850 = vmatprep.subr.bf16.mxu1 %v22147_v0  ;;  %v22150_v3 = vld [vmem:[%s25957_s1 + $0x108] sm:$0xff]   ;;  %v22152_v5 = vld [vmem:[%s25957_s1 + $0x110] sm:$0xff]   ;;  %vm3408_vm1 = vcmask 1045504   ;;  %vm1021_vm2 = vsmask.f32 7424 }
   0xf   : > { %20058 = vmatprep.subr.bf16.mxu0 %v22148_v1  ;;  %19851 = vmatpush3.bf16.msra.mxu1 %v22147_v0  ;;  %s26152_s14 = smov (!%p358_p3, %s17880_s14), 1  ;;  %v22153_v6 = vld [vmem:[%s25957_s1 + $0x18] sm:$0xff]   ;;  %v22155_v8 = vld [vmem:[%s25957_s1 + $0x20] sm:$0xff]   ;;  %v22157_v10 = vld [vmem:[%s25957_s1 + $0x28] sm:$0xff]   ;;  %vm1668_vm3 = vcmask 1046528   ;;  %vm5148_vm5 = vcmask 1044480  }
  0x10   : > { %20059 = vmatpush3.bf16.msra.mxu0 %v22148_v1  ;;  %19852 = vmatprep.subr.bf16.mxu1 %v22149_v2  ;;  %v22154_v7 = vld [vmem:[%s25957_s1 + $0x118] sm:$0xff]   ;;  %s22134_s11 = smul.u32 172, %s26152_s14  ;;  %v22156_v9 = vld [vmem:[%s25957_s1 + $0x120] sm:$0xff]   ;;  %v22158_v11 = vld [vmem:[%s25957_s1 + $0x128] sm:$0xff]   ;;  %vm4479_vm4 = vsmask.f32 5376 }
  0x11   : > { %20060 = vmatprep.subr.bf16.mxu0 %v22150_v3  ;;  %v22159_v15 = vld [vmem:[%s25957_s1 + $0x30] sm:$0xff]   ;;  %v22161_v26 = vld [vmem:[%s25957_s1 + $0x38] sm:$0xff]   ;;  %v22167_v33 = vld [vmem:[%s25957_s1 + $0x40] sm:$0xff]   ;;  %vm6375_vm6 = vcmask 1043457   ;;  %vm6376_vm7 = vsmask.f32 7942 }
  0x12   : > { %s22999_s24 = scalar_lea.vmem %s25956_s0, %s22134_s11  ;;  %v22160_v16 = vld [vmem:[%s25957_s1 + $0x130] sm:$0xff]   ;;  %v22162_v29 = vld [vmem:[%s25957_s1 + $0x138] sm:$0xff]   ;;  %v22169_v39 = vld [vmem:[%s25957_s1 + $0x140] sm:$0xff]   ;;  %vm5976_vm8 = vsmask.f32 1280  ;;  %vm6416_vm12 = vcmask 1041408  }
  0x13   : > { %19853 = vmatpush3.bf16.msra.mxu1 %v22149_v2  ;;  %v22163_v12 = vld [vmem:[%s22999_s24] sm:$0xff]   ;;  %v22164_v13 = vld [vmem:[%s22999_s24 + $0x8] sm:$0xfe]   ;;  %v22165_v14 = vld [vmem:[%s22999_s24 + $0x10] sm:$0xff]   ;;  %vm5977_vm9 = vsmask.f32 5392 }
  0x14   : > { %20061 = vmatpush3.bf16.msra.mxu0 %v22150_v3  ;;  %19854 = vmatprep.subr.bf16.mxu1 %v22151_v4  ;;  %v2741_v17 = vshrl.u32 %v22164_v13, 16  ;;  %v2744_v18 = vshll.u32 %v22164_v13, 16  ;;  %v2749_v19 = vshrl.u32 %v22165_v14, 16  ;;  %v2752_v20 = vshll.u32 %v22165_v14, 16  ;;  %v22168_v25 = vld [vmem:[%s22999_s24 + $0x18] sm:$0xff]   ;;  %v22172_v36 = vld [vmem:[%s22999_s24 + $0x20] sm:$0xff]   ;;  %vm24460_vm10 = vmand %vm6375_vm6, %vm6376_vm7 }
  0x15   : > { %20062 = vmatprep.subr.bf16.mxu0 %v22152_v5  ;;  %19866 = vmatprep.mubr.bf16.mxu1 %v22163_v12  ;;  %v2758_v30 = vshrl.u32 %v22168_v25, 16  ;;  %v2761_v31 = vshll.u32 %v22168_v25, 16  ;;  %v22166_v37 = vld [vmem:[%s22999_s24 + $0x8] sm:$0xff]   ;;  %v2767_v40 = vshrl.u32 %v22172_v36, 16  ;;  %v2770_v41 = vshll.u32 %v22172_v36, 16  ;;  %v22171_v48 = vld [vmem:[%s22999_s24 + $0x10] sm:$0xff]   ;;  %vm24466_vm11 = vmor %vm5976_vm8, %vm5977_vm9 }
  0x16   : > { %v2743_v21 = vrot.slane %v2741_v17, 1  ;;  %v2746_v22 = vrot.slane %v2744_v18, 2  ;;  %v2751_v23 = vrot.slane %v2749_v19, 1  ;;  %v2754_v24 = vrot.slane %v2752_v20, 2  ;;  %v22174_v42 = vld [vmem:[%s22999_s24 + $0x28] sm:$0xff]   ;;  %v22179_v54 = vld [vmem:[%s22999_s24 + $0x30] sm:$0xff]   ;;  %vm24788_vm13 = vmand %vm6416_vm12, %vm5976_vm8 }
  0x17   : > { %19855 = vmatpush3.bf16.msra.mxu1 %v22151_v4  ;;  %v2760_v34 = vrot.slane %v2758_v30, 1  ;;  %v2763_v35 = vrot.slane %v2761_v31, 2  ;;  %v22170_v43 = vld [vmem:[%s25957_s1 + $0x148] sm:$0xff]   ;;  %v2769_v44 = vrot.slane %v2767_v40, 1  ;;  %v2772_v45 = vrot.slane %v2770_v41, 2  ;;  %v22173_v56 = vld [vmem:[%s22999_s24 + $0x18] sm:$0xff]  }
  0x18   : > { %20063 = vmatpush3.bf16.msra.mxu0 %v22152_v5  ;;  %19856 = vmatprep.subr.bf16.mxu1 %v22153_v6  ;;  %v2747_v27 = vor.u32 %v2746_v22, %v2743_v21  ;;  %v2755_v28 = vor.u32 %v2754_v24, %v2751_v23  ;;  %v2776_v46 = vshrl.u32 %v22174_v42, 16  ;;  %v2779_v49 = vshll.u32 %v22174_v42, 16  ;;  %v22176_v52 = vld [vmem:[%s25957_s1 + $0x48] sm:$0xff]   ;;  %v22175_v58 = vld [vmem:[%s25957_s1 + $0x150] sm:$0xff]   ;;  %v22181_v61 = vld [vmem:[%s22999_s24 + $0x38] sm:$0xff]   ;;  %s22135_s22 = smul.u32 288, %s26152_s14 }
  0x19   : > { %20064 = vmatprep.subr.bf16.mxu0 %v22154_v7  ;;  %v2764_v38 = vor.u32 %v2763_v35, %v2760_v34  ;;  %v2773_v50 = vor.u32 %v2772_v45, %v2769_v44  ;;  %v2785_v59 = vshrl.u32 %v22179_v54, 16  ;;  %v2788_v60 = vshll.u32 %v22179_v54, 16  ;;  %v22183_v1 = vld [vmem:[%s25957_s1 + $0x50] sm:$0xff]   ;;  %v22178_v2 = vld [vmem:[%s22999_s24 + $0x20] sm:$0xff]   ;;  %v22177_v5 = vld [vmem:[%s25957_s1 + $0x158] sm:$0xff]  }
  0x1a   : > { %v2756_v32 = vsel %vm2739_vm0, %v2747_v27, %v2755_v28  ;;  %v2778_v51 = vrot.slane %v2776_v46, 1  ;;  %v2781_v53 = vrot.slane %v2779_v49, 2  ;;  %v2794_v0 = vshrl.u32 %v22181_v61, 16  ;;  %v22180_v13 = vld [vmem:[%s22999_s24 + $0x28] sm:$0xff]   ;;  %v22190_v19 = vld [vmem:[%s25957_s1 + $0x58] sm:$0xff]   ;;  %v22185_v22 = vld [vmem:[%s22999_s24 + $0x30] sm:$0xff]   ;;  %s25760_s28 = scalar_lea.vmem %s25965_s9, %s22135_s22  ;;  %s25879_s12 = scalar_lea.vmem %s25966_s10, %s22135_s22 }
  0x1b   : > { %19857 = vmatpush3.bf16.msra.mxu1 %v22153_v6  ;;  %20074 = vmatprep.mubr.bf16.mxu0 %v2756_v32  ;;  %v2765_v47 = vsel %vm2739_vm0, %v2755_v28, %v2764_v38  ;;  %v2774_v55 = vsel %vm2739_vm0, %v2764_v38, %v2773_v50  ;;  %v2787_v62 = vrot.slane %v2785_v59, 1  ;;  %v2790_v63 = vrot.slane %v2788_v60, 2  ;;  %v22184_v25 = vld [vmem:[%s25957_s1 + $0x168] sm:$0xff]   ;;  %v22194_v28 = vld [vmem:[%s22999_s24 + $0x10] sm:$0xff]   ;;  %v22197_v35 = vld [vmem:[%s25957_s1 + $0x60] sm:$0xff]  }
  0x1c   : > { %20065 = vmatpush3.bf16.msra.mxu0 %v22154_v7  ;;  %19858 = vmatprep.subr.bf16.mxu1 %v22155_v8  ;;  %v2782_v57 = vor.u32 %v2781_v53, %v2778_v51  ;;  %v2797_v3 = vshll.u32 %v22181_v61, 16  ;;  %v2796_v7 = vrot.slane %v2794_v0, 1  ;;  %v22193_v30 = vld [vmem:[%s22999_s24 + $0x8] sm:$0xfc]   ;;  %v22189_v32 = vld [vmem:[%s25957_s1 + $0x170] sm:$0xff]   ;;  %v22187_v36 = vld [vmem:[%s22999_s24 + $0x38] sm:$0xff]  }
  0x1d   : > { %20066 = vmatprep.subr.bf16.mxu0 %v22156_v9  ;;  %v2791_v6 = vor.u32 %v2790_v63, %v2787_v62  ;;  %v3409_v34 = vrot.slane %v22193_v30, 2  ;;  %v22192_v38 = vld [vmem:[%s22999_s24 + $0x40] sm:$0xff]   ;;  %v22196_v40 = vld [vmem:[%s22999_s24 + $0x18] sm:$0xff]   ;;  %v22195_v44 = vld [vmem:[%s22999_s24 + $0x48] sm:$0xff]   ;;  %vm17755_vm14 = vcmask 7168  }
  0x1e   : > { %v2783_v4 = vsel %vm2739_vm0, %v2773_v50, %v2782_v57  ;;  %v22199_v42 = vld [vmem:[%s22999_s24 + $0x20] sm:$0xff]   ;;  %v3412_v45 = vrot.slane %v22196_v40, 2  ;;  %v22198_v46 = vld [vmem:[%s22999_s24 + $0x50] sm:$0xff]   ;;  %v22201_v49 = vld [vmem:[%s22999_s24 + $0x28] sm:$0xff]  }
  0x1f   : > { %19859 = vmatpush3.bf16.msra.mxu1 %v22155_v8  ;;  %v2799_v8 = vrot.slane %v2797_v3, 2  ;;  %v22205_v50 = vld [vmem:[%s22999_s24 + $0x30] sm:$0xff]   ;;  %v22207_v60 = vld [vmem:[%s22999_s24 + $0x38] sm:$0xff]   ;;  %v22211_v0 = vld [vmem:[%s22999_s24 + $0x40] sm:$0xff]  }
  0x20   : > { %20067 = vmatpush3.bf16.msra.mxu0 %v22156_v9  ;;  %19860 = vmatprep.subr.bf16.mxu1 %v22157_v10  ;;  %v22186_v9 = vld [vmem:[%s22999_s24 + $0x40] sm:$0xff]   ;;  %v22209_v54 = vld [vmem:[%s25957_s1 + $0x70] sm:$0xff]   ;;  %v22216_v62 = vld [vmem:[%s25957_s1 + $0x78] sm:$0xff]   ;;  %v3422_v3 = vrot.slane %v22211_v0, 2 }
  0x21   : > { %20068 = vmatprep.subr.bf16.mxu0 %v22158_v11  ;;  %v2806_v12 = vshll.u32 %v22186_v9, 16  ;;  %v2800_v14 = vor.u32 %v2799_v8, %v2796_v7  ;;  %v22214_v59 = vld [vmem:[%s25957_s1 + $0x190] sm:$0xff]  }
  0x22   : > { %v22217_v8 = vld [vmem:[%s22999_s24 + $0x50] sm:$0xff]  }
  0x23   : > { %19861 = vmatpush3.bf16.msra.mxu1 %v22157_v10  ;;  %v2792_v10 = vsel %vm2739_vm0, %v2782_v57, %v2791_v6  ;;  %v2808_v18 = vrot.slane %v2806_v12, 2  ;;  %v2801_v24 = vsel %vm2739_vm0, %v2791_v6, %v2800_v14  ;;  %v22204_v57 = vld [vmem:[%s22999_s24 + $0x60] sm:$0xff]   ;;  %v22213_v6 = vld [vmem:[%s22999_s24 + $0x48] sm:$0xff]  }
  0x24   : > { %20069 = vmatpush3.bf16.msra.mxu0 %v22158_v11  ;;  %19862 = vmatprep.subr.bf16.mxu1 %v22159_v15  ;;  %v2803_v11 = vshrl.u32 %v22186_v9, 16  ;;  %v22221_v9 = vld [vmem:[%s22999_s24] sm:$0xff]   ;;  %v3424_v12 = vrot.slane %v22213_v6, 2 }
  0x25   : > { %20070 = vmatprep.subr.bf16.mxu0 %v22160_v16 }
  0x26   : > { %v2805_v17 = vrot.slane %v2803_v11, 1  ;;  %v23129_v11 = vld [vmem:[%s25957_s1 + $0x80] sm:$0xff]  }
  0x27   : > { %19863 = vmatpush3.bf16.msra.mxu1 %v22159_v15  ;;  %v22188_v15 = vld [vmem:[%s22999_s24 + $0x48] sm:$0xff]  }
  0x28   : > { %20071 = vmatpush3.bf16.msra.mxu0 %v22160_v16  ;;  %19864 = vmatprep.subr.bf16.mxu1 %v22161_v26  ;;  %v22182_v16 = vld [vmem:[%s25957_s1 + $0x160] sm:$0xff]   ;;  %v2812_v20 = vshrl.u32 %v22188_v15, 16  ;;  %v2815_v21 = vshll.u32 %v22188_v15, 16  ;;  %v2809_v23 = vor.u32 %v2808_v18, %v2805_v17  ;;  %v22212_v17 = vld [vmem:[%s22999_s24 + $0x78] sm:$0xff]  }
  0x29   : > { %20072 = vmatprep.subr.bf16.mxu0 %v22162_v29  ;;  %v22227_v15 = vld [vmem:[%s25957_s1 + $0x1a0] sm:$0xff]  }
  0x2a   : > { %v2817_v27 = vrot.slane %v2815_v21, 2  ;;  %v22215_v18 = vld [vmem:[%s22999_s24 + $0x80] sm:$0xff]   ;;  %v3425_v21 = vsel %vm3408_vm1, %v3422_v3, %v3424_v12 }
  0x2b   : > { %19865 = vmatpush3.bf16.msra.mxu1 %v22161_v26  ;;  %v2814_v26 = vrot.slane %v2812_v20, 1  ;;  %v1023_v20 = vshrl.u32 %v22221_v9, 16 }
  0x2c   : > { %20073 = vmatpush3.bf16.msra.mxu0 %v22162_v29  ;;  %19902 = vmatprep.subr.bf16.mxu1 %v22167_v33  ;;  %v2810_v29 = vsel %vm2739_vm0, %v2800_v14, %v2809_v23  ;;  %v1025_v14 = vshll.u32 %v22221_v9, 16  ;;  %v22238_v9 = vld [vmem:[%s25957_s1 + $0x90] sm:$0xff]  }
  0x2d   : > { %20110 = vmatprep.subr.bf16.mxu0 %v22169_v39  ;;  %v23068_v31 = vor.u32 %v2817_v27, %v2814_v26  ;;  %v22233_v26 = vld [vmem:[%s25957_s1 + $0x1a8] sm:$0xff]   ;;  %v22224_v27 = vld [vmem:[%s22999_s24 + $0x10] sm:$0xff]  }
  0x2e   : > { %19867 = vmatmul.mubr.bf16.vlgmr.msra.gmra.mrb[0].mxu1 %v22166_v37  ;;  %v22191_v37 = vld [vmem:[%s25957_s1 + $0x178] sm:$0xff]  }
  0x2f   : > { %20075 = vmatmul.mubr.bf16.vlgmr.msra.gmra.mrb[0].mxu0 %v2765_v47  ;;  %19903 = vmatpush3.bf16.msra.mxu1 %v22167_v33  ;;  %26006 = vst [vmem:[#allocation4_spill] sm:$0xff] %v23068_v31  ;;  %v3410_v33 = vrot.slane %v22194_v28, 2  ;;  %v3414_v47 = vrot.slane %v22199_v42, 2  ;;  %v1042_v42 = vshrl.u32 %v22224_v27, 16 }
  0x30   : > { %20111 = vmatpush3.bf16.msra.mxu0 %v22169_v39  ;;  %19870 = vmatprep.mubr.bf16.mxu1 %v22171_v48  ;;  %v2819_v39 = vsel %vm2739_vm0, %v2809_v23, %v23068_v31  ;;  %v22202_v48 = vld [vmem:[%s25957_s1 + $0x180] sm:$0xff]  }
  0x31   : > { %20112 = vmatprep.subr.bf16.mxu0 %v22170_v43  ;;  %20078 = vmatprep.mubr.bf16.mxu0 %v2774_v55  ;;  %v3411_v41 = vsel %vm3408_vm1, %v3409_v34, %v3410_v33  ;;  %v3413_v51 = vsel %vm3408_vm1, %v3410_v33, %v3412_v45  ;;  %v3415_v53 = vsel %vm3408_vm1, %v3412_v45, %v3414_v47  ;;  %v22200_v55 = vld [vmem:[%s22999_s24 + $0x58] sm:$0xff]   ;;  %v22218_v34 = vld [vmem:[%s22999_s24 + $0x88] sm:$0xff]   ;;  %v22239_v45 = vld [vmem:[%s25957_s1 + $0x1b0] sm:$0xff]  }
  0x32   : > { %19904 = vmatprep.subr.bf16.mxu1 %v22176_v52  ;;  %v22228_v33 = vld [vmem:[%s22999_s24 + $0x18] sm:$0xff]  }
  0x33   : > { %19905 = vmatpush3.bf16.msra.mxu1 %v22176_v52  ;;  %v22208_v52 = vld [vmem:[%s25957_s1 + $0x188] sm:$0xff]  }
  0x34   : > { %20113 = vmatpush3.bf16.msra.mxu0 %v22170_v43  ;;  %19906 = vmatprep.subr.bf16.mxu1 %v22183_v1  ;;  %v22203_v43 = vld [vmem:[%s25957_s1 + $0x68] sm:$0xff]  }
  0x35   : > { %20114 = vmatprep.subr.bf16.mxu0 %v22175_v58 }
  0x36   : > { %19871 = vmatmul.mubr.bf16.gmra.mrb[4].mxu1 %v22173_v56  ;;  %v3416_v56 = vrot.slane %v22201_v49, 2  ;;  %v22234_v49 = vld [vmem:[%s22999_s24 + $0x28] sm:$0xff]  }
  0x37   : > { %20079 = vmatmul.mubr.bf16.gmra.mrb[4].mxu0 %v2783_v4  ;;  %19874 = vmatprep.mubr.bf16.mxu1 %v22178_v2  ;;  %v22220_v2 = vld [vmem:[%s25957_s1 + $0x198] sm:$0xff]   ;;  %v22206_v4 = vld [vmem:[%s22999_s24 + $0x68] sm:$0xff]  }
  0x38   : > { %20115 = vmatpush3.bf16.msra.mxu0 %v22175_v58  ;;  %20082 = vmatprep.mubr.bf16.mxu0 %v2792_v10  ;;  %v3418_v58 = vrot.slane %v22205_v50, 2  ;;  %v3417_v61 = vsel %vm3408_vm1, %v3414_v47, %v3416_v56 }
  0x39   : > { %20116 = vmatprep.subr.bf16.mxu0 %v22177_v5  ;;  %19907 = vmatpush3.bf16.msra.mxu1 %v22183_v1  ;;  %v3420_v1 = vrot.slane %v22207_v60, 2 }
  0x3a   : > { %19908 = vmatprep.subr.bf16.mxu1 %v22190_v19  ;;  %v3419_v63 = vsel %vm3408_vm1, %v3416_v56, %v3418_v58  ;;  %v1050_v56 = vshrl.u32 %v22228_v33, 16 }
  0x3b   : > { %v3421_v7 = vsel %vm3408_vm1, %v3418_v58, %v3420_v1  ;;  %v3423_v10 = vsel %vm3408_vm1, %v3420_v1, %v3422_v3  ;;  %v23161_v58 = vld [vmem:[%s22999_s24 + $0x80] sm:$0xff]   ;;  %v22232_v1 = vld [vmem:[%s25957_s1 + $0x88] sm:$0xff]  }
  0x3c   : > { %20117 = vmatpush3.bf16.msra.mxu0 %v22177_v5  ;;  %v22210_v5 = vld [vmem:[%s22999_s24 + $0x70] sm:$0xff]  }
  0x3d   : > { %20118 = vmatprep.subr.bf16.mxu0 %v22182_v16  ;;  %19909 = vmatpush3.bf16.msra.mxu1 %v22190_v19  ;;  %v22219_v19 = vld [vmem:[%s22999_s24 + $0x58] sm:$0xff]  }
  0x3e   : > { %19875 = vmatmul.mubr.bf16.gmra.mrb[8].mxu1 %v22180_v13  ;;  %19910 = vmatprep.subr.bf16.mxu1 %v22197_v35  ;;  %v22222_v13 = vld [vmem:[%s22999_s24 + $0x8] sm:$0xff]   ;;  %v3428_v28 = vrot.slane %v22219_v19, 2  ;;  %v22242_v19 = vld [vmem:[%s22999_s24 + $0x40] sm:$0xff]  }
  0x3f   : > { %20083 = vmatmul.mubr.bf16.gmra.mrb[8].mxu0 %v2801_v24  ;;  %19878 = vmatprep.mubr.bf16.mxu1 %v22185_v22  ;;  %v1027_v22 = vrot.slane %v1025_v14, 1  ;;  %v1030_v23 = vshll.u32 %v22222_v13, 16  ;;  %v1066_v14 = vshrl.u32 %v22234_v49, 16 }
  0x40   : > { %20119 = vmatpush3.bf16.msra.mxu0 %v22182_v16  ;;  %20086 = vmatprep.mubr.bf16.mxu0 %v2810_v29  ;;  %v3426_v16 = vrot.slane %v22217_v8, 2 }
  0x41   : > { %20120 = vmatprep.subr.bf16.mxu0 %v22184_v25  ;;  %19911 = vmatpush3.bf16.msra.mxu1 %v22197_v35  ;;  %v1028_v29 = vor.u32 %v1027_v22, %v1023_v20  ;;  %v1032_v30 = vrot.slane %v1030_v23, 1  ;;  %v1034_v35 = vshrl.u32 %v22222_v13, 16  ;;  %v23181_v13 = vld [vmem:[%s22999_s24 + $0x90] sm:$0xff]   ;;  %v22244_v22 = vld [vmem:[%s25957_s1 + $0x98] sm:$0xff]  }
  0x42   : > { %19912 = vmatprep.subr.bf16.mxu1 %v22203_v43  ;;  %v3427_v24 = vsel %vm3408_vm1, %v3424_v12, %v3426_v16  ;;  %v22237_v12 = vld [vmem:[%s22999_s24 + $0x88] sm:$0xff]  }
  0x43   : > { %v1033_v40 = vsel %vm1021_vm2, %v1028_v29, %v1032_v30  ;;  %v3440_v23 = vrot.slane %v22237_v12, 2  ;;  %v22255_v12 = vld [vmem:[%s22999_s24 + $0x30] sm:$0xff]  }
  0x44   : > { %20121 = vmatpush3.bf16.msra.mxu0 %v22184_v25  ;;  %v22223_v25 = vld [vmem:[%s22999_s24 + $0x60] sm:$0xff]  }
  0x45   : > { %20122 = vmatprep.subr.bf16.mxu0 %v22189_v32  ;;  %19913 = vmatpush3.bf16.msra.mxu1 %v22203_v43  ;;  %v1046_v43 = vshll.u32 %v22228_v33, 16  ;;  %v22251_v33 = vld [vmem:[%s25957_s1 + $0xa0] sm:$0xff]  }
  0x46   : > { %19879 = vmatmul.mubr.bf16.gmra.mrb[12].mxu1 %v22187_v36  ;;  %19914 = vmatprep.subr.bf16.mxu1 %v22209_v54  ;;  %v1038_v36 = vshll.u32 %v22224_v27, 16 }
  0x47   : > { %20087 = vmatmul.mubr.bf16.gmra.mrb[12].mxu0 %v2819_v39  ;;  %19882 = vmatprep.mubr.bf16.mxu1 %v22192_v38  ;;  %v22229_v38 = vld [vmem:[%s22999_s24 + $0x70] sm:$0xff]   ;;  %v3429_v39 = vsel %vm3408_vm1, %v3426_v16, %v3428_v28 }
  0x48   : > { %20123 = vmatpush3.bf16.msra.mxu0 %v22189_v32  ;;  %20126 = vmatprep.mubr.bf16.mxu0 %v3411_v41  ;;  %v3430_v32 = vrot.slane %v22223_v25, 2  ;;  %v1040_v47 = vrot.slane %v1038_v36, 1  ;;  %v23193_v25 = vld [vmem:[%s22999_s24 + $0x48] sm:$0xff]  }
  0x49   : > { %20124 = vmatprep.subr.bf16.mxu0 %v22191_v37  ;;  %19915 = vmatpush3.bf16.msra.mxu1 %v22209_v54  ;;  %v22231_v54 = vld [vmem:[%s22999_s24 + $0x78] sm:$0xff]  }
  0x4a   : > { %19916 = vmatprep.subr.bf16.mxu1 %v22216_v62  ;;  %v3431_v41 = vsel %vm3408_vm1, %v3428_v28, %v3430_v32  ;;  %v1044_v50 = vor.u32 %v1042_v42, %v1040_v47 }
  0x4c   : > { %20125 = vmatpush3.bf16.msra.mxu0 %v22191_v37  ;;  %v22226_v37 = vld [vmem:[%s22999_s24 + $0x68] sm:$0xff]  }
  0x4d   : > { %20162 = vmatprep.subr.bf16.mxu0 %v22202_v48  ;;  %19917 = vmatpush3.bf16.msra.mxu1 %v22216_v62  ;;  %v22236_v62 = vld [vmem:[%s22999_s24 + $0x30] sm:$0xff]  }
  0x4e   : > { %19883 = vmatmul.mubr.bf16.gmra.mrb[16].mxu1 %v22195_v44  ;;  %19954 = vmatprep.subr.bf16.mxu1 %v23129_v11  ;;  %v22230_v44 = vld [vmem:[%s22999_s24 + $0x20] sm:$0xff]   ;;  %v1070_v8 = vshll.u32 %v22236_v62, 16 }
  0x4f   : > { %20127 = vmatmul.mubr.bf16.vlgmr.msra.gmra.mrb[0].mxu0 %v3413_v51  ;;  %19886 = vmatprep.mubr.bf16.mxu1 %v22198_v46  ;;  %v1036_v46 = vor.u32 %v1034_v35, %v1032_v30  ;;  %v1048_v51 = vrot.slane %v1046_v43, 1  ;;  %v23201_v30 = vld [vmem:[%s22999_s24 + $0x98] ss:$0 sps:$4 sm:$0x33]   ;;  %v1090_v35 = vshrl.u32 %v22242_v19, 16 }
  0x50   : > { %20130 = vmatprep.mubr.bf16.mxu0 %v3415_v53  ;;  %20163 = vmatpush3.bf16.msra.mxu0 %v22202_v48  ;;  %v3432_v48 = vrot.slane %v22226_v37, 2  ;;  %v1054_v53 = vshll.u32 %v22230_v44, 16  ;;  %v1094_v37 = vshll.u32 %v23193_v25, 16 }
  0x51   : > { %20164 = vmatprep.subr.bf16.mxu0 %v22208_v52  ;;  %v1052_v3 = vor.u32 %v1050_v56, %v1048_v51 }
  0x52   : > { %v3433_v60 = vsel %vm3408_vm1, %v3430_v32, %v3432_v48  ;;  %v1086_v32 = vshll.u32 %v22242_v19, 16 }
  0x54   : > { %20165 = vmatpush3.bf16.msra.mxu0 %v22208_v52  ;;  %v3434_v52 = vrot.slane %v22229_v38, 2  ;;  %v23210_v38 = vld [vmem:[%s22999_s24 + $0x18] sm:$0xff]   ;;  %v23220_v43 = vrot.slane %v1086_v32, 1  ;;  %v22268_v32 = vld [vmem:[%s25957_s1 + $0x1d0] sm:$0xff]  }
  0x55   : > { %20166 = vmatprep.subr.bf16.mxu0 %v22214_v59 }
  0x56   : > { %19887 = vmatmul.mubr.bf16.gmra.mrb[20].mxu1 %v22200_v55  ;;  %v1041_v55 = vsel %vm1021_vm2, %v1036_v46, %v1040_v47  ;;  %v3435_v0 = vsel %vm3408_vm1, %v3432_v48, %v3434_v52  ;;  %v23229_v46 = vld [vmem:[%s22999_s24 + $0x50] sm:$0xff]   ;;  %v23231_v48 = vrot.slane %v1094_v37, 1 }
  0x57   : > { %20131 = vmatmul.mubr.bf16.gmra.mrb[4].mxu0 %v3417_v61  ;;  %19890 = vmatprep.mubr.bf16.mxu1 %v22204_v57  ;;  %v1058_v57 = vshrl.u32 %v22230_v44, 16  ;;  %v1062_v61 = vshll.u32 %v22234_v49, 16  ;;  %v23225_v44 = vld [vmem:[%s25957_s1 + $0xa8] sm:$0xff]   ;;  %v3945_v49 = vrot.slane %v23210_v38, 2 }
  0x58   : > { %20134 = vmatprep.mubr.bf16.mxu0 %v3419_v63  ;;  %20167 = vmatpush3.bf16.msra.mxu0 %v22214_v59  ;;  %v22245_v59 = vld [vmem:[%s25957_s1 + $0x1b8] sm:$0xff]   ;;  %v1049_v63 = vsel %vm1021_vm2, %v1044_v50, %v1048_v51  ;;  %v1092_v50 = vor.u32 %v1090_v35, %v23220_v43 }
  0x59   : > { %20168 = vmatprep.subr.bf16.mxu0 %v22220_v2  ;;  %v23236_v51 = vld [vmem:[%s22999_s24 + $0x58] sm:$0xff]  }
  0x5c   : > { %20169 = vmatpush3.bf16.msra.mxu0 %v22220_v2  ;;  %v1056_v2 = vrot.slane %v1054_v53, 1  ;;  %v23243_v53 = vld [vmem:[%s25957_s1 + $0xb0] sm:$0xff]  }
  0x5d   : > { %20170 = vmatprep.subr.bf16.mxu0 %v22227_v15 }
  0x5e   : > { %19891 = vmatmul.mubr.bf16.gmra.mrb[24].mxu1 %v22206_v4  ;;  %v3436_v4 = vrot.slane %v22231_v54, 2  ;;  %v1060_v6 = vor.u32 %v1058_v57, %v1056_v2  ;;  %v22893_v54 = vmov 0   ;;  %v1098_v57 = vshrl.u32 %v23193_v25, 16 }
  0x5f   : > { %20135 = vmatmul.mubr.bf16.gmra.mrb[8].mxu0 %v3421_v7  ;;  %19894 = vmatprep.mubr.bf16.mxu1 %v22210_v5  ;;  %v3438_v5 = vrot.slane %v23161_v58, 2  ;;  %v1064_v7 = vrot.slane %v1062_v61, 1  ;;  %374 = vst [vmem:[#allocation2] sm:$0xf] %v22893_v54  ;;  %375 = vst [vmem:[#allocation2 + $0x4] sm:$0xf] %v22893_v54 }
  0x60   : > { %20138 = vmatprep.mubr.bf16.mxu0 %v3423_v10  ;;  %20171 = vmatpush3.bf16.msra.mxu0 %v22227_v15  ;;  %v22240_v10 = vld [vmem:[%s22999_s24 + $0x38] sm:$0xff]   ;;  %v1074_v15 = vshrl.u32 %v22236_v62, 16  ;;  %v3437_v16 = vsel %vm3408_vm1, %v3434_v52, %v3436_v4  ;;  %376 = vst [vmem:[#allocation2 + $0x8] sm:$0xf] %v22893_v54  ;;  %377 = vst [vmem:[#allocation2 + $0xc] sm:$0xf] %v22893_v54 }
  0x61   : > { %20172 = vmatprep.subr.bf16.mxu0 %v22233_v26  ;;  %v3439_v20 = vsel %vm3408_vm1, %v3436_v4, %v3438_v5  ;;  %v1068_v27 = vor.u32 %v1066_v14, %v1064_v7  ;;  %22145 = vset.pattern.permute.xlu0 %v22893_v54  ;;  %378 = vst [vmem:[#allocation2 + $0x10] sm:$0xf] %v22893_v54  ;;  %379 = vst [vmem:[#allocation2 + $0x14] sm:$0xf] %v22893_v54  ;;  %v22250_v58 = vld [vmem:[%s22999_s24 + $0x20] sm:$0xff]   ;;  %v1106_v61 = vshrl.u32 %v23229_v46, 16 }
  0x62   : > { %380 = vst [vmem:[#allocation2 + $0x18] sm:$0xf] %v22893_v54  ;;  %381 = vst [vmem:[#allocation2 + $0x1c] sm:$0xf] %v22893_v54  ;;  %22146 = vset.pattern.permute.xlu1 %v22893_v54  ;;  %v1110_v62 = vshll.u32 %v23236_v51, 16  ;;  %v1100_v4 = vor.u32 %v1098_v57, %v23231_v48 }
  0x63   : > { %382 = vst [vmem:[#allocation2 + $0x20] sm:$0xf] %v22893_v54  ;;  %383 = vst [vmem:[#allocation2 + $0x24] sm:$0xf] %v22893_v54 }
  0x64   : > { %20173 = vmatpush3.bf16.msra.mxu0 %v22233_v26  ;;  %v23198_v26 = vld [vmem:[%s25957_s1 + $0x1c0] sm:$0xff]   ;;  %384 = vst [vmem:[#allocation2 + $0x28] sm:$0xf] %v22893_v54  ;;  %385 = vst [vmem:[#allocation2 + $0x2c] sm:$0xf] %v22893_v54 }
  0x65   : > { %20174 = vmatprep.subr.bf16.mxu0 %v22239_v45  ;;  %386 = vst [vmem:[#allocation2 + $0x30] sm:$0xf] %v22893_v54  ;;  %387 = vst [vmem:[#allocation2 + $0x34] sm:$0xf] %v22893_v54 }
  0x66   : > { %19895 = vmatmul.mubr.bf16.gmra.mrb[28].mxu1 %v22212_v17  ;;  %v1065_v17 = vsel %vm1021_vm2, %v1060_v6, %v1064_v7  ;;  %388 = vst [vmem:[#allocation2 + $0x38] sm:$0xf] %v22893_v54  ;;  %389 = vst [vmem:[#allocation2 + $0x3c] sm:$0xf] %v22893_v54  ;;  %v3947_v6 = vrot.slane %v22250_v58, 2 }
  0x67   : > { %20139 = vmatmul.mubr.bf16.gmra.mrb[12].mxu0 %v3425_v21  ;;  %19898 = vmatprep.mubr.bf16.mxu1 %v22215_v18  ;;  %v1078_v18 = vshll.u32 %v22240_v10, 16  ;;  %v1072_v21 = vrot.slane %v1070_v8, 1  ;;  %390 = vst [vmem:[#allocation2 + $0x40] sm:$0xf] %v22893_v54  ;;  %391 = vst [vmem:[#allocation2 + $0x44] sm:$0xf] %v22893_v54 }
  0x68   : > { %20142 = vmatprep.mubr.bf16.mxu0 %v3427_v24  ;;  %20175 = vmatpush3.bf16.msra.mxu0 %v22239_v45  ;;  %v3442_v24 = vrot.slane %v23181_v13, 2  ;;  %v3444_v45 = vrot.slane %v23201_v30, 2  ;;  %392 = vst [vmem:[#allocation2 + $0x48] sm:$0xf] %v22893_v54  ;;  %393 = vst [vmem:[#allocation2 + $0x4c] sm:$0xf] %v22893_v54 }
  0x69   : > { %20176 = vmatprep.subr.bf16.mxu0 %v22245_v59  ;;  %v1076_v28 = vor.u32 %v1074_v15, %v1072_v21  ;;  %v1080_v29 = vrot.slane %v1078_v18, 1  ;;  %v1073_v36 = vsel %vm1021_vm2, %v1068_v27, %v1072_v21  ;;  %394 = vst [vmem:[#allocation2 + $0x50] sm:$0xf] %v22893_v54  ;;  %395 = vst [vmem:[#allocation2 + $0x54] sm:$0xf] %v22893_v54  ;;  %v1112_v8 = vrot.slane %v1110_v62, 1 }
  0x6a   : > { %v3443_v42 = vsel %vm3408_vm1, %v3440_v23, %v3442_v24  ;;  %396 = vst [vmem:[#allocation2 + $0x58] sm:$0xf] %v22893_v54  ;;  %397 = vst [vmem:[#allocation2 + $0x5c] sm:$0xf] %v22893_v54  ;;  %v3948_v15 = vsel %vm3408_vm1, %v3945_v49, %v3947_v6  ;;  %v22259_v18 = vld [vmem:[%s22999_s24 + $0x38] sm:$0xff]   ;;  %v22260_v21 = vld [vmem:[%s22999_s24 + $0x70] sm:$0xff]  }
  0x6b   : > { %398 = vst [vmem:[#allocation2 + $0x60] sm:$0xf] %v22893_v54  ;;  %399 = vst [vmem:[#allocation2 + $0x64] sm:$0xf] %v22893_v54  ;;  %v3953_v30 = vrot.slane %v22259_v18, 2  ;;  %v1138_v37 = vshrl.u32 %v22260_v21, 16 }
  0x6c   : > { %20177 = vmatpush3.bf16.msra.mxu0 %v22245_v59  ;;  %400 = vst [vmem:[#allocation2 + $0x68] sm:$0xf] %v22893_v54  ;;  %401 = vst [vmem:[#allocation2 + $0x6c] sm:$0xf] %v22893_v54  ;;  %v3445_v59 = vsel %vm3408_vm1, %v3442_v24, %v3444_v45  ;;  %v23288_v24 = vld [vmem:[%s25957_s1 + $0xc0] sm:$0xff]  }
  0x6d   : > { %20214 = vmatprep.subr.bf16.mxu0 %v23198_v26  ;;  %402 = vst [vmem:[#allocation2 + $0x70] sm:$0xf] %v22893_v54  ;;  %403 = vst [vmem:[#allocation2 + $0x74] sm:$0xf] %v22893_v54 }
  0x6e   : > { %19899 = vmatmul.mubr.bf16.gmra.mrb[32].mxu1 %v22218_v34  ;;  %v1082_v34 = vshrl.u32 %v22240_v10, 16  ;;  %404 = vst [vmem:[#allocation2 + $0x78] sm:$0xf] %v22893_v54  ;;  %405 = vst [vmem:[#allocation2 + $0x7c] sm:$0xf] %v22893_v54 }
  0x6f   : > { %20143 = vmatmul.mubr.bf16.gmra.mrb[16].mxu0 %v3429_v39  ;;  %19918 = vmatprep.mubr.bf16.mxu1 %v1033_v40  ;;  %v3441_v39 = vsel %vm3408_vm1, %v3438_v5, %v3440_v23  ;;  %v1081_v40 = vsel %vm1021_vm2, %v1076_v28, %v1080_v29  ;;  %406 = vst [vmem:[#allocation2 + $0x80] sm:$0xf] %v22893_v54  ;;  %407 = vst [vmem:[#allocation2 + $0x84] sm:$0xf] %v22893_v54  ;;  %v22258_v5 = vld [vmem:[%s22999_s24 + $0x68] sm:$0xff]   ;;  %v3951_v23 = vrot.slane %v22255_v12, 2 }
  0x70   : > { %20146 = vmatprep.mubr.bf16.mxu0 %v3431_v41  ;;  %v23215_v41 = vld [vmem:[%s22999_s24 + $0x10] sm:$0xfc]   ;;  %v1084_v47 = vor.u32 %v1082_v34, %v1080_v29  ;;  %408 = vst [vmem:[#allocation2 + $0x88] sm:$0xf] %v22893_v54  ;;  %409 = vst [vmem:[#allocation2 + $0x8c] sm:$0xf] %v22893_v54 }
  0x71   : > { %v3944_v52 = vrot.slane %v23215_v41, 2  ;;  %410 = vst [vmem:[#allocation2 + $0x90] sm:$0xf] %v22893_v54  ;;  %411 = vst [vmem:[#allocation2 + $0x94] sm:$0xf] %v22893_v54  ;;  %v1126_v14 = vshll.u32 %v22258_v5, 16  ;;  %v3954_v41 = vsel %vm3408_vm1, %v3951_v23, %v3953_v30 }
  0x72   : > { %412 = vst [vmem:[#allocation2 + $0x98] sm:$0xf] %v22893_v54  ;;  %413 = vst [vmem:[#allocation2 + $0x9c] sm:$0xf] %v22893_v54  ;;  %v1089_v56 = vsel %vm1021_vm2, %v1084_v47, %v23220_v43  ;;  %v22264_v28 = vld [vmem:[%s22999_s24 + $0x78] sm:$0xff]   ;;  %v1134_v34 = vshll.u32 %v22260_v21, 16 }
  0x73   : > { %414 = vst [vmem:[#allocation2 + $0xa0] sm:$0xf] %v22893_v54  ;;  %v1128_v27 = vrot.slane %v1126_v14, 1  ;;  %v22272_v62 = vld [vmem:[%s22999_s24 + $0x90] ss:$0 sps:$4 sm:$0x11]  }
  0x74   : > { %v1136_v43 = vrot.slane %v1134_v34, 1  ;;  %v1166_v12 = vshll.u32 %v22272_v62, 16  ;;  %v23388_v62 = vld [vmem:[%s22999_s24 + $0xa0] ss:$0 sps:$4 sm:$0x33]  }
  0x76   : > { %19919 = vmatmul.mubr.bf16.vlgmr.msra.gmra.mrb[0].mxu1 %v1041_v55  ;;  %v1102_v55 = vshll.u32 %v23229_v46, 16  ;;  %v1140_v47 = vor.u32 %v1138_v37, %v1136_v43  ;;  %v23345_v37 = vld [vmem:[%s22999_s24 + $0x28] sm:$0xff]  }
  0x77   : > { %20147 = vmatmul.mubr.bf16.gmra.mrb[20].mxu0 %v3433_v60  ;;  %19955 = vmatpush3.bf16.msra.mxu1 %v23129_v11  ;;  %v1057_v11 = vsel %vm1021_vm2, %v1052_v3, %v1056_v2  ;;  %v1097_v60 = vsel %vm1021_vm2, %v1092_v50, %v23231_v48  ;;  %v22270_v2 = vld [vmem:[%s25957_s1 + $0xb8] sm:$0xff]  }
  0x78   : > { %19922 = vmatprep.mubr.bf16.mxu1 %v1049_v63  ;;  %20150 = vmatprep.mubr.bf16.mxu0 %v3435_v0  ;;  %v22253_v63 = vld [vmem:[%s22999_s24 + $0x28] sm:$0xff]   ;;  %v22254_v0 = vld [vmem:[%s22999_s24 + $0x60] sm:$0xff]   ;;  %v1104_v3 = vrot.slane %v1102_v55, 1  ;;  %v22267_v55 = vld [vmem:[%s22999_s24 + $0x50] sm:$0xff]  }
  0x79   : > { %19956 = vmatprep.subr.bf16.mxu1 %v22232_v1  ;;  %v1118_v10 = vshll.u32 %v22254_v0, 16 }
  0x7a   : > { %v1108_v7 = vor.u32 %v1106_v61, %v1104_v3  ;;  %v1105_v13 = vsel %vm1021_vm2, %v1100_v4, %v1104_v3 }
  0x7b   : > { %19957 = vmatpush3.bf16.msra.mxu1 %v22232_v1  ;;  %v3946_v1 = vsel %vm3408_vm1, %v3944_v52, %v3945_v49  ;;  %v22269_v49 = vld [vmem:[%s22999_s24 + $0x88] sm:$0xff]   ;;  %v1146_v52 = vshrl.u32 %v22264_v28, 16 }
  0x7c   : > { %19958 = vmatprep.subr.bf16.mxu1 %v22238_v9 }
  0x7e   : > { %19923 = vmatmul.mubr.bf16.gmra.mrb[4].mxu1 %v1057_v11  ;;  %v1114_v11 = vshrl.u32 %v23236_v51, 16  ;;  %v22281_v51 = vld [vmem:[%s25957_s1 + $0x1e0] sm:$0xff]  }
  0x7f   : > { %20151 = vmatmul.mubr.bf16.gmra.mrb[24].mxu0 %v3437_v16  ;;  %19926 = vmatprep.mubr.bf16.mxu1 %v1065_v17  ;;  %v1113_v16 = vsel %vm1021_vm2, %v1108_v7, %v1112_v8  ;;  %v1122_v17 = vshrl.u32 %v22254_v0, 16  ;;  %v1162_v7 = vshrl.u32 %v22269_v49, 16 }
  0x80   : > { %20154 = vmatprep.mubr.bf16.mxu0 %v3439_v20  ;;  %19959 = vmatpush3.bf16.msra.mxu1 %v22238_v9  ;;  %v3949_v9 = vrot.slane %v22253_v63, 2  ;;  %v1120_v20 = vrot.slane %v1118_v10, 1  ;;  %v1116_v25 = vor.u32 %v1114_v11, %v1112_v8  ;;  %v22287_v63 = vld [vmem:[%s25957_s1 + $0x1e8] sm:$0xff]   ;;  %v22273_v8 = vld [vmem:[%s22999_s24 + $0x60] sm:$0xff]  }
  0x81   : > { %19960 = vmatprep.subr.bf16.mxu1 %v22244_v22 }
  0x82   : > { %v3950_v19 = vsel %vm3408_vm1, %v3947_v6, %v3949_v9  ;;  %v1124_v29 = vor.u32 %v1122_v17, %v1120_v20  ;;  %v1121_v35 = vsel %vm1021_vm2, %v1116_v25, %v1120_v20  ;;  %v3952_v38 = vsel %vm3408_vm1, %v3949_v9, %v3951_v23  ;;  %v22293_v6 = vld [vmem:[%s25957_s1 + $0x1f0] sm:$0xff]   ;;  %v22276_v9 = vld [vmem:[%s22999_s24 + $0x8] sm:$0xff]   ;;  %v22299_v17 = vld [vmem:[%s25957_s1 + $0x1f8] sm:$0xff]  }
  0x83   : > { %v3963_v20 = vrot.slane %v22273_v8, 2  ;;  %v22278_v25 = vld [vmem:[%s22999_s24 + $0x10] sm:$0xff]  }
  0x84   : > { %19961 = vmatpush3.bf16.msra.mxu1 %v22244_v22  ;;  %v22262_v22 = vld [vmem:[%s25957_s1 + $0x1c8] sm:$0xff]  }
  0x85   : > { %19962 = vmatprep.subr.bf16.mxu1 %v22251_v33 }
  0x86   : > { %19927 = vmatmul.mubr.bf16.gmra.mrb[8].mxu1 %v1073_v36  ;;  %v22261_v36 = vld [vmem:[%s22999_s24 + $0x40] sm:$0xff]  }
  0x87   : > { %20155 = vmatmul.mubr.bf16.gmra.mrb[28].mxu0 %v3441_v39  ;;  %19930 = vmatprep.mubr.bf16.mxu1 %v1081_v40  ;;  %v1142_v39 = vshll.u32 %v22264_v28, 16  ;;  %v22265_v40 = vld [vmem:[%s22999_s24 + $0x48] sm:$0xff]   ;;  %v3955_v46 = vrot.slane %v22261_v36, 2 }
  0x88   : > { %20158 = vmatprep.mubr.bf16.mxu0 %v3443_v42  ;;  %19963 = vmatpush3.bf16.msra.mxu1 %v22251_v33  ;;  %v1130_v33 = vshrl.u32 %v22258_v5, 16  ;;  %v22274_v42 = vld [vmem:[%s25957_s1 + $0x1d8] sm:$0xff]   ;;  %v3957_v50 = vrot.slane %v22265_v40, 2 }
  0x89   : > { %19964 = vmatprep.subr.bf16.mxu1 %v23225_v44  ;;  %v1144_v48 = vrot.slane %v1142_v39, 1  ;;  %v3956_v57 = vsel %vm3408_vm1, %v3953_v30, %v3955_v46  ;;  %v22283_v30 = vld [vmem:[%s22999_s24 + $0x78] sm:$0xff]   ;;  %v23351_v39 = vld [vmem:[%s22999_s24 + $0x30] sm:$0xff]  }
  0x8a   : > { %v1132_v45 = vor.u32 %v1130_v33, %v1128_v27  ;;  %v3958_v61 = vsel %vm3408_vm1, %v3955_v46, %v3957_v50 }
  0x8b   : > { %v1145_v58 = vsel %vm1021_vm2, %v1140_v47, %v1144_v48  ;;  %v23362_v47 = vld [vmem:[%s22999_s24 + $0x38] sm:$0xff]  }
  0x8c   : > { %19965 = vmatpush3.bf16.msra.mxu1 %v23225_v44  ;;  %v22266_v44 = vld [vmem:[%s22999_s24 + $0x80] sm:$0xff]   ;;  %v1137_v54 = vsel %vm1021_vm2, %v1132_v45, %v1136_v43  ;;  %v3969_v43 = vrot.slane %v22283_v30, 2 }
  0x8d   : > { %19966 = vmatprep.subr.bf16.mxu1 %v23243_v53  ;;  %v23359_v45 = vld [vmem:[%s25957_s1 + $0x200] sm:$0xff]  }
  0x8e   : > { %19931 = vmatmul.mubr.bf16.gmra.mrb[12].mxu1 %v1089_v56  ;;  %v1154_v56 = vshrl.u32 %v22266_v44, 16 }
  0x8f   : > { %20159 = vmatmul.mubr.bf16.gmra.mrb[32].mxu0 %v3445_v59  ;;  %19934 = vmatprep.mubr.bf16.mxu1 %v1097_v60  ;;  %v1158_v59 = vshll.u32 %v22269_v49, 16  ;;  %v22271_v60 = vld [vmem:[%s22999_s24 + $0x58] sm:$0xff]   ;;  %v22286_v49 = vld [vmem:[%s25957_s1 + $0xc8] sm:$0xff]  }
  0x90   : > { %20178 = vmatprep.mubr.bf16.mxu0 %v3946_v1  ;;  %19967 = vmatpush3.bf16.msra.mxu1 %v23243_v53  ;;  %v1150_v53 = vshll.u32 %v22266_v44, 16  ;;  %v1148_v1 = vor.u32 %v1146_v52, %v1144_v48  ;;  %v3961_v5 = vrot.slane %v22271_v60, 2  ;;  %v22292_v60 = vld [vmem:[%s25957_s1 + $0xd0] sm:$0xff]  }
  0x91   : > { %19968 = vmatprep.subr.bf16.mxu1 %v22270_v2  ;;  %v1160_v4 = vrot.slane %v1158_v59, 1  ;;  %v22301_v59 = vld [vmem:[%s22999_s24 + $0x10] sm:$0xfc]  }
  0x92   : > { %v1152_v0 = vrot.slane %v1150_v53, 1  ;;  %v3964_v33 = vsel %vm3408_vm1, %v3961_v5, %v3963_v20 }
  0x93   : > { %v1164_v18 = vor.u32 %v1162_v7, %v1160_v4 }
  0x94   : > { %19969 = vmatpush3.bf16.msra.mxu1 %v22270_v2  ;;  %v3959_v2 = vrot.slane %v22267_v55, 2  ;;  %v1156_v3 = vor.u32 %v1154_v56, %v1152_v0  ;;  %v1153_v10 = vsel %vm1021_vm2, %v1148_v1, %v1152_v0  ;;  %v23378_v56 = vld [vmem:[%s22999_s24 + $0x40] sm:$0xff]   ;;  %v22302_v0 = vld [vmem:[%s22999_s24 + $0x18] sm:$0xff]  }
  0x95   : > { %20006 = vmatprep.subr.bf16.mxu1 %v23288_v24  ;;  %v1684_v1 = vrot.slane %v23378_v56, 1  ;;  %v4492_v8 = vshll.u32 %v22302_v0, 16  ;;  %v23541_v56 = vld [vmem:[%s25964_s8 + $0x28] sm:$0xff] }
  0x96   : > { %19935 = vmatmul.mubr.bf16.gmra.mrb[16].mxu1 %v1105_v13  ;;  %v22277_v13 = vld [vmem:[%s22999_s24 + $0x68] sm:$0xff]   ;;  %v3960_v11 = vsel %vm3408_vm1, %v3957_v50, %v3959_v2  ;;  %v1161_v14 = vsel %vm1021_vm2, %v1156_v3, %v1160_v4  ;;  %v1678_v50 = vrot.slane %v23345_v37, 1  ;;  %v4481_v3 = vshrl.u32 %v22301_v59, 16 }
  0x97   : > { %20179 = vmatmul.mubr.bf16.vlgmr.msra.gmra.mrb[0].mxu0 %v3948_v15  ;;  %19938 = vmatprep.mubr.bf16.mxu1 %v1113_v16  ;;  %v22275_v15 = vld [vmem:[%s22999_s24] sm:$0xfe]   ;;  %v3962_v16 = vsel %vm3408_vm1, %v3959_v2, %v3961_v5  ;;  %v3965_v23 = vrot.slane %v22277_v13, 2  ;;  %v23395_v2 = vld [vmem:[%s22999_s24 + $0x48] sm:$0xff]   ;;  %v4484_v4 = vshll.u32 %v22301_v59, 16  ;;  %v23398_v5 = vld [vmem:[%s22999_s24 + $0x50] sm:$0xff]  }
  0x98   : > { %20182 = vmatprep.mubr.bf16.mxu0 %v3950_v19  ;;  %20215 = vmatpush3.bf16.msra.mxu0 %v23198_v26  ;;  %v1129_v26 = vsel %vm1021_vm2, %v1124_v29, %v1128_v27  ;;  %v1168_v19 = vrot.slane %v1166_v12, 1  ;;  %v1669_v21 = vrot.slane %v22275_v15, 1  ;;  %v22280_v27 = vld [vmem:[%s22999_s24 + $0x70] sm:$0xff]   ;;  %v22282_v29 = vld [vmem:[%s22999_s24 + $0x18] sm:$0xff]   ;;  %v3979_v12 = vrot.slane %v23388_v62, 2 }
  0x99   : > { %20216 = vmatprep.subr.bf16.mxu0 %v22262_v22  ;;  %v3966_v36 = vsel %vm3408_vm1, %v3963_v20, %v3965_v23  ;;  %v3967_v40 = vrot.slane %v22280_v27, 2  ;;  %v22298_v13 = vld [vmem:[%s25957_s1 + $0xd8] sm:$0xff]   ;;  %v23414_v15 = vrot.slane %v4481_v3, 2  ;;  %v23421_v20 = vrot.slane %v4484_v4, 3 }
  0x9a   : > { %v1169_v28 = vsel %vm1021_vm2, %v1164_v18, %v1168_v19  ;;  %v5616_v19 = vld [vmem:[%s25964_s8] sm:$0xff]  ;;  %v23425_v27 = vld [vmem:[%s22999_s24 + $0x58] sm:$0xff]  }
  0x9b   : > { %v3968_v52 = vsel %vm3408_vm1, %v3965_v23, %v3967_v40  ;;  %v1688_v23 = vrot.slane %v23398_v5, 1  ;;  %5654 = vperm.xlu0 %22145, %v5616_v19   ;;  %v23489_v59 = vld [vmem:[%s25964_s8 + $0x18] sm:$0xff]  ;;  %v23611_v5 = vld [vmem:[%s25957_s1 + $0x100] sm:$0xff]  }
  0x9c   : > { %20217 = vmatpush3.bf16.msra.mxu0 %v22262_v22  ;;  %v1670_v22 = vrot.slane %v22276_v9, 1 }
  0x9d   : > { %20218 = vmatprep.subr.bf16.mxu0 %v22268_v32 }
  0x9e   : > { %19939 = vmatmul.mubr.bf16.gmra.mrb[20].mxu1 %v1121_v35  ;;  %v1671_v34 = vsel %vm1668_vm3, %v1669_v21, %v1670_v22  ;;  %v22285_v35 = vld [vmem:[%s22999_s24 + $0x80] sm:$0xff]  }
  0x9f   : > { %20183 = vmatmul.mubr.bf16.gmra.mrb[4].mxu0 %v3952_v38  ;;  %19942 = vmatprep.mubr.bf16.mxu1 %v1129_v26  ;;  %v23348_v38 = vld [vmem:[%s22999_s24 + $0x88] sm:$0xff]   ;;  %v1672_v26 = vrot.slane %v22278_v25, 1  ;;  %v3971_v46 = vrot.slane %v22285_v35, 2 }
  0xa0   : > { %20186 = vmatprep.mubr.bf16.mxu0 %v3954_v41  ;;  %20219 = vmatpush3.bf16.msra.mxu0 %v22268_v32  ;;  %v22284_v32 = vld [vmem:[%s22999_s24 + $0x20] sm:$0xff]   ;;  %v23354_v41 = vld [vmem:[%s22999_s24 + $0x90] sm:$0xff]   ;;  %v3973_v53 = vrot.slane %v23348_v38, 2 }
  0xa1   : > { %20220 = vmatprep.subr.bf16.mxu0 %v22274_v42  ;;  %v1676_v44 = vrot.slane %v22284_v32, 1  ;;  %v1673_v48 = vsel %vm1668_vm3, %v1670_v22, %v1672_v26  ;;  %v3975_v55 = vrot.slane %v23354_v41, 2  ;;  %v3972_v9 = vsel %vm3408_vm1, %v3969_v43, %v3971_v46  ;;  %v23431_v32 = vld [vmem:[%s22999_s24 + $0x60] sm:$0xff]   ;;  %v23480_v41 = vld [vmem:[%s25964_s8 + $0x8] sm:$0xff] }
  0xa2   : > { %v4494_v22 = vrot.slane %v4492_v8, 3  ;;  %5659 = vperm.xlu0 %22145, %v23480_v41   ;;  %v23501_v8 = vld [vmem:[%s25964_s8 + $0x20] sm:$0xff] }
  0xa4   : > { %20221 = vmatpush3.bf16.msra.mxu0 %v22274_v42  ;;  %v1674_v42 = vrot.slane %v22282_v29, 1 }
  0xa5   : > { %20222 = vmatprep.subr.bf16.mxu0 %v22281_v51 }
  0xa6   : > { %19943 = vmatmul.mubr.bf16.gmra.mrb[24].mxu1 %v1137_v54  ;;  %v1680_v54 = vrot.slane %v23351_v39, 1  ;;  %v1677_v7 = vsel %vm1668_vm3, %v1674_v42, %v1676_v44  ;;  %5674 = vperm.xlu0 %22145, %v23501_v8  }
  0xa7   : > { %20187 = vmatmul.mubr.bf16.gmra.mrb[8].mxu0 %v3956_v57  ;;  %19946 = vmatprep.mubr.bf16.mxu1 %v1145_v58  ;;  %v1675_v57 = vsel %vm1668_vm3, %v1672_v26, %v1674_v42  ;;  %v3970_v58 = vsel %vm3408_vm1, %v3967_v40, %v3969_v43  ;;  %v23441_v26 = vld [vmem:[%s22999_s24 + $0x68] sm:$0xff]   ;;  %v3976_v40 = vsel %vm3408_vm1, %v3973_v53, %v3975_v55  ;;  %v1690_v43 = vrot.slane %v23425_v27, 1 }
  0xa8   : > { %20190 = vmatprep.mubr.bf16.mxu0 %v3958_v61  ;;  %20223 = vmatpush3.bf16.msra.mxu0 %v22281_v51  ;;  %v23370_v51 = vld [vmem:[%s22999_s24 + $0x98] sm:$0xff]   ;;  %v1682_v61 = vrot.slane %v23362_v47, 1  ;;  %v1681_v35 = vsel %vm1668_vm3, %v1678_v50, %v1680_v54 }
  0xa9   : > { %20224 = vmatprep.subr.bf16.mxu0 %v22287_v63 }
  0xaa   : > { %v1683_v42 = vsel %vm1668_vm3, %v1680_v54, %v1682_v61 }
  0xac   : > { %20225 = vmatpush3.bf16.msra.mxu0 %v22287_v63  ;;  %v3977_v63 = vrot.slane %v23370_v51, 2  ;;  %v22324_v51 = vld [vmem:[%s25957_s1 + $0xf8] sm:$0xff]  }
  0xad   : > { %20226 = vmatprep.subr.bf16.mxu0 %v22293_v6 }
  0xae   : > { %19947 = vmatmul.mubr.bf16.gmra.mrb[28].mxu1 %v1153_v10  ;;  %v1679_v10 = vsel %vm1668_vm3, %v1676_v44, %v1678_v50  ;;  %v22311_v44 = vld [vmem:[%s25957_s1 + $0xe8] sm:$0xff]   ;;  %v3978_v38 = vsel %vm3408_vm1, %v3975_v55, %v3977_v63  ;;  %v23469_v50 = vld [vmem:[%s22999_s24 + $0x70] sm:$0xff]  }
  0xaf   : > { %20191 = vmatmul.mubr.bf16.gmra.mrb[12].mxu0 %v3960_v11  ;;  %19950 = vmatprep.mubr.bf16.mxu1 %v1161_v14  ;;  %v3974_v11 = vsel %vm3408_vm1, %v3971_v46, %v3973_v53  ;;  %v1686_v14 = vrot.slane %v23395_v2, 1  ;;  %v22313_v46 = vld [vmem:[%s22999_s24 + $0x38] sm:$0xff]   ;;  %v5618_v53 = vld [vmem:[%s25964_s8 + $0x10] sm:$0xff]  ;;  %v1691_v2 = vsel %vm1668_vm3, %v1688_v23, %v1690_v43 }
  0xb0   : > { %20194 = vmatprep.mubr.bf16.mxu0 %v3962_v16  ;;  %20227 = vmatpush3.bf16.msra.mxu0 %v22293_v6  ;;  %v22304_v6 = vld [vmem:[%s22999_s24 + $0x20] sm:$0xff]   ;;  %v22307_v16 = vld [vmem:[%s22999_s24 + $0x28] sm:$0xff]   ;;  %v4525_v3 = vshrl.u32 %v22313_v46, 16  ;;  %v4528_v4 = vshll.u32 %v22313_v46, 16 }
  0xb1   : > { %20228 = vmatprep.subr.bf16.mxu0 %v22299_v17  ;;  %v4498_v18 = vshrl.u32 %v22304_v6, 16  ;;  %v4501_v25 = vshll.u32 %v22304_v6, 16  ;;  %v4507_v29 = vshrl.u32 %v22307_v16, 16  ;;  %v4510_v30 = vshll.u32 %v22307_v16, 16  ;;  %5664 = vperm.xlu1 %22146, %v5618_v53   ;;  %v22316_v46 = vld [vmem:[%s25957_s1 + $0x208] sm:$0xff]  }
  0xb2   : > { %v3980_v16 = vsel %vm3408_vm1, %v3977_v63, %v3979_v12  ;;  %v1687_v47 = vsel %vm1668_vm3, %v1684_v1, %v1686_v14  ;;  %v23527_v19 = vrot.slane %v4525_v3, 2  ;;  %v22325_v63 = vld [vmem:[%s22999_s24 + $0x58] sm:$0xff]   ;;  %v23549_v12 = vld [vmem:[%s25964_s8 + $0x30] sm:$0xff]  ;;  %v23602_v3 = vld [vmem:[%s22999_s24 + $0x8] sm:$0xfe]  }
  0xb3   : > { %v23453_v37 = vrot.slane %v4501_v25, 3  ;;  %v23465_v39 = vrot.slane %v4507_v29, 2  ;;  %5684 = vperm.xlu0 %22145, %v23549_v12  }
  0xb4   : > { %20229 = vmatpush3.bf16.msra.mxu0 %v22299_v17  ;;  %v22309_v17 = vld [vmem:[%s22999_s24 + $0x30] sm:$0xff]  }
  0xb5   : > { %20266 = vmatprep.subr.bf16.mxu0 %v23359_v45  ;;  %5669 = vperm.xlu1 %22146, %v23489_v59  }
  0xb6   : > { %19951 = vmatmul.mubr.bf16.gmra.mrb[32].mxu1 %v1169_v28  ;;  %v22305_v28 = vld [vmem:[%s25957_s1 + $0xe0] sm:$0xff]  }
  0xb7   : > { %20195 = vmatmul.mubr.bf16.gmra.mrb[16].mxu0 %v3964_v33  ;;  %19970 = vmatprep.mubr.bf16.mxu1 %v1671_v34  ;;  %v23433_v33 = vrot.slane %v4498_v18, 2  ;;  %v4516_v34 = vshrl.u32 %v22309_v17, 16 }
  0xb8   : > { %20198 = vmatprep.mubr.bf16.mxu0 %v3966_v36  ;;  %v4519_v36 = vshll.u32 %v22309_v17, 16  ;;  %v22321_v17 = vld [vmem:[%s22999_s24 + $0x50] sm:$0xff]  }
  0xb9   : > { %v23475_v54 = vrot.slane %v4516_v34, 2  ;;  %5679 = vperm.xlu1 %22146, %v23541_v56   ;;  %v4504_v29 = vor.u32 %v23453_v37, %v23433_v33  ;;  %v4552_v34 = vshrl.u32 %v22321_v17, 16  ;;  %v23574_v33 = vld [vmem:[%s25964_s8 + $0x40] sm:$0xff]  ;;  %v1689_v37 = vsel %vm1668_vm3, %v1686_v14, %v1688_v23 }
  0xba   : > { %v23482_v55 = vrot.slane %v4519_v36, 3  ;;  %v4555_v36 = vshll.u32 %v22321_v17, 16  ;;  %5694 = vperm.xlu0 %22145, %v23574_v33  }
  0xbb   : > { %v23598_v14 = vrot.slane %v4552_v34, 2 }
  0xbc   : > { %v23615_v23 = vrot.slane %v4555_v36, 3 }
  0xbe   : > { %19971 = vmatmul.mubr.bf16.vlgmr.msra.gmra.mrb[0].mxu1 %v1673_v48  ;;  %v4512_v48 = vrot.slane %v4510_v30, 3 }
  0xbf   : > { %20199 = vmatmul.mubr.bf16.gmra.mrb[20].mxu0 %v3968_v52  ;;  %20007 = vmatpush3.bf16.msra.mxu1 %v23288_v24  ;;  %v4489_v24 = vshrl.u32 %v22302_v0, 16  ;;  %v22315_v52 = vld [vmem:[%s22999_s24 + $0x40] sm:$0xff]  }
  0xc0   : > { %19974 = vmatprep.mubr.bf16.mxu1 %v1675_v57  ;;  %20202 = vmatprep.mubr.bf16.mxu0 %v3970_v58  ;;  %v1694_v57 = vrot.slane %v23441_v26, 1  ;;  %v22319_v58 = vld [vmem:[%s22999_s24 + $0x48] sm:$0xff]   ;;  %v4534_v6 = vshrl.u32 %v22315_v52, 16 }
  0xc1   : > { %20008 = vmatprep.subr.bf16.mxu1 %v22286_v49  ;;  %v4491_v21 = vrot.slane %v4489_v24, 2  ;;  %v4537_v24 = vshll.u32 %v22315_v52, 16  ;;  %v4564_v52 = vshll.u32 %v22325_v63, 16 }
  0xc2   : > { %v23531_v62 = vrot.slane %v4534_v6, 2  ;;  %v23618_v6 = vld [vmem:[%s22999_s24 + $0x18] sm:$0xff]  }
  0xc3   : > { %20009 = vmatpush3.bf16.msra.mxu1 %v22286_v49  ;;  %v1692_v49 = vrot.slane %v23431_v32, 1  ;;  %v4495_v0 = vor.u32 %v4494_v22, %v4491_v21  ;;  %v23694_v32 = vld [vmem:[%s25964_s8 + $0x70] sm:$0xff] }
  0xc4   : > { %20010 = vmatprep.subr.bf16.mxu1 %v22292_v60 }
  0xc5   : > { %v1695_v27 = vsel %vm1668_vm3, %v1692_v49, %v1694_v57 }
  0xc6   : > { %19975 = vmatmul.mubr.bf16.gmra.mrb[4].mxu1 %v1677_v7  ;;  %v22317_v7 = vld [vmem:[%s25957_s1 + $0xf0] sm:$0xff]  }
  0xc7   : > { %20203 = vmatmul.mubr.bf16.gmra.mrb[24].mxu0 %v3972_v9  ;;  %19978 = vmatprep.mubr.bf16.mxu1 %v1679_v10  ;;  %v1685_v9 = vsel %vm1668_vm3, %v1682_v61, %v1684_v1  ;;  %v1696_v10 = vrot.slane %v23469_v50, 1  ;;  %v4546_v61 = vshll.u32 %v22319_v58, 16  ;;  %v23543_v1 = vrot.slane %v4537_v24, 3  ;;  %v22322_v24 = vld [vmem:[%s25957_s1 + $0x210] sm:$0xff]  }
  0xc8   : > { %20206 = vmatprep.mubr.bf16.mxu0 %v3974_v11  ;;  %20011 = vmatpush3.bf16.msra.mxu1 %v22292_v60  ;;  %v4487_v60 = vor.u32 %v23421_v20, %v23414_v15  ;;  %v4543_v11 = vshrl.u32 %v22319_v58, 16  ;;  %v23513_v15 = vld [vmem:[%s22999_s24 + $0x80] sm:$0xff]   ;;  %v23529_v20 = vrot.slane %v4528_v4, 3  ;;  %v23605_v4 = vld [vmem:[%s22999_s24 + $0x10] sm:$0xff]  }
  0xc9   : > { %20012 = vmatprep.subr.bf16.mxu1 %v22298_v13  ;;  %v1700_v25 = vrot.slane %v23513_v15, 1  ;;  %v23562_v30 = vrot.slane %v4546_v61, 3  ;;  %v4522_v61 = vor.u32 %v23482_v55, %v23475_v54  ;;  %v22336_v54 = vld [vmem:[%s22999_s24 + $0x78] sm:$0xff]   ;;  %v23658_v55 = vld [vmem:[%s25964_s8 + $0x60] sm:$0xff] }
  0xca   : > { %v4496_v18 = vsel %vm4479_vm4, %v4487_v60, %v4495_v0  ;;  %v23552_v22 = vrot.slane %v4543_v11, 2  ;;  %v4531_v17 = vor.u32 %v23529_v20, %v23527_v19  ;;  %v1693_v19 = vsel %vm1668_vm3, %v1690_v43, %v1692_v49  ;;  %v22328_v20 = vld [vmem:[%s25957_s1 + $0x218] sm:$0xff]  }
  0xcb   : > { %v4540_v49 = vor.u32 %v23543_v1, %v23531_v62 }
  0xcc   : > { %20013 = vmatpush3.bf16.msra.mxu1 %v22298_v13  ;;  %v23510_v13 = vld [vmem:[%s22999_s24 + $0x78] sm:$0xff]   ;;  %v4549_v62 = vor.u32 %v23562_v30, %v23552_v22  ;;  %v23727_v22 = vld [vmem:[%s25964_s8 + $0x80] sm:$0xff]  ;;  %v1697_v30 = vsel %vm1668_vm3, %v1694_v57, %v1696_v10 }
  0xcd   : > { %20014 = vmatprep.subr.bf16.mxu1 %v22305_v28  ;;  %v1698_v21 = vrot.slane %v23510_v13, 1  ;;  %26007 = vst [vmem:[#allocation5_spill] sm:$0xff] %v23727_v22 }
  0xce   : > { %19979 = vmatmul.mubr.bf16.gmra.mrb[8].mxu1 %v1681_v35  ;;  %v4513_v35 = vor.u32 %v4512_v48, %v23465_v39  ;;  %v23590_v39 = vld [vmem:[%s25964_s8 + $0x48] sm:$0xff]  ;;  %v4505_v48 = vsel %vm4479_vm4, %v4495_v0, %v4504_v29  ;;  %v4550_v34 = vsel %vm4479_vm4, %v4540_v49, %v4549_v62 }
  0xcf   : > { %20207 = vmatmul.mubr.bf16.gmra.mrb[28].mxu0 %v3976_v40  ;;  %19982 = vmatprep.mubr.bf16.mxu1 %v1683_v42  ;;  %v23566_v40 = vld [vmem:[%s22999_s24 + $0x88] sm:$0xff]   ;;  %v22327_v42 = vld [vmem:[%s22999_s24 + $0x60] sm:$0xff]   ;;  %v1699_v26 = vsel %vm1668_vm3, %v1696_v10, %v1698_v21 }
  0xd0   : > { %20210 = vmatprep.mubr.bf16.mxu0 %v3978_v38  ;;  %20015 = vmatpush3.bf16.msra.mxu1 %v22305_v28  ;;  %v23558_v28 = vld [vmem:[%s25964_s8 + $0x38] sm:$0xff]  ;;  %v23585_v38 = vld [vmem:[%s22999_s24 + $0x90] ss:$0 sps:$4 sm:$0x11]   ;;  %v4514_v53 = vsel %vm4479_vm4, %v4504_v29, %v4513_v35  ;;  %v4570_v58 = vshrl.u32 %v22327_v42, 16  ;;  %v4573_v60 = vshll.u32 %v22327_v42, 16 }
  0xd1   : > { %20016 = vmatprep.subr.bf16.mxu1 %v22311_v44  ;;  %5689 = vperm.xlu1 %22146, %v23558_v28   ;;  %v22331_v0 = vld [vmem:[%s22999_s24 + $0x68] sm:$0xff]  }
  0xd2   : > { %v23648_v29 = vrot.slane %v4573_v60, 3  ;;  %v4579_v36 = vshrl.u32 %v22331_v0, 16  ;;  %v4582_v42 = vshll.u32 %v22331_v0, 16  ;;  %v4597_v0 = vshrl.u32 %v22336_v54, 16 }
  0xd4   : > { %20017 = vmatpush3.bf16.msra.mxu1 %v22311_v44  ;;  %v4561_v44 = vshrl.u32 %v22325_v63, 16  ;;  %v23646_v63 = vrot.slane %v4570_v58, 2  ;;  %v4532_v58 = vsel %vm4479_vm4, %v4522_v61, %v4531_v17 }
  0xd5   : > { %20018 = vmatprep.subr.bf16.mxu1 %v22317_v7  ;;  %5699 = vperm.xlu1 %22146, %v23590_v39  }
  0xd6   : > { %19983 = vmatmul.mubr.bf16.gmra.mrb[12].mxu1 %v1685_v9  ;;  %v23630_v11 = vrot.slane %v4561_v44, 2  ;;  %v23669_v44 = vld [vmem:[%s22999_s24 + $0x20] sm:$0xff]  }
  0xd7   : > { %20211 = vmatmul.mubr.bf16.gmra.mrb[32].mxu0 %v3980_v16  ;;  %19986 = vmatprep.mubr.bf16.mxu1 %v1687_v47  ;;  %v22333_v16 = vld [vmem:[%s22999_s24 + $0x70] sm:$0xff]   ;;  %v23636_v47 = vld [vmem:[%s25964_s8 + $0x58] sm:$0xff]  ;;  %v22348_v9 = vld [vmem:[%s22999_s24 + $0xa0] ss:$0 sps:$4 sm:$0x77]  }
  0xd8   : > { %20230 = vmatprep.mubr.bf16.mxu0 %v4496_v18  ;;  %20019 = vmatpush3.bf16.msra.mxu1 %v22317_v7  ;;  %v23624_v7 = vld [vmem:[%s25964_s8 + $0x50] sm:$0xff]  ;;  %v23643_v18 = vrot.slane %v4564_v52, 3  ;;  %v23684_v52 = vld [vmem:[%s22999_s24 + $0x28] sm:$0xff]   ;;  %v4591_v60 = vshll.u32 %v22333_v16, 16  ;;  %v4642_v31 = vshrl.u32 %v22348_v9, 16  ;;  %v4645_v15 = vshll.u32 %v22348_v9, 16 }
  0xd9   : > { %20020 = vmatprep.subr.bf16.mxu1 %v22324_v51  ;;  %5704 = vperm.xlu0 %22145, %v23624_v7  }
  0xda   : > { %5709 = vperm.xlu1 %22146, %v23636_v47  }
  0xdc   : > { %20021 = vmatpush3.bf16.msra.mxu1 %v22324_v51  ;;  %v23790_v51 = vld [vmem:[%s22999_s24 + $0x48] sm:$0xff]  }
  0xdd   : > { %21254 = vmatprep.subr.bf16.mxu1 %v23611_v5  ;;  %5714 = vperm.xlu0 %22145, %v23658_v55  }
  0xde   : > { %19987 = vmatmul.mubr.bf16.gmra.mrb[16].mxu1 %v1689_v37  ;;  %v23674_v37 = vld [vmem:[%s25964_s8 + $0x68] sm:$0xff] }
  0xdf   : > { %20231 = vmatmul.mubr.bf16.vlgmr.msra.gmra.mrb[0].mxu0 %v4505_v48  ;;  %19990 = vmatprep.mubr.bf16.mxu1 %v1691_v2  ;;  %v4523_v48 = vsel %vm4479_vm4, %v4513_v35, %v4522_v61  ;;  %v4588_v2 = vshrl.u32 %v22333_v16, 16  ;;  %v22341_v35 = vld [vmem:[%s22999_s24 + $0x88] sm:$0xff]   ;;  %v4600_v16 = vshll.u32 %v22336_v54, 16  ;;  %v23704_v61 = vld [vmem:[%s25964_s8 + $0x78] sm:$0xff]  ;;  %v23714_v54 = vrot.slane %v4591_v60, 3 }
  0xe0   : > { %20234 = vmatprep.mubr.bf16.mxu0 %v4514_v53  ;;  %20267 = vmatpush3.bf16.msra.mxu0 %v23359_v45  ;;  %v22338_v53 = vld [vmem:[%s22999_s24 + $0x80] sm:$0xff]   ;;  %v23718_v45 = vld [vmem:[%s22999_s24 + $0x30] sm:$0xff]   ;;  %v22339_v60 = vld [vmem:[%s25957_s1 + $0x228] sm:$0xff]  }
  0xe1   : > { %20268 = vmatprep.subr.bf16.mxu0 %v22316_v46  ;;  %5719 = vperm.xlu1 %22146, %v23674_v37   ;;  %v4609_v43 = vshll.u32 %v22338_v53, 16  ;;  %v23712_v1 = vrot.slane %v4588_v2, 2  ;;  %v4541_v2 = vsel %vm4479_vm4, %v4531_v17, %v4540_v49  ;;  %v23776_v49 = vld [vmem:[%s25964_s8 + $0x98] sm:$0xff] }
  0xe2   : > { %5724 = vperm.xlu0 %22145, %v23694_v32   ;;  %26010 = vst [vmem:[#allocation8_spill] sm:$0xff] %v23776_v49 }
  0xe3   : > { %v23754_v17 = vrot.slane %v4609_v43, 3 }
  0xe4   : > { %20269 = vmatpush3.bf16.msra.mxu0 %v22316_v46  ;;  %v22334_v46 = vld [vmem:[%s25957_s1 + $0x220] sm:$0xff]  }
  0xe5   : > { %20270 = vmatprep.subr.bf16.mxu0 %v22322_v24  ;;  %5729 = vperm.xlu1 %22146, %v23704_v61  }
  0xe6   : > { %19991 = vmatmul.mubr.bf16.gmra.mrb[20].mxu1 %v1693_v19  ;;  %v23706_v19 = vrot.slane %v4579_v36, 2  ;;  %v4615_v36 = vshrl.u32 %v22341_v35, 16  ;;  %5734 = vperm.xlu0 %22145, %v23727_v22   ;;  %v23983_v22 = vld [vmem:[%s22999_s24 + $0x98] ss:$0 sps:$4 sm:$0x11]  }
  0xe7   : > { %20235 = vmatmul.mubr.bf16.gmra.mrb[4].mxu0 %v4523_v48  ;;  %19994 = vmatprep.mubr.bf16.mxu1 %v1695_v27  ;;  %v23708_v48 = vrot.slane %v4582_v42, 3  ;;  %v4606_v27 = vshrl.u32 %v22338_v53, 16  ;;  %v22343_v42 = vld [vmem:[%s22999_s24 + $0x90] sm:$0xff]   ;;  %v23735_v53 = vrot.slane %v4597_v0, 2  ;;  %v4618_v0 = vshll.u32 %v22341_v35, 16 }
  0xe8   : > { %20238 = vmatprep.mubr.bf16.mxu0 %v4532_v58  ;;  %20271 = vmatpush3.bf16.msra.mxu0 %v22322_v24  ;;  %v23737_v58 = vrot.slane %v4600_v16, 3  ;;  %v23745_v24 = vld [vmem:[%s25964_s8 + $0x88] sm:$0xff]  ;;  %v23757_v16 = vld [vmem:[%s22999_s24 + $0x38] sm:$0xff]   ;;  %v23762_v50 = vrot.slane %v4615_v36, 2  ;;  %v4624_v10 = vshrl.u32 %v22343_v42, 16  ;;  %v4627_v43 = vshll.u32 %v22343_v42, 16 }
  0xe9   : > { %20272 = vmatprep.subr.bf16.mxu0 %v22328_v20  ;;  %26008 = vst [vmem:[#allocation6_spill] sm:$0xff] %v23745_v24  ;;  %v23752_v57 = vrot.slane %v4606_v27, 2  ;;  %5739 = vperm.xlu1 %22146, %v23745_v24   ;;  %v22344_v35 = vld [vmem:[%s25957_s1 + $0x230] sm:$0xff]   ;;  %v4558_v27 = vor.u32 %v23615_v23, %v23598_v14  ;;  %v4567_v42 = vor.u32 %v23643_v18, %v23630_v11  ;;  %v23800_v14 = vld [vmem:[%s25964_s8 + $0xa0] sm:$0xff]  ;;  %v23812_v18 = vld [vmem:[%s25964_s8 + $0xa8] sm:$0xff] }
  0xea   : > { %26011 = vst [vmem:[#allocation9_spill] sm:$0xff] %v23800_v14  ;;  %v1701_v23 = vsel %vm1668_vm3, %v1698_v21, %v1700_v25  ;;  %v23807_v11 = vrot.slane %v4627_v43, 3  ;;  %26012 = vst [vmem:[#allocation10_spill] sm:$0xff] %v23812_v18  ;;  %v4585_v9 = vor.u32 %v23708_v48, %v23706_v19  ;;  %v23913_v24 = vld [vmem:[%s22999_s24 + $0x38] sm:$0xff]  }
  0xeb   : > { %v4568_v43 = vsel %vm4479_vm4, %v4558_v27, %v4567_v42 }
  0xec   : > { %20273 = vmatpush3.bf16.msra.mxu0 %v22328_v20  ;;  %v23768_v20 = vld [vmem:[%s25964_s8 + $0x90] sm:$0xff] }
  0xed   : > { %20274 = vmatprep.subr.bf16.mxu0 %v22334_v46  ;;  %26009 = vst [vmem:[#allocation7_spill] sm:$0xff] %v23768_v20  ;;  %5744 = vperm.xlu0 %22145, %v23768_v20   ;;  %v23910_v20 = vld [vmem:[%s22999_s24 + $0x70] sm:$0xff]  }
  0xee   : > { %19995 = vmatmul.mubr.bf16.gmra.mrb[24].mxu1 %v1697_v30  ;;  %v22346_v30 = vld [vmem:[%s22999_s24 + $0x98] sm:$0xff]   ;;  %5749 = vperm.xlu1 %22146, %v23776_v49  }
  0xef   : > { %20239 = vmatmul.mubr.bf16.gmra.mrb[8].mxu0 %v4541_v2  ;;  %19998 = vmatprep.mubr.bf16.mxu1 %v1699_v26  ;;  %v23784_v2 = vrot.slane %v4618_v0, 3  ;;  %v23787_v26 = vld [vmem:[%s22999_s24 + $0x40] sm:$0xff]   ;;  %v26013_v0 = vrot.slane %v23566_v40, 1  ;;  %v4633_v21 = vshrl.u32 %v22346_v30, 16  ;;  %v4636_v36 = vshll.u32 %v22346_v30, 16 }
  0xf0   : > { %20242 = vmatprep.mubr.bf16.mxu0 %v4550_v34  ;;  %20275 = vmatpush3.bf16.msra.mxu0 %v22334_v46  ;;  %v23794_v34 = vrot.slane %v4624_v10, 2  ;;  %v4559_v46 = vsel %vm4479_vm4, %v4549_v62, %v4558_v27  ;;  %v22349_v10 = vld [vmem:[%s25957_s1 + $0x238] sm:$0xff]   ;;  %v23826_v62 = vld [vmem:[%s22999_s24 + $0x50] sm:$0xff]   ;;  %v4576_v30 = vor.u32 %v23648_v29, %v23646_v63  ;;  %v23860_v63 = vld [vmem:[%s25964_s8 + $0xc0] sm:$0xff] }
  0xf1   : > { %20276 = vmatprep.subr.bf16.mxu0 %v22339_v60  ;;  %v1703_v13 = vsel %vm1668_vm3, %v1700_v25, %v26013_v0  ;;  %5754 = vperm.xlu0 %22145, %v23800_v14   ;;  %v23830_v25 = vld [vmem:[%s22999_s24 + $0x10] sm:$0xf8]   ;;  %v23836_v0 = vld [vmem:[%s22999_s24 + $0x58] sm:$0xff]   ;;  %v23848_v14 = vld [vmem:[%s22999_s24 + $0x20] sm:$0xff]   ;;  %v23855_v49 = vrot.slane %v4633_v21, 2  ;;  %26016 = vst [vmem:[#allocation13_spill] sm:$0xff] %v23860_v63 }
  0xf2   : > { %5759 = vperm.xlu1 %22146, %v23812_v18   ;;  %v23842_v27 = vld [vmem:[%s25964_s8 + $0xb0] sm:$0xff]  ;;  %v23853_v18 = vld [vmem:[%s25964_s8 + $0xb8] sm:$0xff]  ;;  %v23863_v29 = vld [vmem:[%s22999_s24 + $0x60] sm:$0xff]   ;;  %v23873_v21 = vrot.slane %v4642_v31, 2  ;;  %v4577_v48 = vsel %vm4479_vm4, %v4567_v42, %v4576_v30 }
  0xf3   : > { %26014 = vst [vmem:[#allocation11_spill] sm:$0xff] %v23842_v27  ;;  %26015 = vst [vmem:[#allocation12_spill] sm:$0xff] %v23853_v18  ;;  %v23889_v31 = vld [vmem:[%s22999_s24 + $0x30] sm:$0xff]   ;;  %v23929_v42 = vld [vmem:[%s22999_s24 + $0x40] sm:$0xff]  }
  0xf4   : > { %20277 = vmatpush3.bf16.msra.mxu0 %v22339_v60  ;;  %v23833_v60 = vld [vmem:[%s22999_s24 + $0x18] sm:$0xff]  }
  0xf5   : > { %20278 = vmatprep.subr.bf16.mxu0 %v22344_v35  ;;  %5764 = vperm.xlu0 %22145, %v23842_v27   ;;  %v23907_v27 = vld [vmem:[%s25964_s8 + $0xd0] sm:$0xff] }
  0xf6   : > { %19999 = vmatmul.mubr.bf16.gmra.mrb[28].mxu1 %v1701_v23  ;;  %5769 = vperm.xlu1 %22146, %v23853_v18   ;;  %v26018_v23 = vrot.slane %v23566_v40, 1  ;;  %v23894_v18 = vld [vmem:[%s25964_s8 + $0xc8] sm:$0xff]  ;;  %v26021_v40 = vrot.slane %v23602_v3, 1  ;;  %26022 = vst [vmem:[#allocation15_spill] sm:$0xff] %v23907_v27  ;;  %v4586_v3 = vsel %vm4479_vm4, %v4576_v30, %v4585_v9  ;;  %v26040_v30 = vrot.slane %v23669_v44, 1 }
  0xf7   : > { %20243 = vmatmul.mubr.bf16.gmra.mrb[12].mxu0 %v4559_v46  ;;  %20002 = vmatprep.mubr.bf16.mxu1 %v1703_v13  ;;  %v23867_v46 = vrot.slane %v4636_v36, 3  ;;  %v23871_v13 = vld [vmem:[%s22999_s24 + $0x28] sm:$0xff]   ;;  %v23885_v36 = vrot.slane %v4645_v15, 3  ;;  %26019 = vst [vmem:[#allocation14_spill] sm:$0xff] %v23894_v18  ;;  %v4594_v15 = vor.u32 %v23714_v54, %v23712_v1  ;;  %v26028_v1 = vrot.slane %v23618_v6, 1 }
  0xf8   : > { %20246 = vmatprep.mubr.bf16.mxu0 %v4568_v43  ;;  %20279 = vmatpush3.bf16.msra.mxu0 %v22344_v35  ;;  %v23877_v35 = vld [vmem:[%s22999_s24 + $0x68] sm:$0xff]   ;;  %v26017_v43 = vrot.slane %v23585_v38, 1  ;;  %v26020_v38 = vrot.slane %v23605_v4, 1  ;;  %v26029_v54 = vrot.slane %v23605_v4, 1  ;;  %v26032_v4 = vrot.slane %v23669_v44, 1 }
  0xf9   : > { %20280 = vmatprep.subr.bf16.mxu0 %v22349_v10  ;;  %5774 = vperm.xlu0 %22145, %v23860_v63   ;;  %v4595_v63 = vsel %vm4479_vm4, %v4585_v9, %v4594_v15  ;;  %v23995_v9 = vld [vmem:[%s25964_s8 + $0xf8] sm:$0xff]  ;;  %v24017_v6 = vld [vmem:[%s22999_s24 + $0x68] sm:$0xff]  }
  0xfa   : > { %v1705_v19 = vsel %vm1668_vm3, %v26018_v23, %v26017_v43  ;;  %v2206_v23 = vsel %vm1668_vm3, %v26021_v40, %v26020_v38  ;;  %v23921_v38 = vld [vmem:[%s25964_s8 + $0xd8] sm:$0xff]  ;;  %5779 = vperm.xlu1 %22146, %v23894_v18   ;;  %v23964_v43 = vld [vmem:[%s22999_s24 + $0x50] sm:$0xff]   ;;  %26033 = vst [vmem:[#allocation23_spill] sm:$0xff] %v23995_v9  ;;  %26037 = vst [vmem:[#allocation27_spill] sm:$0xff] %v24017_v6 }
  0xfb   : > { %26023 = vst [vmem:[#allocation16_spill] sm:$0xff] %v23921_v38  ;;  %v23924_v40 = vld [vmem:[%s22999_s24 + $0x78] sm:$0xff]   ;;  %26027 = vst [vmem:[#allocation20_spill] sm:$0xff] %v23964_v43  ;;  %v23973_v18 = vld [vmem:[%s22999_s24 + $0x90] sm:$0xff]  }
  0xfc   : > { %20281 = vmatpush3.bf16.msra.mxu0 %v22349_v10  ;;  %v23933_v10 = vld [vmem:[%s22999_s24 + $0x80] sm:$0xff]   ;;  %26030 = vst [vmem:[#allocation21_spill] sm:$0xff] %v23973_v18 }
  0xfd   : > { %5784 = vperm.xlu0 %22145, %v23907_v27   ;;  %v22375_v18 = vld [vmem:[%s22999_s24 + $0x60] sm:$0xff]  }
  0xfe   : > { %20003 = vmatmul.mubr.bf16.gmra.mrb[32].mxu1 %v1705_v19  ;;  %v4603_v19 = vor.u32 %v23737_v58, %v23735_v53  ;;  %v23956_v58 = vld [vmem:[%s25964_s8 + $0xe8] sm:$0xff]  ;;  %5789 = vperm.xlu1 %22146, %v23921_v38   ;;  %v2208_v53 = vsel %vm1668_vm3, %v26029_v54, %v26028_v1  ;;  %v23979_v38 = vld [vmem:[%s25964_s8 + $0xf0] sm:$0xff]  ;;  %v2210_v54 = vsel %vm1668_vm3, %v26028_v1, %v26032_v4  ;;  %v26039_v1 = vrot.slane %v23684_v52, 1  ;;  %v24077_v6 = vld [vmem:[%s22999_s24 + $0x80] sm:$0xff]  }
  0xff   : > { %20247 = vmatmul.mubr.bf16.gmra.mrb[16].mxu0 %v4577_v48  ;;  %20022 = vmatprep.mubr.bf16.mxu1 %v2206_v23  ;;  %v23943_v48 = vld [vmem:[%s25964_s8 + $0xe0] sm:$0xff]  ;;  %v23946_v23 = vld [vmem:[%s22999_s24 + $0x48] sm:$0xff]   ;;  %26026 = vst [vmem:[#allocation19_spill] sm:$0xff] %v23956_v58  ;;  %26031 = vst [vmem:[#allocation22_spill] sm:$0xff] %v23979_v38 }
 0x100   : > { %20250 = vmatprep.mubr.bf16.mxu0 %v4586_v3  ;;  %26024 = vst [vmem:[#allocation17_spill] sm:$0xff] %v23943_v48  ;;  %26025 = vst [vmem:[#allocation18_spill] sm:$0xff] %v23946_v23  ;;  %v23959_v3 = vld [vmem:[%s22999_s24 + $0x88] sm:$0xff]   ;;  %v4604_v27 = vsel %vm4479_vm4, %v4594_v15, %v4603_v19  ;;  %v23999_v23 = vld [vmem:[%s22999_s24 + $0x58] sm:$0xff]   ;;  %v4612_v15 = vor.u32 %v23754_v17, %v23752_v57  ;;  %v4621_v57 = vor.u32 %v23784_v2, %v23762_v50 }
 0x101   : > { %5794 = vperm.xlu0 %22145, %v23943_v48   ;;  %26034 = vst [vmem:[#allocation24_spill] sm:$0xff] %v23999_v23  ;;  %v22371_v4 = vld [vmem:[%s22999_s24 + $0x50] sm:$0xff]   ;;  %v24009_v48 = vld [vmem:[%s22999_s24 + $0x60] sm:$0xff]   ;;  %v24028_v17 = vld [vmem:[%s25964_s8 + $0x108] sm:$0xff]  ;;  %v26042_v23 = vmov %v26039_v1 }
 0x102   : > { %5799 = vperm.xlu1 %22146, %v23956_v58   ;;  %26035 = vst [vmem:[#allocation25_spill] sm:$0xff] %v24009_v48  ;;  %26038 = vst [vmem:[#allocation28_spill] sm:$0xff] %v24028_v17  ;;  %v2212_v58 = vsel %vm1668_vm3, %v26040_v30, %v26039_v1  ;;  %v2824_v2 = vshll.u32 %v22371_v4, 16  ;;  %v4613_v43 = vsel %vm4479_vm4, %v4603_v19, %v4612_v15  ;;  %v24056_v19 = vld [vmem:[%s25964_s8 + $0x110] sm:$0xff]  ;;  %v24066_v50 = vld [vmem:[%s25964_s8 + $0x118] sm:$0xff] }
 0x103   : > { %26043 = vst [vmem:[#allocation29_spill] sm:$0xff] %v24056_v19  ;;  %v4622_v30 = vsel %vm4479_vm4, %v4612_v15, %v4621_v57  ;;  %26044 = vst [vmem:[#allocation30_spill] sm:$0xff] %v24066_v50  ;;  %v24069_v48 = vld [vmem:[%s22999_s24 + $0x78] sm:$0xff]   ;;  %v22377_v52 = vld [vmem:[%s22999_s24 + $0x68] sm:$0xff]   ;;  %v4630_v15 = vor.u32 %v23807_v11, %v23794_v34 }
 0x104   : > { %26045 = vst [vmem:[#allocation31_spill] sm:$0xff] %v24077_v6  ;;  %v22876_v34 = vld [vmem:[%s25957_s1 + $0x118] sm:$0xff]  }
 0x105   : > { %5804 = vperm.xlu0 %22145, %v23979_v38   ;;  %v24040_v38 = vld [vmem:[%s22999_s24 + $0x70] sm:$0xff]  }
 0x106   : > { %20023 = vmatmul.mubr.bf16.vlgmr.msra.gmra.mrb[0].mxu1 %v2208_v53  ;;  %v24014_v53 = vld [vmem:[%s25964_s8 + $0x100] sm:$0xff]  ;;  %5809 = vperm.xlu1 %22146, %v23995_v9   ;;  %v2842_v9 = vshll.u32 %v22375_v18, 16 }
 0x107   : > { %20251 = vmatmul.mubr.bf16.gmra.mrb[20].mxu0 %v4595_v63  ;;  %21262 = vmatpush3.bf16.msra.mxu1 %v23611_v5  ;;  %26036 = vst [vmem:[#allocation26_spill] sm:$0xff] %v24014_v53  ;;  %v2821_v63 = vshrl.u32 %v22371_v4, 16  ;;  %v22874_v5 = vld [vmem:[%s25957_s1 + $0x108] sm:$0xff]   ;;  %v22875_v4 = vld [vmem:[%s25957_s1 + $0x110] sm:$0xff]  }
 0x108   : > { %20026 = vmatprep.mubr.bf16.mxu1 %v2210_v54  ;;  %20254 = vmatprep.mubr.bf16.mxu0 %v4604_v27  ;;  %v22373_v54 = vld [vmem:[%s22999_s24 + $0x58] sm:$0xff]   ;;  %v26041_v27 = vrot.slane %v23718_v45, 1  ;;  %v24094_v11 = vrot.slane %v2842_v9, 2  ;;  %v24107_v9 = vld [vmem:[%s22999_s24 + $0x88] sm:$0xff]  }
 0x109   : > { %21255 = vmatprep.subr.bf16.mxu1 %v22874_v5  ;;  %v2830_v1 = vshrl.u32 %v22373_v54, 16  ;;  %5814 = vperm.xlu0 %22145, %v24014_v53  }
 0x10a   : > { %v2214_v44 = vsel %vm1668_vm3, %v26042_v23, %v26041_v27  ;;  %v2833_v23 = vshll.u32 %v22373_v54, 16  ;;  %v2839_v27 = vshrl.u32 %v22375_v18, 16  ;;  %5819 = vperm.xlu1 %22146, %v24028_v17   ;;  %v22379_v18 = vld [vmem:[%s22999_s24 + $0x70] sm:$0xff]   ;;  %v2851_v54 = vshll.u32 %v22377_v52, 16 }
 0x10b   : > { %21263 = vmatpush3.bf16.msra.mxu1 %v22874_v5  ;;  %v24058_v5 = vrot.slane %v2821_v63, 1  ;;  %v24072_v63 = vrot.slane %v2824_v2, 2  ;;  %v24081_v53 = vrot.slane %v2830_v1, 1  ;;  %v2848_v2 = vshrl.u32 %v22377_v52, 16 }
 0x10c   : > { %21256 = vmatprep.subr.bf16.mxu1 %v22875_v4  ;;  %v24086_v17 = vrot.slane %v2839_v27, 1  ;;  %v2857_v1 = vshrl.u32 %v22379_v18, 16  ;;  %v22381_v27 = vld [vmem:[%s22999_s24 + $0x78] sm:$0xff]  }
 0x10d   : > { %5824 = vperm.xlu0 %22145, %v24056_v19   ;;  %v24104_v52 = vrot.slane %v2848_v2, 1  ;;  %v24119_v2 = vld [vmem:[%s22999_s24 + $0x90] sm:$0xff]  }
 0x10e   : > { %20027 = vmatmul.mubr.bf16.gmra.mrb[4].mxu1 %v2212_v58  ;;  %v24084_v58 = vrot.slane %v2833_v23, 2  ;;  %5829 = vperm.xlu1 %22146, %v24066_v50   ;;  %v2860_v23 = vshll.u32 %v22379_v18, 16  ;;  %v26048_v50 = vrot.slane %v23787_v26, 1  ;;  %26051 = vst [vmem:[#allocation33_spill] sm:$0xff] %v24119_v2 }
 0x10f   : > { %20255 = vmatmul.mubr.bf16.gmra.mrb[24].mxu0 %v4613_v43  ;;  %20030 = vmatprep.mubr.bf16.mxu1 %v2214_v44  ;;  %v4639_v43 = vor.u32 %v23867_v46, %v23855_v49  ;;  %v26046_v49 = vrot.slane %v23757_v16, 1  ;;  %v26047_v46 = vrot.slane %v23718_v45, 1  ;;  %v4631_v44 = vsel %vm4479_vm4, %v4621_v57, %v4630_v15  ;;  %v22878_v57 = vld [vmem:[%s25964_s8] sm:$0xff] }
 0x110   : > { %20258 = vmatprep.mubr.bf16.mxu0 %v4622_v30  ;;  %21264 = vmatpush3.bf16.msra.mxu1 %v22875_v4  ;;  %v24116_v45 = vrot.slane %v2851_v54, 2  ;;  %v2866_v16 = vshrl.u32 %v22381_v27, 16  ;;  %v24130_v54 = vld [vmem:[%s22999_s24 + $0x98] sm:$0xff]   ;;  %v24138_v6 = vrot.slane %v2860_v23, 2 }
 0x111   : > { %21257 = vmatprep.subr.bf16.mxu1 %v22876_v34  ;;  %v2216_v4 = vsel %vm1668_vm3, %v26047_v46, %v26046_v49  ;;  %v26049_v30 = vmov %v26046_v49  ;;  %v4640_v18 = vsel %vm4479_vm4, %v4630_v15, %v4639_v43  ;;  %v22877_v49 = vld [vmem:[%s25957_s1 + $0x120] sm:$0xff]   ;;  %11652 = vperm.xlu0 %22145, %v22878_v57   ;;  %26052 = vst [vmem:[#allocation34_spill] sm:$0xff] %v24130_v54  ;;  %v24133_v15 = vrot.slane %v2857_v1, 1 }
 0x112   : > { %v2218_v19 = vsel %vm1668_vm3, %v26049_v30, %v26048_v50  ;;  %26050 = vst [vmem:[#allocation32_spill] sm:$0xff] %v24116_v45  ;;  %v2869_v50 = vshll.u32 %v22381_v27, 16  ;;  %11657 = vperm.xlu1 %22146, %v23480_v41   ;;  %v22385_v30 = vld [vmem:[%s22999_s24 + $0x88] sm:$0xff]   ;;  %v4648_v46 = vor.u32 %v23885_v36, %v23873_v21  ;;  %v22387_v27 = vld [vmem:[%s22999_s24 + $0x90] sm:$0xff]   ;;  %v26056_v41 = vrot.slane %v23787_v26, 1 }
 0x113   : > { %26053 = vst [vmem:[#allocation35_spill] sm:$0xff] %v24133_v15  ;;  %v2884_v15 = vshrl.u32 %v22385_v30, 16  ;;  %v22880_v21 = vld [vmem:[%s25964_s8 + $0x10] sm:$0xff] }
 0x114   : > { %21265 = vmatpush3.bf16.msra.mxu1 %v22876_v34  ;;  %v22383_v34 = vld [vmem:[%s22999_s24 + $0x80] sm:$0xff]   ;;  %v24151_v36 = vrot.slane %v2869_v50, 2  ;;  %v4649_v50 = vsel %vm4479_vm4, %v4639_v43, %v4648_v46  ;;  %v26060_v43 = vrot.slane %v23830_v25, 3 }
 0x115   : > { %21258 = vmatprep.subr.bf16.mxu1 %v22877_v49  ;;  %v2875_v45 = vshrl.u32 %v22383_v34, 16  ;;  %v2878_v1 = vshll.u32 %v22383_v34, 16  ;;  %11662 = vperm.xlu0 %22145, %v22880_v21   ;;  %v26055_v34 = vrot.slane %v23790_v51, 1  ;;  %v24173_v54 = vrot.slane %v2884_v15, 1  ;;  %v22881_v51 = vld [vmem:[%s25957_s1 + $0x130] sm:$0xff]  }
 0x116   : > { %20031 = vmatmul.mubr.bf16.gmra.mrb[8].mxu1 %v2216_v4  ;;  %v24142_v4 = vrot.slane %v2866_v16, 1  ;;  %11667 = vperm.xlu1 %22146, %v23489_v59   ;;  %v2893_v16 = vshrl.u32 %v22387_v27, 16  ;;  %v26057_v59 = vrot.slane %v23826_v62, 1 }
 0x117   : > { %20259 = vmatmul.mubr.bf16.gmra.mrb[28].mxu0 %v4631_v44  ;;  %20034 = vmatprep.mubr.bf16.mxu1 %v2218_v19  ;;  %v22879_v19 = vld [vmem:[%s25957_s1 + $0x128] sm:$0xff]   ;;  %v2887_v44 = vshll.u32 %v22385_v30, 16  ;;  %v24154_v23 = vrot.slane %v2875_v45, 1  ;;  %v2220_v57 = vsel %vm1668_vm3, %v26056_v41, %v26055_v34  ;;  %v24166_v21 = vrot.slane %v2878_v1, 2 }
 0x118   : > { %20262 = vmatprep.mubr.bf16.mxu0 %v4640_v18  ;;  %21266 = vmatpush3.bf16.msra.mxu1 %v22877_v49  ;;  %v24158_v49 = vld [vmem:[%s22999_s24 + $0xa0] ss:$0 sps:$4 sm:$0x77]   ;;  %v2896_v30 = vshll.u32 %v22387_v27, 16  ;;  %v26058_v45 = vmov %v26055_v34  ;;  %v26059_v41 = vrot.slane %v23833_v60, 3  ;;  %v24188_v15 = vrot.slane %v2893_v16, 1 }
 0x119   : > { %21259 = vmatprep.subr.bf16.mxu1 %v22879_v19  ;;  %26054 = vst [vmem:[#allocation36_spill] sm:$0xff] %v24154_v23  ;;  %v2222_v18 = vsel %vm1668_vm3, %v26058_v45, %v26057_v59  ;;  %v24175_v2 = vrot.slane %v2887_v44, 2  ;;  %v5184_v26 = vrot.slane %v24158_v49, 3  ;;  %v22388_v23 = vld [vmem:[%s22999_s24 + $0x98] ss:$0 sps:$4 sm:$0x33]   ;;  %11672 = vperm.xlu0 %22145, %v23501_v8  }
 0x11a   : > { %v5151_v46 = vsel %vm5148_vm5, %v26060_v43, %v26059_v41  ;;  %v24190_v27 = vrot.slane %v2896_v30, 2  ;;  %11677 = vperm.xlu1 %22146, %v23541_v56   ;;  %v2902_v1 = vshrl.u32 %v22388_v23, 16  ;;  %v22882_v8 = vld [vmem:[%s25957_s1 + $0x138] sm:$0xff]   ;;  %v26061_v56 = vrot.slane %v23836_v0, 1  ;;  %v22390_v49 = vld [vmem:[%s25959_s3 + $0x8] sm:$0xff]  }
 0x11b   : > { %v26064_v16 = vmov %v26059_v41  ;;  %v26069_v60 = vrot.slane %v23877_v35, 1  ;;  %v26071_v45 = vrot.slane %v23889_v31, 3 }
 0x11c   : > { %21267 = vmatpush3.bf16.msra.mxu1 %v22879_v19  ;;  %v2905_v19 = vshll.u32 %v22388_v23, 16  ;;  %v24193_v25 = vrot.slane %v2902_v1, 1  ;;  %v26066_v30 = vmov %v26061_v56 }
 0x11d   : > { %21260 = vmatprep.subr.bf16.mxu1 %v22881_v51  ;;  %11682 = vperm.xlu0 %22145, %v23549_v12   ;;  %v26074_v43 = vmov %v26069_v60 }
 0x11e   : > { %20035 = vmatmul.mubr.bf16.gmra.mrb[12].mxu1 %v2220_v57  ;;  %v24195_v44 = vrot.slane %v2905_v19, 2  ;;  %11687 = vperm.xlu1 %22146, %v23558_v28   ;;  %v26062_v57 = vmov %v26057_v59  ;;  %v26067_v28 = vrot.slane %v23871_v13, 3  ;;  %v26077_v13 = vrot.slane %v23924_v40, 1 }
 0x11f   : > { %20263 = vmatmul.mubr.bf16.gmra.mrb[32].mxu0 %v4649_v50  ;;  %20038 = vmatprep.mubr.bf16.mxu1 %v2222_v18  ;;  %v2224_v23 = vsel %vm1668_vm3, %v26062_v57, %v26061_v56  ;;  %v26063_v18 = vrot.slane %v23848_v14, 3  ;;  %v26065_v50 = vrot.slane %v23863_v29, 1  ;;  %v26086_v57 = vld [vmem:[#allocation5_spill] sm:$0xff]  ;;  %v26090_v40 = vrot.slane %v23959_v3, 1  ;;  %v26103_v3 = vld [vmem:[#allocation11_spill] sm:$0xff] }
 0x120   : > { %20282 = vmatprep.mubr.bf16.mxu0 %v5151_v46  ;;  %21268 = vmatpush3.bf16.msra.mxu1 %v22881_v51  ;;  %v26076_v46 = vmov %v26071_v45  ;;  %v26079_v51 = vrot.slane %v23929_v42, 3  ;;  %v26082_v19 = vmov %v26077_v13 }
 0x121   : > { %21261 = vmatprep.subr.bf16.mxu1 %v22882_v8  ;;  %v5153_v34 = vsel %vm5148_vm5, %v26064_v16, %v26063_v18  ;;  %v2226_v12 = vsel %vm1668_vm3, %v26066_v30, %v26065_v50  ;;  %v26068_v59 = vmov %v26063_v18  ;;  %11692 = vperm.xlu0 %22145, %v23574_v33   ;;  %v26070_v0 = vmov %v26065_v50  ;;  %v26089_v18 = vld [vmem:[#allocation8_spill] sm:$0xff] }
 0x122   : > { %v5155_v62 = vsel %vm5148_vm5, %v26068_v59, %v26067_v28  ;;  %11697 = vperm.xlu1 %22146, %v23590_v39   ;;  %v2228_v14 = vsel %vm1668_vm3, %v26070_v0, %v26069_v60  ;;  %v26072_v33 = vmov %v26067_v28  ;;  %v26073_v39 = vrot.slane %v23910_v20, 1  ;;  %v26095_v28 = vld [vmem:[#allocation21_spill] sm:$0xff]  ;;  %v26098_v0 = vld [vmem:[#allocation24_spill] sm:$0xff] }
 0x123   : > { %v5157_v41 = vsel %vm5148_vm5, %v26072_v33, %v26071_v45  ;;  %v26085_v56 = vmov %v26079_v51  ;;  %v26096_v59 = vrot.slane %v26095_v28, 1  ;;  %v26101_v33 = vld [vmem:[#allocation9_spill] sm:$0xff]  ;;  %v26128_v28 = vld [vmem:[#allocation31_spill] sm:$0xff] }
 0x124   : > { %21269 = vmatpush3.bf16.msra.mxu1 %v22882_v8  ;;  %v26078_v35 = vmov %v26073_v39  ;;  %v26083_v8 = vld [vmem:[#allocation18_spill] sm:$0xff] }
 0x125   : > { %11702 = vperm.xlu0 %22145, %v23624_v7   ;;  %v2230_v7 = vsel %vm1668_vm3, %v26074_v43, %v26073_v39  ;;  %v2232_v31 = vsel %vm1668_vm3, %v26078_v35, %v26077_v13  ;;  %v2827_v39 = vor.u32 %v24072_v63, %v24058_v5  ;;  %v26104_v43 = vld [vmem:[#allocation12_spill] sm:$0xff]  ;;  %v26111_v5 = vld [vmem:[#allocation27_spill] sm:$0xff] }
 0x126   : > { %20039 = vmatmul.mubr.bf16.gmra.mrb[16].mxu1 %v2224_v23  ;;  %11707 = vperm.xlu1 %22146, %v23636_v47   ;;  %v26075_v47 = vrot.slane %v23913_v24, 3  ;;  %v26087_v23 = vld [vmem:[#allocation6_spill] sm:$0xff]  ;;  %v26088_v24 = vld [vmem:[#allocation7_spill] sm:$0xff]  ;;  %v26112_v63 = vrot.slane %v26111_v5, 3 }
 0x127   : > { %20283 = vmatmul.mubr.bf16.vlgmr.msra.gmra.mrb[0].mxu0 %v5153_v34  ;;  %20042 = vmatprep.mubr.bf16.mxu1 %v2226_v12  ;;  %v26092_v34 = vld [vmem:[#allocation20_spill] sm:$0xff] }
 0x128   : > { %20286 = vmatprep.mubr.bf16.mxu0 %v5155_v62  ;;  %v5159_v29 = vsel %vm5148_vm5, %v26076_v46, %v26075_v47  ;;  %v26093_v50 = vrot.slane %v26092_v34, 3  ;;  %v26097_v62 = vmov %v26090_v40  ;;  %v26125_v34 = vld [vmem:[#allocation35_spill] sm:$0xff] }
 0x129   : > { %11712 = vperm.xlu0 %22145, %v23658_v55   ;;  %v26080_v55 = vmov %v26075_v47  ;;  %v2238_v60 = vsel %vm1668_vm3, %v26097_v62, %v26096_v59  ;;  %v26106_v47 = vmov %v26096_v59  ;;  %v26129_v59 = vrot.slane %v26128_v28, 3 }
 0x12a   : > { %11717 = vperm.xlu1 %22146, %v23674_v37   ;;  %v5161_v1 = vsel %vm5148_vm5, %v26080_v55, %v26079_v51  ;;  %v26081_v37 = vrot.slane %v23933_v10, 1  ;;  %v26100_v45 = vmov %v26093_v50  ;;  %v26110_v51 = vld [vmem:[#allocation4_spill] sm:$0xff] }
 0x12b   : > { %v2828_v55 = vsel %vm2739_vm0, %v26110_v51, %v2827_v39 }
 0x12c   : > { %v26091_v16 = vmov %v26081_v37 }
 0x12d   : > { %11722 = vperm.xlu0 %22145, %v23694_v32   ;;  %v2234_v32 = vsel %vm1668_vm3, %v26082_v19, %v26081_v37  ;;  %v2236_v42 = vsel %vm1668_vm3, %v26091_v16, %v26090_v40  ;;  %v26115_v19 = vld [vmem:[#allocation14_spill] sm:$0xff]  ;;  %v26123_v40 = vld [vmem:[#allocation19_spill] sm:$0xff]  ;;  %v26124_v16 = vld [vmem:[#allocation32_spill] sm:$0xff] }
 0x12e   : > { %20043 = vmatmul.mubr.bf16.gmra.mrb[20].mxu1 %v2228_v14  ;;  %11727 = vperm.xlu1 %22146, %v23704_v61   ;;  %v26084_v61 = vrot.slane %v26083_v8, 3  ;;  %v26099_v14 = vrot.slane %v26098_v0, 3  ;;  %v2845_v8 = vor.u32 %v24094_v11, %v24086_v17  ;;  %v26122_v11 = vld [vmem:[#allocation17_spill] sm:$0xff] }
 0x12f   : > { %20287 = vmatmul.mubr.bf16.gmra.mrb[4].mxu0 %v5157_v41  ;;  %20046 = vmatprep.mubr.bf16.mxu1 %v2230_v7  ;;  %v26102_v41 = vld [vmem:[#allocation10_spill] sm:$0xff]  ;;  %v26105_v7 = vrot.slane %v23983_v22, 1  ;;  %v26114_v22 = vld [vmem:[#allocation13_spill] sm:$0xff] }
 0x130   : > { %20290 = vmatprep.mubr.bf16.mxu0 %v5159_v29  ;;  %v5163_v20 = vsel %vm5148_vm5, %v26085_v56, %v26084_v61  ;;  %v26094_v30 = vmov %v26084_v61  ;;  %v5167_v10 = vsel %vm5148_vm5, %v26100_v45, %v26099_v14  ;;  %v26107_v29 = vld [vmem:[#allocation25_spill] sm:$0xff]  ;;  %v26109_v35 = vmov %v26099_v14  ;;  %v26116_v61 = vld [vmem:[#allocation15_spill] sm:$0xff]  ;;  %v26117_v56 = vld [vmem:[#allocation16_spill] sm:$0xff] }
 0x131   : > { %11732 = vperm.xlu0 %22145, %v26086_v57   ;;  %v5165_v12 = vsel %vm5148_vm5, %v26094_v30, %v26093_v50  ;;  %v2240_v46 = vsel %vm1668_vm3, %v26106_v47, %v26105_v7  ;;  %v26108_v13 = vrot.slane %v26107_v29, 3  ;;  %v26118_v57 = vrot.slane %v24040_v38, 3  ;;  %v26126_v30 = vld [vmem:[#allocation22_spill] sm:$0xff]  ;;  %v26138_v7 = vld [vmem:[#allocation33_spill] sm:$0xff] }
 0x132   : > { %11737 = vperm.xlu1 %22146, %v26087_v23   ;;  %v26119_v23 = vmov %v26112_v63  ;;  %v2863_v50 = vor.u32 %v24138_v6, %v26125_v34  ;;  %v26132_v14 = vmov %v26129_v59  ;;  %v26133_v45 = vld [vmem:[#allocation26_spill] sm:$0xff]  ;;  %v26139_v47 = vrot.slane %v26138_v7, 3 }
 0x135   : > { %11742 = vperm.xlu0 %22145, %v26088_v24   ;;  %v5173_v24 = vsel %vm5148_vm5, %v26119_v23, %v26118_v57 }
 0x136   : > { %20047 = vmatmul.mubr.bf16.gmra.mrb[24].mxu1 %v2232_v31  ;;  %11747 = vperm.xlu1 %22146, %v26089_v18   ;;  %v5169_v31 = vsel %vm5148_vm5, %v26109_v35, %v26108_v13  ;;  %v26141_v35 = vld [vmem:[#allocation34_spill] sm:$0xff] }
 0x137   : > { %20291 = vmatmul.mubr.bf16.gmra.mrb[8].mxu0 %v5161_v1  ;;  %20050 = vmatprep.mubr.bf16.mxu1 %v2234_v32  ;;  %v26113_v1 = vmov %v26108_v13  ;;  %v2836_v32 = vor.u32 %v24084_v58, %v24081_v53  ;;  %v26120_v53 = vrot.slane %v24069_v48, 3  ;;  %v26121_v58 = vmov %v26118_v57 }
 0x138   : > { %20294 = vmatprep.mubr.bf16.mxu0 %v5163_v20  ;;  %v5171_v37 = vsel %vm5148_vm5, %v26113_v1, %v26112_v63  ;;  %v2872_v48 = vor.u32 %v24151_v36, %v24142_v4  ;;  %v26142_v4 = vrot.slane %v26141_v35, 3  ;;  %v26143_v36 = vmov %v26139_v47  ;;  %v22395_v1 = vld [vmem:[%s25959_s3 + $0x30] sm:$0xff]  }
 0x139   : > { %11752 = vperm.xlu0 %22145, %v26101_v33   ;;  %v2837_v20 = vsel %vm2739_vm0, %v2827_v39, %v2836_v32  ;;  %v2846_v18 = vsel %vm2739_vm0, %v2836_v32, %v2845_v8  ;;  %v5175_v17 = vsel %vm5148_vm5, %v26121_v58, %v26120_v53  ;;  %v26130_v62 = vmov %v26120_v53  ;;  %v26135_v33 = vld [vmem:[#allocation36_spill] sm:$0xff]  ;;  %v26136_v39 = vld [vmem:[#allocation29_spill] sm:$0xff] }
 0x13a   : > { %11757 = vperm.xlu1 %22146, %v26102_v41   ;;  %v2881_v41 = vor.u32 %v24166_v21, %v26135_v33  ;;  %v5183_v21 = vsel %vm5148_vm5, %v26143_v36, %v26142_v4 }
 0x13c   : > { %v2882_v13 = vsel %vm2739_vm0, %v2872_v48, %v2881_v41 }
 0x13d   : > { %11762 = vperm.xlu0 %22145, %v26103_v3   ;;  %v26137_v3 = vld [vmem:[#allocation30_spill] sm:$0xff] }
 0x13e   : > { %20051 = vmatmul.mubr.bf16.gmra.mrb[28].mxu1 %v2236_v42  ;;  %11767 = vperm.xlu1 %22146, %v26104_v43   ;;  %v2854_v42 = vor.u32 %v26124_v16, %v24104_v52  ;;  %v26131_v52 = vrot.slane %v24107_v9, 3  ;;  %v2873_v43 = vsel %vm2739_vm0, %v2863_v50, %v2872_v48  ;;  %v2899_v9 = vor.u32 %v24190_v27, %v24188_v15  ;;  %v22389_v15 = vld [vmem:[%s25959_s3] sm:$0xff]   ;;  %v22392_v27 = vld [vmem:[%s25959_s3 + $0x18] sm:$0xff]  }
 0x13f   : > { %20295 = vmatmul.mubr.bf16.gmra.mrb[12].mxu0 %v5165_v12  ;;  %20054 = vmatprep.mubr.bf16.mxu1 %v2238_v60  ;;  %v26127_v12 = vld [vmem:[#allocation23_spill] sm:$0xff]  ;;  %v5177_v60 = vsel %vm5148_vm5, %v26130_v62, %v26129_v59 }
 0x140   : > { %20298 = vmatprep.mubr.bf16.mxu0 %v5167_v10  ;;  %v2855_v38 = vsel %vm2739_vm0, %v2845_v8, %v2854_v42  ;;  %v2864_v0 = vsel %vm2739_vm0, %v2854_v42, %v2863_v50  ;;  %v5179_v6 = vsel %vm5148_vm5, %v26132_v14, %v26131_v52  ;;  %v26134_v10 = vld [vmem:[#allocation28_spill] sm:$0xff]  ;;  %20318 = vmatprep.subr.bf16.mxu1 %v22389_v15  ;;  %v5665_v50 = vpop.permute.xlu1 %5664 }
 0x141   : > { %11772 = vperm.xlu0 %22145, %v26114_v22   ;;  %v22397_v22 = vld [vmem:[#allocation2] sm:$0xff]  }
 0x142   : > { %11777 = vperm.xlu1 %22146, %v26115_v19   ;;  %v24418_v19 = vld [vmem:[%s25959_s3 + $0x40] sm:$0xff]  }
 0x144   : > { %v5670_v62 = vpop.permute.xlu1 %5669 }
 0x145   : > { %11782 = vperm.xlu0 %22145, %v26116_v61  }
 0x146   : > { %20055 = vmatmul.mubr.bf16.gmra.mrb[32].mxu1 %v2240_v46  ;;  %11787 = vperm.xlu1 %22146, %v26117_v56   ;;  %v26140_v46 = vmov %v26131_v52 }
 0x147   : > { %20299 = vmatmul.mubr.bf16.gmra.mrb[16].mxu0 %v5169_v31  ;;  %20090 = vmatprep.mubr.bf16.mxu1 %v2828_v55  ;;  %v5181_v29 = vsel %vm5148_vm5, %v26140_v46, %v26139_v47  ;;  %v2890_v31 = vor.u32 %v24175_v2, %v24173_v54  ;;  %v26144_v55 = vmov %v26142_v4  ;;  %v2908_v2 = vor.u32 %v24195_v44, %v24193_v25  ;;  %v22393_v25 = vld [vmem:[%s25959_s3 + $0x20] sm:$0xff]   ;;  %v22394_v44 = vld [vmem:[%s25959_s3 + $0x28] sm:$0xff]  }
 0x148   : > { %20302 = vmatprep.mubr.bf16.mxu0 %v5171_v37  ;;  %v5185_v5 = vsel %vm5148_vm5, %v26144_v55, %v5184_v26  ;;  %v22391_v26 = vld [vmem:[%s25959_s3 + $0x10] sm:$0xff]   ;;  %v22396_v37 = vld [vmem:[%s25959_s3 + $0x38] sm:$0xff]   ;;  %v24452_v47 = vpop.permute.xlu1 %5679 }
 0x149   : > { %11792 = vperm.xlu0 %22145, %v26122_v11   ;;  %v2891_v51 = vsel %vm2739_vm0, %v2881_v41, %v2890_v31  ;;  %v2900_v63 = vsel %vm2739_vm0, %v2890_v31, %v2899_v9  ;;  %v2909_v54 = vsel %vm2739_vm0, %v2899_v9, %v2908_v2  ;;  %v5655_v11 = vpop.permute.xlu0 %5654 }
 0x14a   : > { %11797 = vperm.xlu1 %22146, %v26123_v40  }
 0x14d   : > { %11802 = vperm.xlu0 %22145, %v26126_v30   ;;  %v5660_v30 = vpop.permute.xlu0 %5659 }
 0x14e   : > { %20091 = vmatmul.mubr.bf16.vlgmr.msra.gmra.mrb[16].mxu1 %v2837_v20  ;;  %11807 = vperm.xlu1 %22146, %v26127_v12  }
 0x14f   : > { %20303 = vmatmul.mubr.bf16.gmra.mrb[20].mxu0 %v5173_v24  ;;  %20094 = vmatprep.mubr.bf16.mxu1 %v2846_v18 }
 0x150   : > { %20306 = vmatprep.mubr.bf16.mxu0 %v5175_v17  ;;  %20319 = vmatpush3.bf16.msra.mxu1 %v22389_v15 }
 0x151   : > { %11812 = vperm.xlu0 %22145, %v26133_v45   ;;  %20320 = vmatprep.subr.bf16.mxu1 %v22390_v49  ;;  %v24446_v52 = vpop.permute.xlu0 %5674 }
 0x152   : > { %11817 = vperm.xlu1 %22146, %v26134_v10  }
 0x154   : > { %20321 = vmatpush3.bf16.msra.mxu1 %v22390_v49 }
 0x155   : > { %11822 = vperm.xlu0 %22145, %v26136_v39   ;;  %20322 = vmatprep.subr.bf16.mxu1 %v22391_v26  ;;  %v5685_v35 = vpop.permute.xlu0 %5684 }
 0x156   : > { %20095 = vmatmul.mubr.bf16.gmra.mrb[20].mxu1 %v2855_v38  ;;  %11827 = vperm.xlu1 %22146, %v26137_v3   ;;  %v24444_v38 = vld [vmem:[%s25958_s2] ss:$0 sm:$0xff] }
 0x157   : > { %20307 = vmatmul.mubr.bf16.gmra.mrb[24].mxu0 %v5177_v60  ;;  %20098 = vmatprep.mubr.bf16.mxu1 %v2864_v0 }
 0x158   : > { %20310 = vmatprep.mubr.bf16.mxu0 %v5179_v6  ;;  %20323 = vmatpush3.bf16.msra.mxu1 %v22391_v26 }
 0x159   : > { %20324 = vmatprep.subr.bf16.mxu1 %v22392_v27 }
 0x15c   : > { %20325 = vmatpush3.bf16.msra.mxu1 %v22392_v27 }
 0x15d   : > { %20326 = vmatprep.subr.bf16.mxu1 %v22393_v25 }
 0x15e   : > { %20099 = vmatmul.mubr.bf16.gmra.mrb[24].mxu1 %v2873_v43 }
 0x15f   : > { %20311 = vmatmul.mubr.bf16.gmra.mrb[28].mxu0 %v5181_v29  ;;  %20102 = vmatprep.mubr.bf16.mxu1 %v2882_v13 }
 0x160   : > { %20314 = vmatprep.mubr.bf16.mxu0 %v5183_v21  ;;  %20327 = vmatpush3.bf16.msra.mxu1 %v22393_v25 }
 0x161   : > { %20328 = vmatprep.subr.bf16.mxu1 %v22394_v44 }
 0x164   : > { %20329 = vmatpush3.bf16.msra.mxu1 %v22394_v44 }
 0x165   : > { %20330 = vmatprep.subr.bf16.mxu1 %v22395_v1 }
 0x166   : > { %20103 = vmatmul.mubr.bf16.gmra.mrb[28].mxu1 %v2891_v51 }
 0x167   : > { %20315 = vmatmul.mubr.bf16.gmra.mrb[32].mxu0 %v5185_v5  ;;  %20106 = vmatprep.mubr.bf16.mxu1 %v2900_v63 }
 0x168   : > { %20331 = vmatpush3.bf16.msra.mxu1 %v22395_v1 }
 0x169   : > { %20332 = vmatprep.subr.bf16.mxu1 %v22396_v37 }
 0x16c   : > { %20333 = vmatpush3.bf16.msra.mxu1 %v22396_v37 }
 0x16d   : > { %20370 = vmatprep.subr.bf16.mxu1 %v24418_v19 }
 0x16e   : > { %20107 = vmatmul.mubr.bf16.gmra.mrb[32].mxu1 %v2909_v54 }
 0x16f   : > { %20334 = vmatprep.mubr.bf16.mxu1 %v22397_v22 }
 0x1d9   : > { %v20024_v32 = vpop.f32.mrb[0].mxu1 }
 0x1da   : > { %v2341_v8 = vpop.f32.mrb[1].mxu1 }
 0x1db   : > { %v20025_v61 = vpop.f32.mrb[2].mxu1 }
 0x1dc   : > { %v2344_v56 = vpop.f32.mrb[3].mxu1 }
 0x1e1   : > { %v20028_v20 = vpop.f32.mrb[4].mxu1 }
 0x1e2   : > { %v2357_v57 = vpop.f32.mrb[5].mxu1 }
 0x1e3   : > { %v24421_v23 = vpop.f32.mrb[6].mxu1 }
 0x1e4   : > { %v24423_v24 = vpop.f32.mrb[7].mxu1 }
 0x1e9   : > { %v24425_v18 = vpop.f32.mrb[8].mxu1 }
 0x1ea   : > { %v24427_v53 = vpop.f32.mrb[9].mxu1 }
 0x1eb   : > { %v24429_v58 = vpop.f32.mrb[10].mxu1 }
 0x1ec   : > { %v24431_v17 = vpop.f32.mrb[11].mxu1 }
 0x1f1   : > { %v24433_v40 = vpop.f32.mrb[12].mxu1 }
 0x1f2   : > { %v24435_v16 = vpop.f32.mrb[13].mxu1 }
 0x1f3   : > { %v24437_v42 = vpop.f32.mrb[14].mxu1 }
 0x1f4   : > { %v24439_v34 = vpop.f32.mrb[15].mxu1 }
 0x1fa   : > { %v20284_v12 = vpop.f32.mrb[0].mxu0 }
 0x1fb   : > { %v21270_v28 = vadd.f32 %v20284_v12, %v20024_v32  ;;  %v5286_v59 = vpop.f32.mrb[1].mxu0  ;;  %v6378_v12 = vld [vmem:[#allocation2 + $0x8] sm:$0xe] }
 0x1fc   : > { %v21271_v60 = vadd.f32 %v5286_v59, %v2341_v8  ;;  %v20285_v0 = vpop.f32.mrb[2].mxu0  ;;  %v5690_v8 = vpop.permute.xlu1 %5689 }
 0x1fd   : > { %v5546_v14 = vadd.f32 %v21270_v28, %v24444_v38  ;;  %v21272_v6 = vadd.f32 %v20285_v0, %v20025_v61  ;;  %v5289_v45 = vpop.f32.mrb[3].mxu0 }
 0x1fe   : > { %v5544_v10 = vadd.f32 %v21271_v60, %v24444_v38  ;;  %v21273_v48 = vadd.f32 %v5289_v45, %v2344_v56 }
 0x1ff   : > { %v5582_v33 = vmax.f32 %v5546_v14, 0.0  ;;  %v5547_v41 = vadd.f32 %v21272_v6, %v24444_v38 }
 0x200   : > { %v5580_v39 = vmax.f32 %v5544_v10, 0.0  ;;  %v5545_v3 = vadd.f32 %v21273_v48, %v24444_v38 }
 0x201   : > { %v5834_v43 = vmul.f32 %v5665_v50, %v5582_v33  ;;  %v5583_v7 = vmax.f32 %v5547_v41, 0.0 }
 0x202   : > { %v5832_v46 = vmul.f32 %v5655_v11, %v5580_v39  ;;  %v5581_v29 = vmax.f32 %v5545_v3, 0.0  ;;  %v20288_v13 = vpop.f32.mrb[4].mxu0  ;;  %v24456_v11 = vpop.permute.xlu0 %5694 }
 0x203   : > { %v19078_v4 = vpack.c.bf16 %v5834_v43, %v5834_v43  ;;  %v5835_v36 = vmul.f32 %v5670_v62, %v5583_v7  ;;  %v21274_v21 = vadd.f32 %v20288_v13, %v20028_v20  ;;  %v5302_v31 = vpop.f32.mrb[5].mxu0 }
 0x204   : > { %v19076_v9 = vpack.c.bf16 %v5832_v46, %v5832_v46  ;;  %v5833_v51 = vmul.f32 %v5660_v30, %v5581_v29  ;;  %v21275_v55 = vadd.f32 %v5302_v31, %v2357_v57  ;;  %v20289_v5 = vpop.f32.mrb[6].mxu0 }
 0x205   : > { %v5999_v63 = vshrl.u32 %v19078_v4, 16  ;;  %v6002_v2 = vshll.u32 %v19078_v4, 16  ;;  %v19079_v54 = vpack.c.bf16 %v5835_v36, %v5835_v36  ;;  %v5550_v15 = vadd.f32 %v21274_v21, %v24444_v38  ;;  %v5305_v49 = vpop.f32.mrb[7].mxu0 }
 0x206   : > { %v5980_v26 = vshrl.u32 %v19076_v9, 16  ;;  %v5983_v27 = vshll.u32 %v19076_v9, 16  ;;  %v19077_v25 = vpack.c.bf16 %v5833_v51, %v5833_v51  ;;  %v5548_v44 = vadd.f32 %v21275_v55, %v24444_v38  ;;  %v24477_v9 = vpop.permute.xlu1 %5699 }
 0x207   : > { %v6001_v1 = vrot.slane %v5999_v63, 6  ;;  %v6004_v37 = vrot.slane %v6002_v2, 7  ;;  %v6009_v22 = vshrl.u32 %v19079_v54, 16  ;;  %v6012_v32 = vshll.u32 %v19079_v54, 16 }
 0x208   : > { %v5982_v61 = vrot.slane %v5980_v26, 6  ;;  %v5985_v56 = vrot.slane %v5983_v27, 7  ;;  %v5989_v20 = vshrl.u32 %v19077_v25, 16  ;;  %v5992_v57 = vshll.u32 %v19077_v25, 16 }
 0x209   : > { %v6005_v50 = vor.u32 %v6004_v37, %v6001_v1  ;;  %v6011_v28 = vrot.slane %v6009_v22, 6  ;;  %v6014_v59 = vrot.slane %v6012_v32, 7  ;;  %v5586_v62 = vmax.f32 %v5550_v15, 0.0 }
 0x20a   : > { %v5986_v60 = vor.u32 %v5985_v56, %v5982_v61  ;;  %v5991_v14 = vrot.slane %v5989_v20, 6  ;;  %v5994_v6 = vrot.slane %v5992_v57, 7  ;;  %v5584_v45 = vmax.f32 %v5548_v44, 0.0  ;;  %v20292_v10 = vpop.f32.mrb[8].mxu0 }
 0x20b   : > { %v6007_v48 = vrot.slane %v6005_v50, 4  ;;  %v6015_v33 = vor.u32 %v6014_v59, %v6011_v28  ;;  %v5838_v41 = vmul.f32 %v5685_v35, %v5586_v62  ;;  %v21276_v39 = vadd.f32 %v20289_v5, %v24421_v23  ;;  %v5318_v3 = vpop.f32.mrb[9].mxu0  ;;  %v5705_v5 = vpop.permute.xlu0 %5704 }
 0x20c   : > { %v5987_v43 = vrot.slane %v5986_v60, 4  ;;  %v6379_v7 = vsel %vm24460_vm10, %v5986_v60, %v6378_v12  ;;  %v5995_v46 = vor.u32 %v5994_v6, %v5991_v14  ;;  %v5836_v29 = vmul.f32 %v24446_v52, %v5584_v45  ;;  %v20293_v13 = vpop.f32.mrb[10].mxu0  ;;  %v5710_v59 = vpop.permute.xlu1 %5709 }
 0x20d   : > { %6380 = vst [vmem:[#allocation2 + $0x8] sm:$0xe] %v6379_v7  ;;  %v6016_v4 = vsel %vm24466_vm11, %v6007_v48, %v6015_v33  ;;  %v6017_v36 = vrot.slane %v6015_v33, 4  ;;  %v19082_v21 = vpack.c.bf16 %v5838_v41, %v5838_v41  ;;  %v5551_v31 = vadd.f32 %v21276_v39, %v24444_v38  ;;  %v5321_v35 = vpop.f32.mrb[11].mxu0 }
 0x20e   : > { %6383 = vst [vmem:[#allocation2 + $0x14] sm:$0xf] %v6016_v4  ;;  %v5996_v23 = vsel %vm24466_vm11, %v5987_v43, %v5995_v46  ;;  %v5997_v51 = vrot.slane %v5995_v46, 4  ;;  %v19080_v55 = vpack.c.bf16 %v5836_v29, %v5836_v29  ;;  %v21277_v52 = vadd.f32 %v5305_v49, %v24423_v24 }
 0x20f   : > { %6381 = vst [vmem:[#allocation2 + $0xc] sm:$0xf] %v5996_v23  ;;  %v6039_v63 = vshrl.u32 %v19082_v21, 16  ;;  %v6042_v2 = vshll.u32 %v19082_v21, 16  ;;  %v5587_v54 = vmax.f32 %v5551_v31, 0.0  ;;  %v21278_v15 = vadd.f32 %v20292_v10, %v24425_v18 }
 0x210   : > { %v6006_v26 = vsel %vm24466_vm11, %v5997_v51, %v6005_v50  ;;  %v6019_v27 = vshrl.u32 %v19080_v55, 16  ;;  %v6022_v25 = vshll.u32 %v19080_v55, 16  ;;  %v5549_v44 = vadd.f32 %v21277_v52, %v24444_v38 }
 0x211   : > { %6382 = vst [vmem:[#allocation2 + $0x10] sm:$0xf] %v6006_v26  ;;  %v6041_v1 = vrot.slane %v6039_v63, 6  ;;  %v6044_v37 = vrot.slane %v6042_v2, 7  ;;  %v5839_v22 = vmul.f32 %v5690_v8, %v5587_v54  ;;  %v5554_v24 = vadd.f32 %v21278_v15, %v24444_v38  ;;  %v24515_v63 = vpop.permute.xlu1 %5719 }
 0x212   : > { %v6021_v49 = vrot.slane %v6019_v27, 6  ;;  %v6024_v32 = vrot.slane %v6022_v25, 7  ;;  %v5585_v61 = vmax.f32 %v5549_v44, 0.0  ;;  %v21279_v56 = vadd.f32 %v5318_v3, %v24427_v53  ;;  %v24488_v20 = vpop.f32.mrb[12].mxu0  ;;  %v24498_v53 = vpop.permute.xlu0 %5714 }
 0x213   : > { %v24490_v18 = vor.u32 %v6044_v37, %v6041_v1  ;;  %v19083_v57 = vpack.c.bf16 %v5839_v22, %v5839_v22  ;;  %v5590_v50 = vmax.f32 %v5554_v24, 0.0  ;;  %v21280_v12 = vadd.f32 %v20293_v13, %v24429_v58  ;;  %v5334_v28 = vpop.f32.mrb[13].mxu0 }
 0x214   : > { %v6025_v62 = vor.u32 %v6024_v32, %v6021_v49  ;;  %v5837_v8 = vmul.f32 %v24452_v47, %v5585_v61  ;;  %v5552_v60 = vadd.f32 %v21279_v56, %v24444_v38  ;;  %v21281_v14 = vadd.f32 %v5321_v35, %v24431_v17  ;;  %v24496_v6 = vpop.f32.mrb[14].mxu0  ;;  %v22404_v17 = vld [vmem:[%s25959_s3 + $0x48] sm:$0xff]  }
 0x215   : > { %v6047_v45 = vrot.slane %v24490_v18, 4  ;;  %v6049_v10 = vshrl.u32 %v19083_v57, 16  ;;  %v6052_v48 = vshll.u32 %v19083_v57, 16  ;;  %v5842_v33 = vmul.f32 %v5705_v5, %v5590_v50  ;;  %v24501_v41 = vpop.f32.mrb[15].mxu0  ;;  %v22408_v5 = vld [vmem:[%s25959_s3 + $0x50] sm:$0xff]  }
 0x216   : > { %v6026_v58 = vsel %vm24466_vm11, %v6017_v36, %v6025_v62  ;;  %v6027_v39 = vrot.slane %v6025_v62, 4  ;;  %v19081_v47 = vpack.c.bf16 %v5837_v8, %v5837_v8  ;;  %v5588_v3 = vmax.f32 %v5552_v60, 0.0  ;;  %v22398_v43 = vld [vmem:[#allocation2 + $0x8] sm:$0xff]   ;;  %v5725_v27 = vpop.permute.xlu0 %5724 }
 0x217   : > { %6384 = vst [vmem:[#allocation2 + $0x18] sm:$0xf] %v6026_v58  ;;  %v6051_v7 = vrot.slane %v6049_v10, 6  ;;  %v6054_v46 = vrot.slane %v6052_v48, 7  ;;  %v19086_v29 = vpack.c.bf16 %v5842_v33, %v5842_v33  ;;  %v5555_v13 = vadd.f32 %v21280_v12, %v24444_v38  ;;  %20335 = vmatmul.mubr.bf16.vlgmr.msra.gmra.mrb[36].mxu1 %v22398_v43 }
 0x218   : > { %v6029_v4 = vshrl.u32 %v19081_v47, 16  ;;  %v6032_v21 = vshll.u32 %v19081_v47, 16  ;;  %v5840_v31 = vmul.f32 %v24456_v11, %v5588_v3  ;;  %v5553_v36 = vadd.f32 %v21281_v14, %v24444_v38  ;;  %v22399_v35 = vld [vmem:[#allocation2 + $0x10] sm:$0xff]   ;;  %20371 = vmatpush3.bf16.msra.mxu1 %v24418_v19 }
 0x219   : > { %v6055_v23 = vor.u32 %v6054_v46, %v6051_v7  ;;  %v6079_v51 = vshrl.u32 %v19086_v29, 16  ;;  %v6082_v55 = vshll.u32 %v19086_v29, 16  ;;  %v5591_v52 = vmax.f32 %v5555_v13, 0.0  ;;  %20338 = vmatprep.mubr.bf16.mxu1 %v22399_v35  ;;  %20372 = vmatprep.subr.bf16.mxu1 %v22404_v17 }
 0x21a   : > { %v6031_v2 = vrot.slane %v6029_v4, 6  ;;  %v6034_v54 = vrot.slane %v6032_v21, 7  ;;  %v19084_v15 = vpack.c.bf16 %v5840_v31, %v5840_v31  ;;  %v5589_v11 = vmax.f32 %v5553_v36, 0.0  ;;  %v24517_v26 = vpop.f32.mrb[16].mxu0 }
 0x21b   : > { %v6056_v25 = vsel %vm24466_vm11, %v6047_v45, %v6055_v23  ;;  %v6057_v44 = vrot.slane %v6055_v23, 4  ;;  %v6081_v19 = vrot.slane %v6079_v51, 6  ;;  %v6084_v1 = vrot.slane %v6082_v55, 7  ;;  %v5350_v37 = vpop.f32.mrb[17].mxu0  ;;  %v22409_v45 = vld [vmem:[%s25959_s3 + $0x58] sm:$0xff]  }
 0x21c   : > { %6387 = vst [vmem:[#allocation2 + $0x24] sm:$0xf] %v6056_v25  ;;  %v6035_v22 = vor.u32 %v6034_v54, %v6031_v2  ;;  %v6059_v24 = vshrl.u32 %v19084_v15, 16  ;;  %v6062_v49 = vshll.u32 %v19084_v15, 16  ;;  %v5843_v32 = vmul.f32 %v5710_v59, %v5591_v52  ;;  %v24521_v61 = vpop.f32.mrb[18].mxu0  ;;  %20373 = vmatpush3.bf16.msra.mxu1 %v22404_v17 }
 0x21d   : > { %v24523_v56 = vor.u32 %v6084_v1, %v6081_v19  ;;  %v5841_v57 = vmul.f32 %v24477_v9, %v5589_v11  ;;  %v21282_v50 = vadd.f32 %v24488_v20, %v24433_v40  ;;  %v21283_v12 = vadd.f32 %v5334_v28, %v24435_v16  ;;  %v24529_v62 = vpop.f32.mrb[19].mxu0  ;;  %20374 = vmatprep.subr.bf16.mxu1 %v22408_v5  ;;  %v5730_v28 = vpop.permute.xlu1 %5729 }
 0x21e   : > { %v6036_v8 = vsel %vm24466_vm11, %v6027_v39, %v6035_v22  ;;  %v6037_v60 = vrot.slane %v6035_v22, 4  ;;  %v6061_v14 = vrot.slane %v6059_v24, 6  ;;  %v6064_v59 = vrot.slane %v6062_v49, 7  ;;  %v24544_v39 = vpop.permute.xlu0 %5734 }
 0x21f   : > { %6385 = vst [vmem:[#allocation2 + $0x1c] sm:$0xf] %v6036_v8  ;;  %v6087_v9 = vrot.slane %v24523_v56, 4  ;;  %v19087_v40 = vpack.c.bf16 %v5843_v32, %v5843_v32  ;;  %v19085_v20 = vpack.c.bf16 %v5841_v57, %v5841_v57  ;;  %v5558_v16 = vadd.f32 %v21282_v50, %v24444_v38 }
 0x220   : > { %v6046_v10 = vsel %vm24466_vm11, %v6037_v60, %v24490_v18  ;;  %v6065_v48 = vor.u32 %v6064_v59, %v6061_v14  ;;  %v5556_v33 = vadd.f32 %v21283_v12, %v24444_v38  ;;  %v21284_v58 = vadd.f32 %v24496_v6, %v24437_v42  ;;  %20375 = vmatpush3.bf16.msra.mxu1 %v22408_v5  ;;  %v22412_v42 = vld [vmem:[%s25959_s3 + $0x60] sm:$0xff]  }
 0x221   : > { %6386 = vst [vmem:[#allocation2 + $0x20] sm:$0xf] %v6046_v10  ;;  %v6089_v47 = vshrl.u32 %v19087_v40, 16  ;;  %v6092_v3 = vshll.u32 %v19087_v40, 16  ;;  %v6069_v43 = vshrl.u32 %v19085_v20, 16  ;;  %v6072_v17 = vshll.u32 %v19085_v20, 16  ;;  %20376 = vmatprep.subr.bf16.mxu1 %v22409_v45  ;;  %v24576_v60 = vpop.permute.xlu1 %5739 }
 0x222   : > { %v20092_v7 = vpop.f32.mrb[16].mxu1  ;;  %v6066_v46 = vsel %vm24466_vm11, %v6057_v44, %v6065_v48  ;;  %v6067_v29 = vrot.slane %v6065_v48, 4  ;;  %v5594_v18 = vmax.f32 %v5558_v16, 0.0  ;;  %v5592_v13 = vmax.f32 %v5556_v33, 0.0  ;;  %v24548_v4 = vpop.f32.mrb[20].mxu0  ;;  %v22418_v16 = vld [vmem:[%s25959_s3 + $0x70] sm:$0xff]  }
 0x223   : > { %v3074_v21 = vpop.f32.mrb[17].mxu1  ;;  %6388 = vst [vmem:[#allocation2 + $0x28] sm:$0xf] %v6066_v46  ;;  %v6091_v6 = vrot.slane %v6089_v47, 6  ;;  %v6094_v31 = vrot.slane %v6092_v3, 7  ;;  %v6071_v36 = vrot.slane %v6069_v43, 6  ;;  %v5559_v5 = vadd.f32 %v21284_v58, %v24444_v38  ;;  %v5745_v10 = vpop.permute.xlu0 %5744 }
 0x224   : > { %v6074_v35 = vrot.slane %v6072_v17, 7  ;;  %v24553_v23 = vpop.f32.mrb[21].mxu0  ;;  %v20093_v51 = vpop.f32.mrb[18].mxu1  ;;  %v5846_v55 = vmul.f32 %v5725_v27, %v5594_v18  ;;  %v5844_v52 = vmul.f32 %v24498_v53, %v5592_v13  ;;  %v21285_v2 = vadd.f32 %v24501_v41, %v24439_v34  ;;  %20377 = vmatpush3.bf16.msra.mxu1 %v22409_v45  ;;  %v22415_v53 = vld [vmem:[%s25959_s3 + $0x68] sm:$0xff]  }
 0x225   : > { %v24559_v54 = vpop.f32.mrb[22].mxu0  ;;  %v3077_v15 = vpop.f32.mrb[19].mxu1  ;;  %v24561_v11 = vor.u32 %v6094_v31, %v6091_v6  ;;  %v21286_v44 = vadd.f32 %v24517_v26, %v20092_v7  ;;  %v21287_v19 = vadd.f32 %v5350_v37, %v3074_v21  ;;  %v5595_v24 = vmax.f32 %v5559_v5, 0.0  ;;  %20378 = vmatprep.subr.bf16.mxu1 %v22412_v42 }
 0x226   : > { %v6075_v25 = vor.u32 %v6074_v35, %v6071_v36  ;;  %v24564_v1 = vpop.f32.mrb[23].mxu0  ;;  %v19090_v27 = vpack.c.bf16 %v5846_v55, %v5846_v55  ;;  %v19088_v22 = vpack.c.bf16 %v5844_v52, %v5844_v52  ;;  %v5557_v34 = vadd.f32 %v21285_v2, %v24444_v38  ;;  %v22400_v41 = vld [vmem:[#allocation2 + $0x18] sm:$0xff]  }
 0x227   : > { %v6096_v49 = vsel %vm24466_vm11, %v6087_v9, %v24561_v11  ;;  %v6097_v26 = vrot.slane %v24561_v11, 4  ;;  %20339 = vmatmul.mubr.bf16.gmra.mrb[40].mxu1 %v22400_v41  ;;  %v5847_v59 = vmul.f32 %v5730_v28, %v5595_v24  ;;  %v5562_v9 = vadd.f32 %v21286_v44, %v24444_v38  ;;  %v22421_v2 = vld [vmem:[%s25959_s3 + $0x78] sm:$0xff]   ;;  %v24618_v41 = vpop.permute.xlu0 %5754 }
 0x228   : > { %v6076_v37 = vsel %vm24466_vm11, %v6067_v29, %v6075_v25  ;;  %v6077_v32 = vrot.slane %v6075_v25, 4  ;;  %6391 = vst [vmem:[#allocation2 + $0x34] sm:$0xf] %v6096_v49  ;;  %v6119_v57 = vshrl.u32 %v19090_v27, 16  ;;  %v6122_v50 = vshll.u32 %v19090_v27, 16  ;;  %v22402_v40 = vld [vmem:[#allocation2 + $0x20] sm:$0xff]   ;;  %20379 = vmatpush3.bf16.msra.mxu1 %v22412_v42 }
 0x229   : > { %6389 = vst [vmem:[#allocation2 + $0x2c] sm:$0xf] %v6076_v37  ;;  %v6099_v12 = vshrl.u32 %v19088_v22, 16  ;;  %v6102_v8 = vshll.u32 %v19088_v22, 16  ;;  %v5593_v45 = vmax.f32 %v5557_v34, 0.0  ;;  %v20096_v20 = vpop.f32.mrb[20].mxu1  ;;  %20380 = vmatprep.subr.bf16.mxu1 %v22415_v53  ;;  %v19091_v3 = vpack.c.bf16 %v5847_v59, %v5847_v59  ;;  %20342 = vmatprep.mubr.bf16.mxu1 %v22402_v40 }
 0x22a   : > { %v6086_v14 = vsel %vm24466_vm11, %v6077_v32, %v24523_v56  ;;  %v6121_v48 = vrot.slane %v6119_v57, 6  ;;  %v6124_v33 = vrot.slane %v6122_v50, 7  ;;  %v5598_v28 = vmax.f32 %v5562_v9, 0.0  ;;  %v24587_v17 = vpop.f32.mrb[24].mxu0  ;;  %v24589_v7 = vpop.f32.mrb[21].mxu1  ;;  %v24630_v9 = vld [vmem:[%s25959_s3 + $0x80] sm:$0xff]  }
 0x22b   : > { %6390 = vst [vmem:[#allocation2 + $0x30] sm:$0xf] %v6086_v14  ;;  %v6101_v58 = vrot.slane %v6099_v12, 6  ;;  %v6104_v47 = vrot.slane %v6102_v8, 7  ;;  %v5845_v56 = vmul.f32 %v24515_v63, %v5593_v45  ;;  %v5560_v43 = vadd.f32 %v21287_v19, %v24444_v38  ;;  %v24597_v21 = vpop.f32.mrb[25].mxu0  ;;  %v24599_v42 = vpop.f32.mrb[22].mxu1 }
 0x22c   : > { %v24591_v46 = vor.u32 %v6124_v33, %v6121_v48  ;;  %v21288_v18 = vadd.f32 %v24521_v61, %v20093_v51  ;;  %v21289_v13 = vadd.f32 %v24529_v62, %v3077_v15  ;;  %v6129_v63 = vshrl.u32 %v19091_v3, 16  ;;  %v24601_v35 = vpop.f32.mrb[26].mxu0  ;;  %v24603_v55 = vpop.f32.mrb[23].mxu1  ;;  %20381 = vmatpush3.bf16.msra.mxu1 %v22415_v53 }
 0x22d   : > { %v24593_v29 = vor.u32 %v6104_v47, %v6101_v58  ;;  %v6132_v6 = vshll.u32 %v19091_v3, 16  ;;  %v19089_v31 = vpack.c.bf16 %v5845_v56, %v5845_v56  ;;  %v5850_v36 = vmul.f32 %v5745_v10, %v5598_v28  ;;  %v24610_v5 = vpop.f32.mrb[27].mxu0  ;;  %20382 = vmatprep.subr.bf16.mxu1 %v22418_v16  ;;  %v5750_v15 = vpop.permute.xlu1 %5749 }
 0x22e   : > { %v6127_v52 = vrot.slane %v24591_v46, 4  ;;  %v5596_v51 = vmax.f32 %v5560_v43, 0.0  ;;  %v6131_v11 = vrot.slane %v6129_v63, 6  ;;  %v5563_v22 = vadd.f32 %v21288_v18, %v24444_v38 }
 0x22f   : > { %v6106_v61 = vsel %vm24466_vm11, %v6097_v26, %v24593_v29  ;;  %v6107_v62 = vrot.slane %v24593_v29, 4  ;;  %v6134_v25 = vrot.slane %v6132_v6, 7  ;;  %v6109_v44 = vshrl.u32 %v19089_v31, 16 }
 0x230   : > { %6392 = vst [vmem:[#allocation2 + $0x38] sm:$0xf] %v6106_v61  ;;  %v6112_v19 = vshll.u32 %v19089_v31, 16  ;;  %v19094_v53 = vpack.c.bf16 %v5850_v36, %v5850_v36  ;;  %v5848_v27 = vmul.f32 %v24544_v39, %v5596_v51  ;;  %v5561_v24 = vadd.f32 %v21289_v13, %v24444_v38  ;;  %v22403_v34 = vld [vmem:[#allocation2 + $0x28] sm:$0xff]   ;;  %20383 = vmatpush3.bf16.msra.mxu1 %v22418_v16 }
 0x231   : > { %v6135_v49 = vor.u32 %v6134_v25, %v6131_v11  ;;  %v6111_v26 = vrot.slane %v6109_v44, 6  ;;  %v21290_v32 = vadd.f32 %v24548_v4, %v20096_v20  ;;  %v24621_v50 = vpop.f32.mrb[24].mxu1  ;;  %v5599_v39 = vmax.f32 %v5563_v22, 0.0  ;;  %20343 = vmatmul.mubr.bf16.gmra.mrb[44].mxu1 %v22403_v34  ;;  %20384 = vmatprep.subr.bf16.mxu1 %v22421_v2  ;;  %v24642_v43 = vpop.permute.xlu1 %5759 }
 0x232   : > { %v6114_v37 = vrot.slane %v6112_v19, 7  ;;  %v22405_v57 = vld [vmem:[#allocation2 + $0x30] sm:$0xff]   ;;  %v6159_v12 = vshrl.u32 %v19094_v53, 16  ;;  %v6162_v8 = vshll.u32 %v19094_v53, 16  ;;  %v19092_v14 = vpack.c.bf16 %v5848_v27, %v5848_v27  ;;  %v24623_v59 = vpop.f32.mrb[28].mxu0  ;;  %v24625_v45 = vpop.f32.mrb[25].mxu1 }
 0x233   : > { %v6136_v4 = vsel %vm24466_vm11, %v6127_v52, %v6135_v49  ;;  %v6137_v40 = vrot.slane %v6135_v49, 4  ;;  %v5597_v16 = vmax.f32 %v5561_v24, 0.0  ;;  %20346 = vmatprep.mubr.bf16.mxu1 %v22405_v57  ;;  %v24634_v10 = vpop.f32.mrb[29].mxu0  ;;  %v24636_v48 = vpop.f32.mrb[26].mxu1  ;;  %v5851_v13 = vmul.f32 %v5750_v15, %v5599_v39 }
 0x234   : > { %v6115_v20 = vor.u32 %v6114_v37, %v6111_v26  ;;  %6395 = vst [vmem:[#allocation2 + $0x44] sm:$0xf] %v6136_v4  ;;  %v6161_v33 = vrot.slane %v6159_v12, 6  ;;  %v6164_v58 = vrot.slane %v6162_v8, 7  ;;  %v6139_v47 = vshrl.u32 %v19092_v14, 16  ;;  %v24638_v56 = vpop.f32.mrb[30].mxu0  ;;  %20385 = vmatpush3.bf16.msra.mxu1 %v22421_v2  ;;  %v5765_v11 = vpop.permute.xlu0 %5764 }
 0x235   : > { %v6142_v3 = vshll.u32 %v19092_v14, 16  ;;  %v24640_v28 = vpop.f32.mrb[27].mxu1  ;;  %v5849_v63 = vmul.f32 %v24576_v60, %v5597_v16  ;;  %v24647_v6 = vpop.f32.mrb[31].mxu0  ;;  %v5566_v61 = vadd.f32 %v21290_v32, %v24444_v38  ;;  %20422 = vmatprep.subr.bf16.mxu1 %v24630_v9  ;;  %v19095_v51 = vpack.c.bf16 %v5851_v13, %v5851_v13 }
 0x236   : > { %v6116_v29 = vsel %vm24466_vm11, %v6107_v62, %v6115_v20  ;;  %v6117_v18 = vrot.slane %v6115_v20, 4  ;;  %v24649_v31 = vor.u32 %v6164_v58, %v6161_v33  ;;  %v6141_v36 = vrot.slane %v6139_v47, 6  ;;  %v5770_v32 = vpop.permute.xlu1 %5769 }
 0x237   : > { %6393 = vst [vmem:[#allocation2 + $0x3c] sm:$0xf] %v6116_v29  ;;  %v6144_v52 = vrot.slane %v6142_v3, 7  ;;  %v19093_v15 = vpack.c.bf16 %v5849_v63, %v5849_v63  ;;  %v21291_v60 = vadd.f32 %v24553_v23, %v24589_v7  ;;  %v5602_v44 = vmax.f32 %v5566_v61, 0.0 }
 0x238   : > { %v6126_v62 = vsel %vm24466_vm11, %v6117_v18, %v24591_v46  ;;  %v6167_v2 = vrot.slane %v24649_v31, 4  ;;  %v21292_v19 = vadd.f32 %v24559_v54, %v24599_v42  ;;  %v6169_v53 = vshrl.u32 %v19095_v51, 16  ;;  %v5775_v13 = vpop.permute.xlu0 %5774 }
 0x239   : > { %6394 = vst [vmem:[#allocation2 + $0x40] sm:$0xf] %v6126_v62  ;;  %v6145_v25 = vor.u32 %v6144_v52, %v6141_v36  ;;  %v6172_v27 = vshll.u32 %v19095_v51, 16  ;;  %v6149_v22 = vshrl.u32 %v19093_v15, 16  ;;  %v6152_v24 = vshll.u32 %v19093_v15, 16  ;;  %v24661_v34 = vpop.f32.mrb[28].mxu1 }
 0x23a   : > { %v5854_v23 = vmul.f32 %v5765_v11, %v5602_v44  ;;  %v5564_v7 = vadd.f32 %v21291_v60, %v24444_v38  ;;  %v24666_v26 = vpop.f32.mrb[32].mxu0  ;;  %v24668_v37 = vpop.f32.mrb[29].mxu1  ;;  %v6171_v54 = vrot.slane %v6169_v53, 6  ;;  %v5567_v39 = vadd.f32 %v21292_v19, %v24444_v38 }
 0x23b   : > { %v6146_v46 = vsel %vm24466_vm11, %v6137_v40, %v6145_v25  ;;  %v6147_v49 = vrot.slane %v6145_v25, 4  ;;  %v6174_v42 = vrot.slane %v6172_v27, 7  ;;  %v6151_v57 = vrot.slane %v6149_v22, 6  ;;  %v24673_v40 = vpop.f32.mrb[33].mxu0  ;;  %v24675_v20 = vpop.f32.mrb[30].mxu1 }
 0x23c   : > { %6396 = vst [vmem:[#allocation2 + $0x48] sm:$0xf] %v6146_v46  ;;  %v6154_v12 = vrot.slane %v6152_v24, 7  ;;  %v19098_v8 = vpack.c.bf16 %v5854_v23, %v5854_v23  ;;  %v5600_v14 = vmax.f32 %v5564_v7, 0.0  ;;  %v21293_v4 = vadd.f32 %v24564_v1, %v24603_v55  ;;  %v24683_v29 = vpop.f32.mrb[34].mxu0  ;;  %v24685_v18 = vpop.f32.mrb[31].mxu1 }
 0x23d   : > { %v24677_v16 = vor.u32 %v6174_v42, %v6171_v54  ;;  %v21294_v47 = vadd.f32 %v24587_v17, %v24621_v50  ;;  %v21295_v3 = vadd.f32 %v24597_v21, %v24625_v45  ;;  %v5603_v36 = vmax.f32 %v5567_v39, 0.0  ;;  %v24688_v52 = vpop.f32.mrb[35].mxu0  ;;  %v24708_v46 = vpop.permute.xlu1 %5779 }
 0x23e   : > { %v6155_v33 = vor.u32 %v6154_v12, %v6151_v57  ;;  %v22406_v58 = vld [vmem:[#allocation2 + $0x38] sm:$0xff]   ;;  %v6199_v1 = vshrl.u32 %v19098_v8, 16  ;;  %v6202_v55 = vshll.u32 %v19098_v8, 16  ;;  %v5852_v63 = vmul.f32 %v24618_v41, %v5600_v14  ;;  %v5785_v54 = vpop.permute.xlu0 %5784 }
 0x23f   : > { %v6176_v61 = vsel %vm24466_vm11, %v6167_v2, %v24677_v16  ;;  %v6177_v17 = vrot.slane %v24677_v16, 4  ;;  %20347 = vmatmul.mubr.bf16.gmra.mrb[48].mxu1 %v22406_v58  ;;  %v5855_v15 = vmul.f32 %v5770_v32, %v5603_v36  ;;  %v5565_v11 = vadd.f32 %v21293_v4, %v24444_v38 }
 0x240   : > { %v6156_v21 = vsel %vm24466_vm11, %v6147_v49, %v6155_v33  ;;  %v6157_v50 = vrot.slane %v6155_v33, 4  ;;  %v22407_v45 = vld [vmem:[#allocation2 + $0x40] sm:$0xff]   ;;  %6399 = vst [vmem:[#allocation2 + $0x54] sm:$0xf] %v6176_v61  ;;  %v6201_v62 = vrot.slane %v6199_v1, 6  ;;  %v6204_v51 = vrot.slane %v6202_v55, 7 }
 0x241   : > { %6397 = vst [vmem:[#allocation2 + $0x4c] sm:$0xf] %v6156_v21  ;;  %v19096_v41 = vpack.c.bf16 %v5852_v63, %v5852_v63  ;;  %v5570_v2 = vadd.f32 %v21294_v47, %v24444_v38  ;;  %v5568_v25 = vadd.f32 %v21295_v3, %v24444_v38  ;;  %20350 = vmatprep.mubr.bf16.mxu1 %v22407_v45  ;;  %v24702_v44 = vpop.f32.mrb[32].mxu1 }
 0x242   : > { %v6166_v60 = vsel %vm24466_vm11, %v6157_v50, %v24649_v31  ;;  %v24704_v19 = vor.u32 %v6204_v51, %v6201_v62  ;;  %v19099_v22 = vpack.c.bf16 %v5855_v15, %v5855_v15  ;;  %v24706_v24 = vpop.f32.mrb[33].mxu1  ;;  %v5601_v31 = vmax.f32 %v5565_v11, 0.0 }
 0x243   : > { %6398 = vst [vmem:[#allocation2 + $0x50] sm:$0xf] %v6166_v60  ;;  %v6179_v53 = vshrl.u32 %v19096_v41, 16  ;;  %v6182_v27 = vshll.u32 %v19096_v41, 16  ;;  %v5606_v49 = vmax.f32 %v5570_v2, 0.0  ;;  %v5604_v23 = vmax.f32 %v5568_v25, 0.0 }
 0x244   : > { %v21296_v7 = vadd.f32 %v24601_v35, %v24636_v48  ;;  %v24712_v32 = vpop.f32.mrb[34].mxu1  ;;  %v6207_v42 = vrot.slane %v24704_v19, 4  ;;  %v6209_v8 = vshrl.u32 %v19099_v22, 16  ;;  %v6212_v39 = vshll.u32 %v19099_v22, 16 }
 0x245   : > { %v6181_v57 = vrot.slane %v6179_v53, 6  ;;  %v6184_v12 = vrot.slane %v6182_v27, 7  ;;  %v24715_v14 = vpop.f32.mrb[35].mxu1  ;;  %v5853_v4 = vmul.f32 %v24642_v43, %v5601_v31  ;;  %v5858_v16 = vmul.f32 %v5785_v54, %v5606_v49 }
 0x246   : > { %v5856_v33 = vmul.f32 %v5775_v13, %v5604_v23  ;;  %v6211_v47 = vrot.slane %v6209_v8, 6  ;;  %v5571_v3 = vadd.f32 %v21296_v7, %v24444_v38  ;;  %v21297_v35 = vadd.f32 %v24610_v5, %v24640_v28  ;;  %v5790_v13 = vpop.permute.xlu1 %5789  ;;  %v5795_v28 = vpop.permute.xlu0 %5794 }
 0x247   : > { %v6185_v58 = vor.u32 %v6184_v12, %v6181_v57  ;;  %v6214_v48 = vrot.slane %v6212_v39, 7  ;;  %v19097_v1 = vpack.c.bf16 %v5853_v4, %v5853_v4  ;;  %v19102_v55 = vpack.c.bf16 %v5858_v16, %v5858_v16 }
 0x248   : > { %v19100_v63 = vpack.c.bf16 %v5856_v33, %v5856_v33  ;;  %v22410_v36 = vld [vmem:[#allocation2 + $0x48] sm:$0xff]   ;;  %v5607_v50 = vmax.f32 %v5571_v3, 0.0  ;;  %v5569_v43 = vadd.f32 %v21297_v35, %v24444_v38  ;;  %v21298_v57 = vadd.f32 %v24623_v59, %v24661_v34 }
 0x249   : > { %v6186_v61 = vsel %vm24466_vm11, %v6177_v17, %v6185_v58  ;;  %v6187_v21 = vrot.slane %v6185_v58, 4  ;;  %v6215_v45 = vor.u32 %v6214_v48, %v6211_v47  ;;  %v6189_v62 = vshrl.u32 %v19097_v1, 16  ;;  %20351 = vmatmul.mubr.bf16.gmra.mrb[52].mxu1 %v22410_v36  ;;  %v24746_v48 = vld [vmem:[%s25958_s2] ss:$0 sm:$0xff] }
 0x24a   : > { %6400 = vst [vmem:[#allocation2 + $0x58] sm:$0xf] %v6186_v61  ;;  %v6192_v51 = vshll.u32 %v19097_v1, 16  ;;  %v6239_v41 = vshrl.u32 %v19102_v55, 16  ;;  %v22411_v5 = vld [vmem:[#allocation2 + $0x50] sm:$0xff]   ;;  %v6242_v15 = vshll.u32 %v19102_v55, 16  ;;  %v5859_v2 = vmul.f32 %v5790_v13, %v5607_v50  ;;  %v5800_v4 = vpop.permute.xlu1 %5799  ;;  %v5805_v3 = vpop.permute.xlu0 %5804 }
 0x24b   : > { %v6219_v60 = vshrl.u32 %v19100_v63, 16  ;;  %v6222_v11 = vshll.u32 %v19100_v63, 16  ;;  %v6216_v17 = vsel %vm24466_vm11, %v6207_v42, %v6215_v45  ;;  %v6217_v25 = vrot.slane %v6215_v45, 4  ;;  %20354 = vmatprep.mubr.bf16.mxu1 %v22411_v5 }
 0x24c   : > { %v6191_v53 = vrot.slane %v6189_v62, 6  ;;  %v6194_v27 = vrot.slane %v6192_v51, 7  ;;  %6403 = vst [vmem:[#allocation2 + $0x64] sm:$0xf] %v6216_v17  ;;  %v6241_v38 = vrot.slane %v6239_v41, 6  ;;  %v6244_v22 = vrot.slane %v6242_v15, 7 }
 0x24d   : > { %v6221_v31 = vrot.slane %v6219_v60, 6  ;;  %v6224_v49 = vrot.slane %v6222_v11, 7  ;;  %v19103_v7 = vpack.c.bf16 %v5859_v2, %v5859_v2  ;;  %v5605_v54 = vmax.f32 %v5569_v43, 0.0 }
 0x24e   : > { %v6195_v23 = vor.u32 %v6194_v27, %v6191_v53  ;;  %v24728_v12 = vor.u32 %v6244_v22, %v6241_v38  ;;  %v21299_v42 = vadd.f32 %v24634_v10, %v24668_v37  ;;  %v21300_v39 = vadd.f32 %v24638_v56, %v24675_v20  ;;  %v5810_v51 = vpop.permute.xlu1 %5809  ;;  %v5815_v15 = vpop.permute.xlu0 %5814 }
 0x24f   : > { %v6225_v8 = vor.u32 %v6224_v49, %v6221_v31  ;;  %v6249_v58 = vshrl.u32 %v19103_v7, 16  ;;  %v6252_v47 = vshll.u32 %v19103_v7, 16  ;;  %v5857_v10 = vmul.f32 %v24708_v46, %v5605_v54 }
 0x250   : > { %v6196_v16 = vsel %vm24466_vm11, %v6187_v21, %v6195_v23  ;;  %v6197_v33 = vrot.slane %v6195_v23, 4  ;;  %v6247_v59 = vrot.slane %v24728_v12, 4  ;;  %v5574_v1 = vadd.f32 %v24746_v48, %v21298_v57 }
 0x251   : > { %6401 = vst [vmem:[#allocation2 + $0x5c] sm:$0xf] %v6196_v16  ;;  %v6226_v34 = vsel %vm24466_vm11, %v6217_v25, %v6225_v8  ;;  %v6227_v35 = vrot.slane %v6225_v8, 4  ;;  %v6251_v37 = vrot.slane %v6249_v58, 6  ;;  %v6254_v20 = vrot.slane %v6252_v47, 7 }
 0x252   : > { %v6206_v56 = vsel %vm24466_vm11, %v6197_v33, %v24704_v19  ;;  %6404 = vst [vmem:[#allocation2 + $0x68] sm:$0xf] %v6226_v34  ;;  %v19101_v55 = vpack.c.bf16 %v5857_v10, %v5857_v10  ;;  %v5572_v63 = vadd.f32 %v24746_v48, %v21299_v42  ;;  %v5575_v46 = vadd.f32 %v24746_v48, %v21300_v39  ;;  %v5825_v47 = vpop.permute.xlu0 %5824 }
 0x253   : > { %6402 = vst [vmem:[#allocation2 + $0x60] sm:$0xf] %v6206_v56  ;;  %v21301_v36 = vadd.f32 %v24647_v6, %v24685_v18  ;;  %v24753_v19 = vor.u32 %v6254_v20, %v6251_v37  ;;  %v5610_v61 = vmax.f32 %v5574_v1, 0.0  ;;  %v21302_v21 = vadd.f32 %v24666_v26, %v24702_v44 }
 0x254   : > { %v21303_v50 = vadd.f32 %v24673_v40, %v24706_v24  ;;  %v6229_v43 = vshrl.u32 %v19101_v55, 16  ;;  %v6232_v13 = vshll.u32 %v19101_v55, 16  ;;  %v5608_v45 = vmax.f32 %v5572_v63, 0.0 }
 0x255   : > { %v5611_v62 = vmax.f32 %v5575_v46, 0.0  ;;  %v6256_v41 = vsel %vm24466_vm11, %v6247_v59, %v24753_v19  ;;  %v6257_v6 = vrot.slane %v24753_v19, 4  ;;  %v5862_v18 = vmul.f32 %v5805_v3, %v5610_v61  ;;  %v5820_v59 = vpop.permute.xlu1 %5819 }
 0x256   : > { %v5573_v5 = vadd.f32 %v24746_v48, %v21301_v36  ;;  %6407 = vst [vmem:[#allocation2 + $0x74] sm:$0xf] %v6256_v41  ;;  %v6231_v26 = vrot.slane %v6229_v43, 6  ;;  %v6234_v44 = vrot.slane %v6232_v13, 7  ;;  %v5860_v60 = vmul.f32 %v5795_v28, %v5608_v45 }
 0x257   : > { %v5863_v40 = vmul.f32 %v5810_v51, %v5611_v62  ;;  %v19106_v24 = vpack.c.bf16 %v5862_v18, %v5862_v18  ;;  %v5578_v2 = vadd.f32 %v24746_v48, %v21302_v21  ;;  %v5576_v17 = vadd.f32 %v24746_v48, %v21303_v50 }
 0x258   : > { %v5609_v11 = vmax.f32 %v5573_v5, 0.0  ;;  %v22413_v25 = vld [vmem:[#allocation2 + $0x58] sm:$0xff]   ;;  %v6235_v53 = vor.u32 %v6234_v44, %v6231_v26  ;;  %v19104_v27 = vpack.c.bf16 %v5860_v60, %v5860_v60  ;;  %v21304_v22 = vadd.f32 %v24683_v29, %v24712_v32 }
 0x259   : > { %v19107_v38 = vpack.c.bf16 %v5863_v40, %v5863_v40  ;;  %v6279_v31 = vshrl.u32 %v19106_v24, 16  ;;  %v6282_v49 = vshll.u32 %v19106_v24, 16  ;;  %v5614_v7 = vmax.f32 %v5578_v2, 0.0  ;;  %20355 = vmatmul.mubr.bf16.gmra.mrb[56].mxu1 %v22413_v25  ;;  %v5830_v26 = vpop.permute.xlu1 %5829 }
 0x25a   : > { %v5861_v23 = vmul.f32 %v5800_v4, %v5609_v11  ;;  %v22414_v28 = vld [vmem:[#allocation2 + $0x60] sm:$0xff]   ;;  %v6236_v54 = vsel %vm24466_vm11, %v6227_v35, %v6235_v53  ;;  %v6237_v57 = vrot.slane %v6235_v53, 4  ;;  %v6259_v8 = vshrl.u32 %v19104_v27, 16 }
 0x25b   : > { %v6262_v42 = vshll.u32 %v19104_v27, 16  ;;  %6405 = vst [vmem:[#allocation2 + $0x6c] sm:$0xf] %v6236_v54  ;;  %v6281_v39 = vrot.slane %v6279_v31, 6  ;;  %v6284_v16 = vrot.slane %v6282_v49, 7  ;;  %v6289_v33 = vshrl.u32 %v19107_v38, 16  ;;  %20358 = vmatprep.mubr.bf16.mxu1 %v22414_v28 }
 0x25c   : > { %v6292_v58 = vshll.u32 %v19107_v38, 16  ;;  %v6246_v29 = vsel %vm24466_vm11, %v6237_v57, %v24728_v12  ;;  %v6261_v32 = vrot.slane %v6259_v8, 6  ;;  %v19105_v3 = vpack.c.bf16 %v5861_v23, %v5861_v23 }
 0x25d   : > { %v6264_v4 = vrot.slane %v6262_v42, 7  ;;  %6406 = vst [vmem:[#allocation2 + $0x70] sm:$0xf] %v6246_v29  ;;  %v6285_v34 = vor.u32 %v6284_v16, %v6281_v39  ;;  %v6291_v35 = vrot.slane %v6289_v33, 6  ;;  %v5866_v56 = vmul.f32 %v5825_v47, %v5614_v7  ;;  %v22423_v42 = vld [vmem:[#allocation2] sm:$0xff]  }
 0x25e   : > { %v6294_v10 = vrot.slane %v6292_v58, 7  ;;  %v6269_v20 = vshrl.u32 %v19105_v3, 16  ;;  %v6272_v1 = vshll.u32 %v19105_v3, 16  ;;  %v5612_v55 = vmax.f32 %v5576_v17, 0.0  ;;  %v6418_v33 = vld [vmem:[#allocation2 + $0x98] sm:$0x3] }
 0x25f   : > { %v6265_v37 = vor.u32 %v6264_v4, %v6261_v32  ;;  %v6287_v63 = vrot.slane %v6285_v34, 4  ;;  %v19110_v36 = vpack.c.bf16 %v5866_v56, %v5866_v56  ;;  %v5579_v19 = vadd.f32 %v24746_v48, %v21304_v22 }
 0x260   : > { %v6295_v46 = vor.u32 %v6294_v10, %v6291_v35  ;;  %v6271_v21 = vrot.slane %v6269_v20, 6  ;;  %v6274_v50 = vrot.slane %v6272_v1, 7  ;;  %v5864_v51 = vmul.f32 %v5815_v15, %v5612_v55  ;;  %v22424_v20 = vld [vmem:[#allocation2 + $0x8] sm:$0xff]  }
 0x261   : > { %v6266_v12 = vsel %vm24466_vm11, %v6257_v6, %v6265_v37  ;;  %v6267_v61 = vrot.slane %v6265_v37, 4  ;;  %v6319_v13 = vshrl.u32 %v19110_v36, 16  ;;  %v6322_v45 = vshll.u32 %v19110_v36, 16 }
 0x262   : > { %6408 = vst [vmem:[#allocation2 + $0x78] sm:$0xf] %v6266_v12  ;;  %v6296_v43 = vsel %vm24466_vm11, %v6287_v63, %v6295_v46  ;;  %v6275_v62 = vor.u32 %v6274_v50, %v6271_v21  ;;  %v5615_v41 = vmax.f32 %v5579_v19, 0.0  ;;  %v21305_v18 = vadd.f32 %v24688_v52, %v24715_v14  ;;  %v22416_v5 = vld [vmem:[#allocation2 + $0x68] sm:$0xff]  }
 0x263   : > { %6411 = vst [vmem:[#allocation2 + $0x84] sm:$0xf] %v6296_v43  ;;  %v6321_v44 = vrot.slane %v6319_v13, 6  ;;  %v6324_v6 = vrot.slane %v6322_v45, 7  ;;  %v19108_v24 = vpack.c.bf16 %v5864_v51, %v5864_v51  ;;  %20359 = vmatmul.mubr.bf16.gmra.mrb[60].mxu1 %v22416_v5  ;;  %v6297_v23 = vrot.slane %v6295_v46, 4  ;;  %v22427_v43 = vld [vmem:[#allocation2 + $0x18] sm:$0xff]  }
 0x264   : > { %v6276_v60 = vsel %vm24466_vm11, %v6267_v61, %v6275_v62  ;;  %v6277_v40 = vrot.slane %v6275_v62, 4  ;;  %v5867_v11 = vmul.f32 %v5830_v26, %v5615_v41  ;;  %v22417_v2 = vld [vmem:[#allocation2 + $0x70] sm:$0xff]   ;;  %v5577_v15 = vadd.f32 %v24746_v48, %v21305_v18  ;;  %v22428_v5 = vld [vmem:[#allocation2 + $0x20] sm:$0xff]  }
 0x265   : > { %6409 = vst [vmem:[#allocation2 + $0x7c] sm:$0xf] %v6276_v60  ;;  %v6325_v17 = vor.u32 %v6324_v6, %v6321_v44  ;;  %v6299_v52 = vshrl.u32 %v19108_v24, 16  ;;  %v6302_v14 = vshll.u32 %v19108_v24, 16  ;;  %20362 = vmatprep.mubr.bf16.mxu1 %v22417_v2  ;;  %v7028_v1 = vshll.u32 %v22423_v42, 16  ;;  %v22425_v61 = vld [vmem:[#allocation2 + $0x10] sm:$0xff]  }
 0x266   : > { %v6286_v25 = vsel %vm24466_vm11, %v6277_v40, %v6285_v34  ;;  %v19111_v53 = vpack.c.bf16 %v5867_v11, %v5867_v11  ;;  %v5613_v27 = vmax.f32 %v5577_v15, 0.0  ;;  %v7026_v46 = vshrl.u32 %v22423_v42, 16  ;;  %v22429_v44 = vld [vmem:[#allocation2 + $0x28] sm:$0xff]   ;;  %v22434_v42 = vld [vmem:[#allocation2 + $0x40] sm:$0xff]  }
 0x267   : > { %6410 = vst [vmem:[#allocation2 + $0x80] sm:$0xf] %v6286_v25  ;;  %v6301_v38 = vrot.slane %v6299_v52, 6  ;;  %v6304_v22 = vrot.slane %v6302_v14, 7  ;;  %v6327_v28 = vrot.slane %v6325_v17, 4  ;;  %v7030_v19 = vrot.slane %v7028_v1, 1 }
 0x268   : > { %v6329_v31 = vshrl.u32 %v19111_v53, 16  ;;  %v6332_v49 = vshll.u32 %v19111_v53, 16  ;;  %v5865_v7 = vmul.f32 %v5820_v59, %v5613_v27  ;;  %v7033_v12 = vshll.u32 %v22424_v20, 16  ;;  %v22430_v11 = vld [vmem:[%s25959_s3 + $0x88] sm:$0xff]   ;;  %v22433_v52 = vld [vmem:[%s25959_s3 + $0x90] sm:$0xff]   ;;  %v22438_v1 = vld [vmem:[#allocation2 + $0x58] sm:$0xff]  }
 0x269   : > { %v6305_v54 = vor.u32 %v6304_v22, %v6301_v38  ;;  %v7031_v21 = vor.u32 %v7030_v19, %v7026_v46  ;;  %v7041_v45 = vshll.u32 %v22425_v61, 16  ;;  %v7049_v51 = vshll.u32 %v22427_v43, 16  ;;  %v22431_v53 = vld [vmem:[#allocation2 + $0x30] sm:$0xff]   ;;  %v22448_v19 = vld [vmem:[%s25959_s3 + $0xb8] sm:$0xff]  }
 0x26a   : > { %v6331_v57 = vrot.slane %v6329_v31, 6  ;;  %v6334_v48 = vrot.slane %v6332_v49, 7  ;;  %v19109_v8 = vpack.c.bf16 %v5865_v7, %v5865_v7  ;;  %v7035_v50 = vrot.slane %v7033_v12, 1  ;;  %v22432_v31 = vld [vmem:[#allocation2 + $0x38] sm:$0xff]  }
 0x26b   : > { %v6306_v39 = vsel %vm24466_vm11, %v6297_v23, %v6305_v54  ;;  %v6307_v34 = vrot.slane %v6305_v54, 4  ;;  %v7037_v41 = vshrl.u32 %v22424_v20, 16  ;;  %v7043_v18 = vrot.slane %v7041_v45, 1  ;;  %v24834_v45 = vld [vmem:[%s25959_s3 + $0xc0] sm:$0xff]  }
 0x26c   : > { %v6335_v16 = vor.u32 %v6334_v48, %v6331_v57  ;;  %v22419_v58 = vld [vmem:[#allocation2 + $0x78] sm:$0xff]   ;;  %6412 = vst [vmem:[#allocation2 + $0x88] sm:$0xf] %v6306_v39  ;;  %v6309_v29 = vshrl.u32 %v19109_v8, 16  ;;  %v6312_v32 = vshll.u32 %v19109_v8, 16  ;;  %v7036_v62 = vsel %vm1021_vm2, %v7031_v21, %v7035_v50  ;;  %v22439_v48 = vld [vmem:[%s25959_s3 + $0xa0] sm:$0xff]  }
 0x26d   : > { %20363 = vmatmul.mubr.bf16.gmra.mrb[64].mxu1 %v22419_v58  ;;  %v7039_v26 = vor.u32 %v7037_v41, %v7035_v50  ;;  %v7045_v6 = vshrl.u32 %v22425_v61, 16  ;;  %v7051_v60 = vrot.slane %v7049_v51, 1  ;;  %v7057_v24 = vshll.u32 %v22428_v5, 16  ;;  %v22435_v58 = vld [vmem:[#allocation2 + $0x48] sm:$0xff]  }
 0x26e   : > { %v6336_v4 = vsel %vm24466_vm11, %v6327_v28, %v6335_v16  ;;  %v6337_v3 = vrot.slane %v6335_v16, 4  ;;  %v22420_v59 = vld [vmem:[#allocation2 + $0x80] sm:$0xff]   ;;  %v6311_v35 = vrot.slane %v6309_v29, 6  ;;  %v6314_v10 = vrot.slane %v6312_v32, 7 }
 0x26f   : > { %6415 = vst [vmem:[#allocation2 + $0x94] sm:$0xf] %v6336_v4  ;;  %20366 = vmatprep.mubr.bf16.mxu1 %v22420_v59  ;;  %v7047_v40 = vor.u32 %v7045_v6, %v7043_v18  ;;  %v7044_v2 = vsel %vm1021_vm2, %v7039_v26, %v7043_v18  ;;  %v7065_v15 = vshll.u32 %v22429_v44, 16  ;;  %v7053_v25 = vshrl.u32 %v22427_v43, 16  ;;  %v22442_v4 = vld [vmem:[%s25959_s3 + $0xa8] sm:$0xff]  }
 0x270   : > { %v6419_v56 = vsel %vm24788_vm13, %v6337_v3, %v6418_v33  ;;  %v6315_v37 = vor.u32 %v6314_v10, %v6311_v35  ;;  %v7059_v14 = vrot.slane %v7057_v24, 1  ;;  %v7061_v38 = vshrl.u32 %v22428_v5, 16  ;;  %v22441_v18 = vld [vmem:[#allocation2 + $0x68] sm:$0xff]  }
 0x271   : > { %6420 = vst [vmem:[#allocation2 + $0x98] sm:$0x3] %v6419_v56  ;;  %v7055_v27 = vor.u32 %v7053_v25, %v7051_v60  ;;  %v7067_v22 = vrot.slane %v7065_v15, 1  ;;  %v7073_v23 = vshll.u32 %v22431_v53, 16  ;;  %v7081_v54 = vshll.u32 %v22432_v31, 16  ;;  %v22437_v56 = vld [vmem:[#allocation2 + $0x50] sm:$0xff]  }
 0x272   : > { %v6316_v55 = vsel %vm24466_vm11, %v6307_v34, %v6315_v37  ;;  %v6317_v63 = vrot.slane %v6315_v37, 4  ;;  %v7063_v49 = vor.u32 %v7061_v38, %v7059_v14  ;;  %v7069_v57 = vshrl.u32 %v22429_v44, 16  ;;  %v22445_v37 = vld [vmem:[%s25959_s3 + $0xb0] sm:$0xff]  }
 0x273   : > { %6413 = vst [vmem:[#allocation2 + $0x8c] sm:$0xf] %v6316_v55  ;;  %v7060_v7 = vsel %vm1021_vm2, %v7055_v27, %v7059_v14  ;;  %v7075_v8 = vrot.slane %v7073_v23, 1  ;;  %v7077_v16 = vshrl.u32 %v22431_v53, 16  ;;  %v7083_v33 = vrot.slane %v7081_v54, 1 }
 0x274   : > { %v6326_v36 = vsel %vm24466_vm11, %v6317_v63, %v6325_v17  ;;  %v7052_v17 = vsel %vm1021_vm2, %v7047_v40, %v7051_v60  ;;  %v7068_v28 = vsel %vm1021_vm2, %v7063_v49, %v7067_v22  ;;  %v7071_v39 = vor.u32 %v7069_v57, %v7067_v22  ;;  %v22446_v49 = vld [vmem:[#allocation2 + $0x80] sm:$0xff]  }
 0x275   : > { %6414 = vst [vmem:[#allocation2 + $0x90] sm:$0xf] %v6326_v36  ;;  %v7079_v29 = vor.u32 %v7077_v16, %v7075_v8  ;;  %v7089_v32 = vshll.u32 %v22434_v42, 16  ;;  %v7097_v34 = vshll.u32 %v22435_v58, 16  ;;  %v7085_v35 = vshrl.u32 %v22432_v31, 16 }
 0x276   : > { %v7076_v3 = vsel %vm1021_vm2, %v7071_v39, %v7075_v8  ;;  %v7093_v55 = vshrl.u32 %v22434_v42, 16  ;;  %v7105_v36 = vshll.u32 %v22437_v56, 16  ;;  %v7113_v21 = vshll.u32 %v22438_v1, 16 }
 0x277   : > { %v7084_v59 = vsel %vm1021_vm2, %v7079_v29, %v7083_v33  ;;  %v7091_v10 = vrot.slane %v7089_v32, 1  ;;  %v7087_v20 = vor.u32 %v7085_v35, %v7083_v33  ;;  %v7099_v63 = vrot.slane %v7097_v34, 1  ;;  %v22450_v34 = vld [vmem:[#allocation2] sm:$0xfe]  }
 0x278   : > { %v7101_v50 = vshrl.u32 %v22435_v58, 16  ;;  %v7107_v43 = vrot.slane %v7105_v36, 1  ;;  %v7109_v51 = vshrl.u32 %v22437_v56, 16  ;;  %v7115_v41 = vrot.slane %v7113_v21, 1  ;;  %v22454_v36 = vld [vmem:[#allocation2 + $0x18] sm:$0xff]   ;;  %v22457_v21 = vld [vmem:[%s25959_s3 + $0xc8] sm:$0xff]  }
 0x279   : > { %v7095_v46 = vor.u32 %v7093_v55, %v7091_v10  ;;  %v7092_v12 = vsel %vm1021_vm2, %v7087_v20, %v7091_v10  ;;  %v7129_v60 = vshll.u32 %v22441_v18, 16  ;;  %v7117_v40 = vshrl.u32 %v22438_v1, 16  ;;  %v22451_v10 = vld [vmem:[#allocation2 + $0x8] sm:$0xff]  }
 0x27a   : > { %v22422_v13 = vld [vmem:[#allocation2 + $0x88] sm:$0xff]   ;;  %v7111_v5 = vor.u32 %v7109_v51, %v7107_v43  ;;  %v7133_v22 = vshrl.u32 %v22441_v18, 16  ;;  %v7153_v57 = vshll.u32 %v22446_v49, 16  ;;  %v7157_v29 = vshrl.u32 %v22446_v49, 16  ;;  %v22460_v51 = vld [vmem:[%s25959_s3 + $0xd0] sm:$0xff]   ;;  %v22465_v49 = vld [vmem:[#allocation2 + $0x58] sm:$0xff]  }
 0x27b   : > { %20367 = vmatmul.mubr.bf16.gmra.mrb[68].mxu1 %v22422_v13  ;;  %v7100_v61 = vsel %vm1021_vm2, %v7095_v46, %v7099_v63  ;;  %v22440_v13 = vld [vmem:[#allocation2 + $0x60] sm:$0xff]   ;;  %v7131_v25 = vrot.slane %v7129_v60, 1  ;;  %v7671_v1 = vrot.slane %v22450_v34, 1  ;;  %v7672_v55 = vrot.slane %v22451_v10, 1  ;;  %v22474_v34 = vld [vmem:[#allocation2 + $0x88] sm:$0xff]  }
 0x27c   : > { %20386 = vmatprep.mubr.bf16.mxu1 %v7036_v62  ;;  %v7103_v62 = vor.u32 %v7101_v50, %v7099_v63  ;;  %v7121_v26 = vshll.u32 %v22440_v13, 16  ;;  %v7116_v6 = vsel %vm1021_vm2, %v7111_v5, %v7115_v41  ;;  %v7125_v15 = vshrl.u32 %v22440_v13, 16  ;;  %v22449_v39 = vld [vmem:[#allocation2 + $0x90] ss:$0 sps:$4 sm:$0x11]   ;;  %v22463_v5 = vld [vmem:[%s25959_s3 + $0xd8] sm:$0xff]  }
 0x27d   : > { %v7135_v23 = vor.u32 %v7133_v22, %v7131_v25  ;;  %v7155_v33 = vrot.slane %v7153_v57, 1  ;;  %v22452_v63 = vld [vmem:[#allocation2 + $0x10] sm:$0xff]   ;;  %v22466_v60 = vld [vmem:[%s25959_s3 + $0xe0] sm:$0xff]   ;;  %v7704_v10 = vrot.slane %v22474_v34, 1 }
 0x27e   : > { %v7108_v44 = vsel %vm1021_vm2, %v7103_v62, %v7107_v43  ;;  %v7123_v24 = vrot.slane %v7121_v26, 1  ;;  %v22455_v43 = vld [vmem:[#allocation2 + $0x20] sm:$0xff]   ;;  %v22456_v62 = vld [vmem:[#allocation2 + $0x28] sm:$0xff]   ;;  %v22464_v22 = vld [vmem:[#allocation2 + $0x50] sm:$0xff]  }
 0x27f   : > { %v7680_v18 = vrot.slane %v22456_v62, 1 }
 0x283   : > { %20387 = vmatmul.mubr.bf16.vlgmr.msra.gmra.mrb[36].mxu1 %v7044_v2  ;;  %v7119_v2 = vor.u32 %v7117_v40, %v7115_v41  ;;  %v7678_v41 = vrot.slane %v22455_v43, 1 }
 0x284   : > { %20390 = vmatprep.mubr.bf16.mxu1 %v7052_v17  ;;  %20423 = vmatpush3.bf16.msra.mxu1 %v24630_v9  ;;  %v22436_v9 = vld [vmem:[%s25959_s3 + $0x98] sm:$0xff]  }
 0x285   : > { %20424 = vmatprep.subr.bf16.mxu1 %v22430_v11  ;;  %v22444_v17 = vld [vmem:[#allocation2 + $0x78] sm:$0xff]   ;;  %v7124_v53 = vsel %vm1021_vm2, %v7119_v2, %v7123_v24 }
 0x286   : > { %v7145_v38 = vshll.u32 %v22444_v17, 16  ;;  %v7149_v16 = vshrl.u32 %v22444_v17, 16  ;;  %v22461_v17 = vld [vmem:[#allocation2 + $0x40] sm:$0xff]  }
 0x288   : > { %20425 = vmatpush3.bf16.msra.mxu1 %v22430_v11  ;;  %v22443_v11 = vld [vmem:[#allocation2 + $0x70] sm:$0xff]  }
 0x289   : > { %20426 = vmatprep.subr.bf16.mxu1 %v22433_v52  ;;  %v7137_v14 = vshll.u32 %v22443_v11, 16 }
 0x28b   : > { %20391 = vmatmul.mubr.bf16.gmra.mrb[40].mxu1 %v7060_v7  ;;  %v7139_v31 = vrot.slane %v7137_v14, 1  ;;  %v7141_v7 = vshrl.u32 %v22443_v11, 16  ;;  %v22469_v11 = vld [vmem:[%s25959_s3 + $0xe8] sm:$0xff]   ;;  %v7686_v14 = vrot.slane %v22461_v17, 1 }
 0x28c   : > { %20394 = vmatprep.mubr.bf16.mxu1 %v7068_v28  ;;  %20427 = vmatpush3.bf16.msra.mxu1 %v22433_v52  ;;  %v7127_v52 = vor.u32 %v7125_v15, %v7123_v24  ;;  %v7147_v28 = vrot.slane %v7145_v38, 1 }
 0x28d   : > { %20428 = vmatprep.subr.bf16.mxu1 %v22436_v9  ;;  %v7143_v54 = vor.u32 %v7141_v7, %v7139_v31  ;;  %v7692_v7 = vrot.slane %v22465_v49, 1 }
 0x28e   : > { %v7132_v27 = vsel %vm1021_vm2, %v7127_v52, %v7131_v25  ;;  %v7151_v58 = vor.u32 %v7149_v16, %v7147_v28  ;;  %v22462_v25 = vld [vmem:[#allocation2 + $0x48] sm:$0xff]   ;;  %v22472_v52 = vld [vmem:[%s25959_s3 + $0xf0] sm:$0xff]  }
 0x28f   : > { %v7148_v42 = vsel %vm1021_vm2, %v7143_v54, %v7147_v28  ;;  %v22467_v28 = vld [vmem:[#allocation2 + $0x60] sm:$0xff]   ;;  %v22470_v16 = vld [vmem:[#allocation2 + $0x70] sm:$0xff]  }
 0x290   : > { %20429 = vmatpush3.bf16.msra.mxu1 %v22436_v9  ;;  %v22447_v9 = vld [vmem:[#allocation2 + $0x88] sm:$0xff]  }
 0x291   : > { %20430 = vmatprep.subr.bf16.mxu1 %v22439_v48  ;;  %v7161_v8 = vshll.u32 %v22447_v9, 16  ;;  %v7165_v56 = vshrl.u32 %v22447_v9, 16  ;;  %v7690_v9 = vrot.slane %v22464_v22, 1 }
 0x293   : > { %20395 = vmatmul.mubr.bf16.gmra.mrb[44].mxu1 %v7076_v3  ;;  %v7163_v32 = vrot.slane %v7161_v8, 1  ;;  %v7169_v3 = vshll.u32 %v22449_v39, 16  ;;  %v7693_v57 = vsel %vm1668_vm3, %v7690_v9, %v7692_v7  ;;  %v7694_v8 = vrot.slane %v22467_v28, 1  ;;  %v24922_v28 = vld [vmem:[%s25959_s3 + $0x140] sm:$0xff]  }
 0x294   : > { %20398 = vmatprep.mubr.bf16.mxu1 %v7084_v59  ;;  %20431 = vmatpush3.bf16.msra.mxu1 %v22439_v48  ;;  %v7140_v48 = vsel %vm1021_vm2, %v7135_v23, %v7139_v31  ;;  %v7156_v59 = vsel %vm1021_vm2, %v7151_v58, %v7155_v33  ;;  %v22480_v23 = vld [vmem:[%s25959_s3 + $0x100] sm:$0xff]   ;;  %v22471_v58 = vld [vmem:[#allocation2 + $0x78] sm:$0xff]  }
 0x295   : > { %20432 = vmatprep.subr.bf16.mxu1 %v22442_v4  ;;  %v7167_v20 = vor.u32 %v7165_v56, %v7163_v32  ;;  %v7695_v39 = vsel %vm1668_vm3, %v7692_v7, %v7694_v8  ;;  %v22492_v7 = vld [vmem:[#allocation2 + $0x60] sm:$0xff]  }
 0x298   : > { %20433 = vmatpush3.bf16.msra.mxu1 %v22442_v4  ;;  %v7159_v4 = vor.u32 %v7157_v29, %v7155_v33  ;;  %v7698_v29 = vrot.slane %v22470_v16, 1 }
 0x299   : > { %20434 = vmatprep.subr.bf16.mxu1 %v22445_v37 }
 0x29a   : > { %v7164_v35 = vsel %vm1021_vm2, %v7159_v4, %v7163_v32  ;;  %v7700_v32 = vrot.slane %v22471_v58, 1 }
 0x29b   : > { %20399 = vmatmul.mubr.bf16.gmra.mrb[48].mxu1 %v7092_v12  ;;  %v7674_v12 = vrot.slane %v22452_v63, 1 }
 0x29c   : > { %20402 = vmatprep.mubr.bf16.mxu1 %v7100_v61  ;;  %20435 = vmatpush3.bf16.msra.mxu1 %v22445_v37  ;;  %v7171_v37 = vrot.slane %v7169_v3, 1  ;;  %v7676_v61 = vrot.slane %v22454_v36, 1  ;;  %v22473_v3 = vld [vmem:[#allocation2 + $0x80] sm:$0xff]  }
 0x29d   : > { %20436 = vmatprep.subr.bf16.mxu1 %v22448_v19  ;;  %v7675_v50 = vsel %vm1668_vm3, %v7672_v55, %v7674_v12 }
 0x29e   : > { %v7172_v46 = vsel %vm1021_vm2, %v7167_v20, %v7171_v37  ;;  %v7677_v13 = vsel %vm1668_vm3, %v7674_v12, %v7676_v61  ;;  %v7679_v26 = vsel %vm1668_vm3, %v7676_v61, %v7678_v41  ;;  %v22476_v37 = vld [vmem:[#allocation2 + $0x90] ss:$0 sps:$4 sm:$0x11]   ;;  %v22479_v12 = vld [vmem:[#allocation2 + $0x18] sm:$0xff]  }
 0x29f   : > { %v7706_v63 = vrot.slane %v22476_v37, 1  ;;  %v22505_v37 = vld [vmem:[#allocation2 + $0x10] sm:$0xff]  }
 0x2a0   : > { %20437 = vmatpush3.bf16.msra.mxu1 %v22448_v19  ;;  %v7673_v19 = vsel %vm1668_vm3, %v7671_v1, %v7672_v55  ;;  %v22478_v1 = vld [vmem:[#allocation2 + $0x10] sm:$0xff]   ;;  %v22477_v55 = vld [vmem:[#allocation2 + $0x8] sm:$0xfe]  }
 0x2a1   : > { %20474 = vmatprep.subr.bf16.mxu1 %v24834_v45  ;;  %v8206_v36 = vrot.slane %v22477_v55, 1 }
 0x2a3   : > { %20403 = vmatmul.mubr.bf16.gmra.mrb[52].mxu1 %v7108_v44  ;;  %v22458_v44 = vld [vmem:[#allocation2 + $0x30] sm:$0xff]  }
 0x2a4   : > { %20406 = vmatprep.mubr.bf16.mxu1 %v7116_v6  ;;  %v7681_v6 = vsel %vm1668_vm3, %v7678_v41, %v7680_v18  ;;  %v7682_v40 = vrot.slane %v22458_v44, 1 }
 0x2a6   : > { %v7683_v2 = vsel %vm1668_vm3, %v7680_v18, %v7682_v40  ;;  %v22483_v18 = vld [vmem:[#allocation2 + $0x30] sm:$0xff]  }
 0x2a7   : > { %v8215_v44 = vrot.slane %v22483_v18, 1 }
 0x2ab   : > { %20407 = vmatmul.mubr.bf16.gmra.mrb[56].mxu1 %v7124_v53  ;;  %v7688_v53 = vrot.slane %v22462_v25, 1 }
 0x2ac   : > { %20410 = vmatprep.mubr.bf16.mxu1 %v7132_v27  ;;  %v22475_v27 = vld [vmem:[%s25959_s3 + $0xf8] sm:$0xff]  }
 0x2ad   : > { %v7689_v31 = vsel %vm1668_vm3, %v7686_v14, %v7688_v53  ;;  %v7691_v54 = vsel %vm1668_vm3, %v7688_v53, %v7690_v9  ;;  %v22489_v53 = vld [vmem:[#allocation2 + $0x50] sm:$0xff]  }
 0x2ae   : > { %v8223_v22 = vrot.slane %v22489_v53, 1 }
 0x2b3   : > { %20411 = vmatmul.mubr.bf16.gmra.mrb[60].mxu1 %v7140_v48  ;;  %v22468_v48 = vld [vmem:[#allocation2 + $0x68] sm:$0xff]  }
 0x2b4   : > { %20414 = vmatprep.mubr.bf16.mxu1 %v7148_v42  ;;  %v7696_v42 = vrot.slane %v22468_v48, 1 }
 0x2b6   : > { %v7697_v33 = vsel %vm1668_vm3, %v7694_v8, %v7696_v42  ;;  %v7699_v4 = vsel %vm1668_vm3, %v7696_v42, %v7698_v29  ;;  %v22494_v8 = vld [vmem:[#allocation2 + $0x68] sm:$0xff]  }
 0x2b7   : > { %v8229_v16 = vrot.slane %v22494_v8, 1 }
 0x2bb   : > { %20415 = vmatmul.mubr.bf16.gmra.mrb[64].mxu1 %v7156_v59  ;;  %v7701_v59 = vsel %vm1668_vm3, %v7698_v29, %v7700_v32  ;;  %v22497_v29 = vld [vmem:[#allocation2 + $0x78] sm:$0xff]  }
 0x2bc   : > { %20418 = vmatprep.mubr.bf16.mxu1 %v7164_v35  ;;  %v7702_v35 = vrot.slane %v22473_v3, 1  ;;  %v8233_v3 = vrot.slane %v22497_v29, 1 }
 0x2be   : > { %v7703_v56 = vsel %vm1668_vm3, %v7700_v32, %v7702_v35  ;;  %v7705_v20 = vsel %vm1668_vm3, %v7702_v35, %v7704_v10  ;;  %v22500_v35 = vld [vmem:[#allocation2 + $0x88] sm:$0xff]  }
 0x2c3   : > { %20419 = vmatmul.mubr.bf16.gmra.mrb[68].mxu1 %v7172_v46  ;;  %v8207_v46 = vrot.slane %v22478_v1, 1  ;;  %v8237_v1 = vrot.slane %v22500_v35, 1  ;;  %v22515_v35 = vld [vmem:[#allocation2 + $0x48] sm:$0xff]  }
 0x2c4   : > { %20438 = vmatprep.mubr.bf16.mxu1 %v7673_v19  ;;  %v7707_v19 = vsel %vm1668_vm3, %v7704_v10, %v7706_v63  ;;  %v8750_v63 = vshrl.u32 %v22505_v37, 16 }
 0x2c5   : > { %v8208_v61 = vsel %vm1668_vm3, %v8206_v36, %v8207_v46 }
 0x2cb   : > { %20439 = vmatmul.mubr.bf16.vlgmr.msra.gmra.mrb[36].mxu1 %v7675_v50  ;;  %v8209_v50 = vrot.slane %v22479_v12, 1 }
 0x2cc   : > { %20442 = vmatprep.mubr.bf16.mxu1 %v7677_v13  ;;  %20475 = vmatpush3.bf16.msra.mxu1 %v24834_v45  ;;  %v22459_v45 = vld [vmem:[#allocation2 + $0x38] sm:$0xff]   ;;  %v22484_v13 = vld [vmem:[%s25959_s3 + $0x108] sm:$0xff]  }
 0x2cd   : > { %20476 = vmatprep.subr.bf16.mxu1 %v22457_v21  ;;  %v7684_v24 = vrot.slane %v22459_v45, 1  ;;  %v8210_v62 = vsel %vm1668_vm3, %v8207_v46, %v8209_v50  ;;  %v8753_v46 = vshll.u32 %v22505_v37, 16 }
 0x2cf   : > { %v7685_v15 = vsel %vm1668_vm3, %v7682_v40, %v7684_v24  ;;  %v7687_v38 = vsel %vm1668_vm3, %v7684_v24, %v7686_v14  ;;  %v22486_v24 = vld [vmem:[#allocation2 + $0x40] sm:$0xff]  }
 0x2d0   : > { %20477 = vmatpush3.bf16.msra.mxu1 %v22457_v21  ;;  %v22481_v21 = vld [vmem:[#allocation2 + $0x20] sm:$0xff]   ;;  %v8219_v17 = vrot.slane %v22486_v24, 1 }
 0x2d1   : > { %20478 = vmatprep.subr.bf16.mxu1 %v22460_v51  ;;  %v8211_v43 = vrot.slane %v22481_v21, 1  ;;  %v22506_v21 = vld [vmem:[#allocation2 + $0x18] sm:$0xff]  }
 0x2d3   : > { %20443 = vmatmul.mubr.bf16.gmra.mrb[40].mxu1 %v7679_v26  ;;  %v8212_v41 = vsel %vm1668_vm3, %v8209_v50, %v8211_v43 }
 0x2d4   : > { %20446 = vmatprep.mubr.bf16.mxu1 %v7681_v6  ;;  %20479 = vmatpush3.bf16.msra.mxu1 %v22460_v51  ;;  %v22482_v51 = vld [vmem:[#allocation2 + $0x28] sm:$0xff]   ;;  %v22490_v6 = vld [vmem:[%s25959_s3 + $0x118] sm:$0xff]  }
 0x2d5   : > { %20480 = vmatprep.subr.bf16.mxu1 %v22463_v5  ;;  %v8213_v26 = vrot.slane %v22482_v51, 1 }
 0x2d7   : > { %v8214_v45 = vsel %vm1668_vm3, %v8211_v43, %v8213_v26  ;;  %v8216_v40 = vsel %vm1668_vm3, %v8213_v26, %v8215_v44  ;;  %v8752_v43 = vrot.slane %v8750_v63, 1  ;;  %v8762_v26 = vshll.u32 %v22506_v21, 16 }
 0x2d8   : > { %20481 = vmatpush3.bf16.msra.mxu1 %v22463_v5  ;;  %v22487_v5 = vld [vmem:[%s25959_s3 + $0x110] sm:$0xff]   ;;  %v8813_v63 = vshrl.u32 %v22515_v35, 16 }
 0x2d9   : > { %20482 = vmatprep.subr.bf16.mxu1 %v22466_v60 }
 0x2db   : > { %20447 = vmatmul.mubr.bf16.gmra.mrb[44].mxu1 %v7683_v2 }
 0x2dc   : > { %20450 = vmatprep.mubr.bf16.mxu1 %v7685_v15  ;;  %20483 = vmatpush3.bf16.msra.mxu1 %v22466_v60  ;;  %v22485_v60 = vld [vmem:[#allocation2 + $0x38] sm:$0xff]   ;;  %v22496_v15 = vld [vmem:[%s25959_s3 + $0x128] sm:$0xff]  }
 0x2dd   : > { %20484 = vmatprep.subr.bf16.mxu1 %v22469_v11  ;;  %v8217_v2 = vrot.slane %v22485_v60, 1 }
 0x2df   : > { %v8218_v25 = vsel %vm1668_vm3, %v8215_v44, %v8217_v2  ;;  %v8220_v14 = vsel %vm1668_vm3, %v8217_v2, %v8219_v17  ;;  %v22509_v2 = vld [vmem:[#allocation2 + $0x28] sm:$0xff]  }
 0x2e0   : > { %20485 = vmatpush3.bf16.msra.mxu1 %v22469_v11  ;;  %v22493_v11 = vld [vmem:[%s25959_s3 + $0x120] sm:$0xff]   ;;  %v8777_v53 = vshrl.u32 %v22509_v2, 16 }
 0x2e1   : > { %20486 = vmatprep.subr.bf16.mxu1 %v22472_v52 }
 0x2e3   : > { %20451 = vmatmul.mubr.bf16.gmra.mrb[48].mxu1 %v7687_v38 }
 0x2e4   : > { %20454 = vmatprep.mubr.bf16.mxu1 %v7689_v31  ;;  %20487 = vmatpush3.bf16.msra.mxu1 %v22472_v52  ;;  %v22488_v52 = vld [vmem:[#allocation2 + $0x48] sm:$0xff]   ;;  %v22502_v31 = vld [vmem:[%s25959_s3 + $0x138] sm:$0xff]  }
 0x2e5   : > { %20488 = vmatprep.subr.bf16.mxu1 %v22475_v27  ;;  %v8221_v38 = vrot.slane %v22488_v52, 1  ;;  %v22510_v52 = vld [vmem:[#allocation2 + $0x30] sm:$0xff]  }
 0x2e7   : > { %v8222_v49 = vsel %vm1668_vm3, %v8219_v17, %v8221_v38  ;;  %v8224_v9 = vsel %vm1668_vm3, %v8221_v38, %v8223_v22 }
 0x2e8   : > { %20489 = vmatpush3.bf16.msra.mxu1 %v22475_v27  ;;  %v22499_v27 = vld [vmem:[%s25959_s3 + $0x130] sm:$0xff]  }
 0x2e9   : > { %20526 = vmatprep.subr.bf16.mxu1 %v22480_v23 }
 0x2eb   : > { %20455 = vmatmul.mubr.bf16.gmra.mrb[52].mxu1 %v7691_v54 }
 0x2ec   : > { %20458 = vmatprep.mubr.bf16.mxu1 %v7693_v57  ;;  %v8227_v57 = vrot.slane %v22492_v7, 1 }
 0x2ee   : > { %v8230_v58 = vsel %vm1668_vm3, %v8227_v57, %v8229_v16 }
 0x2f3   : > { %20459 = vmatmul.mubr.bf16.gmra.mrb[56].mxu1 %v7695_v39  ;;  %v22495_v39 = vld [vmem:[#allocation2 + $0x70] sm:$0xff]  }
 0x2f4   : > { %20462 = vmatprep.mubr.bf16.mxu1 %v7697_v33  ;;  %v8231_v33 = vrot.slane %v22495_v39, 1  ;;  %v22514_v39 = vld [vmem:[%s25959_s3 + $0x150] sm:$0xff]  }
 0x2f6   : > { %v8232_v32 = vsel %vm1668_vm3, %v8229_v16, %v8231_v33  ;;  %v8234_v34 = vsel %vm1668_vm3, %v8231_v33, %v8233_v3 }
 0x2fb   : > { %20463 = vmatmul.mubr.bf16.gmra.mrb[60].mxu1 %v7699_v4  ;;  %v22498_v4 = vld [vmem:[#allocation2 + $0x80] sm:$0xff]  }
 0x2fc   : > { %20466 = vmatprep.mubr.bf16.mxu1 %v7701_v59  ;;  %v8235_v59 = vrot.slane %v22498_v4, 1 }
 0x2fe   : > { %v8236_v10 = vsel %vm1668_vm3, %v8233_v3, %v8235_v59  ;;  %v8238_v12 = vsel %vm1668_vm3, %v8235_v59, %v8237_v1  ;;  %v22517_v3 = vld [vmem:[%s25959_s3 + $0x158] sm:$0xff]  }
 0x303   : > { %20467 = vmatmul.mubr.bf16.gmra.mrb[64].mxu1 %v7703_v56  ;;  %v22501_v56 = vld [vmem:[#allocation2 + $0x90] sm:$0xff]  }
 0x304   : > { %20470 = vmatprep.mubr.bf16.mxu1 %v7705_v20  ;;  %v22504_v20 = vld [vmem:[#allocation2 + $0x8] sm:$0xfe]   ;;  %v8239_v55 = vrot.slane %v22501_v56, 1 }
 0x305   : > { %v8742_v36 = vshrl.u32 %v22504_v20, 16 }
 0x306   : > { %v8240_v50 = vsel %vm1668_vm3, %v8237_v1, %v8239_v55  ;;  %v22520_v1 = vld [vmem:[%s25959_s3 + $0x160] sm:$0xff]  }
 0x307   : > { %v8744_v51 = vrot.slane %v8742_v36, 1 }
 0x30b   : > { %20471 = vmatmul.mubr.bf16.gmra.mrb[68].mxu1 %v7707_v19  ;;  %v8745_v19 = vshll.u32 %v22504_v20, 16  ;;  %v22516_v20 = vld [vmem:[#allocation2 + $0x50] sm:$0xff]  }
 0x30c   : > { %20490 = vmatprep.mubr.bf16.mxu1 %v8208_v61  ;;  %v22503_v61 = vld [vmem:[#allocation2 + $0x98] ss:$0 sps:$4 sm:$0x11]  }
 0x30d   : > { %v8241_v18 = vrot.slane %v22503_v61, 1  ;;  %v22523_v61 = vld [vmem:[%s25959_s3 + $0x168] sm:$0xff]  }
 0x313   : > { %20491 = vmatmul.mubr.bf16.vlgmr.msra.gmra.mrb[36].mxu1 %v8210_v62  ;;  %v22508_v62 = vld [vmem:[#allocation2 + $0x20] sm:$0xff]  }
 0x314   : > { %20494 = vmatprep.mubr.bf16.mxu1 %v8212_v41  ;;  %20527 = vmatpush3.bf16.msra.mxu1 %v22480_v23  ;;  %v22491_v23 = vld [vmem:[#allocation2 + $0x58] sm:$0xff]   ;;  %v8747_v41 = vrot.slane %v8745_v19, 2  ;;  %v8822_v19 = vshrl.u32 %v22516_v20, 16 }
 0x315   : > { %20528 = vmatprep.subr.bf16.mxu1 %v22484_v13  ;;  %v8225_v54 = vrot.slane %v22491_v23, 1 }
 0x316   : > { %v8748_v60 = vor.u32 %v8747_v41, %v8744_v51  ;;  %v8824_v51 = vrot.slane %v8822_v19, 1 }
 0x317   : > { %v8226_v48 = vsel %vm1668_vm3, %v8223_v22, %v8225_v54  ;;  %v8228_v42 = vsel %vm1668_vm3, %v8225_v54, %v8227_v57  ;;  %v8786_v22 = vshrl.u32 %v22510_v52, 16  ;;  %v22512_v54 = vld [vmem:[#allocation2 + $0x38] sm:$0xff]  }
 0x318   : > { %20529 = vmatpush3.bf16.msra.mxu1 %v22484_v13  ;;  %v8755_v13 = vrot.slane %v8753_v46, 2  ;;  %v8795_v33 = vshrl.u32 %v22512_v54, 16  ;;  %v8816_v46 = vshll.u32 %v22515_v35, 16  ;;  %v22527_v35 = vld [vmem:[#allocation2 + $0x88] sm:$0xff]  }
 0x319   : > { %20530 = vmatprep.subr.bf16.mxu1 %v22487_v5 }
 0x31a   : > { %v8756_v44 = vor.u32 %v8755_v13, %v8752_v43  ;;  %v8818_v43 = vrot.slane %v8816_v46, 2  ;;  %v22518_v13 = vld [vmem:[#allocation2 + $0x58] sm:$0xff]  }
 0x31b   : > { %20495 = vmatmul.mubr.bf16.gmra.mrb[40].mxu1 %v8214_v45  ;;  %v8771_v45 = vshll.u32 %v22508_v62, 16 }
 0x31c   : > { %20498 = vmatprep.mubr.bf16.mxu1 %v8216_v40  ;;  %20531 = vmatpush3.bf16.msra.mxu1 %v22487_v5  ;;  %v8759_v5 = vshrl.u32 %v22506_v21, 16  ;;  %v8242_v40 = vsel %vm1668_vm3, %v8239_v55, %v8241_v18  ;;  %v8757_v17 = vsel %vm2739_vm0, %v8748_v60, %v8756_v44  ;;  %v22519_v18 = vld [vmem:[#allocation2 + $0x60] sm:$0xff]  }
 0x31d   : > { %20532 = vmatprep.subr.bf16.mxu1 %v22490_v6  ;;  %v8840_v60 = vshrl.u32 %v22519_v18, 16 }
 0x31e   : > { %v8761_v24 = vrot.slane %v8759_v5, 1  ;;  %v22526_v5 = vld [vmem:[%s25959_s3 + $0x170] sm:$0xff]  }
 0x320   : > { %20533 = vmatpush3.bf16.msra.mxu1 %v22490_v6  ;;  %v8768_v6 = vshrl.u32 %v22508_v62, 16 }
 0x321   : > { %20534 = vmatprep.subr.bf16.mxu1 %v22493_v11 }
 0x323   : > { %20499 = vmatmul.mubr.bf16.gmra.mrb[44].mxu1 %v8218_v25  ;;  %v8773_v25 = vrot.slane %v8771_v45, 2 }
 0x324   : > { %20502 = vmatprep.mubr.bf16.mxu1 %v8220_v14  ;;  %20535 = vmatpush3.bf16.msra.mxu1 %v22493_v11  ;;  %v8764_v11 = vrot.slane %v8762_v26, 2 }
 0x325   : > { %20536 = vmatprep.subr.bf16.mxu1 %v22496_v15 }
 0x326   : > { %v8765_v14 = vor.u32 %v8764_v11, %v8761_v24  ;;  %v22529_v24 = vld [vmem:[%s25959_s3 + $0x178] sm:$0xff]  }
 0x328   : > { %20537 = vmatpush3.bf16.msra.mxu1 %v22496_v15  ;;  %v8770_v15 = vrot.slane %v8768_v6, 1  ;;  %v8766_v23 = vsel %vm2739_vm0, %v8756_v44, %v8765_v14  ;;  %v8831_v44 = vshrl.u32 %v22518_v13, 16  ;;  %v8834_v6 = vshll.u32 %v22518_v13, 16 }
 0x329   : > { %20538 = vmatprep.subr.bf16.mxu1 %v22499_v27 }
 0x32a   : > { %v8774_v38 = vor.u32 %v8773_v25, %v8770_v15  ;;  %v22521_v15 = vld [vmem:[#allocation2 + $0x68] sm:$0xff]  }
 0x32b   : > { %20503 = vmatmul.mubr.bf16.gmra.mrb[48].mxu1 %v8222_v49  ;;  %v22511_v49 = vld [vmem:[%s25959_s3 + $0x148] sm:$0xff]  }
 0x32c   : > { %20506 = vmatprep.mubr.bf16.mxu1 %v8224_v9  ;;  %20539 = vmatpush3.bf16.msra.mxu1 %v22499_v27  ;;  %v8780_v27 = vshll.u32 %v22509_v2, 16  ;;  %v8779_v9 = vrot.slane %v8777_v53, 1  ;;  %v8775_v57 = vsel %vm2739_vm0, %v8765_v14, %v8774_v38  ;;  %v8833_v2 = vrot.slane %v8831_v44, 1  ;;  %v22522_v53 = vld [vmem:[#allocation2 + $0x70] sm:$0xff]  }
 0x32d   : > { %20540 = vmatprep.subr.bf16.mxu1 %v22502_v31 }
 0x32e   : > { %v8782_v7 = vrot.slane %v8780_v27, 2  ;;  %v24968_v27 = vld [vmem:[%s25959_s3 + $0x180] sm:$0xff]  }
 0x330   : > { %20541 = vmatpush3.bf16.msra.mxu1 %v22502_v31  ;;  %v8789_v31 = vshll.u32 %v22510_v52, 16  ;;  %v8783_v16 = vor.u32 %v8782_v7, %v8779_v9  ;;  %v8842_v52 = vrot.slane %v8840_v60, 1  ;;  %v8861_v9 = vshll.u32 %v22522_v53, 16  ;;  %v22532_v60 = vld [vmem:[#allocation2 + $0x10] sm:$0xff]  }
 0x331   : > { %20578 = vmatprep.subr.bf16.mxu1 %v24922_v28 }
 0x332   : > { %v8791_v8 = vrot.slane %v8789_v31, 2  ;;  %v8784_v59 = vsel %vm2739_vm0, %v8774_v38, %v8783_v16  ;;  %v8852_v31 = vshll.u32 %v22521_v15, 16 }
 0x333   : > { %20507 = vmatmul.mubr.bf16.gmra.mrb[52].mxu1 %v8226_v48  ;;  %v8788_v48 = vrot.slane %v8786_v22, 1  ;;  %v8849_v22 = vshrl.u32 %v22521_v15, 16  ;;  %v22533_v15 = vld [vmem:[#allocation2 + $0x18] sm:$0xff]  }
 0x334   : > { %20510 = vmatprep.mubr.bf16.mxu1 %v8228_v42  ;;  %v22513_v42 = vld [vmem:[#allocation2 + $0x40] sm:$0xff]  }
 0x335   : > { %v8792_v29 = vor.u32 %v8791_v8, %v8788_v48  ;;  %v8807_v4 = vshll.u32 %v22513_v42, 16  ;;  %v22524_v48 = vld [vmem:[#allocation2 + $0x78] sm:$0xff]  }
 0x337   : > { %v8809_v37 = vrot.slane %v8807_v4, 2 }
 0x33b   : > { %20511 = vmatmul.mubr.bf16.gmra.mrb[56].mxu1 %v8230_v58  ;;  %v8798_v58 = vshll.u32 %v22512_v54, 16  ;;  %v8851_v54 = vrot.slane %v8849_v22, 1 }
 0x33c   : > { %20514 = vmatprep.mubr.bf16.mxu1 %v8232_v32  ;;  %v8804_v32 = vshrl.u32 %v22513_v42, 16 }
 0x33e   : > { %v8806_v56 = vrot.slane %v8804_v32, 1 }
 0x340   : > { %v8810_v36 = vor.u32 %v8809_v37, %v8806_v56 }
 0x343   : > { %20515 = vmatmul.mubr.bf16.gmra.mrb[60].mxu1 %v8234_v34  ;;  %v8800_v34 = vrot.slane %v8798_v58, 2  ;;  %v8867_v58 = vshrl.u32 %v22524_v48, 16 }
 0x344   : > { %20518 = vmatprep.mubr.bf16.mxu1 %v8236_v10  ;;  %v8793_v10 = vsel %vm2739_vm0, %v8783_v16, %v8792_v29  ;;  %v22525_v16 = vld [vmem:[#allocation2 + $0x80] sm:$0xff]  }
 0x345   : > { %v8876_v4 = vshrl.u32 %v22525_v16, 16 }
 0x347   : > { %v8878_v56 = vrot.slane %v8876_v4, 1 }
 0x34b   : > { %20519 = vmatmul.mubr.bf16.gmra.mrb[64].mxu1 %v8238_v12  ;;  %v8825_v12 = vshll.u32 %v22516_v20, 16  ;;  %v22528_v20 = vld [vmem:[#allocation2 + $0x90] sm:$0xff]  }
 0x34c   : > { %20522 = vmatprep.mubr.bf16.mxu1 %v8240_v50  ;;  %v8815_v50 = vrot.slane %v8813_v63, 1  ;;  %v8888_v63 = vshll.u32 %v22527_v35, 16  ;;  %v8897_v19 = vshll.u32 %v22528_v20, 16 }
 0x34d   : > { %v8827_v41 = vrot.slane %v8825_v12, 2 }
 0x34e   : > { %v8819_v26 = vor.u32 %v8818_v43, %v8815_v50  ;;  %v22530_v50 = vld [vmem:[#allocation2 + $0x98] ss:$0 sps:$4 sm:$0x33]  }
 0x34f   : > { %v8828_v45 = vor.u32 %v8827_v41, %v8824_v51  ;;  %v8903_v41 = vshrl.u32 %v22530_v50, 16 }
 0x350   : > { %v8820_v11 = vsel %vm2739_vm0, %v8810_v36, %v8819_v26 }
 0x351   : > { %v8829_v25 = vsel %vm2739_vm0, %v8819_v26, %v8828_v45  ;;  %v8905_v44 = vrot.slane %v8903_v41, 1 }
 0x353   : > { %20523 = vmatmul.mubr.bf16.gmra.mrb[68].mxu1 %v8242_v40  ;;  %v8843_v40 = vshll.u32 %v22519_v18, 16  ;;  %v8906_v18 = vshll.u32 %v22530_v50, 16 }
 0x354   : > { %20542 = vmatprep.mubr.bf16.mxu1 %v8757_v17  ;;  %v8836_v17 = vrot.slane %v8834_v6, 2 }
 0x355   : > { %v8845_v14 = vrot.slane %v8843_v40, 2  ;;  %v8908_v6 = vrot.slane %v8906_v18, 2  ;;  %v22531_v40 = vld [vmem:[#allocation2 + $0x8] sm:$0xfc]  }
 0x356   : > { %v8837_v38 = vor.u32 %v8836_v17, %v8833_v2  ;;  %v9409_v2 = vrot.slane %v22531_v40, 2  ;;  %v22557_v40 = vld [vmem:[#allocation2 + $0x98] ss:$0 sps:$4 sm:$0x33]  }
 0x358   : > { %v8838_v7 = vsel %vm2739_vm0, %v8828_v45, %v8837_v38 }
 0x35b   : > { %20543 = vmatmul.mubr.bf16.vlgmr.msra.gmra.mrb[36].mxu1 %v8766_v23  ;;  %v8858_v23 = vshrl.u32 %v22522_v53, 16 }
 0x35c   : > { %20546 = vmatprep.mubr.bf16.mxu1 %v8775_v57  ;;  %20579 = vmatpush3.bf16.msra.mxu1 %v24922_v28  ;;  %v8797_v28 = vrot.slane %v8795_v33, 1  ;;  %v8854_v57 = vrot.slane %v8852_v31, 2  ;;  %v22536_v31 = vld [vmem:[#allocation2 + $0x28] sm:$0xff]  }
 0x35d   : > { %20580 = vmatprep.subr.bf16.mxu1 %v22511_v49  ;;  %v8860_v42 = vrot.slane %v8858_v23, 1  ;;  %v22537_v23 = vld [vmem:[#allocation2 + $0x30] sm:$0xff]  }
 0x35e   : > { %v8801_v55 = vor.u32 %v8800_v34, %v8797_v28  ;;  %v8855_v33 = vor.u32 %v8854_v57, %v8851_v54  ;;  %v8869_v28 = vrot.slane %v8867_v58, 1  ;;  %v9418_v54 = vrot.slane %v22537_v23, 2  ;;  %v22544_v57 = vld [vmem:[%s25959_s3 + $0x198] sm:$0xff]   ;;  %v22550_v58 = vld [vmem:[%s25959_s3 + $0x1a8] sm:$0xff]  }
 0x360   : > { %20581 = vmatpush3.bf16.msra.mxu1 %v22511_v49  ;;  %v8802_v21 = vsel %vm2739_vm0, %v8792_v29, %v8801_v55  ;;  %v8811_v62 = vsel %vm2739_vm0, %v8801_v55, %v8810_v36  ;;  %v8846_v49 = vor.u32 %v8845_v14, %v8842_v52  ;;  %v8870_v29 = vshll.u32 %v22524_v48, 16  ;;  %v22535_v52 = vld [vmem:[#allocation2 + $0x20] sm:$0xff]  }
 0x361   : > { %20582 = vmatprep.subr.bf16.mxu1 %v22514_v39  ;;  %v8885_v55 = vshrl.u32 %v22527_v35, 16  ;;  %v8894_v36 = vshrl.u32 %v22528_v20, 16  ;;  %v9412_v14 = vrot.slane %v22533_v15, 2  ;;  %v9414_v53 = vrot.slane %v22535_v52, 2  ;;  %v22556_v35 = vld [vmem:[%s25959_s3 + $0x1b8] sm:$0xff]   ;;  %v22546_v20 = vld [vmem:[#allocation2 + $0x60] sm:$0xff]  }
 0x362   : > { %v8847_v8 = vsel %vm2739_vm0, %v8837_v38, %v8846_v49  ;;  %v8872_v34 = vrot.slane %v8870_v29, 2  ;;  %v22538_v38 = vld [vmem:[%s25959_s3 + $0x188] sm:$0xff]  }
 0x363   : > { %20547 = vmatmul.mubr.bf16.gmra.mrb[40].mxu1 %v8784_v59  ;;  %v8856_v59 = vsel %vm2739_vm0, %v8846_v49, %v8855_v33  ;;  %v8896_v13 = vrot.slane %v8894_v36, 1  ;;  %v9415_v49 = vsel %vm3408_vm1, %v9412_v14, %v9414_v53  ;;  %v22548_v36 = vld [vmem:[#allocation2 + $0x68] sm:$0xff]  }
 0x364   : > { %20550 = vmatprep.mubr.bf16.mxu1 %v8793_v10  ;;  %20583 = vmatpush3.bf16.msra.mxu1 %v22514_v39  ;;  %v8863_v39 = vrot.slane %v8861_v9, 2  ;;  %v22541_v9 = vld [vmem:[%s25959_s3 + $0x190] sm:$0xff]  }
 0x365   : > { %20584 = vmatprep.subr.bf16.mxu1 %v22517_v3 }
 0x366   : > { %v8864_v32 = vor.u32 %v8863_v39, %v8860_v42  ;;  %v22547_v39 = vld [vmem:[%s25959_s3 + $0x1a0] sm:$0xff]  }
 0x368   : > { %20585 = vmatpush3.bf16.msra.mxu1 %v22517_v3  ;;  %v8879_v3 = vshll.u32 %v22525_v16, 16  ;;  %v8865_v10 = vsel %vm2739_vm0, %v8855_v33, %v8864_v32 }
 0x369   : > { %20586 = vmatprep.subr.bf16.mxu1 %v22520_v1 }
 0x36a   : > { %v8881_v37 = vrot.slane %v8879_v3, 2  ;;  %v22543_v3 = vld [vmem:[#allocation2 + $0x50] sm:$0xff]  }
 0x36b   : > { %20551 = vmatmul.mubr.bf16.gmra.mrb[44].mxu1 %v8802_v21  ;;  %v8890_v21 = vrot.slane %v8888_v63, 2  ;;  %v9430_v63 = vrot.slane %v22546_v20, 2 }
 0x36c   : > { %20554 = vmatprep.mubr.bf16.mxu1 %v8811_v62  ;;  %20587 = vmatpush3.bf16.msra.mxu1 %v22520_v1  ;;  %v8873_v1 = vor.u32 %v8872_v34, %v8869_v28  ;;  %v8882_v46 = vor.u32 %v8881_v37, %v8878_v56  ;;  %v8899_v62 = vrot.slane %v8897_v19, 2  ;;  %v9426_v34 = vrot.slane %v22543_v3, 2  ;;  %v22545_v56 = vld [vmem:[#allocation2 + $0x58] sm:$0xff]  }
 0x36d   : > { %20588 = vmatprep.subr.bf16.mxu1 %v22523_v61 }
 0x36e   : > { %v8874_v12 = vsel %vm2739_vm0, %v8864_v32, %v8873_v1  ;;  %v8883_v43 = vsel %vm2739_vm0, %v8873_v1, %v8882_v46  ;;  %v22542_v32 = vld [vmem:[#allocation2 + $0x48] sm:$0xff]   ;;  %v22561_v1 = vld [vmem:[%s25959_s3 + $0x1c0] sm:$0xff]  }
 0x36f   : > { %v9424_v28 = vrot.slane %v22542_v32, 2 }
 0x370   : > { %20589 = vmatpush3.bf16.msra.mxu1 %v22523_v61  ;;  %v8887_v61 = vrot.slane %v8885_v55, 1  ;;  %v9428_v55 = vrot.slane %v22545_v56, 2 }
 0x371   : > { %20590 = vmatprep.subr.bf16.mxu1 %v22526_v5  ;;  %v9427_v37 = vsel %vm3408_vm1, %v9424_v28, %v9426_v34 }
 0x372   : > { %v8891_v51 = vor.u32 %v8890_v21, %v8887_v61  ;;  %v9431_v19 = vsel %vm3408_vm1, %v9428_v55, %v9430_v63  ;;  %v9432_v61 = vrot.slane %v22548_v36, 2 }
 0x373   : > { %20555 = vmatmul.mubr.bf16.gmra.mrb[48].mxu1 %v8820_v11  ;;  %v9410_v11 = vrot.slane %v22532_v60, 2 }
 0x374   : > { %20558 = vmatprep.mubr.bf16.mxu1 %v8829_v25  ;;  %20591 = vmatpush3.bf16.msra.mxu1 %v22526_v5  ;;  %v8900_v5 = vor.u32 %v8899_v62, %v8896_v13  ;;  %v8892_v26 = vsel %vm2739_vm0, %v8882_v46, %v8891_v51  ;;  %v9429_v46 = vsel %vm3408_vm1, %v9426_v34, %v9428_v55  ;;  %v22552_v62 = vld [vmem:[#allocation2 + $0x80] sm:$0xff]   ;;  %v22570_v34 = vld [vmem:[#allocation2 + $0x58] sm:$0xff]  }
 0x375   : > { %20592 = vmatprep.subr.bf16.mxu1 %v22529_v24  ;;  %v9411_v25 = vsel %vm3408_vm1, %v9409_v2, %v9410_v11  ;;  %v9413_v22 = vsel %vm3408_vm1, %v9410_v11, %v9412_v14  ;;  %v9433_v50 = vsel %vm3408_vm1, %v9430_v63, %v9432_v61  ;;  %v9438_v41 = vrot.slane %v22552_v62, 2  ;;  %v22559_v11 = vld [vmem:[#allocation2 + $0x18] sm:$0xff]   ;;  %v22558_v2 = vld [vmem:[#allocation2 + $0x10] sm:$0xfc]   ;;  %v22560_v14 = vld [vmem:[#allocation2 + $0x20] sm:$0xff]  }
 0x376   : > { %v8901_v45 = vsel %vm2739_vm0, %v8891_v51, %v8900_v5  ;;  %v9945_v15 = vrot.slane %v22559_v11, 2  ;;  %v9961_v56 = vrot.slane %v22570_v34, 2  ;;  %v22573_v63 = vld [vmem:[#allocation2 + $0x68] sm:$0xff]  }
 0x378   : > { %20593 = vmatpush3.bf16.msra.mxu1 %v22529_v24  ;;  %v8909_v24 = vor.u32 %v8908_v6, %v8905_v44  ;;  %v22555_v44 = vld [vmem:[#allocation2 + $0x90] sm:$0xff]  }
 0x379   : > { %20630 = vmatprep.subr.bf16.mxu1 %v24968_v27 }
 0x37a   : > { %v8910_v17 = vsel %vm2739_vm0, %v8900_v5, %v8909_v24  ;;  %v22554_v5 = vld [vmem:[#allocation2 + $0x88] sm:$0xff]  }
 0x37b   : > { %20559 = vmatmul.mubr.bf16.gmra.mrb[52].mxu1 %v8838_v7  ;;  %v9416_v7 = vrot.slane %v22536_v31, 2  ;;  %v9440_v6 = vrot.slane %v22554_v5, 2 }
 0x37c   : > { %20562 = vmatprep.mubr.bf16.mxu1 %v8847_v8  ;;  %v22539_v8 = vld [vmem:[#allocation2 + $0x38] sm:$0xff]  }
 0x37d   : > { %v9417_v48 = vsel %vm3408_vm1, %v9414_v53, %v9416_v7  ;;  %v9419_v42 = vsel %vm3408_vm1, %v9416_v7, %v9418_v54  ;;  %v9420_v16 = vrot.slane %v22539_v8, 2  ;;  %v9441_v60 = vsel %vm3408_vm1, %v9438_v41, %v9440_v6 }
 0x37f   : > { %v9421_v29 = vsel %vm3408_vm1, %v9418_v54, %v9420_v16  ;;  %v22564_v54 = vld [vmem:[#allocation2 + $0x38] sm:$0xff]  }
 0x380   : > { %v9953_v8 = vrot.slane %v22564_v54, 2 }
 0x383   : > { %20563 = vmatmul.mubr.bf16.gmra.mrb[56].mxu1 %v8856_v59  ;;  %v22553_v59 = vld [vmem:[%s25959_s3 + $0x1b0] sm:$0xff]  }
 0x384   : > { %20566 = vmatprep.mubr.bf16.mxu1 %v8865_v10 }
 0x38b   : > { %20567 = vmatmul.mubr.bf16.gmra.mrb[60].mxu1 %v8874_v12  ;;  %v22549_v12 = vld [vmem:[#allocation2 + $0x70] sm:$0xff]  }
 0x38c   : > { %20570 = vmatprep.mubr.bf16.mxu1 %v8883_v43  ;;  %v9434_v21 = vrot.slane %v22549_v12, 2  ;;  %v22551_v43 = vld [vmem:[#allocation2 + $0x78] sm:$0xff]  }
 0x38d   : > { %v9436_v51 = vrot.slane %v22551_v43, 2 }
 0x38e   : > { %v9435_v13 = vsel %vm3408_vm1, %v9432_v61, %v9434_v21  ;;  %v22575_v61 = vld [vmem:[#allocation2 + $0x70] sm:$0xff]  }
 0x38f   : > { %v9437_v18 = vsel %vm3408_vm1, %v9434_v21, %v9436_v51  ;;  %v9967_v43 = vrot.slane %v22575_v61, 2 }
 0x393   : > { %20571 = vmatmul.mubr.bf16.gmra.mrb[64].mxu1 %v8892_v26  ;;  %v9439_v26 = vsel %vm3408_vm1, %v9436_v51, %v9438_v41  ;;  %v22578_v51 = vld [vmem:[#allocation2 + $0x80] sm:$0xff]  }
 0x394   : > { %20574 = vmatprep.mubr.bf16.mxu1 %v8901_v45  ;;  %v9442_v45 = vrot.slane %v22555_v44, 2  ;;  %v9971_v5 = vrot.slane %v22578_v51, 2 }
 0x396   : > { %v9443_v24 = vsel %vm3408_vm1, %v9440_v6, %v9442_v45  ;;  %v22581_v6 = vld [vmem:[#allocation2 + $0x90] sm:$0xff]  }
 0x397   : > { %v9975_v11 = vrot.slane %v22581_v6, 2  ;;  %v22596_v6 = vld [vmem:[#allocation2 + $0x50] sm:$0xff]  }
 0x39b   : > { %20575 = vmatmul.mubr.bf16.gmra.mrb[68].mxu1 %v8910_v17  ;;  %v9444_v17 = vrot.slane %v22557_v40, 2  ;;  %v22586_v40 = vld [vmem:[#allocation2 + $0x18] sm:$0xff]  }
 0x39c   : > { %20594 = vmatprep.mubr.bf16.mxu1 %v9411_v25  ;;  %v9944_v25 = vrot.slane %v22558_v2, 2 }
 0x39d   : > { %v9445_v52 = vsel %vm3408_vm1, %v9442_v45, %v9444_v17  ;;  %v10488_v17 = vshrl.u32 %v22586_v40, 16 }
 0x39e   : > { %v9946_v53 = vsel %vm3408_vm1, %v9944_v25, %v9945_v15 }
 0x3a3   : > { %20595 = vmatmul.mubr.bf16.vlgmr.msra.gmra.mrb[36].mxu1 %v9413_v22  ;;  %v9947_v22 = vrot.slane %v22560_v14, 2 }
 0x3a4   : > { %20598 = vmatprep.mubr.bf16.mxu1 %v9415_v49  ;;  %20631 = vmatpush3.bf16.msra.mxu1 %v24968_v27  ;;  %v22540_v27 = vld [vmem:[#allocation2 + $0x40] sm:$0xff]   ;;  %v22565_v49 = vld [vmem:[%s25959_s3 + $0x1c8] sm:$0xff]  }
 0x3a5   : > { %20632 = vmatprep.subr.bf16.mxu1 %v22538_v38  ;;  %v9422_v33 = vrot.slane %v22540_v27, 2  ;;  %v9948_v23 = vsel %vm3408_vm1, %v9945_v15, %v9947_v22  ;;  %v10491_v15 = vshll.u32 %v22586_v40, 16 }
 0x3a7   : > { %v9423_v4 = vsel %vm3408_vm1, %v9420_v16, %v9422_v33  ;;  %v9425_v10 = vsel %vm3408_vm1, %v9422_v33, %v9424_v28  ;;  %v22567_v33 = vld [vmem:[#allocation2 + $0x48] sm:$0xff]  }
 0x3a8   : > { %20633 = vmatpush3.bf16.msra.mxu1 %v22538_v38  ;;  %v22562_v38 = vld [vmem:[#allocation2 + $0x28] sm:$0xff]   ;;  %v9957_v32 = vrot.slane %v22567_v33, 2 }
 0x3a9   : > { %20634 = vmatprep.subr.bf16.mxu1 %v22541_v9  ;;  %v9949_v31 = vrot.slane %v22562_v38, 2  ;;  %v22587_v38 = vld [vmem:[#allocation2 + $0x20] sm:$0xff]  }
 0x3ab   : > { %20599 = vmatmul.mubr.bf16.gmra.mrb[40].mxu1 %v9417_v48  ;;  %v9950_v7 = vsel %vm3408_vm1, %v9947_v22, %v9949_v31 }
 0x3ac   : > { %20602 = vmatprep.mubr.bf16.mxu1 %v9419_v42  ;;  %20635 = vmatpush3.bf16.msra.mxu1 %v22541_v9  ;;  %v22563_v9 = vld [vmem:[#allocation2 + $0x30] sm:$0xff]   ;;  %v22571_v42 = vld [vmem:[%s25959_s3 + $0x1d8] sm:$0xff]  }
 0x3ad   : > { %20636 = vmatprep.subr.bf16.mxu1 %v22544_v57  ;;  %v9951_v48 = vrot.slane %v22563_v9, 2 }
 0x3af   : > { %v9952_v27 = vsel %vm3408_vm1, %v9949_v31, %v9951_v48  ;;  %v9954_v16 = vsel %vm3408_vm1, %v9951_v48, %v9953_v8  ;;  %v10490_v31 = vrot.slane %v10488_v17, 2  ;;  %v10500_v48 = vshll.u32 %v22587_v38, 16  ;;  %v22601_v17 = vld [vmem:[%s25959_s3 + $0x220] sm:$0xff]  }
 0x3b0   : > { %20637 = vmatpush3.bf16.msra.mxu1 %v22544_v57  ;;  %v22568_v57 = vld [vmem:[%s25959_s3 + $0x1d0] sm:$0xff]  }
 0x3b1   : > { %20638 = vmatprep.subr.bf16.mxu1 %v22547_v39 }
 0x3b3   : > { %20603 = vmatmul.mubr.bf16.gmra.mrb[44].mxu1 %v9421_v29 }
 0x3b4   : > { %20606 = vmatprep.mubr.bf16.mxu1 %v9423_v4  ;;  %20639 = vmatpush3.bf16.msra.mxu1 %v22547_v39  ;;  %v22566_v39 = vld [vmem:[#allocation2 + $0x40] sm:$0xff]   ;;  %v22577_v4 = vld [vmem:[%s25959_s3 + $0x1e8] sm:$0xff]  }
 0x3b5   : > { %20640 = vmatprep.subr.bf16.mxu1 %v22550_v58  ;;  %v9955_v29 = vrot.slane %v22566_v39, 2 }
 0x3b7   : > { %v9956_v3 = vsel %vm3408_vm1, %v9953_v8, %v9955_v29  ;;  %v9958_v28 = vsel %vm3408_vm1, %v9955_v29, %v9957_v32  ;;  %v22590_v29 = vld [vmem:[#allocation2 + $0x30] sm:$0xff]  }
 0x3b8   : > { %20641 = vmatpush3.bf16.msra.mxu1 %v22550_v58  ;;  %v22574_v58 = vld [vmem:[%s25959_s3 + $0x1e0] sm:$0xff]   ;;  %v10515_v34 = vshrl.u32 %v22590_v29, 16 }
 0x3b9   : > { %20642 = vmatprep.subr.bf16.mxu1 %v22553_v59 }
 0x3bb   : > { %20607 = vmatmul.mubr.bf16.gmra.mrb[48].mxu1 %v9425_v10 }
 0x3bc   : > { %20610 = vmatprep.mubr.bf16.mxu1 %v9427_v37  ;;  %20643 = vmatpush3.bf16.msra.mxu1 %v22553_v59  ;;  %v22569_v59 = vld [vmem:[#allocation2 + $0x50] sm:$0xff]   ;;  %v22583_v37 = vld [vmem:[%s25959_s3 + $0x1f8] sm:$0xff]  }
 0x3bd   : > { %20644 = vmatprep.subr.bf16.mxu1 %v22556_v35  ;;  %v9959_v10 = vrot.slane %v22569_v59, 2  ;;  %v22591_v59 = vld [vmem:[#allocation2 + $0x38] sm:$0xff]  }
 0x3bf   : > { %v9960_v20 = vsel %vm3408_vm1, %v9957_v32, %v9959_v10  ;;  %v9962_v55 = vsel %vm3408_vm1, %v9959_v10, %v9961_v56 }
 0x3c0   : > { %20645 = vmatpush3.bf16.msra.mxu1 %v22556_v35  ;;  %v22580_v35 = vld [vmem:[%s25959_s3 + $0x1f0] sm:$0xff]  }
 0x3c1   : > { %20682 = vmatprep.subr.bf16.mxu1 %v22561_v1 }
 0x3c3   : > { %20611 = vmatmul.mubr.bf16.gmra.mrb[52].mxu1 %v9429_v46  ;;  %v25056_v46 = vld [vmem:[%s25959_s3 + $0x200] sm:$0xff]  }
 0x3c4   : > { %20614 = vmatprep.mubr.bf16.mxu1 %v9431_v19  ;;  %v9965_v19 = vrot.slane %v22573_v63, 2 }
 0x3c6   : > { %v9968_v62 = vsel %vm3408_vm1, %v9965_v19, %v9967_v43 }
 0x3cb   : > { %20615 = vmatmul.mubr.bf16.gmra.mrb[56].mxu1 %v9433_v50  ;;  %v22576_v50 = vld [vmem:[#allocation2 + $0x78] sm:$0xff]  }
 0x3cc   : > { %20618 = vmatprep.mubr.bf16.mxu1 %v9435_v13  ;;  %v9969_v13 = vrot.slane %v22576_v50, 2  ;;  %v22595_v50 = vld [vmem:[%s25959_s3 + $0x210] sm:$0xff]  }
 0x3ce   : > { %v9970_v41 = vsel %vm3408_vm1, %v9967_v43, %v9969_v13  ;;  %v9972_v44 = vsel %vm3408_vm1, %v9969_v13, %v9971_v5 }
 0x3d3   : > { %20619 = vmatmul.mubr.bf16.gmra.mrb[60].mxu1 %v9437_v18  ;;  %v22579_v18 = vld [vmem:[#allocation2 + $0x88] sm:$0xff]  }
 0x3d4   : > { %20622 = vmatprep.mubr.bf16.mxu1 %v9439_v26  ;;  %v9973_v26 = vrot.slane %v22579_v18, 2 }
 0x3d6   : > { %v9974_v45 = vsel %vm3408_vm1, %v9971_v5, %v9973_v26  ;;  %v9976_v14 = vsel %vm3408_vm1, %v9973_v26, %v9975_v11  ;;  %v22598_v5 = vld [vmem:[%s25959_s3 + $0x218] sm:$0xff]  }
 0x3db   : > { %20623 = vmatmul.mubr.bf16.gmra.mrb[64].mxu1 %v9441_v60  ;;  %v22582_v60 = vld [vmem:[#allocation2 + $0x98] sm:$0xff]  }
 0x3dc   : > { %20626 = vmatprep.mubr.bf16.mxu1 %v9443_v24  ;;  %v22585_v24 = vld [vmem:[#allocation2 + $0x10] sm:$0xfc]   ;;  %v9977_v2 = vrot.slane %v22582_v60, 2 }
 0x3dd   : > { %v10480_v25 = vshrl.u32 %v22585_v24, 16 }
 0x3de   : > { %v9978_v22 = vsel %vm3408_vm1, %v9975_v11, %v9977_v2  ;;  %v22631_v11 = vld [vmem:[%s25961_s5] sm:$0xff]  }
 0x3df   : > { %v10482_v9 = vrot.slane %v10480_v25, 2  ;;  %20786 = vmatprep.subr.bf16.mxu0 %v22631_v11  ;;  %v10551_v25 = vshrl.u32 %v22596_v6, 16 }
 0x3e0   : > { %20787 = vmatpush3.bf16.msra.mxu0 %v22631_v11 }
 0x3e3   : > { %20627 = vmatmul.mubr.bf16.gmra.mrb[68].mxu1 %v9445_v52  ;;  %v10483_v52 = vshll.u32 %v22585_v24, 16  ;;  %v22597_v24 = vld [vmem:[#allocation2 + $0x58] sm:$0xff]  }
 0x3e4   : > { %20646 = vmatprep.mubr.bf16.mxu1 %v9946_v53  ;;  %v22584_v53 = vld [vmem:[#allocation2 + $0xa0] ss:$0 sps:$4 sm:$0x33]  }
 0x3e5   : > { %v9979_v54 = vrot.slane %v22584_v53, 2  ;;  %v10560_v53 = vshrl.u32 %v22597_v24, 16 }
 0x3eb   : > { %20647 = vmatmul.mubr.bf16.vlgmr.msra.gmra.mrb[36].mxu1 %v9948_v23  ;;  %v22589_v23 = vld [vmem:[#allocation2 + $0x28] sm:$0xff]  }
 0x3ec   : > { %20650 = vmatprep.mubr.bf16.mxu1 %v9950_v7  ;;  %20683 = vmatpush3.bf16.msra.mxu1 %v22561_v1  ;;  %v22572_v1 = vld [vmem:[#allocation2 + $0x60] sm:$0xff]   ;;  %v10485_v7 = vrot.slane %v10483_v52, 3  ;;  %v10554_v52 = vshll.u32 %v22596_v6, 16 }
 0x3ed   : > { %20684 = vmatprep.subr.bf16.mxu1 %v22565_v49  ;;  %v9963_v36 = vrot.slane %v22572_v1, 2 }
 0x3ee   : > { %v10486_v39 = vor.u32 %v10485_v7, %v10482_v9  ;;  %v10556_v9 = vrot.slane %v10554_v52, 3  ;;  %v22599_v7 = vld [vmem:[#allocation2 + $0x60] sm:$0xff]  }
 0x3ef   : > { %v9964_v12 = vsel %vm3408_vm1, %v9961_v56, %v9963_v36  ;;  %v9966_v21 = vsel %vm3408_vm1, %v9963_v36, %v9965_v19  ;;  %v10524_v56 = vshrl.u32 %v22591_v59, 16  ;;  %v22593_v36 = vld [vmem:[#allocation2 + $0x40] sm:$0xff]  }
 0x3f0   : > { %20685 = vmatpush3.bf16.msra.mxu1 %v22565_v49  ;;  %v10493_v49 = vrot.slane %v10491_v15, 3  ;;  %v10533_v13 = vshrl.u32 %v22593_v36, 16 }
 0x3f1   : > { %20686 = vmatprep.subr.bf16.mxu1 %v22568_v57 }
 0x3f2   : > { %v10494_v8 = vor.u32 %v10493_v49, %v10490_v31  ;;  %v22604_v31 = vld [vmem:[%s25959_s3 + $0x228] sm:$0xff]  }
 0x3f3   : > { %20651 = vmatmul.mubr.bf16.gmra.mrb[40].mxu1 %v9952_v27  ;;  %v10509_v27 = vshll.u32 %v22589_v23, 16 }
 0x3f4   : > { %20654 = vmatprep.mubr.bf16.mxu1 %v9954_v16  ;;  %20687 = vmatpush3.bf16.msra.mxu1 %v22568_v57  ;;  %v10497_v57 = vshrl.u32 %v22587_v38, 16  ;;  %v9980_v16 = vsel %vm3408_vm1, %v9977_v2, %v9979_v54  ;;  %v10495_v32 = vsel %vm4479_vm4, %v10486_v39, %v10494_v8  ;;  %v22632_v2 = vld [vmem:[%s25961_s5 + $0x8] sm:$0xff]   ;;  %v10563_v38 = vshll.u32 %v22597_v24, 16  ;;  %v22608_v24 = vld [vmem:[#allocation2 + $0x90] sm:$0xff]  }
 0x3f5   : > { %20688 = vmatprep.subr.bf16.mxu1 %v22571_v42  ;;  %20788 = vmatprep.subr.bf16.mxu0 %v22632_v2  ;;  %v10623_v52 = vshrl.u32 %v22608_v24, 16 }
 0x3f6   : > { %v10499_v33 = vrot.slane %v10497_v57, 2  ;;  %20789 = vmatpush3.bf16.msra.mxu0 %v22632_v2  ;;  %v10562_v57 = vrot.slane %v10560_v53, 2 }
 0x3f8   : > { %20689 = vmatpush3.bf16.msra.mxu1 %v22571_v42  ;;  %v10506_v42 = vshrl.u32 %v22589_v23, 16  ;;  %v10553_v23 = vrot.slane %v10551_v25, 2 }
 0x3f9   : > { %20690 = vmatprep.subr.bf16.mxu1 %v22574_v58 }
 0x3fa   : > { %v10557_v39 = vor.u32 %v10556_v9, %v10553_v23  ;;  %v22611_v9 = vld [vmem:[#allocation2 + $0xa0] ss:$0 sps:$4 sm:$0x77]  }
 0x3fb   : > { %20655 = vmatmul.mubr.bf16.gmra.mrb[44].mxu1 %v9956_v3  ;;  %v10511_v3 = vrot.slane %v10509_v27, 3  ;;  %v22607_v27 = vld [vmem:[%s25959_s3 + $0x230] sm:$0xff]  }
 0x3fc   : > { %20658 = vmatprep.mubr.bf16.mxu1 %v9958_v28  ;;  %20691 = vmatpush3.bf16.msra.mxu1 %v22574_v58  ;;  %v10502_v58 = vrot.slane %v10500_v48, 3  ;;  %v10565_v48 = vrot.slane %v10563_v38, 3 }
 0x3fd   : > { %20692 = vmatprep.subr.bf16.mxu1 %v22577_v4 }
 0x3fe   : > { %v10503_v28 = vor.u32 %v10502_v58, %v10499_v33  ;;  %v10572_v33 = vshll.u32 %v22599_v7, 16  ;;  %v10566_v58 = vor.u32 %v10565_v48, %v10562_v57 }
 0x400   : > { %20693 = vmatpush3.bf16.msra.mxu1 %v22577_v4  ;;  %v10508_v4 = vrot.slane %v10506_v42, 2  ;;  %v10504_v1 = vsel %vm4479_vm4, %v10494_v8, %v10503_v28  ;;  %v22600_v8 = vld [vmem:[#allocation2 + $0x68] sm:$0xff]   ;;  %v22634_v42 = vld [vmem:[%s25961_s5 + $0x18] sm:$0xff]  }
 0x401   : > { %20694 = vmatprep.subr.bf16.mxu1 %v22580_v35 }
 0x402   : > { %v10512_v10 = vor.u32 %v10511_v3, %v10508_v4  ;;  %v22635_v4 = vld [vmem:[%s25961_s5 + $0x20] sm:$0xff]   ;;  %v22610_v3 = vld [vmem:[%s25959_s3 + $0x238] sm:$0xff]  }
 0x403   : > { %20659 = vmatmul.mubr.bf16.gmra.mrb[48].mxu1 %v9960_v20  ;;  %v22592_v20 = vld [vmem:[%s25959_s3 + $0x208] sm:$0xff]  }
 0x404   : > { %20662 = vmatprep.mubr.bf16.mxu1 %v9962_v55  ;;  %20695 = vmatpush3.bf16.msra.mxu1 %v22580_v35  ;;  %v10518_v35 = vshll.u32 %v22590_v29, 16  ;;  %v10517_v55 = vrot.slane %v10515_v34, 2  ;;  %v10513_v19 = vsel %vm4479_vm4, %v10503_v28, %v10512_v10  ;;  %v10578_v29 = vshrl.u32 %v22600_v8, 16 }
 0x405   : > { %20696 = vmatprep.subr.bf16.mxu1 %v22583_v37  ;;  %v10574_v34 = vrot.slane %v10572_v33, 3 }
 0x406   : > { %v10520_v63 = vrot.slane %v10518_v35, 3  ;;  %v22602_v35 = vld [vmem:[#allocation2 + $0x70] sm:$0xff]  }
 0x408   : > { %20697 = vmatpush3.bf16.msra.mxu1 %v22583_v37  ;;  %v10527_v37 = vshll.u32 %v22591_v59, 16  ;;  %v10521_v43 = vor.u32 %v10520_v63, %v10517_v55  ;;  %v10587_v55 = vshrl.u32 %v22602_v35, 16  ;;  %v10590_v63 = vshll.u32 %v22602_v35, 16 }
 0x409   : > { %20734 = vmatprep.subr.bf16.mxu1 %v25056_v46 }
 0x40a   : > { %v10529_v61 = vrot.slane %v10527_v37, 3  ;;  %v10522_v26 = vsel %vm4479_vm4, %v10512_v10, %v10521_v43  ;;  %v10567_v10 = vsel %vm4479_vm4, %v10557_v39, %v10566_v58 }
 0x40b   : > { %20663 = vmatmul.mubr.bf16.gmra.mrb[52].mxu1 %v9964_v12  ;;  %v10526_v12 = vrot.slane %v10524_v56, 2  ;;  %v10580_v56 = vrot.slane %v10578_v29, 2  ;;  %v22613_v29 = vld [vmem:[#allocation2 + $0x18] sm:$0xff]  }
 0x40c   : > { %20666 = vmatprep.mubr.bf16.mxu1 %v9966_v21  ;;  %v22594_v21 = vld [vmem:[#allocation2 + $0x48] sm:$0xff]  }
 0x40d   : > { %v10530_v51 = vor.u32 %v10529_v61, %v10526_v12  ;;  %v10545_v18 = vshll.u32 %v22594_v21, 16 }
 0x40f   : > { %v10547_v40 = vrot.slane %v10545_v18, 3 }
 0x413   : > { %20667 = vmatmul.mubr.bf16.gmra.mrb[56].mxu1 %v9968_v62  ;;  %v10536_v62 = vshll.u32 %v22593_v36, 16 }
 0x414   : > { %20670 = vmatprep.mubr.bf16.mxu1 %v9970_v41  ;;  %v10542_v41 = vshrl.u32 %v22594_v21, 16  ;;  %v10589_v21 = vrot.slane %v10587_v55, 2 }
 0x416   : > { %v10544_v60 = vrot.slane %v10542_v41, 2  ;;  %v22606_v41 = vld [vmem:[#allocation2 + $0x88] sm:$0xff]  }
 0x417   : > { %v10617_v6 = vshll.u32 %v22606_v41, 16 }
 0x41b   : > { %20671 = vmatmul.mubr.bf16.gmra.mrb[60].mxu1 %v9972_v44  ;;  %v10538_v44 = vrot.slane %v10536_v62, 3 }
 0x41c   : > { %20674 = vmatprep.mubr.bf16.mxu1 %v9974_v45  ;;  %v10531_v45 = vsel %vm4479_vm4, %v10521_v43, %v10530_v51  ;;  %v22605_v43 = vld [vmem:[#allocation2 + $0x80] sm:$0xff]  }
 0x423   : > { %20675 = vmatmul.mubr.bf16.gmra.mrb[64].mxu1 %v9976_v14  ;;  %v10548_v14 = vor.u32 %v10547_v40, %v10544_v60 }
 0x424   : > { %20678 = vmatprep.mubr.bf16.mxu1 %v9978_v22  ;;  %v22633_v22 = vld [vmem:[%s25961_s5 + $0x10] sm:$0xff]  }
 0x425   : > { %20790 = vmatprep.subr.bf16.mxu0 %v22633_v22  ;;  %v10558_v59 = vsel %vm4479_vm4, %v10548_v14, %v10557_v39 }
 0x426   : > { %20791 = vmatpush3.bf16.msra.mxu0 %v22633_v22 }
 0x427   : > { %20792 = vmatprep.subr.bf16.mxu0 %v22634_v42 }
 0x42a   : > { %20793 = vmatpush3.bf16.msra.mxu0 %v22634_v42  ;;  %v10644_v42 = vshll.u32 %v22611_v9, 16 }
 0x42b   : > { %20679 = vmatmul.mubr.bf16.gmra.mrb[68].mxu1 %v9980_v16  ;;  %v10569_v16 = vshrl.u32 %v22599_v7, 16  ;;  %20794 = vmatprep.subr.bf16.mxu0 %v22635_v4 }
 0x42c   : > { %20698 = vmatprep.mubr.bf16.mxu1 %v10495_v32  ;;  %v10581_v32 = vshll.u32 %v22600_v8, 16  ;;  %v10641_v8 = vshrl.u32 %v22611_v9, 16  ;;  %v10646_v33 = vrot.slane %v10644_v42, 3 }
 0x42d   : > { %v10571_v28 = vrot.slane %v10569_v16, 2 }
 0x42e   : > { %v10583_v37 = vrot.slane %v10581_v32, 3  ;;  %20795 = vmatpush3.bf16.msra.mxu0 %v22635_v4  ;;  %v10643_v16 = vrot.slane %v10641_v8, 2  ;;  %v22612_v32 = vld [vmem:[#allocation2 + $0x10] sm:$0xf8]  }
 0x42f   : > { %v22630_v8 = vld [vmem:[#allocation2 + $0xa0] ss:$0 sps:$4 sm:$0x77]  }
 0x430   : > { %v10584_v36 = vor.u32 %v10583_v37, %v10580_v56  ;;  %v10647_v4 = vor.u32 %v10646_v33, %v10643_v16  ;;  %v22636_v16 = vld [vmem:[%s25961_s5 + $0x28] sm:$0xff]   ;;  %v22637_v33 = vld [vmem:[%s25961_s5 + $0x30] sm:$0xff]  }
 0x431   : > { %20796 = vmatprep.subr.bf16.mxu0 %v22636_v16 }
 0x432   : > { %20797 = vmatpush3.bf16.msra.mxu0 %v22636_v16 }
 0x433   : > { %20699 = vmatmul.mubr.bf16.vlgmr.msra.gmra.mrb[36].mxu1 %v10504_v1  ;;  %v10575_v1 = vor.u32 %v10574_v34, %v10571_v28  ;;  %v22614_v34 = vld [vmem:[#allocation2 + $0x20] sm:$0xff]   ;;  %20798 = vmatprep.subr.bf16.mxu0 %v22637_v33 }
 0x434   : > { %20702 = vmatprep.mubr.bf16.mxu1 %v10513_v19  ;;  %20735 = vmatpush3.bf16.msra.mxu1 %v25056_v46  ;;  %v10535_v46 = vrot.slane %v10533_v13, 2  ;;  %v11150_v56 = vrot.slane %v22614_v34, 3  ;;  %v25159_v34 = vld [vmem:[%s25960_s4] ss:$0 sm:$0xff] }
 0x435   : > { %20736 = vmatprep.subr.bf16.mxu1 %v22592_v20  ;;  %v10576_v61 = vsel %vm4479_vm4, %v10566_v58, %v10575_v1  ;;  %v10585_v13 = vsel %vm4479_vm4, %v10575_v1, %v10584_v36  ;;  %v22616_v1 = vld [vmem:[#allocation2 + $0x30] sm:$0xff]  }
 0x436   : > { %v10539_v15 = vor.u32 %v10538_v44, %v10535_v46  ;;  %v10614_v44 = vshrl.u32 %v22606_v41, 16  ;;  %20799 = vmatpush3.bf16.msra.mxu0 %v22637_v33  ;;  %v12370_v33 = vld [vmem:[#allocation2 + $0x8] sm:$0xe] }
 0x438   : > { %20737 = vmatpush3.bf16.msra.mxu1 %v22592_v20  ;;  %v10540_v49 = vsel %vm4479_vm4, %v10530_v51, %v10539_v15  ;;  %v10549_v54 = vsel %vm4479_vm4, %v10539_v15, %v10548_v14  ;;  %v22603_v20 = vld [vmem:[#allocation2 + $0x78] sm:$0xff]   ;;  %v10616_v2 = vrot.slane %v10614_v44, 2  ;;  %v10626_v14 = vshll.u32 %v22608_v24, 16  ;;  %v22622_v44 = vld [vmem:[#allocation2 + $0x60] sm:$0xff]  }
 0x439   : > { %20738 = vmatprep.subr.bf16.mxu1 %v22595_v50  ;;  %v10596_v19 = vshrl.u32 %v22603_v20, 16  ;;  %v10599_v12 = vshll.u32 %v22603_v20, 16  ;;  %v22609_v15 = vld [vmem:[#allocation2 + $0x98] sm:$0xff]  }
 0x43a   : > { %v10632_v38 = vshrl.u32 %v22609_v15, 16  ;;  %v10635_v22 = vshll.u32 %v22609_v15, 16  ;;  %v10628_v23 = vrot.slane %v10626_v14, 3  ;;  %v22626_v14 = vld [vmem:[#allocation2 + $0x80] sm:$0xff]  }
 0x43b   : > { %20703 = vmatmul.mubr.bf16.gmra.mrb[40].mxu1 %v10522_v26  ;;  %v10598_v62 = vrot.slane %v10596_v19, 2  ;;  %v10601_v51 = vrot.slane %v10599_v12, 3  ;;  %v10608_v26 = vshll.u32 %v22605_v43, 16 }
 0x43c   : > { %20706 = vmatprep.mubr.bf16.mxu1 %v10531_v45  ;;  %20739 = vmatpush3.bf16.msra.mxu1 %v22595_v50  ;;  %v10592_v50 = vrot.slane %v10590_v63, 3  ;;  %v10637_v57 = vrot.slane %v10635_v22, 3  ;;  %v22617_v63 = vld [vmem:[#allocation2 + $0x38] sm:$0xff]   ;;  %v11174_v22 = vrot.slane %v22626_v14, 3 }
 0x43d   : > { %20740 = vmatprep.subr.bf16.mxu1 %v22598_v5  ;;  %v10602_v46 = vor.u32 %v10601_v51, %v10598_v62  ;;  %v10610_v40 = vrot.slane %v10608_v26, 3  ;;  %v11156_v19 = vrot.slane %v22617_v63, 3  ;;  %v22620_v51 = vld [vmem:[#allocation2 + $0x50] sm:$0xff]  }
 0x43e   : > { %v10593_v18 = vor.u32 %v10592_v50, %v10589_v21  ;;  %v22619_v50 = vld [vmem:[#allocation2 + $0x48] sm:$0xff]  }
 0x440   : > { %20741 = vmatpush3.bf16.msra.mxu1 %v22598_v5  ;;  %v10605_v5 = vshrl.u32 %v22605_v43, 16  ;;  %v10594_v45 = vsel %vm4479_vm4, %v10584_v36, %v10593_v18  ;;  %v10603_v11 = vsel %vm4479_vm4, %v10593_v18, %v10602_v46  ;;  %v11154_v36 = vrot.slane %v22616_v1, 3  ;;  %v22621_v18 = vld [vmem:[#allocation2 + $0x58] sm:$0xff]  }
 0x441   : > { %20742 = vmatprep.subr.bf16.mxu1 %v22601_v17  ;;  %v11164_v26 = vrot.slane %v22621_v18, 3 }
 0x442   : > { %v10607_v60 = vrot.slane %v10605_v5, 2  ;;  %v11157_v21 = vsel %vm5148_vm5, %v11154_v36, %v11156_v19  ;;  %v11162_v5 = vrot.slane %v22620_v51, 3 }
 0x443   : > { %20707 = vmatmul.mubr.bf16.gmra.mrb[44].mxu1 %v10540_v49  ;;  %v10625_v49 = vrot.slane %v10623_v52, 2 }
 0x444   : > { %20710 = vmatprep.mubr.bf16.mxu1 %v10549_v54  ;;  %20743 = vmatpush3.bf16.msra.mxu1 %v22601_v17  ;;  %v10619_v17 = vrot.slane %v10617_v6, 3  ;;  %v10611_v25 = vor.u32 %v10610_v40, %v10607_v60  ;;  %v10634_v54 = vrot.slane %v10632_v38, 2  ;;  %v11165_v6 = vsel %vm5148_vm5, %v11162_v5, %v11164_v26  ;;  %v22627_v38 = vld [vmem:[#allocation2 + $0x88] sm:$0xff]  }
 0x445   : > { %20744 = vmatprep.subr.bf16.mxu1 %v22604_v31  ;;  %v10629_v48 = vor.u32 %v10628_v23, %v10625_v49  ;;  %v11166_v60 = vrot.slane %v22622_v44, 3  ;;  %v22628_v23 = vld [vmem:[#allocation2 + $0x90] sm:$0xff]  }
 0x446   : > { %v10620_v53 = vor.u32 %v10619_v17, %v10616_v2  ;;  %v22625_v17 = vld [vmem:[#allocation2 + $0x78] sm:$0xff]  }
 0x447   : > { %v11167_v24 = vsel %vm5148_vm5, %v11164_v26, %v11166_v60 }
 0x448   : > { %20745 = vmatpush3.bf16.msra.mxu1 %v22604_v31  ;;  %v10612_v31 = vsel %vm4479_vm4, %v10602_v46, %v10611_v25  ;;  %v10621_v7 = vsel %vm4479_vm4, %v10611_v25, %v10620_v53  ;;  %v10630_v39 = vsel %vm4479_vm4, %v10620_v53, %v10629_v48  ;;  %v11172_v25 = vrot.slane %v22625_v17, 3 }
 0x449   : > { %20746 = vmatprep.subr.bf16.mxu1 %v22607_v27 }
 0x44a   : > { %v11175_v49 = vsel %vm5148_vm5, %v11172_v25, %v11174_v22 }
 0x44b   : > { %20711 = vmatmul.mubr.bf16.gmra.mrb[48].mxu1 %v10558_v59  ;;  %v11147_v59 = vrot.slane %v22612_v32, 3  ;;  %v25153_v32 = vld [vmem:[%s25961_s5 + $0x40] sm:$0xff]  }
 0x44c   : > { %20714 = vmatprep.mubr.bf16.mxu1 %v10567_v10  ;;  %20747 = vmatpush3.bf16.msra.mxu1 %v22607_v27  ;;  %v10638_v27 = vor.u32 %v10637_v57, %v10634_v54  ;;  %v22615_v10 = vld [vmem:[#allocation2 + $0x28] sm:$0xff]   ;;  %v11178_v54 = vrot.slane %v22628_v23, 3 }
 0x44d   : > { %20748 = vmatprep.subr.bf16.mxu1 %v22610_v3  ;;  %v11152_v37 = vrot.slane %v22615_v10, 3 }
 0x44e   : > { %v10639_v58 = vsel %vm4479_vm4, %v10629_v48, %v10638_v27  ;;  %v10648_v28 = vsel %vm4479_vm4, %v10638_v27, %v10647_v4  ;;  %v11182_v27 = vrot.slane %v22630_v8, 3  ;;  %v11653_v4 = vpop.permute.xlu0 %11652 }
 0x44f   : > { %v11153_v55 = vsel %vm5148_vm5, %v11150_v56, %v11152_v37  ;;  %v11155_v12 = vsel %vm5148_vm5, %v11152_v37, %v11154_v36 }
 0x450   : > { %20749 = vmatpush3.bf16.msra.mxu1 %v22610_v3  ;;  %v11148_v3 = vrot.slane %v22613_v29, 3  ;;  %v22639_v29 = vld [vmem:[#allocation2] sm:$0xff]  }
 0x451   : > { %20802 = vmatprep.mubr.bf16.mxu0 %v22639_v29 }
 0x452   : > { %v11149_v35 = vsel %vm5148_vm5, %v11147_v59, %v11148_v3  ;;  %v11151_v20 = vsel %vm5148_vm5, %v11148_v3, %v11150_v56  ;;  %v11658_v3 = vpop.permute.xlu1 %11657  ;;  %v11663_v59 = vpop.permute.xlu0 %11662 }
 0x453   : > { %20715 = vmatmul.mubr.bf16.gmra.mrb[52].mxu1 %v10576_v61  ;;  %v22618_v61 = vld [vmem:[#allocation2 + $0x40] sm:$0xff]  }
 0x454   : > { %20718 = vmatprep.mubr.bf16.mxu1 %v10585_v13  ;;  %v11158_v43 = vrot.slane %v22618_v61, 3  ;;  %v11160_v13 = vrot.slane %v22619_v50, 3 }
 0x456   : > { %v11159_v62 = vsel %vm5148_vm5, %v11156_v19, %v11158_v43  ;;  %v11161_v41 = vsel %vm5148_vm5, %v11158_v43, %v11160_v13  ;;  %v11163_v46 = vsel %vm5148_vm5, %v11160_v13, %v11162_v5 }
 0x45b   : > { %20719 = vmatmul.mubr.bf16.gmra.mrb[56].mxu1 %v10594_v45  ;;  %v22623_v45 = vld [vmem:[#allocation2 + $0x68] sm:$0xff]  }
 0x45c   : > { %20722 = vmatprep.mubr.bf16.mxu1 %v10603_v11  ;;  %v11168_v40 = vrot.slane %v22623_v45, 3  ;;  %v22624_v11 = vld [vmem:[#allocation2 + $0x70] sm:$0xff]  }
 0x45d   : > { %v11170_v15 = vrot.slane %v22624_v11, 3 }
 0x45e   : > { %v11169_v2 = vsel %vm5148_vm5, %v11166_v60, %v11168_v40 }
 0x45f   : > { %v11171_v52 = vsel %vm5148_vm5, %v11168_v40, %v11170_v15  ;;  %v11173_v53 = vsel %vm5148_vm5, %v11170_v15, %v11172_v25 }
 0x463   : > { %20723 = vmatmul.mubr.bf16.gmra.mrb[60].mxu1 %v10612_v31  ;;  %v11176_v31 = vrot.slane %v22627_v38, 3 }
 0x464   : > { %20726 = vmatprep.mubr.bf16.mxu1 %v10621_v7  ;;  %v22629_v7 = vld [vmem:[#allocation2 + $0x98] sm:$0xff]  }
 0x465   : > { %v11177_v9 = vsel %vm5148_vm5, %v11174_v22, %v11176_v31  ;;  %v11180_v57 = vrot.slane %v22629_v7, 3  ;;  %v11179_v48 = vsel %vm5148_vm5, %v11176_v31, %v11178_v54 }
 0x467   : > { %v11181_v42 = vsel %vm5148_vm5, %v11178_v54, %v11180_v57 }
 0x46b   : > { %20727 = vmatmul.mubr.bf16.gmra.mrb[64].mxu1 %v10630_v39  ;;  %v11183_v39 = vsel %vm5148_vm5, %v11180_v57, %v11182_v27 }
 0x46c   : > { %20730 = vmatprep.mubr.bf16.mxu1 %v10639_v58  ;;  %v22638_v58 = vld [vmem:[%s25961_s5 + $0x38] sm:$0xff]  }
 0x46d   : > { %20800 = vmatprep.subr.bf16.mxu0 %v22638_v58 }
 0x46e   : > { %20801 = vmatpush3.bf16.msra.mxu0 %v22638_v58 }
 0x46f   : > { %20838 = vmatprep.subr.bf16.mxu0 %v25153_v32 }
 0x473   : > { %20731 = vmatmul.mubr.bf16.gmra.mrb[68].mxu1 %v10648_v28  ;;  %v11668_v28 = vpop.permute.xlu1 %11667 }
 0x474   : > { %20750 = vmatprep.mubr.bf16.mxu1 %v11149_v35  ;;  %v11673_v35 = vpop.permute.xlu0 %11672 }
 0x477   : > { %v25164_v19 = vpop.permute.xlu1 %11677 }
 0x47b   : > { %20751 = vmatmul.mubr.bf16.vlgmr.msra.gmra.mrb[36].mxu1 %v11151_v20  ;;  %v11688_v40 = vpop.permute.xlu1 %11687 }
 0x47c   : > { %20754 = vmatprep.mubr.bf16.mxu1 %v11153_v55 }
 0x483   : > { %20755 = vmatmul.mubr.bf16.gmra.mrb[40].mxu1 %v11155_v12 }
 0x484   : > { %20758 = vmatprep.mubr.bf16.mxu1 %v11157_v21  ;;  %v11683_v21 = vpop.permute.xlu0 %11682 }
 0x488   : > { %v25169_v25 = vpop.permute.xlu0 %11692 }
 0x48b   : > { %20759 = vmatmul.mubr.bf16.gmra.mrb[44].mxu1 %v11159_v62 }
 0x48c   : > { %20762 = vmatprep.mubr.bf16.mxu1 %v11161_v41 }
 0x493   : > { %20763 = vmatmul.mubr.bf16.gmra.mrb[48].mxu1 %v11163_v46 }
 0x494   : > { %20766 = vmatprep.mubr.bf16.mxu1 %v11165_v6 }
 0x49b   : > { %20767 = vmatmul.mubr.bf16.gmra.mrb[52].mxu1 %v11167_v24 }
 0x49c   : > { %20770 = vmatprep.mubr.bf16.mxu1 %v11169_v2 }
 0x4a3   : > { %20771 = vmatmul.mubr.bf16.gmra.mrb[56].mxu1 %v11171_v52 }
 0x4a4   : > { %20774 = vmatprep.mubr.bf16.mxu1 %v11173_v53 }
 0x4ab   : > { %20775 = vmatmul.mubr.bf16.gmra.mrb[60].mxu1 %v11175_v49 }
 0x4ac   : > { %20778 = vmatprep.mubr.bf16.mxu1 %v11177_v9 }
 0x4b3   : > { %20779 = vmatmul.mubr.bf16.gmra.mrb[64].mxu1 %v11179_v48 }
 0x4b4   : > { %20782 = vmatprep.mubr.bf16.mxu1 %v11181_v42 }
 0x4bb   : > { %20783 = vmatmul.mubr.bf16.gmra.mrb[68].mxu1 %v11183_v39 }
 0x54e   : > { %v20752_v10 = vpop.f32.mrb[36].mxu1 }
 0x54f   : > { %v11544_v56 = vadd.f32 %v20752_v10, %v25159_v34  ;;  %v11284_v37 = vpop.f32.mrb[37].mxu1 }
 0x550   : > { %v11542_v20 = vadd.f32 %v25159_v34, %v11284_v37  ;;  %v20753_v1 = vpop.f32.mrb[38].mxu1 }
 0x551   : > { %v11580_v55 = vmax.f32 %v11544_v56, 0.0  ;;  %v11545_v63 = vadd.f32 %v20753_v1, %v25159_v34  ;;  %v11287_v36 = vpop.f32.mrb[39].mxu1 }
 0x552   : > { %v11578_v12 = vmax.f32 %v11542_v20, 0.0  ;;  %v11543_v61 = vadd.f32 %v25159_v34, %v11287_v36  ;;  %v11703_v20 = vpop.permute.xlu0 %11702 }
 0x553   : > { %v11832_v50 = vmul.f32 %v11663_v59, %v11580_v55  ;;  %v11581_v43 = vmax.f32 %v11545_v63, 0.0 }
 0x554   : > { %v11830_v13 = vmul.f32 %v11653_v4, %v11578_v12  ;;  %v11579_v62 = vmax.f32 %v11543_v61, 0.0 }
 0x555   : > { %v19114_v51 = vpack.c.bf16 %v11832_v50, %v11832_v50  ;;  %v11833_v41 = vmul.f32 %v11668_v28, %v11581_v43 }
 0x556   : > { %v19112_v18 = vpack.c.bf16 %v11830_v13, %v11830_v13  ;;  %v11831_v5 = vmul.f32 %v11658_v3, %v11579_v62  ;;  %v20756_v26 = vpop.f32.mrb[40].mxu1  ;;  %v25172_v3 = vpop.permute.xlu1 %11697 }
 0x557   : > { %v11994_v46 = vshrl.u32 %v19114_v51, 16  ;;  %v11997_v44 = vshll.u32 %v19114_v51, 16  ;;  %v19115_v6 = vpack.c.bf16 %v11833_v41, %v11833_v41  ;;  %v11548_v45 = vadd.f32 %v20756_v26, %v25159_v34  ;;  %v11300_v60 = vpop.f32.mrb[41].mxu1 }
 0x558   : > { %v11975_v24 = vshrl.u32 %v19112_v18, 16  ;;  %v11978_v11 = vshll.u32 %v19112_v18, 16  ;;  %v19113_v2 = vpack.c.bf16 %v11831_v5, %v11831_v5  ;;  %v11546_v17 = vadd.f32 %v25159_v34, %v11300_v60  ;;  %v20757_v15 = vpop.f32.mrb[42].mxu1 }
 0x559   : > { %v11996_v52 = vrot.slane %v11994_v46, 6  ;;  %v11999_v14 = vrot.slane %v11997_v44, 7  ;;  %v12004_v53 = vshrl.u32 %v19115_v6, 16  ;;  %v12007_v38 = vshll.u32 %v19115_v6, 16  ;;  %v11303_v22 = vpop.f32.mrb[43].mxu1 }
 0x55a   : > { %v11977_v31 = vrot.slane %v11975_v24, 6  ;;  %v11980_v49 = vrot.slane %v11978_v11, 7  ;;  %v11984_v23 = vshrl.u32 %v19113_v2, 16  ;;  %v11987_v9 = vshll.u32 %v19113_v2, 16  ;;  %v11708_v24 = vpop.permute.xlu1 %11707 }
 0x55b   : > { %v12000_v7 = vor.u32 %v11999_v14, %v11996_v52  ;;  %v12006_v54 = vrot.slane %v12004_v53, 6  ;;  %v12009_v57 = vrot.slane %v12007_v38, 7  ;;  %v11584_v48 = vmax.f32 %v11548_v45, 0.0 }
 0x55c   : > { %v11981_v8 = vor.u32 %v11980_v49, %v11977_v31  ;;  %v11986_v42 = vrot.slane %v11984_v23, 6  ;;  %v11989_v27 = vrot.slane %v11987_v9, 7  ;;  %v11582_v39 = vmax.f32 %v11546_v17, 0.0 }
 0x55d   : > { %v12002_v16 = vrot.slane %v12000_v7, 4  ;;  %v12010_v58 = vor.u32 %v12009_v57, %v12006_v54  ;;  %v11836_v29 = vmul.f32 %v11683_v21, %v11584_v48  ;;  %v11549_v4 = vadd.f32 %v20757_v15, %v25159_v34  ;;  %v25186_v15 = vpop.permute.xlu0 %11712 }
 0x55e   : > { %v11982_v59 = vrot.slane %v11981_v8, 4  ;;  %v12371_v28 = vsel %vm24460_vm10, %v11981_v8, %v12370_v33  ;;  %v11990_v10 = vor.u32 %v11989_v27, %v11986_v42  ;;  %v11834_v56 = vmul.f32 %v11673_v35, %v11582_v39  ;;  %v20760_v37 = vpop.f32.mrb[44].mxu1  ;;  %v22644_v8 = vld [vmem:[%s25961_s5 + $0x48] sm:$0xff]  }
 0x55f   : > { %12372 = vst [vmem:[#allocation2 + $0x8] sm:$0xe] %v12371_v28  ;;  %v12011_v1 = vsel %vm24466_vm11, %v12002_v16, %v12010_v58  ;;  %v12012_v55 = vrot.slane %v12010_v58, 4  ;;  %v19118_v63 = vpack.c.bf16 %v11836_v29, %v11836_v29  ;;  %v11585_v36 = vmax.f32 %v11549_v4, 0.0  ;;  %v11316_v12 = vpop.f32.mrb[45].mxu1 }
 0x560   : > { %12375 = vst [vmem:[#allocation2 + $0x14] sm:$0xf] %v12011_v1  ;;  %v11991_v61 = vsel %vm24466_vm11, %v11982_v59, %v11990_v10  ;;  %v11992_v21 = vrot.slane %v11990_v10, 4  ;;  %v19116_v50 = vpack.c.bf16 %v11834_v56, %v11834_v56  ;;  %v11547_v30 = vadd.f32 %v25159_v34, %v11303_v22  ;;  %v20761_v43 = vpop.f32.mrb[46].mxu1  ;;  %v25200_v56 = vpop.permute.xlu1 %11717 }
 0x561   : > { %12373 = vst [vmem:[#allocation2 + $0xc] sm:$0xf] %v11991_v61  ;;  %v12034_v35 = vshrl.u32 %v19118_v63, 16  ;;  %v12037_v13 = vshll.u32 %v19118_v63, 16  ;;  %v11837_v62 = vmul.f32 %v11688_v40, %v11585_v36  ;;  %v11552_v51 = vadd.f32 %v20760_v37, %v25159_v34  ;;  %v11319_v41 = vpop.f32.mrb[47].mxu1  ;;  %v11723_v36 = vpop.permute.xlu0 %11722 }
 0x562   : > { %v12001_v18 = vsel %vm24466_vm11, %v11992_v21, %v12000_v7  ;;  %v12014_v5 = vshrl.u32 %v19116_v50, 16  ;;  %v12017_v26 = vshll.u32 %v19116_v50, 16  ;;  %v11583_v46 = vmax.f32 %v11547_v30, 0.0 }
 0x563   : > { %12374 = vst [vmem:[#allocation2 + $0x10] sm:$0xf] %v12001_v18  ;;  %v12036_v44 = vrot.slane %v12034_v35, 6  ;;  %v12039_v6 = vrot.slane %v12037_v13, 7  ;;  %v19119_v45 = vpack.c.bf16 %v11837_v62, %v11837_v62  ;;  %v11588_v60 = vmax.f32 %v11552_v51, 0.0  ;;  %v22648_v13 = vld [vmem:[%s25961_s5 + $0x50] sm:$0xff]  }
 0x564   : > { %v12016_v11 = vrot.slane %v12014_v5, 6  ;;  %v12019_v2 = vrot.slane %v12017_v26, 7  ;;  %v11835_v17 = vmul.f32 %v25164_v19, %v11583_v46  ;;  %v11550_v40 = vadd.f32 %v25159_v34, %v11316_v12 }
 0x565   : > { %v25188_v52 = vor.u32 %v12039_v6, %v12036_v44  ;;  %v12044_v14 = vshrl.u32 %v19119_v45, 16  ;;  %v12047_v53 = vshll.u32 %v19119_v45, 16  ;;  %v11840_v38 = vmul.f32 %v11703_v20, %v11588_v60 }
 0x566   : > { %v12020_v22 = vor.u32 %v12019_v2, %v12016_v11  ;;  %v19117_v31 = vpack.c.bf16 %v11835_v17, %v11835_v17  ;;  %v11586_v49 = vmax.f32 %v11550_v40, 0.0  ;;  %v11553_v23 = vadd.f32 %v20761_v43, %v25159_v34  ;;  %v20764_v9 = vpop.f32.mrb[48].mxu1  ;;  %v11728_v2 = vpop.permute.xlu1 %11727 }
 0x567   : > { %v12042_v7 = vrot.slane %v25188_v52, 4  ;;  %v12046_v54 = vrot.slane %v12044_v14, 6  ;;  %v12049_v57 = vrot.slane %v12047_v53, 7  ;;  %v19122_v19 = vpack.c.bf16 %v11840_v38, %v11840_v38  ;;  %v11332_v48 = vpop.f32.mrb[49].mxu1 }
 0x568   : > { %v12021_v42 = vsel %vm24466_vm11, %v12012_v55, %v12020_v22  ;;  %v12022_v27 = vrot.slane %v12020_v22, 4  ;;  %v12024_v39 = vshrl.u32 %v19117_v31, 16  ;;  %v12027_v16 = vshll.u32 %v19117_v31, 16  ;;  %v20765_v33 = vpop.f32.mrb[50].mxu1  ;;  %v22640_v10 = vld [vmem:[#allocation2 + $0x8] sm:$0xff]   ;;  %v25229_v22 = vpop.permute.xlu0 %11732 }
 0x569   : > { %12376 = vst [vmem:[#allocation2 + $0x18] sm:$0xf] %v12021_v42  ;;  %v25197_v58 = vor.u32 %v12049_v57, %v12046_v54  ;;  %v12074_v29 = vshrl.u32 %v19122_v19, 16  ;;  %v12077_v4 = vshll.u32 %v19122_v19, 16  ;;  %v11838_v59 = vmul.f32 %v25169_v25, %v11586_v49  ;;  %v11335_v28 = vpop.f32.mrb[51].mxu1  ;;  %20803 = vmatmul.mubr.bf16.vlgmr.msra.gmra.mrb[36].mxu0 %v22640_v10 }
 0x56a   : > { %v12026_v37 = vrot.slane %v12024_v39, 6  ;;  %v12029_v20 = vrot.slane %v12027_v16, 7  ;;  %v11589_v1 = vmax.f32 %v11553_v23, 0.0  ;;  %v11551_v55 = vadd.f32 %v25159_v34, %v11319_v41  ;;  %v22642_v63 = vld [vmem:[#allocation2 + $0x10] sm:$0xff]   ;;  %20839 = vmatpush3.bf16.msra.mxu0 %v25153_v32  ;;  %v25245_v10 = vpop.permute.xlu1 %11737 }
 0x56b   : > { %v12051_v12 = vsel %vm24466_vm11, %v12042_v7, %v25197_v58  ;;  %v12052_v61 = vrot.slane %v25197_v58, 4  ;;  %v12076_v21 = vrot.slane %v12074_v29, 6  ;;  %v12079_v50 = vrot.slane %v12077_v4, 7  ;;  %20806 = vmatprep.mubr.bf16.mxu0 %v22642_v63  ;;  %20840 = vmatprep.subr.bf16.mxu0 %v22644_v8  ;;  %v22654_v29 = vld [vmem:[%s25961_s5 + $0x60] sm:$0xff]  }
 0x56c   : > { %12379 = vst [vmem:[#allocation2 + $0x24] sm:$0xf] %v12051_v12  ;;  %v12030_v25 = vor.u32 %v12029_v20, %v12026_v37  ;;  %v19120_v30 = vpack.c.bf16 %v11838_v59, %v11838_v59  ;;  %v11841_v43 = vmul.f32 %v11708_v24, %v11589_v1  ;;  %v11587_v35 = vmax.f32 %v11551_v55, 0.0  ;;  %v11743_v63 = vpop.permute.xlu0 %11742 }
 0x56d   : > { %v25211_v62 = vor.u32 %v12079_v50, %v12076_v21  ;;  %v11556_v51 = vadd.f32 %v20764_v9, %v25159_v34  ;;  %v11554_v41 = vadd.f32 %v25159_v34, %v11332_v48  ;;  %v11557_v18 = vadd.f32 %v20765_v33, %v25159_v34 }
 0x56e   : > { %v12031_v5 = vsel %vm24466_vm11, %v12022_v27, %v12030_v25  ;;  %v12032_v26 = vrot.slane %v12030_v25, 4  ;;  %v12054_v46 = vshrl.u32 %v19120_v30, 16  ;;  %v12057_v32 = vshll.u32 %v19120_v30, 16  ;;  %v25218_v44 = vpop.f32.mrb[52].mxu1  ;;  %20841 = vmatpush3.bf16.msra.mxu0 %v22644_v8 }
 0x56f   : > { %12377 = vst [vmem:[#allocation2 + $0x1c] sm:$0xf] %v12031_v5  ;;  %v12082_v6 = vrot.slane %v25211_v62, 4  ;;  %v19123_v45 = vpack.c.bf16 %v11841_v43, %v11841_v43  ;;  %v11839_v60 = vmul.f32 %v25172_v3, %v11587_v35  ;;  %v11592_v24 = vmax.f32 %v11556_v51, 0.0  ;;  %v25222_v11 = vpop.f32.mrb[53].mxu1  ;;  %20842 = vmatprep.subr.bf16.mxu0 %v22648_v13 }
 0x570   : > { %v12041_v17 = vsel %vm24466_vm11, %v12032_v26, %v25188_v52  ;;  %v12056_v40 = vrot.slane %v12054_v46, 6  ;;  %v12059_v14 = vrot.slane %v12057_v32, 7  ;;  %v11590_v53 = vmax.f32 %v11554_v41, 0.0  ;;  %v25227_v38 = vpop.f32.mrb[54].mxu1  ;;  %v22651_v52 = vld [vmem:[%s25961_s5 + $0x58] sm:$0xff]   ;;  %v22657_v32 = vld [vmem:[%s25961_s5 + $0x68] sm:$0xff]  }
 0x571   : > { %12378 = vst [vmem:[#allocation2 + $0x20] sm:$0xf] %v12041_v17  ;;  %v12084_v31 = vshrl.u32 %v19123_v45, 16  ;;  %v12087_v49 = vshll.u32 %v19123_v45, 16  ;;  %v19121_v3 = vpack.c.bf16 %v11839_v60, %v11839_v60  ;;  %v11844_v23 = vmul.f32 %v11723_v36, %v11592_v24  ;;  %v25231_v9 = vpop.f32.mrb[55].mxu1 }
 0x572   : > { %v12060_v7 = vor.u32 %v12059_v14, %v12056_v40  ;;  %v11842_v54 = vmul.f32 %v25186_v15, %v11590_v53  ;;  %v11593_v57 = vmax.f32 %v11557_v18, 0.0  ;;  %v25238_v19 = vadd.f32 %v25159_v34, %v11335_v28  ;;  %20843 = vmatpush3.bf16.msra.mxu0 %v22648_v13 }
 0x573   : > { %v12086_v48 = vrot.slane %v12084_v31, 6  ;;  %v12089_v8 = vrot.slane %v12087_v49, 7  ;;  %v12064_v42 = vshrl.u32 %v19121_v3, 16  ;;  %v12067_v27 = vshll.u32 %v19121_v3, 16  ;;  %20844 = vmatprep.subr.bf16.mxu0 %v22651_v52  ;;  %v22660_v49 = vld [vmem:[%s25961_s5 + $0x70] sm:$0xff]   ;;  %v11748_v3 = vpop.permute.xlu1 %11747 }
 0x574   : > { %v12061_v39 = vsel %vm24466_vm11, %v12052_v61, %v12060_v7  ;;  %v12062_v16 = vrot.slane %v12060_v7, 4  ;;  %v19126_v33 = vpack.c.bf16 %v11844_v23, %v11844_v23  ;;  %v19124_v58 = vpack.c.bf16 %v11842_v54, %v11842_v54 }
 0x575   : > { %12380 = vst [vmem:[#allocation2 + $0x28] sm:$0xf] %v12061_v39  ;;  %v12090_v15 = vor.u32 %v12089_v8, %v12086_v48  ;;  %v12066_v4 = vrot.slane %v12064_v42, 6  ;;  %v12069_v59 = vrot.slane %v12067_v27, 7  ;;  %v11845_v28 = vmul.f32 %v11728_v2, %v11593_v57 }
 0x576   : > { %v12114_v37 = vshrl.u32 %v19126_v33, 16  ;;  %v12117_v20 = vshll.u32 %v19126_v33, 16  ;;  %v12094_v1 = vshrl.u32 %v19124_v58, 16  ;;  %v12097_v55 = vshll.u32 %v19124_v58, 16  ;;  %v22643_v50 = vld [vmem:[#allocation2 + $0x18] sm:$0xff]   ;;  %v20772_v25 = vpop.f32.mrb[56].mxu1  ;;  %20845 = vmatpush3.bf16.msra.mxu0 %v22651_v52 }
 0x577   : > { %v12091_v36 = vsel %vm24466_vm11, %v12082_v6, %v12090_v15  ;;  %v12092_v12 = vrot.slane %v12090_v15, 4  ;;  %v12070_v61 = vor.u32 %v12069_v59, %v12066_v4  ;;  %v19127_v21 = vpack.c.bf16 %v11845_v28, %v11845_v28  ;;  %20807 = vmatmul.mubr.bf16.gmra.mrb[40].mxu0 %v22643_v50  ;;  %v11364_v46 = vpop.f32.mrb[57].mxu1  ;;  %20846 = vmatprep.subr.bf16.mxu0 %v22654_v29  ;;  %v22663_v28 = vld [vmem:[%s25961_s5 + $0x78] sm:$0xff]  }
 0x578   : > { %12383 = vst [vmem:[#allocation2 + $0x34] sm:$0xf] %v12091_v36  ;;  %v12116_v30 = vrot.slane %v12114_v37, 6  ;;  %v12119_v43 = vrot.slane %v12117_v20, 7  ;;  %v12096_v35 = vrot.slane %v12094_v1, 6  ;;  %v12099_v13 = vrot.slane %v12097_v55, 7  ;;  %v25308_v36 = vpop.permute.xlu1 %11757 }
 0x579   : > { %v12071_v51 = vsel %vm24466_vm11, %v12062_v16, %v12070_v61  ;;  %v12072_v41 = vrot.slane %v12070_v61, 4  ;;  %v12124_v18 = vshrl.u32 %v19127_v21, 16  ;;  %v12127_v5 = vshll.u32 %v19127_v21, 16  ;;  %v22645_v26 = vld [vmem:[#allocation2 + $0x20] sm:$0xff]   ;;  %v25261_v2 = vpop.f32.mrb[58].mxu1 }
 0x57a   : > { %12381 = vst [vmem:[#allocation2 + $0x2c] sm:$0xf] %v12071_v51  ;;  %v25254_v6 = vor.u32 %v12119_v43, %v12116_v30  ;;  %v25256_v45 = vor.u32 %v12099_v13, %v12096_v35  ;;  %v11591_v60 = vmax.f32 %v25238_v19, 0.0  ;;  %v11560_v24 = vadd.f32 %v25218_v44, %v25159_v34  ;;  %20810 = vmatprep.mubr.bf16.mxu0 %v22645_v26  ;;  %v25268_v31 = vpop.f32.mrb[59].mxu1 }
 0x57b   : > { %v12081_v17 = vsel %vm24466_vm11, %v12072_v41, %v25211_v62  ;;  %v12126_v40 = vrot.slane %v12124_v18, 6  ;;  %v12129_v14 = vrot.slane %v12127_v5, 7  ;;  %v11558_v53 = vadd.f32 %v25159_v34, %v25222_v11  ;;  %20847 = vmatpush3.bf16.msra.mxu0 %v22654_v29  ;;  %v25279_v11 = vpop.permute.xlu0 %11752 }
 0x57c   : > { %12382 = vst [vmem:[#allocation2 + $0x30] sm:$0xf] %v12081_v17  ;;  %v12122_v44 = vrot.slane %v25254_v6, 4  ;;  %v12101_v62 = vsel %vm24466_vm11, %v12092_v12, %v25256_v45  ;;  %v12102_v23 = vrot.slane %v25256_v45, 4  ;;  %v11843_v52 = vmul.f32 %v25200_v56, %v11591_v60  ;;  %20848 = vmatprep.subr.bf16.mxu0 %v22657_v32 }
 0x57d   : > { %12384 = vst [vmem:[#allocation2 + $0x38] sm:$0xf] %v12101_v62  ;;  %v25281_v7 = vor.u32 %v12129_v14, %v12126_v40  ;;  %v11596_v54 = vmax.f32 %v11560_v24, 0.0  ;;  %v11594_v57 = vmax.f32 %v11558_v53, 0.0  ;;  %v11561_v19 = vadd.f32 %v25227_v38, %v25159_v34 }
 0x57e   : > { %v19125_v48 = vpack.c.bf16 %v11843_v52, %v11843_v52  ;;  %v11559_v8 = vadd.f32 %v25159_v34, %v25231_v9  ;;  %v11564_v42 = vadd.f32 %v20772_v25, %v25159_v34  ;;  %v25289_v56 = vadd.f32 %v25159_v34, %v11364_v46  ;;  %v25291_v27 = vpop.f32.mrb[60].mxu1 }
 0x57f   : > { %v12131_v39 = vsel %vm24466_vm11, %v12122_v44, %v25281_v7  ;;  %v12132_v16 = vrot.slane %v25281_v7, 4  ;;  %v11848_v33 = vmul.f32 %v11743_v63, %v11596_v54  ;;  %v11846_v38 = vmul.f32 %v25229_v22, %v11594_v57  ;;  %v25298_v58 = vpop.f32.mrb[61].mxu1  ;;  %20849 = vmatpush3.bf16.msra.mxu0 %v22657_v32  ;;  %v11763_v25 = vpop.permute.xlu0 %11762 }
 0x580   : > { %12387 = vst [vmem:[#allocation2 + $0x44] sm:$0xf] %v12131_v39  ;;  %v12104_v9 = vshrl.u32 %v19125_v48, 16  ;;  %v12107_v29 = vshll.u32 %v19125_v48, 16  ;;  %v11597_v15 = vmax.f32 %v11561_v19, 0.0  ;;  %v11595_v4 = vmax.f32 %v11559_v8, 0.0  ;;  %20850 = vmatprep.subr.bf16.mxu0 %v22660_v49  ;;  %v11768_v54 = vpop.permute.xlu1 %11767 }
 0x581   : > { %v25300_v59 = vpop.f32.mrb[62].mxu1  ;;  %v19130_v37 = vpack.c.bf16 %v11848_v33, %v11848_v33  ;;  %v19128_v20 = vpack.c.bf16 %v11846_v38, %v11846_v38  ;;  %v11600_v1 = vmax.f32 %v11564_v42, 0.0  ;;  %v11598_v55 = vmax.f32 %v25289_v56, 0.0  ;;  %v22646_v22 = vld [vmem:[#allocation2 + $0x28] sm:$0xff]  }
 0x582   : > { %v25306_v63 = vpop.f32.mrb[63].mxu1  ;;  %v12106_v12 = vrot.slane %v12104_v9, 6  ;;  %v12109_v61 = vrot.slane %v12107_v29, 7  ;;  %v11849_v21 = vmul.f32 %v11748_v3, %v11597_v15  ;;  %v11847_v50 = vmul.f32 %v25245_v10, %v11595_v4  ;;  %20811 = vmatmul.mubr.bf16.gmra.mrb[44].mxu0 %v22646_v22  ;;  %v25314_v10 = vld [vmem:[%s25961_s5 + $0x80] sm:$0xff]  }
 0x583   : > { %v12154_v30 = vshrl.u32 %v19130_v37, 16  ;;  %v12157_v43 = vshll.u32 %v19130_v37, 16  ;;  %v12134_v35 = vshrl.u32 %v19128_v20, 16  ;;  %v12137_v13 = vshll.u32 %v19128_v20, 16  ;;  %v22647_v26 = vld [vmem:[#allocation2 + $0x30] sm:$0xff]   ;;  %20851 = vmatpush3.bf16.msra.mxu0 %v22660_v49  ;;  %v11773_v42 = vpop.permute.xlu0 %11772 }
 0x584   : > { %v12110_v51 = vor.u32 %v12109_v61, %v12106_v12  ;;  %v19131_v41 = vpack.c.bf16 %v11849_v21, %v11849_v21  ;;  %v19129_v18 = vpack.c.bf16 %v11847_v50, %v11847_v50  ;;  %v11852_v5 = vmul.f32 %v11763_v25, %v11600_v1  ;;  %20852 = vmatprep.subr.bf16.mxu0 %v22663_v28 }
 0x585   : > { %v12156_v46 = vrot.slane %v12154_v30, 6  ;;  %v12159_v32 = vrot.slane %v12157_v43, 7  ;;  %v12136_v45 = vrot.slane %v12134_v35, 6  ;;  %v12139_v60 = vrot.slane %v12137_v13, 7  ;;  %20814 = vmatprep.mubr.bf16.mxu0 %v22647_v26 }
 0x586   : > { %v12111_v24 = vsel %vm24466_vm11, %v12102_v23, %v12110_v51  ;;  %v12112_v17 = vrot.slane %v12110_v51, 4  ;;  %v12164_v40 = vshrl.u32 %v19131_v41, 16  ;;  %v12167_v14 = vshll.u32 %v19131_v41, 16  ;;  %v25318_v53 = vpop.f32.mrb[64].mxu1 }
 0x587   : > { %12385 = vst [vmem:[#allocation2 + $0x3c] sm:$0xf] %v12111_v24  ;;  %v12160_v49 = vor.u32 %v12159_v32, %v12156_v46  ;;  %v12140_v3 = vor.u32 %v12139_v60, %v12136_v45  ;;  %v12144_v44 = vshrl.u32 %v19129_v18, 16  ;;  %v12147_v62 = vshll.u32 %v19129_v18, 16  ;;  %v25320_v52 = vpop.f32.mrb[65].mxu1  ;;  %20853 = vmatpush3.bf16.msra.mxu0 %v22663_v28  ;;  %v11783_v35 = vpop.permute.xlu0 %11782 }
 0x588   : > { %v12121_v57 = vsel %vm24466_vm11, %v12112_v17, %v25254_v6  ;;  %v12166_v19 = vrot.slane %v12164_v40, 6  ;;  %v12169_v23 = vrot.slane %v12167_v14, 7  ;;  %v19134_v48 = vpack.c.bf16 %v11852_v5, %v11852_v5  ;;  %v25325_v8 = vpop.f32.mrb[66].mxu1  ;;  %20890 = vmatprep.subr.bf16.mxu0 %v25314_v10 }
 0x589   : > { %12386 = vst [vmem:[#allocation2 + $0x40] sm:$0xf] %v12121_v57  ;;  %v12162_v56 = vrot.slane %v12160_v49, 4  ;;  %v12141_v39 = vsel %vm24466_vm11, %v12132_v16, %v12140_v3  ;;  %v12142_v33 = vrot.slane %v12140_v3, 4  ;;  %v12146_v38 = vrot.slane %v12144_v44, 6  ;;  %v25331_v9 = vpop.f32.mrb[67].mxu1 }
 0x58a   : > { %12388 = vst [vmem:[#allocation2 + $0x48] sm:$0xf] %v12141_v39  ;;  %v12170_v6 = vor.u32 %v12169_v23, %v12166_v19  ;;  %v12149_v29 = vrot.slane %v12147_v62, 7  ;;  %v12194_v15 = vshrl.u32 %v19134_v48, 16  ;;  %v12197_v4 = vshll.u32 %v19134_v48, 16 }
 0x58b   : > { %v11850_v28 = vmul.f32 %v25279_v11, %v11598_v55  ;;  %v11565_v37 = vadd.f32 %v25261_v2, %v25159_v34  ;;  %v11563_v7 = vadd.f32 %v25159_v34, %v25268_v31  ;;  %v11568_v16 = vadd.f32 %v25291_v27, %v25159_v34  ;;  %v25343_v55 = vpop.permute.xlu1 %11777 }
 0x58c   : > { %v12171_v20 = vsel %vm24466_vm11, %v12162_v56, %v12170_v6  ;;  %v12172_v1 = vrot.slane %v12170_v6, 4  ;;  %v12150_v22 = vor.u32 %v12149_v29, %v12146_v38  ;;  %v12196_v12 = vrot.slane %v12194_v15, 6 }
 0x58d   : > { %12391 = vst [vmem:[#allocation2 + $0x54] sm:$0xf] %v12171_v20  ;;  %v12199_v61 = vrot.slane %v12197_v4, 7  ;;  %v19132_v21 = vpack.c.bf16 %v11850_v28, %v11850_v28  ;;  %v11601_v50 = vmax.f32 %v11565_v37, 0.0  ;;  %v11599_v11 = vmax.f32 %v11563_v7, 0.0  ;;  %v11793_v4 = vpop.permute.xlu0 %11792 }
 0x58e   : > { %v12151_v2 = vsel %vm24466_vm11, %v12142_v33, %v12150_v22  ;;  %v12152_v31 = vrot.slane %v12150_v22, 4  ;;  %v11604_v25 = vmax.f32 %v11568_v16, 0.0  ;;  %v11566_v27 = vadd.f32 %v25159_v34, %v25298_v58  ;;  %v22649_v30 = vld [vmem:[#allocation2 + $0x38] sm:$0xff]   ;;  %v25349_v43 = vpop.f32.mrb[68].mxu1 }
 0x58f   : > { %12389 = vst [vmem:[#allocation2 + $0x4c] sm:$0xf] %v12151_v2  ;;  %v25351_v13 = vor.u32 %v12199_v61, %v12196_v12  ;;  %v12174_v51 = vshrl.u32 %v19132_v21, 16  ;;  %v12177_v41 = vshll.u32 %v19132_v21, 16  ;;  %v11853_v18 = vmul.f32 %v11768_v54, %v11601_v50  ;;  %v25353_v5 = vpop.f32.mrb[69].mxu1  ;;  %20815 = vmatmul.mubr.bf16.gmra.mrb[48].mxu0 %v22649_v30  ;;  %v11788_v48 = vpop.permute.xlu1 %11787 }
 0x590   : > { %v12161_v26 = vsel %vm24466_vm11, %v12152_v31, %v12160_v49  ;;  %v11851_v46 = vmul.f32 %v25308_v36, %v11599_v11  ;;  %v11856_v32 = vmul.f32 %v11783_v35, %v11604_v25  ;;  %v11602_v45 = vmax.f32 %v11566_v27, 0.0  ;;  %v22650_v58 = vld [vmem:[#allocation2 + $0x40] sm:$0xff]   ;;  %v25358_v60 = vpop.f32.mrb[70].mxu1 }
 0x591   : > { %12390 = vst [vmem:[#allocation2 + $0x50] sm:$0xf] %v12161_v26  ;;  %v12202_v24 = vrot.slane %v25351_v13, 4  ;;  %v12176_v17 = vrot.slane %v12174_v51, 6  ;;  %v12179_v40 = vrot.slane %v12177_v41, 7  ;;  %v19135_v14 = vpack.c.bf16 %v11853_v18, %v11853_v18  ;;  %v25361_v3 = vpop.f32.mrb[71].mxu1  ;;  %20818 = vmatprep.mubr.bf16.mxu0 %v22650_v58 }
 0x592   : > { %v19133_v44 = vpack.c.bf16 %v11851_v46, %v11851_v46  ;;  %v19138_v62 = vpack.c.bf16 %v11856_v32, %v11856_v32  ;;  %v11854_v54 = vmul.f32 %v11773_v42, %v11602_v45  ;;  %v11569_v36 = vadd.f32 %v25300_v59, %v25159_v34  ;;  %v11803_v32 = vpop.permute.xlu0 %11802 }
 0x593   : > { %v12180_v49 = vor.u32 %v12179_v40, %v12176_v17  ;;  %v12204_v57 = vshrl.u32 %v19135_v14, 16  ;;  %v12207_v19 = vshll.u32 %v19135_v14, 16  ;;  %v11567_v23 = vadd.f32 %v25159_v34, %v25306_v63  ;;  %v11798_v30 = vpop.permute.xlu1 %11797 }
 0x594   : > { %v12184_v56 = vshrl.u32 %v19133_v44, 16  ;;  %v12187_v39 = vshll.u32 %v19133_v44, 16  ;;  %v12234_v33 = vshrl.u32 %v19138_v62, 16  ;;  %v12237_v38 = vshll.u32 %v19138_v62, 16 }
 0x595   : > { %v12181_v6 = vsel %vm24466_vm11, %v12172_v1, %v12180_v49  ;;  %v12182_v29 = vrot.slane %v12180_v49, 4  ;;  %v12206_v42 = vrot.slane %v12204_v57, 6  ;;  %v12209_v15 = vrot.slane %v12207_v19, 7 }
 0x596   : > { %12392 = vst [vmem:[#allocation2 + $0x58] sm:$0xf] %v12181_v6  ;;  %v12186_v59 = vrot.slane %v12184_v56, 6  ;;  %v12189_v28 = vrot.slane %v12187_v39, 7  ;;  %v12236_v37 = vrot.slane %v12234_v33, 6  ;;  %v12239_v7 = vrot.slane %v12237_v38, 7 }
 0x597   : > { %v12210_v16 = vor.u32 %v12209_v15, %v12206_v42  ;;  %v19136_v20 = vpack.c.bf16 %v11854_v54, %v11854_v54  ;;  %v11605_v63 = vmax.f32 %v11569_v36, 0.0  ;;  %v11603_v22 = vmax.f32 %v11567_v23, 0.0  ;;  %v22652_v12 = vld [vmem:[#allocation2 + $0x48] sm:$0xff]  }
 0x598   : > { %v12190_v61 = vor.u32 %v12189_v28, %v12186_v59  ;;  %v25369_v21 = vor.u32 %v12239_v7, %v12236_v37  ;;  %v11572_v1 = vadd.f32 %v25318_v53, %v25159_v34  ;;  %v11570_v50 = vadd.f32 %v25159_v34, %v25320_v52  ;;  %v22653_v11 = vld [vmem:[#allocation2 + $0x50] sm:$0xff]   ;;  %20819 = vmatmul.mubr.bf16.gmra.mrb[52].mxu0 %v22652_v12 }
 0x599   : > { %v12211_v2 = vsel %vm24466_vm11, %v12202_v24, %v12210_v16  ;;  %v12212_v31 = vrot.slane %v12210_v16, 4  ;;  %v12214_v25 = vshrl.u32 %v19136_v20, 16  ;;  %v12217_v27 = vshll.u32 %v19136_v20, 16  ;;  %20822 = vmatprep.mubr.bf16.mxu0 %v22653_v11  ;;  %v11813_v20 = vpop.permute.xlu0 %11812 }
 0x59a   : > { %12395 = vst [vmem:[#allocation2 + $0x64] sm:$0xf] %v12211_v2  ;;  %v12191_v35 = vsel %vm24466_vm11, %v12182_v29, %v12190_v61  ;;  %v12192_v51 = vrot.slane %v12190_v61, 4  ;;  %v12242_v41 = vrot.slane %v25369_v21, 4  ;;  %v11857_v53 = vmul.f32 %v11788_v48, %v11605_v63  ;;  %v11808_v48 = vpop.permute.xlu1 %11807 }
 0x59b   : > { %12393 = vst [vmem:[#allocation2 + $0x5c] sm:$0xf] %v12191_v35  ;;  %v12216_v52 = vrot.slane %v12214_v25, 6  ;;  %v12219_v18 = vrot.slane %v12217_v27, 7  ;;  %v11855_v26 = vmul.f32 %v25343_v55, %v11603_v22  ;;  %v11608_v46 = vmax.f32 %v11572_v1, 0.0 }
 0x59c   : > { %v12201_v45 = vsel %vm24466_vm11, %v12192_v51, %v25351_v13  ;;  %v19139_v58 = vpack.c.bf16 %v11857_v53, %v11857_v53  ;;  %v11606_v24 = vmax.f32 %v11570_v50, 0.0  ;;  %v11573_v17 = vadd.f32 %v25325_v8, %v25159_v34 }
 0x59d   : > { %12394 = vst [vmem:[#allocation2 + $0x60] sm:$0xf] %v12201_v45  ;;  %v12220_v40 = vor.u32 %v12219_v18, %v12216_v52  ;;  %v19137_v14 = vpack.c.bf16 %v11855_v26, %v11855_v26  ;;  %v11860_v44 = vmul.f32 %v11803_v32, %v11608_v46  ;;  %v11571_v62 = vadd.f32 %v25159_v34, %v25331_v9  ;;  %v22884_v52 = vld [vmem:[%s25960_s4] ss:$0 sm:$0xff] }
 0x59e   : > { %v12244_v54 = vshrl.u32 %v19139_v58, 16  ;;  %v12247_v55 = vshll.u32 %v19139_v58, 16  ;;  %v11858_v36 = vmul.f32 %v11793_v4, %v11606_v24  ;;  %v11609_v49 = vmax.f32 %v11573_v17, 0.0  ;;  %v11818_v51 = vpop.permute.xlu1 %11817 }
 0x59f   : > { %v12221_v57 = vsel %vm24466_vm11, %v12212_v31, %v12220_v40  ;;  %v12222_v13 = vrot.slane %v12220_v40, 4  ;;  %v12224_v19 = vshrl.u32 %v19137_v14, 16  ;;  %v12227_v23 = vshll.u32 %v19137_v14, 16 }
 0x5a0   : > { %12396 = vst [vmem:[#allocation2 + $0x68] sm:$0xf] %v12221_v57  ;;  %v12246_v8 = vrot.slane %v12244_v54, 6  ;;  %v12249_v56 = vrot.slane %v12247_v55, 7  ;;  %v19142_v39 = vpack.c.bf16 %v11860_v44, %v11860_v44  ;;  %v19140_v33 = vpack.c.bf16 %v11858_v36, %v11858_v36 }
 0x5a1   : > { %v12226_v38 = vrot.slane %v12224_v19, 6  ;;  %v12229_v6 = vrot.slane %v12227_v23, 7  ;;  %v11861_v29 = vmul.f32 %v11808_v48, %v11609_v49  ;;  %v11607_v34 = vmax.f32 %v11571_v62, 0.0 }
 0x5a2   : > { %v12250_v9 = vor.u32 %v12249_v56, %v12246_v8  ;;  %v12274_v42 = vshrl.u32 %v19142_v39, 16  ;;  %v12277_v15 = vshll.u32 %v19142_v39, 16  ;;  %v12254_v4 = vshrl.u32 %v19140_v33, 16  ;;  %v22655_v59 = vld [vmem:[#allocation2 + $0x58] sm:$0xff]   ;;  %v11828_v19 = vpop.permute.xlu1 %11827 }
 0x5a3   : > { %v12230_v28 = vor.u32 %v12229_v6, %v12226_v38  ;;  %v12257_v37 = vshll.u32 %v19140_v33, 16  ;;  %v19143_v7 = vpack.c.bf16 %v11861_v29, %v11861_v29  ;;  %v11859_v16 = vmul.f32 %v11798_v30, %v11607_v34  ;;  %20823 = vmatmul.mubr.bf16.gmra.mrb[56].mxu0 %v22655_v59 }
 0x5a4   : > { %v12251_v63 = vsel %vm24466_vm11, %v12242_v41, %v12250_v9  ;;  %v12252_v22 = vrot.slane %v12250_v9, 4  ;;  %v12276_v12 = vrot.slane %v12274_v42, 6  ;;  %v12279_v61 = vrot.slane %v12277_v15, 7  ;;  %v22656_v1 = vld [vmem:[#allocation2 + $0x60] sm:$0xff]  }
 0x5a5   : > { %12399 = vst [vmem:[#allocation2 + $0x74] sm:$0xf] %v12251_v63  ;;  %v12231_v50 = vsel %vm24466_vm11, %v12222_v13, %v12230_v28  ;;  %v12232_v11 = vrot.slane %v12230_v28, 4  ;;  %v12256_v2 = vrot.slane %v12254_v4, 6  ;;  %v12259_v31 = vrot.slane %v12257_v37, 7  ;;  %20826 = vmatprep.mubr.bf16.mxu0 %v22656_v1 }
 0x5a6   : > { %12397 = vst [vmem:[#allocation2 + $0x6c] sm:$0xf] %v12231_v50  ;;  %v12280_v25 = vor.u32 %v12279_v61, %v12276_v12  ;;  %v12284_v27 = vshrl.u32 %v19143_v7, 16  ;;  %v12287_v30 = vshll.u32 %v19143_v7, 16  ;;  %v19141_v35 = vpack.c.bf16 %v11859_v16, %v11859_v16 }
 0x5a7   : > { %v12241_v41 = vsel %vm24466_vm11, %v12232_v11, %v25369_v21  ;;  %v12260_v53 = vor.u32 %v12259_v31, %v12256_v2  ;;  %v11576_v18 = vadd.f32 %v22884_v52, %v25349_v43  ;;  %v11574_v26 = vadd.f32 %v22884_v52, %v25353_v5  ;;  %v11823_v21 = vpop.permute.xlu0 %11822 }
 0x5a8   : > { %12398 = vst [vmem:[#allocation2 + $0x70] sm:$0xf] %v12241_v41  ;;  %v12282_v46 = vrot.slane %v12280_v25, 4  ;;  %v12286_v32 = vrot.slane %v12284_v27, 6  ;;  %v12289_v45 = vrot.slane %v12287_v30, 7  ;;  %v12264_v58 = vshrl.u32 %v19141_v35, 16 }
 0x5a9   : > { %v12261_v24 = vsel %vm24466_vm11, %v12252_v22, %v12260_v53  ;;  %v12267_v17 = vshll.u32 %v19141_v35, 16  ;;  %v11612_v40 = vmax.f32 %v11576_v18, 0.0  ;;  %v11610_v62 = vmax.f32 %v11574_v26, 0.0  ;;  %v22665_v27 = vld [vmem:[#allocation2] sm:$0xff]   ;;  %v12408_v26 = vld [vmem:[#allocation2 + $0x98] sm:$0x3] }
 0x5aa   : > { %12400 = vst [vmem:[#allocation2 + $0x78] sm:$0xf] %v12261_v24  ;;  %v12290_v14 = vor.u32 %v12289_v45, %v12286_v32  ;;  %v12266_v44 = vrot.slane %v12264_v58, 6  ;;  %v11577_v54 = vadd.f32 %v22884_v52, %v25358_v60  ;;  %v12262_v43 = vrot.slane %v12260_v53, 4  ;;  %v22666_v45 = vld [vmem:[#allocation2 + $0x8] sm:$0xff]  }
 0x5ab   : > { %v12269_v55 = vrot.slane %v12267_v17, 7  ;;  %v11864_v5 = vmul.f32 %v11823_v21, %v11612_v40  ;;  %v11575_v36 = vadd.f32 %v22884_v52, %v25361_v3  ;;  %v11862_v57 = vmul.f32 %v11813_v20, %v11610_v62 }
 0x5ac   : > { %v12291_v49 = vsel %vm24466_vm11, %v12282_v46, %v12290_v14  ;;  %v11613_v13 = vmax.f32 %v11577_v54, 0.0  ;;  %v12292_v12 = vrot.slane %v12290_v14, 4  ;;  %v13018_v58 = vshll.u32 %v22665_v27, 16  ;;  %v22667_v54 = vld [vmem:[#allocation2 + $0x10] sm:$0xff]  }
 0x5ad   : > { %12403 = vst [vmem:[#allocation2 + $0x84] sm:$0xf] %v12291_v49  ;;  %v12270_v23 = vor.u32 %v12269_v55, %v12266_v44  ;;  %v19146_v48 = vpack.c.bf16 %v11864_v5, %v11864_v5  ;;  %v11611_v8 = vmax.f32 %v11575_v36, 0.0  ;;  %v22658_v56 = vld [vmem:[#allocation2 + $0x68] sm:$0xff]   ;;  %v19144_v39 = vpack.c.bf16 %v11862_v57, %v11862_v57  ;;  %v22669_v5 = vld [vmem:[#allocation2 + $0x18] sm:$0xff]  }
 0x5ae   : > { %v11865_v33 = vmul.f32 %v11828_v19, %v11613_v13  ;;  %20827 = vmatmul.mubr.bf16.gmra.mrb[60].mxu0 %v22658_v56  ;;  %v13016_v14 = vshrl.u32 %v22665_v27, 16  ;;  %v13020_v44 = vrot.slane %v13018_v58, 1  ;;  %v13023_v62 = vshll.u32 %v22666_v45, 16  ;;  %v22671_v56 = vld [vmem:[#allocation2 + $0x28] sm:$0xff]   ;;  %v22680_v58 = vld [vmem:[#allocation2 + $0x58] sm:$0xff]  }
 0x5af   : > { %v12271_v60 = vsel %vm24466_vm11, %v12262_v43, %v12270_v23  ;;  %v12272_v38 = vrot.slane %v12270_v23, 4  ;;  %v12314_v6 = vshrl.u32 %v19146_v48, 16  ;;  %v12317_v29 = vshll.u32 %v19146_v48, 16  ;;  %v22659_v3 = vld [vmem:[#allocation2 + $0x70] sm:$0xff]   ;;  %v22670_v23 = vld [vmem:[#allocation2 + $0x20] sm:$0xff]  }
 0x5b0   : > { %12401 = vst [vmem:[#allocation2 + $0x7c] sm:$0xf] %v12271_v60  ;;  %v12294_v34 = vshrl.u32 %v19144_v39, 16  ;;  %v12297_v9 = vshll.u32 %v19144_v39, 16  ;;  %v19147_v42 = vpack.c.bf16 %v11865_v33, %v11865_v33  ;;  %v11863_v15 = vmul.f32 %v11818_v51, %v11611_v8  ;;  %20830 = vmatprep.mubr.bf16.mxu0 %v22659_v3  ;;  %v22672_v60 = vld [vmem:[%s25961_s5 + $0x88] sm:$0xff]  }
 0x5b1   : > { %v12281_v4 = vsel %vm24466_vm11, %v12272_v38, %v12280_v25  ;;  %v12316_v59 = vrot.slane %v12314_v6, 6  ;;  %v12319_v28 = vrot.slane %v12317_v29, 7  ;;  %v13021_v43 = vor.u32 %v13020_v44, %v13016_v14 }
 0x5b2   : > { %12402 = vst [vmem:[#allocation2 + $0x80] sm:$0xf] %v12281_v4  ;;  %v12296_v37 = vrot.slane %v12294_v34, 6  ;;  %v12299_v7 = vrot.slane %v12297_v9, 7  ;;  %v12324_v16 = vshrl.u32 %v19147_v42, 16  ;;  %v12327_v20 = vshll.u32 %v19147_v42, 16 }
 0x5b3   : > { %v12320_v63 = vor.u32 %v12319_v28, %v12316_v59  ;;  %v19145_v22 = vpack.c.bf16 %v11863_v15, %v11863_v15  ;;  %v13025_v55 = vrot.slane %v13023_v62, 1  ;;  %v13031_v36 = vshll.u32 %v22667_v54, 16  ;;  %v22675_v34 = vld [vmem:[%s25961_s5 + $0x90] sm:$0xff]   ;;  %v22674_v4 = vld [vmem:[#allocation2 + $0x38] sm:$0xff]  }
 0x5b4   : > { %v12300_v61 = vor.u32 %v12299_v7, %v12296_v37  ;;  %v12326_v1 = vrot.slane %v12324_v16, 6  ;;  %v12329_v50 = vrot.slane %v12327_v20, 7  ;;  %v13039_v57 = vshll.u32 %v22669_v5, 16  ;;  %v22673_v42 = vld [vmem:[#allocation2 + $0x30] sm:$0xff]  }
 0x5b5   : > { %v12322_v11 = vrot.slane %v12320_v63, 4  ;;  %v12304_v2 = vshrl.u32 %v19145_v22, 16  ;;  %v12307_v31 = vshll.u32 %v19145_v22, 16  ;;  %v13026_v49 = vsel %vm1021_vm2, %v13021_v43, %v13025_v55 }
 0x5b6   : > { %v12301_v25 = vsel %vm24466_vm11, %v12292_v12, %v12300_v61  ;;  %v12330_v30 = vor.u32 %v12329_v50, %v12326_v1  ;;  %v12302_v35 = vrot.slane %v12300_v61, 4  ;;  %v13027_v13 = vshrl.u32 %v22666_v45, 16  ;;  %v22676_v61 = vld [vmem:[#allocation2 + $0x40] sm:$0xff]  }
 0x5b7   : > { %12404 = vst [vmem:[#allocation2 + $0x88] sm:$0xf] %v12301_v25  ;;  %v12306_v51 = vrot.slane %v12304_v2, 6  ;;  %v12309_v41 = vrot.slane %v12307_v31, 7  ;;  %v22661_v53 = vld [vmem:[#allocation2 + $0x78] sm:$0xff]   ;;  %v13033_v19 = vrot.slane %v13031_v36, 1 }
 0x5b8   : > { %v12331_v52 = vsel %vm24466_vm11, %v12322_v11, %v12330_v30  ;;  %v12332_v18 = vrot.slane %v12330_v30, 4  ;;  %20831 = vmatmul.mubr.bf16.gmra.mrb[64].mxu0 %v22661_v53  ;;  %v13029_v0 = vor.u32 %v13027_v13, %v13025_v55  ;;  %v13035_v48 = vshrl.u32 %v22667_v54, 16  ;;  %v22681_v1 = vld [vmem:[%s25961_s5 + $0xa0] sm:$0xff]   ;;  %v22677_v31 = vld [vmem:[#allocation2 + $0x48] sm:$0xff]  }
 0x5b9   : > { %12407 = vst [vmem:[#allocation2 + $0x94] sm:$0xf] %v12331_v52  ;;  %v12310_v46 = vor.u32 %v12309_v41, %v12306_v51  ;;  %v22662_v32 = vld [vmem:[#allocation2 + $0x80] sm:$0xff]   ;;  %v13041_v8 = vrot.slane %v13039_v57, 1  ;;  %v13047_v33 = vshll.u32 %v22670_v23, 16  ;;  %v13055_v29 = vshll.u32 %v22671_v56, 16 }
 0x5ba   : > { %v12409_v24 = vsel %vm24788_vm13, %v12332_v18, %v12408_v26  ;;  %20834 = vmatprep.mubr.bf16.mxu0 %v22662_v32  ;;  %v13037_v39 = vor.u32 %v13035_v48, %v13033_v19  ;;  %v13034_v38 = vsel %vm1021_vm2, %v13029_v0, %v13033_v19  ;;  %v13043_v3 = vshrl.u32 %v22669_v5, 16  ;;  %v22684_v30 = vld [vmem:[%s25961_s5 + $0xa8] sm:$0xff]   ;;  %v22687_v52 = vld [vmem:[%s25961_s5 + $0xb0] sm:$0xff]   ;;  %v25456_v54 = vld [vmem:[%s25961_s5 + $0xc0] sm:$0xff]  }
 0x5bb   : > { %12410 = vst [vmem:[#allocation2 + $0x98] sm:$0x3] %v12409_v24  ;;  %v12311_v17 = vsel %vm24466_vm11, %v12302_v35, %v12310_v46  ;;  %v12312_v40 = vrot.slane %v12310_v46, 4  ;;  %v13049_v9 = vrot.slane %v13047_v33, 1  ;;  %v13051_v59 = vshrl.u32 %v22670_v23, 16  ;;  %v22679_v26 = vld [vmem:[#allocation2 + $0x50] sm:$0xff]  }
 0x5bc   : > { %12405 = vst [vmem:[#allocation2 + $0x8c] sm:$0xf] %v12311_v17  ;;  %v13042_v6 = vsel %vm1021_vm2, %v13037_v39, %v13041_v8  ;;  %v13045_v15 = vor.u32 %v13043_v3, %v13041_v8  ;;  %v13057_v28 = vrot.slane %v13055_v29, 1  ;;  %v13063_v7 = vshll.u32 %v22673_v42, 16  ;;  %v22682_v55 = vld [vmem:[#allocation2 + $0x60] sm:$0xff]   ;;  %v22686_v33 = vld [vmem:[#allocation2 + $0x78] sm:$0xff]  }
 0x5bd   : > { %v12321_v21 = vsel %vm24466_vm11, %v12312_v40, %v12320_v63  ;;  %v13053_v37 = vor.u32 %v13051_v59, %v13049_v9  ;;  %v13071_v63 = vshll.u32 %v22674_v4, 16  ;;  %v13059_v22 = vshrl.u32 %v22671_v56, 16  ;;  %v22690_v40 = vld [vmem:[%s25961_s5 + $0xb8] sm:$0xff]   ;;  %v22685_v56 = vld [vmem:[#allocation2 + $0x70] sm:$0xff]  }
 0x5be   : > { %12406 = vst [vmem:[#allocation2 + $0x90] sm:$0xf] %v12321_v21  ;;  %v13050_v16 = vsel %vm1021_vm2, %v13045_v15, %v13049_v9  ;;  %v13065_v12 = vrot.slane %v13063_v7, 1  ;;  %v13067_v11 = vshrl.u32 %v22673_v42, 16  ;;  %v13079_v25 = vshll.u32 %v22676_v61, 16  ;;  %v22688_v15 = vld [vmem:[#allocation2 + $0x80] sm:$0xff]  }
 0x5bf   : > { %v13058_v20 = vsel %vm1021_vm2, %v13053_v37, %v13057_v28  ;;  %v13061_v50 = vor.u32 %v13059_v22, %v13057_v28  ;;  %v13073_v2 = vrot.slane %v13071_v63, 1  ;;  %v13087_v41 = vshll.u32 %v22677_v31, 16 }
 0x5c0   : > { %v13069_v27 = vor.u32 %v13067_v11, %v13065_v12  ;;  %v13075_v53 = vshrl.u32 %v22674_v4, 16  ;;  %v13081_v18 = vrot.slane %v13079_v25, 1  ;;  %v13083_v32 = vshrl.u32 %v22676_v61, 16 }
 0x5c1   : > { %v13066_v35 = vsel %vm1021_vm2, %v13061_v50, %v13065_v12  ;;  %v13089_v45 = vrot.slane %v13087_v41, 1  ;;  %v13095_v17 = vshll.u32 %v22679_v26, 16  ;;  %v13103_v44 = vshll.u32 %v22680_v58, 16 }
 0x5c2   : > { %v13074_v51 = vsel %vm1021_vm2, %v13069_v27, %v13073_v2  ;;  %v13077_v46 = vor.u32 %v13075_v53, %v13073_v2  ;;  %v13085_v24 = vor.u32 %v13083_v32, %v13081_v18  ;;  %v13091_v62 = vshrl.u32 %v22677_v31, 16  ;;  %v22692_v27 = vld [vmem:[#allocation2] sm:$0xfe]   ;;  %v22694_v32 = vld [vmem:[#allocation2 + $0x10] sm:$0xff]  }
 0x5c3   : > { %v22664_v47 = vld [vmem:[#allocation2 + $0x88] sm:$0xff]   ;;  %v13097_v43 = vrot.slane %v13095_v17, 1  ;;  %v13099_v36 = vshrl.u32 %v22679_v26, 16  ;;  %v13111_v13 = vshll.u32 %v22682_v55, 16  ;;  %v13107_v48 = vshrl.u32 %v22680_v58, 16  ;;  %v22696_v58 = vld [vmem:[#allocation2 + $0x18] sm:$0xff]  }
 0x5c4   : > { %20835 = vmatmul.mubr.bf16.gmra.mrb[68].mxu0 %v22664_v47  ;;  %v13082_v21 = vsel %vm1021_vm2, %v13077_v46, %v13081_v18  ;;  %v13090_v14 = vsel %vm1021_vm2, %v13085_v24, %v13089_v45  ;;  %v13093_v5 = vor.u32 %v13091_v62, %v13089_v45  ;;  %v22683_v47 = vld [vmem:[#allocation2 + $0x68] sm:$0xff]   ;;  %v13127_v29 = vshll.u32 %v22685_v56, 16 }
 0x5c5   : > { %20854 = vmatprep.mubr.bf16.mxu0 %v13026_v49  ;;  %v13105_v49 = vrot.slane %v13103_v44, 1  ;;  %v13101_v57 = vor.u32 %v13099_v36, %v13097_v43  ;;  %v13119_v0 = vshll.u32 %v22683_v47, 16  ;;  %v13113_v8 = vrot.slane %v13111_v13, 1  ;;  %v22689_v28 = vld [vmem:[#allocation2 + $0x88] sm:$0xff]   ;;  %v22708_v13 = vld [vmem:[%s25961_s5 + $0xe0] sm:$0xff]  }
 0x5c6   : > { %v13098_v19 = vsel %vm1021_vm2, %v13093_v5, %v13097_v43  ;;  %v13135_v9 = vshll.u32 %v22686_v33, 16  ;;  %v13123_v42 = vshrl.u32 %v22683_v47, 16  ;;  %v13129_v4 = vrot.slane %v13127_v29, 1  ;;  %v22698_v62 = vld [vmem:[#allocation2 + $0x28] sm:$0xff]   ;;  %v22705_v47 = vld [vmem:[%s25961_s5 + $0xd8] sm:$0xff]  }
 0x5c7   : > { %v13106_v23 = vsel %vm1021_vm2, %v13101_v57, %v13105_v49  ;;  %v13109_v39 = vor.u32 %v13107_v48, %v13105_v49  ;;  %v13131_v37 = vshrl.u32 %v22685_v56, 16  ;;  %v13151_v63 = vshll.u32 %v22689_v28, 16  ;;  %v22700_v49 = vld [vmem:[#allocation2 + $0x30] sm:$0xff]  }
 0x5c8   : > { %v13137_v7 = vrot.slane %v13135_v9, 1  ;;  %v13139_v12 = vshrl.u32 %v22686_v33, 16  ;;  %v13147_v11 = vshrl.u32 %v22688_v15, 16  ;;  %v13155_v41 = vshrl.u32 %v22689_v28, 16  ;;  %v22714_v33 = vld [vmem:[%s25961_s5 + $0xf0] sm:$0xff]   ;;  %v22707_v9 = vld [vmem:[#allocation2 + $0x58] sm:$0xff]  }
 0x5c9   : > { %v13114_v3 = vsel %vm1021_vm2, %v13109_v39, %v13113_v8  ;;  %v13153_v2 = vrot.slane %v13151_v63, 1  ;;  %v13661_v18 = vrot.slane %v22692_v27, 1  ;;  %v13664_v24 = vrot.slane %v22694_v32, 1  ;;  %v22704_v39 = vld [vmem:[#allocation2 + $0x48] sm:$0xff]   ;;  %v22709_v28 = vld [vmem:[#allocation2 + $0x60] sm:$0xff]   ;;  %v22712_v63 = vld [vmem:[#allocation2 + $0x70] sm:$0xff]  }
 0x5ca   : > { %v13141_v50 = vor.u32 %v13139_v12, %v13137_v7  ;;  %v13666_v17 = vrot.slane %v22696_v58, 1  ;;  %v13670_v5 = vrot.slane %v22698_v62, 1  ;;  %v22713_v12 = vld [vmem:[#allocation2 + $0x78] sm:$0xff]   ;;  %v22723_v58 = vld [vmem:[#allocation2 + $0x20] sm:$0xff]   ;;  %v22725_v62 = vld [vmem:[#allocation2 + $0x30] sm:$0xff]  }
 0x5cb   : > { %v13157_v53 = vor.u32 %v13155_v41, %v13153_v2  ;;  %v22720_v41 = vld [vmem:[#allocation2 + $0x10] sm:$0xff]   ;;  %v22721_v32 = vld [vmem:[#allocation2 + $0x18] sm:$0xff]  }
 0x5cc   : > { %20855 = vmatmul.mubr.bf16.vlgmr.msra.gmra.mrb[36].mxu0 %v13034_v38  ;;  %v13121_v38 = vrot.slane %v13119_v0, 1  ;;  %v13667_v44 = vsel %vm1668_vm3, %v13664_v24, %v13666_v17  ;;  %v22711_v0 = vld [vmem:[%s25961_s5 + $0xe8] sm:$0xff]  }
 0x5cd   : > { %20858 = vmatprep.mubr.bf16.mxu0 %v13042_v6  ;;  %20891 = vmatpush3.bf16.msra.mxu0 %v25314_v10  ;;  %v22678_v10 = vld [vmem:[%s25961_s5 + $0x98] sm:$0xff]  }
 0x5ce   : > { %20892 = vmatprep.subr.bf16.mxu0 %v22672_v60  ;;  %v13125_v59 = vor.u32 %v13123_v42, %v13121_v38  ;;  %v22722_v42 = vld [vmem:[%s25961_s5 + $0x100] sm:$0xff]  }
 0x5d1   : > { %20893 = vmatpush3.bf16.msra.mxu0 %v22672_v60  ;;  %v13115_v60 = vshrl.u32 %v22682_v55, 16  ;;  %v22702_v55 = vld [vmem:[%s25961_s5 + $0xd0] sm:$0xff]  }
 0x5d2   : > { %20894 = vmatprep.subr.bf16.mxu0 %v22675_v34 }
 0x5d3   : > { %v13117_v6 = vor.u32 %v13115_v60, %v13113_v8  ;;  %v22703_v8 = vld [vmem:[#allocation2 + $0x40] sm:$0xff]  }
 0x5d4   : > { %20859 = vmatmul.mubr.bf16.gmra.mrb[40].mxu0 %v13050_v16  ;;  %v13133_v16 = vor.u32 %v13131_v37, %v13129_v4  ;;  %v13676_v60 = vrot.slane %v22703_v8, 1  ;;  %v22730_v8 = vld [vmem:[#allocation2 + $0x48] sm:$0xff]  }
 0x5d5   : > { %20862 = vmatprep.mubr.bf16.mxu0 %v13058_v20  ;;  %20895 = vmatpush3.bf16.msra.mxu0 %v22675_v34  ;;  %v13122_v34 = vsel %vm1021_vm2, %v13117_v6, %v13121_v38  ;;  %v13130_v20 = vsel %vm1021_vm2, %v13125_v59, %v13129_v4  ;;  %v13678_v38 = vrot.slane %v22704_v39, 1  ;;  %v22717_v6 = vld [vmem:[%s25961_s5 + $0xf8] sm:$0xff]   ;;  %v13682_v4 = vrot.slane %v22707_v9, 1  ;;  %v22731_v39 = vld [vmem:[#allocation2 + $0x50] sm:$0xff]   ;;  %v22734_v9 = vld [vmem:[#allocation2 + $0x60] sm:$0xff]  }
 0x5d6   : > { %20896 = vmatprep.subr.bf16.mxu0 %v22678_v10  ;;  %v13138_v22 = vsel %vm1021_vm2, %v13133_v16, %v13137_v7  ;;  %v22710_v7 = vld [vmem:[#allocation2 + $0x68] sm:$0xff]  }
 0x5d7   : > { %v13686_v16 = vrot.slane %v22710_v7, 1  ;;  %v22737_v7 = vld [vmem:[#allocation2 + $0x70] sm:$0xff]  }
 0x5d9   : > { %20897 = vmatpush3.bf16.msra.mxu0 %v22678_v10  ;;  %v13143_v10 = vshll.u32 %v22688_v15, 16 }
 0x5da   : > { %20898 = vmatprep.subr.bf16.mxu0 %v22681_v1 }
 0x5db   : > { %v13145_v61 = vrot.slane %v13143_v10, 1  ;;  %v13684_v10 = vrot.slane %v22709_v28, 1  ;;  %v22736_v28 = vld [vmem:[#allocation2 + $0x68] sm:$0xff]  }
 0x5dc   : > { %20863 = vmatmul.mubr.bf16.gmra.mrb[44].mxu0 %v13066_v35 }
 0x5dd   : > { %20866 = vmatprep.mubr.bf16.mxu0 %v13074_v51  ;;  %20899 = vmatpush3.bf16.msra.mxu0 %v22681_v1  ;;  %v22691_v1 = vld [vmem:[#allocation2 + $0x90] ss:$0 sps:$4 sm:$0x11]   ;;  %v13149_v31 = vor.u32 %v13147_v11, %v13145_v61  ;;  %v13146_v25 = vsel %vm1021_vm2, %v13141_v50, %v13145_v61  ;;  %v22693_v51 = vld [vmem:[#allocation2 + $0x8] sm:$0xff]   ;;  %v13688_v61 = vrot.slane %v22712_v63, 1  ;;  %v22715_v11 = vld [vmem:[#allocation2 + $0x80] sm:$0xff]  }
 0x5de   : > { %20900 = vmatprep.subr.bf16.mxu0 %v22684_v30  ;;  %v13662_v26 = vrot.slane %v22693_v51, 1  ;;  %v13692_v27 = vrot.slane %v22715_v11, 1  ;;  %v22739_v63 = vld [vmem:[#allocation2 + $0x78] sm:$0xff]   ;;  %v22742_v11 = vld [vmem:[#allocation2 + $0x88] sm:$0xff]  }
 0x5df   : > { %v13154_v35 = vsel %vm1021_vm2, %v13149_v31, %v13153_v2  ;;  %v13689_v50 = vsel %vm1668_vm3, %v13686_v16, %v13688_v61  ;;  %v22716_v31 = vld [vmem:[#allocation2 + $0x88] sm:$0xff]  }
 0x5e0   : > { %v13663_v45 = vsel %vm1668_vm3, %v13661_v18, %v13662_v26  ;;  %v14197_v18 = vrot.slane %v22720_v41, 1 }
 0x5e1   : > { %20901 = vmatpush3.bf16.msra.mxu0 %v22684_v30  ;;  %v13159_v30 = vshll.u32 %v22691_v1, 16  ;;  %v13690_v1 = vrot.slane %v22713_v12, 1  ;;  %v22740_v12 = vld [vmem:[#allocation2 + $0x80] sm:$0xff]  }
 0x5e2   : > { %20902 = vmatprep.subr.bf16.mxu0 %v22687_v52 }
 0x5e3   : > { %v13691_v2 = vsel %vm1668_vm3, %v13688_v61, %v13690_v1  ;;  %v14223_v61 = vrot.slane %v22739_v63, 1  ;;  %v22759_v63 = vld [vmem:[%s25961_s5 + $0x158] sm:$0xff]  }
 0x5e4   : > { %20867 = vmatmul.mubr.bf16.gmra.mrb[48].mxu0 %v13082_v21  ;;  %v22699_v21 = vld [vmem:[%s25961_s5 + $0xc8] sm:$0xff]  }
 0x5e5   : > { %20870 = vmatprep.mubr.bf16.mxu0 %v13090_v14  ;;  %20903 = vmatpush3.bf16.msra.mxu0 %v22687_v52  ;;  %v13161_v52 = vrot.slane %v13159_v30, 1  ;;  %v13665_v14 = vsel %vm1668_vm3, %v13662_v26, %v13664_v24  ;;  %v13693_v30 = vsel %vm1668_vm3, %v13690_v1, %v13692_v27  ;;  %v14199_v24 = vrot.slane %v22721_v32, 1 }
 0x5e6   : > { %20904 = vmatprep.subr.bf16.mxu0 %v22690_v40  ;;  %v14225_v1 = vrot.slane %v22740_v12, 1 }
 0x5e7   : > { %v13162_v46 = vsel %vm1021_vm2, %v13157_v53, %v13161_v52  ;;  %v22719_v53 = vld [vmem:[#allocation2 + $0x8] sm:$0xfe]  }
 0x5e8   : > { %v14196_v26 = vrot.slane %v22719_v53, 1 }
 0x5e9   : > { %20905 = vmatpush3.bf16.msra.mxu0 %v22690_v40  ;;  %v22697_v40 = vld [vmem:[#allocation2 + $0x20] sm:$0xff]  }
 0x5ea   : > { %20942 = vmatprep.subr.bf16.mxu0 %v25456_v54  ;;  %v13668_v43 = vrot.slane %v22697_v40, 1  ;;  %v22726_v40 = vld [vmem:[%s25961_s5 + $0x108] sm:$0xff]  }
 0x5ec   : > { %20871 = vmatmul.mubr.bf16.gmra.mrb[52].mxu0 %v13098_v19  ;;  %v13669_v36 = vsel %vm1668_vm3, %v13666_v17, %v13668_v43  ;;  %v13671_v57 = vsel %vm1668_vm3, %v13668_v43, %v13670_v5  ;;  %v13672_v19 = vrot.slane %v22700_v49, 1  ;;  %v14201_v17 = vrot.slane %v22723_v58, 1  ;;  %v22729_v43 = vld [vmem:[%s25961_s5 + $0x110] sm:$0xff]   ;;  %v22727_v49 = vld [vmem:[#allocation2 + $0x38] sm:$0xff]  }
 0x5ed   : > { %20874 = vmatprep.mubr.bf16.mxu0 %v13106_v23 }
 0x5ee   : > { %v13673_v48 = vsel %vm1668_vm3, %v13670_v5, %v13672_v19  ;;  %v14205_v5 = vrot.slane %v22725_v62, 1 }
 0x5f4   : > { %20875 = vmatmul.mubr.bf16.gmra.mrb[56].mxu0 %v13114_v3  ;;  %v22706_v3 = vld [vmem:[#allocation2 + $0x50] sm:$0xff]  }
 0x5f5   : > { %20878 = vmatprep.mubr.bf16.mxu0 %v13122_v34  ;;  %v13679_v34 = vsel %vm1668_vm3, %v13676_v60, %v13678_v38  ;;  %v13680_v15 = vrot.slane %v22706_v3, 1  ;;  %v22733_v3 = vld [vmem:[#allocation2 + $0x58] sm:$0xff]  }
 0x5f7   : > { %v13681_v59 = vsel %vm1668_vm3, %v13678_v38, %v13680_v15  ;;  %v13683_v37 = vsel %vm1668_vm3, %v13680_v15, %v13682_v4  ;;  %v14213_v38 = vrot.slane %v22731_v39, 1  ;;  %v14215_v15 = vrot.slane %v22733_v3, 1  ;;  %v22754_v3 = vld [vmem:[#allocation2 + $0x38] sm:$0xff]  }
 0x5fc   : > { %20879 = vmatmul.mubr.bf16.gmra.mrb[60].mxu0 %v13130_v20  ;;  %v13685_v20 = vsel %vm1668_vm3, %v13682_v4, %v13684_v10  ;;  %v14217_v4 = vrot.slane %v22734_v9, 1 }
 0x5fd   : > { %20882 = vmatprep.mubr.bf16.mxu0 %v13138_v22  ;;  %v13687_v22 = vsel %vm1668_vm3, %v13684_v10, %v13686_v16  ;;  %v14219_v10 = vrot.slane %v22736_v28, 1  ;;  %v14221_v16 = vrot.slane %v22737_v7, 1  ;;  %v14788_v7 = vshll.u32 %v22754_v3, 16 }
 0x5ff   : > { %v14790_v12 = vrot.slane %v14788_v7, 2 }
 0x604   : > { %20883 = vmatmul.mubr.bf16.gmra.mrb[64].mxu0 %v13146_v25  ;;  %v13694_v25 = vrot.slane %v22716_v31, 1  ;;  %v22743_v31 = vld [vmem:[#allocation2 + $0x90] sm:$0xff]  }
 0x605   : > { %20886 = vmatprep.mubr.bf16.mxu0 %v13154_v35  ;;  %v22718_v35 = vld [vmem:[#allocation2 + $0x90] ss:$0 sps:$4 sm:$0x11]  }
 0x606   : > { %v13695_v51 = vsel %vm1668_vm3, %v13692_v27, %v13694_v25  ;;  %v13696_v52 = vrot.slane %v22718_v35, 1  ;;  %v22747_v27 = vld [vmem:[#allocation2 + $0x10] sm:$0xff]   ;;  %v14229_v35 = vrot.slane %v22743_v31, 1  ;;  %v22762_v31 = vld [vmem:[%s25961_s5 + $0x160] sm:$0xff]  }
 0x607   : > { %v14743_v41 = vshll.u32 %v22747_v27, 16 }
 0x609   : > { %v14745_v58 = vrot.slane %v14743_v41, 2 }
 0x60c   : > { %20887 = vmatmul.mubr.bf16.gmra.mrb[68].mxu0 %v13162_v46  ;;  %v13697_v46 = vsel %vm1668_vm3, %v13694_v25, %v13696_v52  ;;  %v22746_v25 = vld [vmem:[#allocation2 + $0x8] sm:$0xfe]  }
 0x60d   : > { %20906 = vmatprep.mubr.bf16.mxu0 %v13663_v45  ;;  %v14198_v45 = vsel %vm1668_vm3, %v14196_v26, %v14197_v18  ;;  %v14732_v53 = vshrl.u32 %v22746_v25, 16  ;;  %v14735_v52 = vshll.u32 %v22746_v25, 16  ;;  %v22745_v26 = vld [vmem:[#allocation2 + $0x98] ss:$0 sps:$4 sm:$0x11]  }
 0x614   : > { %20907 = vmatmul.mubr.bf16.vlgmr.msra.gmra.mrb[36].mxu0 %v13665_v14  ;;  %v22724_v14 = vld [vmem:[#allocation2 + $0x28] sm:$0xff]  }
 0x615   : > { %20910 = vmatprep.mubr.bf16.mxu0 %v13667_v44  ;;  %20943 = vmatpush3.bf16.msra.mxu0 %v25456_v54  ;;  %v22701_v54 = vld [vmem:[#allocation2 + $0x38] sm:$0xff]   ;;  %v14202_v44 = vsel %vm1668_vm3, %v14199_v24, %v14201_v17 }
 0x616   : > { %20944 = vmatprep.subr.bf16.mxu0 %v22699_v21  ;;  %v13674_v23 = vrot.slane %v22701_v54, 1  ;;  %v22728_v54 = vld [vmem:[#allocation2 + $0x40] sm:$0xff]  }
 0x618   : > { %v13675_v56 = vsel %vm1668_vm3, %v13672_v19, %v13674_v23  ;;  %v13677_v29 = vsel %vm1668_vm3, %v13674_v23, %v13676_v60  ;;  %v14207_v19 = vrot.slane %v22727_v49, 1  ;;  %v14209_v23 = vrot.slane %v22728_v54, 1 }
 0x619   : > { %20945 = vmatpush3.bf16.msra.mxu0 %v22699_v21  ;;  %v14200_v21 = vsel %vm1668_vm3, %v14197_v18, %v14199_v24  ;;  %v14211_v60 = vrot.slane %v22730_v8, 1  ;;  %v22750_v24 = vld [vmem:[#allocation2 + $0x20] sm:$0xff]  }
 0x61a   : > { %20946 = vmatprep.subr.bf16.mxu0 %v22702_v55 }
 0x61c   : > { %20911 = vmatmul.mubr.bf16.gmra.mrb[40].mxu0 %v13669_v36 }
 0x61d   : > { %20914 = vmatprep.mubr.bf16.mxu0 %v13671_v57  ;;  %20947 = vmatpush3.bf16.msra.mxu0 %v22702_v55  ;;  %v14203_v55 = vrot.slane %v22724_v14, 1 }
 0x61e   : > { %20948 = vmatprep.subr.bf16.mxu0 %v22705_v47 }
 0x61f   : > { %v14204_v36 = vsel %vm1668_vm3, %v14201_v17, %v14203_v55  ;;  %v14206_v57 = vsel %vm1668_vm3, %v14203_v55, %v14205_v5  ;;  %v14734_v17 = vrot.slane %v14732_v53, 1  ;;  %v14761_v55 = vshll.u32 %v22750_v24, 16  ;;  %v22765_v53 = vld [vmem:[%s25961_s5 + $0x168] sm:$0xff]  }
 0x621   : > { %20949 = vmatpush3.bf16.msra.mxu0 %v22705_v47  ;;  %v22732_v47 = vld [vmem:[%s25961_s5 + $0x118] sm:$0xff]  }
 0x622   : > { %20950 = vmatprep.subr.bf16.mxu0 %v22708_v13 }
 0x624   : > { %20915 = vmatmul.mubr.bf16.gmra.mrb[44].mxu0 %v13673_v48  ;;  %v14208_v48 = vsel %vm1668_vm3, %v14205_v5, %v14207_v19 }
 0x625   : > { %20918 = vmatprep.mubr.bf16.mxu0 %v13675_v56  ;;  %20951 = vmatpush3.bf16.msra.mxu0 %v22708_v13  ;;  %v22735_v13 = vld [vmem:[%s25961_s5 + $0x120] sm:$0xff]   ;;  %v14210_v56 = vsel %vm1668_vm3, %v14207_v19, %v14209_v23  ;;  %v14763_v19 = vrot.slane %v14761_v55, 2  ;;  %v22771_v55 = vld [vmem:[%s25961_s5 + $0x178] sm:$0xff]  }
 0x626   : > { %20952 = vmatprep.subr.bf16.mxu0 %v22711_v0 }
 0x629   : > { %20953 = vmatpush3.bf16.msra.mxu0 %v22711_v0  ;;  %v22738_v0 = vld [vmem:[%s25961_s5 + $0x128] sm:$0xff]  }
 0x62a   : > { %20954 = vmatprep.subr.bf16.mxu0 %v22714_v33 }
 0x62c   : > { %20919 = vmatmul.mubr.bf16.gmra.mrb[48].mxu0 %v13677_v29  ;;  %v14212_v29 = vsel %vm1668_vm3, %v14209_v23, %v14211_v60  ;;  %v22752_v23 = vld [vmem:[#allocation2 + $0x30] sm:$0xff]  }
 0x62d   : > { %20922 = vmatprep.mubr.bf16.mxu0 %v13679_v34  ;;  %20955 = vmatpush3.bf16.msra.mxu0 %v22714_v33  ;;  %v22741_v33 = vld [vmem:[%s25961_s5 + $0x130] sm:$0xff]   ;;  %v14214_v34 = vsel %vm1668_vm3, %v14211_v60, %v14213_v38  ;;  %v14776_v39 = vshrl.u32 %v22752_v23, 16  ;;  %v22753_v60 = vld [vmem:[%s25961_s5 + $0x148] sm:$0xff]  }
 0x62e   : > { %20956 = vmatprep.subr.bf16.mxu0 %v22717_v6 }
 0x62f   : > { %v14778_v9 = vrot.slane %v14776_v39, 1 }
 0x631   : > { %20957 = vmatpush3.bf16.msra.mxu0 %v22717_v6  ;;  %v22744_v6 = vld [vmem:[%s25961_s5 + $0x138] sm:$0xff]  }
 0x632   : > { %20994 = vmatprep.subr.bf16.mxu0 %v22722_v42 }
 0x634   : > { %20923 = vmatmul.mubr.bf16.gmra.mrb[52].mxu0 %v13681_v59  ;;  %v14216_v59 = vsel %vm1668_vm3, %v14213_v38, %v14215_v15 }
 0x635   : > { %20926 = vmatprep.mubr.bf16.mxu0 %v13683_v37  ;;  %v14218_v37 = vsel %vm1668_vm3, %v14215_v15, %v14217_v4 }
 0x63c   : > { %20927 = vmatmul.mubr.bf16.gmra.mrb[56].mxu0 %v13685_v20  ;;  %v14220_v20 = vsel %vm1668_vm3, %v14217_v4, %v14219_v10  ;;  %v22755_v4 = vld [vmem:[#allocation2 + $0x40] sm:$0xff]  }
 0x63d   : > { %20930 = vmatprep.mubr.bf16.mxu0 %v13687_v22  ;;  %v14222_v22 = vsel %vm1668_vm3, %v14219_v10, %v14221_v16 }
 0x644   : > { %20931 = vmatmul.mubr.bf16.gmra.mrb[60].mxu0 %v13689_v50  ;;  %v14224_v50 = vsel %vm1668_vm3, %v14221_v16, %v14223_v61  ;;  %v14794_v16 = vshrl.u32 %v22755_v4, 16 }
 0x645   : > { %20934 = vmatprep.mubr.bf16.mxu0 %v13691_v2  ;;  %v14226_v2 = vsel %vm1668_vm3, %v14223_v61, %v14225_v1  ;;  %v22757_v61 = vld [vmem:[#allocation2 + $0x48] sm:$0xff]  }
 0x646   : > { %v14803_v25 = vshrl.u32 %v22757_v61, 16 }
 0x64c   : > { %20935 = vmatmul.mubr.bf16.gmra.mrb[64].mxu0 %v13693_v30  ;;  %v14227_v30 = vrot.slane %v22742_v11, 1 }
 0x64d   : > { %20938 = vmatprep.mubr.bf16.mxu0 %v13695_v51  ;;  %v14740_v51 = vshrl.u32 %v22747_v27, 16 }
 0x64e   : > { %v14228_v18 = vsel %vm1668_vm3, %v14225_v1, %v14227_v30  ;;  %v14230_v32 = vsel %vm1668_vm3, %v14227_v30, %v14229_v35  ;;  %v14806_v30 = vshll.u32 %v22757_v61, 16 }
 0x654   : > { %20939 = vmatmul.mubr.bf16.gmra.mrb[68].mxu0 %v13697_v46  ;;  %v22748_v46 = vld [vmem:[#allocation2 + $0x18] sm:$0xff]  }
 0x655   : > { %20958 = vmatprep.mubr.bf16.mxu0 %v14198_v45  ;;  %v14742_v45 = vrot.slane %v14740_v51, 1  ;;  %v14749_v14 = vshrl.u32 %v22748_v46, 16 }
 0x657   : > { %v14746_v62 = vor.u32 %v14745_v58, %v14742_v45 }
 0x65c   : > { %20959 = vmatmul.mubr.bf16.vlgmr.msra.gmra.mrb[36].mxu0 %v14200_v21  ;;  %v14231_v21 = vrot.slane %v22745_v26, 1  ;;  %v14808_v26 = vrot.slane %v14806_v30, 2 }
 0x65d   : > { %20962 = vmatprep.mubr.bf16.mxu0 %v14202_v44  ;;  %20995 = vmatpush3.bf16.msra.mxu0 %v22722_v42  ;;  %v25544_v42 = vld [vmem:[%s25961_s5 + $0x140] sm:$0xff]   ;;  %v14752_v44 = vshll.u32 %v22748_v46, 16  ;;  %v22760_v46 = vld [vmem:[#allocation2 + $0x58] sm:$0xff]  }
 0x65e   : > { %20996 = vmatprep.subr.bf16.mxu0 %v22726_v40 }
 0x65f   : > { %v14754_v49 = vrot.slane %v14752_v44, 2 }
 0x661   : > { %20997 = vmatpush3.bf16.msra.mxu0 %v22726_v40  ;;  %v14737_v40 = vrot.slane %v14735_v52, 2 }
 0x662   : > { %20998 = vmatprep.subr.bf16.mxu0 %v22729_v43 }
 0x663   : > { %v14738_v5 = vor.u32 %v14737_v40, %v14734_v17  ;;  %v22768_v17 = vld [vmem:[%s25961_s5 + $0x170] sm:$0xff]  }
 0x664   : > { %20963 = vmatmul.mubr.bf16.gmra.mrb[40].mxu0 %v14204_v36  ;;  %v14751_v36 = vrot.slane %v14749_v14, 1  ;;  %v14824_v14 = vshll.u32 %v22760_v46, 16 }
 0x665   : > { %20966 = vmatprep.mubr.bf16.mxu0 %v14206_v57  ;;  %20999 = vmatpush3.bf16.msra.mxu0 %v22729_v43  ;;  %v14758_v43 = vshrl.u32 %v22750_v24, 16  ;;  %v22751_v57 = vld [vmem:[#allocation2 + $0x28] sm:$0xff]   ;;  %v14747_v54 = vsel %vm2739_vm0, %v14738_v5, %v14746_v62  ;;  %v22761_v24 = vld [vmem:[#allocation2 + $0x60] sm:$0xff]  }
 0x666   : > { %21000 = vmatprep.subr.bf16.mxu0 %v22732_v47  ;;  %v14770_v8 = vshll.u32 %v22751_v57, 16 }
 0x669   : > { %21001 = vmatpush3.bf16.msra.mxu0 %v22732_v47  ;;  %v14232_v47 = vsel %vm1668_vm3, %v14229_v35, %v14231_v21  ;;  %v14821_v21 = vshrl.u32 %v22760_v46, 16 }
 0x66a   : > { %21002 = vmatprep.subr.bf16.mxu0 %v22735_v13 }
 0x66c   : > { %20967 = vmatmul.mubr.bf16.gmra.mrb[44].mxu0 %v14208_v48  ;;  %v14767_v48 = vshrl.u32 %v22751_v57, 16 }
 0x66d   : > { %20970 = vmatprep.mubr.bf16.mxu0 %v14210_v56  ;;  %21003 = vmatpush3.bf16.msra.mxu0 %v22735_v13  ;;  %v14760_v13 = vrot.slane %v14758_v43, 1  ;;  %v14833_v43 = vshll.u32 %v22761_v24, 16 }
 0x66e   : > { %21004 = vmatprep.subr.bf16.mxu0 %v22738_v0 }
 0x66f   : > { %v14764_v56 = vor.u32 %v14763_v19, %v14760_v13  ;;  %v14835_v13 = vrot.slane %v14833_v43, 2  ;;  %v22764_v19 = vld [vmem:[#allocation2 + $0x70] sm:$0xff]  }
 0x670   : > { %v14848_v39 = vshrl.u32 %v22764_v19, 16 }
 0x671   : > { %21005 = vmatpush3.bf16.msra.mxu0 %v22738_v0  ;;  %v14755_v0 = vor.u32 %v14754_v49, %v14751_v36  ;;  %v14826_v36 = vrot.slane %v14824_v14, 2  ;;  %v22763_v49 = vld [vmem:[#allocation2 + $0x68] sm:$0xff]  }
 0x672   : > { %21006 = vmatprep.subr.bf16.mxu0 %v22741_v33  ;;  %v22773_v14 = vld [vmem:[#allocation2 + $0x8] sm:$0xfc]  }
 0x673   : > { %v14756_v38 = vsel %vm2739_vm0, %v14746_v62, %v14755_v0  ;;  %v14830_v62 = vshrl.u32 %v22761_v24, 16  ;;  %v15399_v43 = vrot.slane %v22773_v14, 2  ;;  %v22800_v14 = vld [vmem:[#allocation2 + $0x10] sm:$0xfc]  }
 0x674   : > { %20971 = vmatmul.mubr.bf16.gmra.mrb[48].mxu0 %v14212_v29  ;;  %v14772_v29 = vrot.slane %v14770_v8, 2  ;;  %v14842_v8 = vshll.u32 %v22763_v49, 16 }
 0x675   : > { %20974 = vmatprep.mubr.bf16.mxu0 %v14214_v34  ;;  %21007 = vmatpush3.bf16.msra.mxu0 %v22741_v33  ;;  %v14779_v33 = vshll.u32 %v22752_v23, 16  ;;  %v14765_v34 = vsel %vm2739_vm0, %v14755_v0, %v14764_v56  ;;  %v25590_v23 = vld [vmem:[%s25961_s5 + $0x180] sm:$0xff]  }
 0x676   : > { %21008 = vmatprep.subr.bf16.mxu0 %v22744_v6 }
 0x677   : > { %v14781_v15 = vrot.slane %v14779_v33, 2  ;;  %v14851_v33 = vshll.u32 %v22764_v19, 16  ;;  %v22778_v19 = vld [vmem:[#allocation2 + $0x28] sm:$0xff]  }
 0x679   : > { %21009 = vmatpush3.bf16.msra.mxu0 %v22744_v6  ;;  %v14769_v6 = vrot.slane %v14767_v48, 1  ;;  %v14782_v10 = vor.u32 %v14781_v15, %v14778_v9  ;;  %v14839_v48 = vshrl.u32 %v22763_v49, 16  ;;  %v14853_v9 = vrot.slane %v14851_v33, 2  ;;  %v22767_v15 = vld [vmem:[#allocation2 + $0x80] sm:$0xff]   ;;  %v22786_v33 = vld [vmem:[%s25961_s5 + $0x198] sm:$0xff]  }
 0x67a   : > { %21046 = vmatprep.subr.bf16.mxu0 %v25544_v42  ;;  %v14866_v7 = vshrl.u32 %v22767_v15, 16 }
 0x67b   : > { %v14773_v28 = vor.u32 %v14772_v29, %v14769_v6  ;;  %v14844_v6 = vrot.slane %v14842_v8, 2  ;;  %v22766_v29 = vld [vmem:[#allocation2 + $0x78] sm:$0xff]   ;;  %v22783_v8 = vld [vmem:[%s25961_s5 + $0x190] sm:$0xff]  }
 0x67c   : > { %20975 = vmatmul.mubr.bf16.gmra.mrb[52].mxu0 %v14216_v59  ;;  %v22756_v59 = vld [vmem:[%s25961_s5 + $0x150] sm:$0xff]  }
 0x67d   : > { %20978 = vmatprep.mubr.bf16.mxu0 %v14218_v37  ;;  %v14785_v37 = vshrl.u32 %v22754_v3, 16  ;;  %v14783_v1 = vsel %vm2739_vm0, %v14773_v28, %v14782_v10 }
 0x684   : > { %20979 = vmatmul.mubr.bf16.gmra.mrb[56].mxu0 %v14220_v20  ;;  %v14797_v20 = vshll.u32 %v22755_v4, 16 }
 0x685   : > { %20982 = vmatprep.mubr.bf16.mxu0 %v14222_v22  ;;  %v14774_v22 = vsel %vm2739_vm0, %v14764_v56, %v14773_v28  ;;  %v14860_v28 = vshll.u32 %v22766_v29, 16 }
 0x686   : > { %v14799_v11 = vrot.slane %v14797_v20, 2 }
 0x68c   : > { %20983 = vmatmul.mubr.bf16.gmra.mrb[60].mxu0 %v14224_v50  ;;  %v14796_v50 = vrot.slane %v14794_v16, 1 }
 0x68d   : > { %20986 = vmatprep.mubr.bf16.mxu0 %v14226_v2  ;;  %v22758_v2 = vld [vmem:[#allocation2 + $0x50] sm:$0xff]  }
 0x68e   : > { %v14800_v35 = vor.u32 %v14799_v11, %v14796_v50  ;;  %v14812_v51 = vshrl.u32 %v22758_v2, 16  ;;  %v14815_v41 = vshll.u32 %v22758_v2, 16 }
 0x690   : > { %v14814_v45 = vrot.slane %v14812_v51, 1  ;;  %v14817_v58 = vrot.slane %v14815_v41, 2  ;;  %v22772_v41 = vld [vmem:[#allocation2 + $0x98] ss:$0 sps:$4 sm:$0x33]  }
 0x691   : > { %v14893_v46 = vshrl.u32 %v22772_v41, 16 }
 0x692   : > { %v14818_v44 = vor.u32 %v14817_v58, %v14814_v45 }
 0x693   : > { %v14895_v24 = vrot.slane %v14893_v46, 1 }
 0x694   : > { %20987 = vmatmul.mubr.bf16.gmra.mrb[64].mxu0 %v14228_v18  ;;  %v14805_v18 = vrot.slane %v14803_v25, 1 }
 0x695   : > { %20990 = vmatprep.mubr.bf16.mxu0 %v14230_v32 }
 0x696   : > { %v14809_v40 = vor.u32 %v14808_v26, %v14805_v18 }
 0x698   : > { %v14810_v5 = vsel %vm2739_vm0, %v14800_v35, %v14809_v40  ;;  %v14819_v57 = vsel %vm2739_vm0, %v14809_v40, %v14818_v44 }
 0x69c   : > { %20991 = vmatmul.mubr.bf16.gmra.mrb[68].mxu0 %v14232_v47  ;;  %v14823_v47 = vrot.slane %v14821_v21, 1  ;;  %v22774_v21 = vld [vmem:[#allocation2 + $0x10] sm:$0xff]  }
 0x69d   : > { %21010 = vmatprep.mubr.bf16.mxu0 %v14747_v54  ;;  %v14832_v54 = vrot.slane %v14830_v62, 1  ;;  %v15400_v62 = vrot.slane %v22774_v21, 2  ;;  %v22801_v21 = vld [vmem:[#allocation2 + $0x18] sm:$0xff]  }
 0x69e   : > { %v14827_v0 = vor.u32 %v14826_v36, %v14823_v47  ;;  %v22777_v36 = vld [vmem:[#allocation2 + $0x20] sm:$0xff]  }
 0x69f   : > { %v14836_v56 = vor.u32 %v14835_v13, %v14832_v54  ;;  %v15401_v47 = vsel %vm3408_vm1, %v15399_v43, %v15400_v62  ;;  %v22780_v54 = vld [vmem:[%s25961_s5 + $0x188] sm:$0xff]   ;;  %v15934_v43 = vrot.slane %v22800_v14, 2 }
 0x6a1   : > { %v14837_v3 = vsel %vm2739_vm0, %v14827_v0, %v14836_v56 }
 0x6a4   : > { %21011 = vmatmul.mubr.bf16.vlgmr.msra.gmra.mrb[36].mxu0 %v14756_v38  ;;  %v14841_v38 = vrot.slane %v14839_v48, 1  ;;  %v22779_v48 = vld [vmem:[#allocation2 + $0x30] sm:$0xff]  }
 0x6a5   : > { %21014 = vmatprep.mubr.bf16.mxu0 %v14765_v34  ;;  %21047 = vmatpush3.bf16.msra.mxu0 %v25544_v42  ;;  %v14787_v42 = vrot.slane %v14785_v37, 1  ;;  %v14850_v34 = vrot.slane %v14848_v39, 1  ;;  %v15408_v39 = vrot.slane %v22779_v48, 2  ;;  %v22806_v48 = vld [vmem:[#allocation2 + $0x38] sm:$0xff]  }
 0x6a6   : > { %21048 = vmatprep.subr.bf16.mxu0 %v22753_v60  ;;  %v14845_v4 = vor.u32 %v14844_v6, %v14841_v38  ;;  %v22781_v38 = vld [vmem:[#allocation2 + $0x38] sm:$0xff]  }
 0x6a7   : > { %v14791_v27 = vor.u32 %v14790_v12, %v14787_v42  ;;  %v14854_v37 = vor.u32 %v14853_v9, %v14850_v34  ;;  %v14868_v12 = vrot.slane %v14866_v7, 1  ;;  %v22792_v9 = vld [vmem:[%s25961_s5 + $0x1a8] sm:$0xff]  }
 0x6a8   : > { %v14846_v16 = vsel %vm2739_vm0, %v14836_v56, %v14845_v4  ;;  %v15406_v56 = vrot.slane %v22778_v19, 2  ;;  %v22805_v19 = vld [vmem:[#allocation2 + $0x30] sm:$0xff]  }
 0x6a9   : > { %21049 = vmatpush3.bf16.msra.mxu0 %v22753_v60  ;;  %v14792_v52 = vsel %vm2739_vm0, %v14782_v10, %v14791_v27  ;;  %v14801_v32 = vsel %vm2739_vm0, %v14791_v27, %v14800_v35  ;;  %v14828_v60 = vsel %vm2739_vm0, %v14818_v44, %v14827_v0  ;;  %v14869_v10 = vshll.u32 %v22767_v15, 16 }
 0x6aa   : > { %21050 = vmatprep.subr.bf16.mxu0 %v22756_v59  ;;  %v14855_v42 = vsel %vm2739_vm0, %v14845_v4, %v14854_v37  ;;  %v15409_v6 = vsel %vm3408_vm1, %v15406_v56, %v15408_v39  ;;  %v22784_v4 = vld [vmem:[#allocation2 + $0x48] sm:$0xff]  }
 0x6ab   : > { %v14871_v61 = vrot.slane %v14869_v10, 2  ;;  %v15414_v7 = vrot.slane %v22784_v4, 2  ;;  %v22811_v4 = vld [vmem:[#allocation2 + $0x50] sm:$0xff]  }
 0x6ac   : > { %21015 = vmatmul.mubr.bf16.gmra.mrb[40].mxu0 %v14774_v22  ;;  %v22769_v22 = vld [vmem:[#allocation2 + $0x88] sm:$0xff]  }
 0x6ad   : > { %21018 = vmatprep.mubr.bf16.mxu0 %v14783_v1  ;;  %21051 = vmatpush3.bf16.msra.mxu0 %v22756_v59  ;;  %v14857_v59 = vshrl.u32 %v22766_v29, 16  ;;  %v22770_v1 = vld [vmem:[#allocation2 + $0x90] sm:$0xff]   ;;  %v14875_v11 = vshrl.u32 %v22769_v22, 16  ;;  %v14878_v2 = vshll.u32 %v22769_v22, 16  ;;  %v22789_v29 = vld [vmem:[%s25961_s5 + $0x1a0] sm:$0xff]  }
 0x6ae   : > { %21052 = vmatprep.subr.bf16.mxu0 %v22759_v63  ;;  %v14884_v27 = vshrl.u32 %v22770_v1, 16  ;;  %v14887_v25 = vshll.u32 %v22770_v1, 16 }
 0x6af   : > { %v14859_v20 = vrot.slane %v14857_v59, 1  ;;  %v14877_v35 = vrot.slane %v14875_v11, 1  ;;  %v14880_v51 = vrot.slane %v14878_v2, 2  ;;  %v22790_v11 = vld [vmem:[#allocation2 + $0x68] sm:$0xff]  }
 0x6b0   : > { %v14889_v18 = vrot.slane %v14887_v25, 2 }
 0x6b1   : > { %21053 = vmatpush3.bf16.msra.mxu0 %v22759_v63  ;;  %v14862_v63 = vrot.slane %v14860_v28, 2  ;;  %v14881_v26 = vor.u32 %v14880_v51, %v14877_v35  ;;  %v22785_v28 = vld [vmem:[#allocation2 + $0x50] sm:$0xff]   ;;  %v22793_v35 = vld [vmem:[#allocation2 + $0x78] sm:$0xff]  }
 0x6b2   : > { %21054 = vmatprep.subr.bf16.mxu0 %v22762_v31  ;;  %v15416_v10 = vrot.slane %v22785_v28, 2  ;;  %v22812_v28 = vld [vmem:[#allocation2 + $0x58] sm:$0xff]  }
 0x6b3   : > { %v14863_v50 = vor.u32 %v14862_v63, %v14859_v20  ;;  %v22787_v63 = vld [vmem:[#allocation2 + $0x58] sm:$0xff]  }
 0x6b4   : > { %21019 = vmatmul.mubr.bf16.gmra.mrb[44].mxu0 %v14792_v52  ;;  %v14886_v52 = vrot.slane %v14884_v27, 1  ;;  %v15417_v22 = vsel %vm3408_vm1, %v15414_v7, %v15416_v10  ;;  %v15422_v27 = vrot.slane %v22790_v11, 2  ;;  %v22817_v11 = vld [vmem:[#allocation2 + $0x70] sm:$0xff]  }
 0x6b5   : > { %21022 = vmatprep.mubr.bf16.mxu0 %v14801_v32  ;;  %21055 = vmatpush3.bf16.msra.mxu0 %v22762_v31  ;;  %v14872_v31 = vor.u32 %v14871_v61, %v14868_v12  ;;  %v14864_v30 = vsel %vm2739_vm0, %v14854_v37, %v14863_v50  ;;  %v14896_v32 = vshll.u32 %v22772_v41, 16  ;;  %v22795_v37 = vld [vmem:[%s25961_s5 + $0x1b0] sm:$0xff]   ;;  %v22803_v12 = vld [vmem:[%s25961_s5 + $0x1c0] sm:$0xff]   ;;  %v15418_v61 = vrot.slane %v22787_v63, 2 }
 0x6b6   : > { %21056 = vmatprep.subr.bf16.mxu0 %v22765_v53  ;;  %v14890_v45 = vor.u32 %v14889_v18, %v14886_v52  ;;  %v22794_v41 = vld [vmem:[#allocation2 + $0x80] sm:$0xff]  }
 0x6b7   : > { %v14882_v58 = vsel %vm2739_vm0, %v14872_v31, %v14881_v26  ;;  %v15428_v52 = vrot.slane %v22794_v41, 2  ;;  %v22814_v63 = vld [vmem:[#allocation2 + $0x60] sm:$0xff]   ;;  %v22821_v41 = vld [vmem:[#allocation2 + $0x88] sm:$0xff]  }
 0x6b8   : > { %v14891_v40 = vsel %vm2739_vm0, %v14881_v26, %v14890_v45  ;;  %v22796_v26 = vld [vmem:[#allocation2 + $0x88] sm:$0xff]  }
 0x6b9   : > { %21057 = vmatpush3.bf16.msra.mxu0 %v22765_v53  ;;  %v14873_v53 = vsel %vm2739_vm0, %v14863_v50, %v14872_v31  ;;  %v15419_v50 = vsel %vm3408_vm1, %v15416_v10, %v15418_v61  ;;  %v22791_v31 = vld [vmem:[#allocation2 + $0x70] sm:$0xff]   ;;  %v15951_v10 = vrot.slane %v22812_v28, 2 }
 0x6ba   : > { %21058 = vmatprep.subr.bf16.mxu0 %v22768_v17  ;;  %v15424_v25 = vrot.slane %v22791_v31, 2  ;;  %v22818_v31 = vld [vmem:[#allocation2 + $0x78] sm:$0xff]  }
 0x6bc   : > { %21023 = vmatmul.mubr.bf16.gmra.mrb[48].mxu0 %v14810_v5  ;;  %v22775_v5 = vld [vmem:[#allocation2 + $0x18] sm:$0xff]   ;;  %v15425_v51 = vsel %vm3408_vm1, %v15422_v27, %v15424_v25 }
 0x6bd   : > { %21026 = vmatprep.mubr.bf16.mxu0 %v14819_v57  ;;  %21059 = vmatpush3.bf16.msra.mxu0 %v22768_v17  ;;  %v14898_v17 = vrot.slane %v14896_v32, 2  ;;  %v15402_v49 = vrot.slane %v22775_v5, 2  ;;  %v15404_v57 = vrot.slane %v22777_v36, 2  ;;  %v22797_v32 = vld [vmem:[#allocation2 + $0x90] sm:$0xff]   ;;  %v22802_v5 = vld [vmem:[#allocation2 + $0x20] sm:$0xff]   ;;  %v22804_v36 = vld [vmem:[#allocation2 + $0x28] sm:$0xff]  }
 0x6be   : > { %21060 = vmatprep.subr.bf16.mxu0 %v22771_v55 }
 0x6bf   : > { %v14899_v44 = vor.u32 %v14898_v17, %v14895_v24  ;;  %v15403_v13 = vsel %vm3408_vm1, %v15400_v62, %v15402_v49  ;;  %v15405_v0 = vsel %vm3408_vm1, %v15402_v49, %v15404_v57  ;;  %v22799_v17 = vld [vmem:[#allocation2 + $0x98] ss:$0 sps:$4 sm:$0x33]   ;;  %v15935_v62 = vrot.slane %v22801_v21, 2 }
 0x6c0   : > { %v15937_v49 = vrot.slane %v22802_v5, 2 }
 0x6c1   : > { %21061 = vmatpush3.bf16.msra.mxu0 %v22771_v55  ;;  %v14900_v55 = vsel %vm2739_vm0, %v14890_v45, %v14899_v44  ;;  %v15430_v45 = vrot.slane %v22796_v26, 2  ;;  %v15434_v44 = vrot.slane %v22799_v17, 2  ;;  %v22823_v26 = vld [vmem:[#allocation2 + $0x90] sm:$0xff]  }
 0x6c2   : > { %21098 = vmatprep.subr.bf16.mxu0 %v25590_v23 }
 0x6c3   : > { %v15431_v24 = vsel %vm3408_vm1, %v15428_v52, %v15430_v45 }
 0x6c4   : > { %21027 = vmatmul.mubr.bf16.gmra.mrb[52].mxu0 %v14828_v60  ;;  %v15407_v60 = vsel %vm3408_vm1, %v15404_v57, %v15406_v56  ;;  %v15939_v57 = vrot.slane %v22804_v36, 2  ;;  %v15941_v56 = vrot.slane %v22805_v19, 2 }
 0x6c5   : > { %21030 = vmatprep.mubr.bf16.mxu0 %v14837_v3  ;;  %v15410_v3 = vrot.slane %v22781_v38, 2  ;;  %v22808_v38 = vld [vmem:[#allocation2 + $0x40] sm:$0xff]  }
 0x6c7   : > { %v15411_v15 = vsel %vm3408_vm1, %v15408_v39, %v15410_v3  ;;  %v15943_v39 = vrot.slane %v22806_v48, 2 }
 0x6cc   : > { %21031 = vmatmul.mubr.bf16.gmra.mrb[56].mxu0 %v14846_v16  ;;  %v22798_v16 = vld [vmem:[%s25961_s5 + $0x1b8] sm:$0xff]  }
 0x6cd   : > { %21034 = vmatprep.mubr.bf16.mxu0 %v14855_v42  ;;  %v22788_v42 = vld [vmem:[#allocation2 + $0x60] sm:$0xff]  }
 0x6ce   : > { %v15420_v1 = vrot.slane %v22788_v42, 2  ;;  %v22815_v42 = vld [vmem:[#allocation2 + $0x68] sm:$0xff]  }
 0x6d0   : > { %v15421_v2 = vsel %vm3408_vm1, %v15418_v61, %v15420_v1  ;;  %v15953_v61 = vrot.slane %v22814_v63, 2  ;;  %v22835_v63 = vld [vmem:[#allocation2 + $0x40] sm:$0xff]  }
 0x6d4   : > { %21035 = vmatmul.mubr.bf16.gmra.mrb[60].mxu0 %v14864_v30  ;;  %v15423_v30 = vsel %vm3408_vm1, %v15420_v1, %v15422_v27  ;;  %v15955_v1 = vrot.slane %v22815_v42, 2  ;;  %v15957_v27 = vrot.slane %v22817_v11, 2 }
 0x6d5   : > { %21038 = vmatprep.mubr.bf16.mxu0 %v14873_v53  ;;  %v15426_v53 = vrot.slane %v22793_v35, 2  ;;  %v22820_v35 = vld [vmem:[#allocation2 + $0x80] sm:$0xff]  }
 0x6d7   : > { %v15427_v18 = vsel %vm3408_vm1, %v15424_v25, %v15426_v53  ;;  %v15429_v46 = vsel %vm3408_vm1, %v15426_v53, %v15428_v52  ;;  %v15959_v25 = vrot.slane %v22818_v31, 2  ;;  %v15961_v53 = vrot.slane %v22820_v35, 2  ;;  %v22840_v35 = vld [vmem:[%s25961_s5 + $0x218] sm:$0xff]  }
 0x6d8   : > { %v15963_v52 = vrot.slane %v22821_v41, 2  ;;  %v16526_v31 = vshll.u32 %v22835_v63, 16 }
 0x6da   : > { %v16528_v41 = vrot.slane %v16526_v31, 3 }
 0x6dc   : > { %21039 = vmatmul.mubr.bf16.gmra.mrb[64].mxu0 %v14882_v58  ;;  %v15432_v58 = vrot.slane %v22797_v32, 2  ;;  %v22824_v32 = vld [vmem:[#allocation2 + $0x98] sm:$0xff]  }
 0x6dd   : > { %21042 = vmatprep.mubr.bf16.mxu0 %v14891_v40  ;;  %v15967_v17 = vrot.slane %v22824_v32, 2  ;;  %v22843_v32 = vld [vmem:[%s25961_s5 + $0x220] sm:$0xff]  }
 0x6de   : > { %v15433_v40 = vsel %vm3408_vm1, %v15430_v45, %v15432_v58  ;;  %v22828_v45 = vld [vmem:[#allocation2 + $0x18] sm:$0xff]  }
 0x6df   : > { %v16481_v21 = vshll.u32 %v22828_v45, 16 }
 0x6e1   : > { %v16483_v36 = vrot.slane %v16481_v21, 3 }
 0x6e4   : > { %21043 = vmatmul.mubr.bf16.gmra.mrb[68].mxu0 %v14900_v55  ;;  %v15435_v55 = vsel %vm3408_vm1, %v15432_v58, %v15434_v44  ;;  %v22827_v58 = vld [vmem:[#allocation2 + $0x10] sm:$0xfc]  }
 0x6e5   : > { %21062 = vmatprep.mubr.bf16.mxu0 %v15401_v47  ;;  %v15936_v47 = vsel %vm3408_vm1, %v15934_v43, %v15935_v62  ;;  %v16470_v14 = vshrl.u32 %v22827_v58, 16  ;;  %v16473_v44 = vshll.u32 %v22827_v58, 16  ;;  %v22826_v43 = vld [vmem:[#allocation2 + $0xa0] ss:$0 sps:$4 sm:$0x33]  }
 0x6ec   : > { %21063 = vmatmul.mubr.bf16.vlgmr.msra.gmra.mrb[36].mxu0 %v15403_v13  ;;  %v15938_v13 = vsel %vm3408_vm1, %v15935_v62, %v15937_v49 }
 0x6ed   : > { %21066 = vmatprep.mubr.bf16.mxu0 %v15405_v0  ;;  %21099 = vmatpush3.bf16.msra.mxu0 %v25590_v23  ;;  %v22782_v23 = vld [vmem:[#allocation2 + $0x40] sm:$0xff]   ;;  %v15940_v0 = vsel %vm3408_vm1, %v15937_v49, %v15939_v57  ;;  %v22831_v49 = vld [vmem:[#allocation2 + $0x28] sm:$0xff]  }
 0x6ee   : > { %21100 = vmatprep.subr.bf16.mxu0 %v22780_v54  ;;  %v15412_v34 = vrot.slane %v22782_v23, 2  ;;  %v22809_v23 = vld [vmem:[#allocation2 + $0x48] sm:$0xff]  }
 0x6f0   : > { %v15413_v59 = vsel %vm3408_vm1, %v15410_v3, %v15412_v34  ;;  %v15415_v20 = vsel %vm3408_vm1, %v15412_v34, %v15414_v7  ;;  %v15945_v3 = vrot.slane %v22808_v38, 2  ;;  %v15947_v34 = vrot.slane %v22809_v23, 2 }
 0x6f1   : > { %21101 = vmatpush3.bf16.msra.mxu0 %v22780_v54  ;;  %v22807_v54 = vld [vmem:[%s25961_s5 + $0x1c8] sm:$0xff]   ;;  %v15949_v7 = vrot.slane %v22811_v4, 2 }
 0x6f2   : > { %21102 = vmatprep.subr.bf16.mxu0 %v22783_v8 }
 0x6f4   : > { %21067 = vmatmul.mubr.bf16.gmra.mrb[40].mxu0 %v15407_v60  ;;  %v15942_v60 = vsel %vm3408_vm1, %v15939_v57, %v15941_v56  ;;  %v16472_v57 = vrot.slane %v16470_v14, 2  ;;  %v22846_v14 = vld [vmem:[%s25961_s5 + $0x228] sm:$0xff]  }
 0x6f5   : > { %21070 = vmatprep.mubr.bf16.mxu0 %v15409_v6  ;;  %21103 = vmatpush3.bf16.msra.mxu0 %v22783_v8  ;;  %v22810_v8 = vld [vmem:[%s25961_s5 + $0x1d0] sm:$0xff]   ;;  %v15944_v6 = vsel %vm3408_vm1, %v15941_v56, %v15943_v39  ;;  %v16499_v56 = vshll.u32 %v22831_v49, 16 }
 0x6f6   : > { %21104 = vmatprep.subr.bf16.mxu0 %v22786_v33 }
 0x6f9   : > { %21105 = vmatpush3.bf16.msra.mxu0 %v22786_v33  ;;  %v22813_v33 = vld [vmem:[%s25961_s5 + $0x1d8] sm:$0xff]  }
 0x6fa   : > { %21106 = vmatprep.subr.bf16.mxu0 %v22789_v29 }
 0x6fc   : > { %21071 = vmatmul.mubr.bf16.gmra.mrb[44].mxu0 %v15411_v15  ;;  %v15946_v15 = vsel %vm3408_vm1, %v15943_v39, %v15945_v3 }
 0x6fd   : > { %21074 = vmatprep.mubr.bf16.mxu0 %v15413_v59  ;;  %21107 = vmatpush3.bf16.msra.mxu0 %v22789_v29  ;;  %v22816_v29 = vld [vmem:[%s25961_s5 + $0x1e0] sm:$0xff]   ;;  %v15948_v59 = vsel %vm3408_vm1, %v15945_v3, %v15947_v34  ;;  %v16501_v3 = vrot.slane %v16499_v56, 3  ;;  %v22852_v56 = vld [vmem:[%s25961_s5 + $0x238] sm:$0xff]  }
 0x6fe   : > { %21108 = vmatprep.subr.bf16.mxu0 %v22792_v9 }
 0x701   : > { %21109 = vmatpush3.bf16.msra.mxu0 %v22792_v9  ;;  %v22819_v9 = vld [vmem:[%s25961_s5 + $0x1e8] sm:$0xff]  }
 0x702   : > { %21110 = vmatprep.subr.bf16.mxu0 %v22795_v37 }
 0x704   : > { %21075 = vmatmul.mubr.bf16.gmra.mrb[48].mxu0 %v15415_v20  ;;  %v15950_v20 = vsel %vm3408_vm1, %v15947_v34, %v15949_v7  ;;  %v22833_v34 = vld [vmem:[#allocation2 + $0x38] sm:$0xff]  }
 0x705   : > { %21078 = vmatprep.mubr.bf16.mxu0 %v15417_v22  ;;  %21111 = vmatpush3.bf16.msra.mxu0 %v22795_v37  ;;  %v22822_v37 = vld [vmem:[%s25961_s5 + $0x1f0] sm:$0xff]   ;;  %v15952_v22 = vsel %vm3408_vm1, %v15949_v7, %v15951_v10  ;;  %v16514_v28 = vshrl.u32 %v22833_v34, 16  ;;  %v22834_v7 = vld [vmem:[%s25961_s5 + $0x208] sm:$0xff]  }
 0x706   : > { %21112 = vmatprep.subr.bf16.mxu0 %v22798_v16 }
 0x707   : > { %v16516_v42 = vrot.slane %v16514_v28, 2 }
 0x709   : > { %21113 = vmatpush3.bf16.msra.mxu0 %v22798_v16  ;;  %v22825_v16 = vld [vmem:[%s25961_s5 + $0x1f8] sm:$0xff]  }
 0x70a   : > { %21150 = vmatprep.subr.bf16.mxu0 %v22803_v12 }
 0x70c   : > { %21079 = vmatmul.mubr.bf16.gmra.mrb[52].mxu0 %v15419_v50  ;;  %v15954_v50 = vsel %vm3408_vm1, %v15951_v10, %v15953_v61 }
 0x70d   : > { %21082 = vmatprep.mubr.bf16.mxu0 %v15421_v2  ;;  %v15956_v2 = vsel %vm3408_vm1, %v15953_v61, %v15955_v1 }
 0x714   : > { %21083 = vmatmul.mubr.bf16.gmra.mrb[56].mxu0 %v15423_v30  ;;  %v15958_v30 = vsel %vm3408_vm1, %v15955_v1, %v15957_v27  ;;  %v22836_v1 = vld [vmem:[#allocation2 + $0x48] sm:$0xff]  }
 0x715   : > { %21086 = vmatprep.mubr.bf16.mxu0 %v15425_v51  ;;  %v15960_v51 = vsel %vm3408_vm1, %v15957_v27, %v15959_v25 }
 0x71c   : > { %21087 = vmatmul.mubr.bf16.gmra.mrb[60].mxu0 %v15427_v18  ;;  %v15962_v18 = vsel %vm3408_vm1, %v15959_v25, %v15961_v53  ;;  %v16532_v25 = vshrl.u32 %v22836_v1, 16 }
 0x71d   : > { %21090 = vmatprep.mubr.bf16.mxu0 %v15429_v46  ;;  %v15964_v46 = vsel %vm3408_vm1, %v15961_v53, %v15963_v52  ;;  %v22838_v53 = vld [vmem:[#allocation2 + $0x50] sm:$0xff]  }
 0x71e   : > { %v16541_v58 = vshrl.u32 %v22838_v53, 16 }
 0x724   : > { %21091 = vmatmul.mubr.bf16.gmra.mrb[64].mxu0 %v15431_v24  ;;  %v15965_v24 = vrot.slane %v22823_v26, 2 }
 0x725   : > { %21094 = vmatprep.mubr.bf16.mxu0 %v15433_v40  ;;  %v16478_v40 = vshrl.u32 %v22828_v45, 16 }
 0x726   : > { %v15966_v62 = vsel %vm3408_vm1, %v15963_v52, %v15965_v24  ;;  %v15968_v5 = vsel %vm3408_vm1, %v15965_v24, %v15967_v17  ;;  %v16544_v24 = vshll.u32 %v22838_v53, 16  ;;  %v22851_v53 = vld [vmem:[#allocation2 + $0x98] sm:$0xff]  }
 0x72c   : > { %21095 = vmatmul.mubr.bf16.gmra.mrb[68].mxu0 %v15435_v55  ;;  %v22829_v55 = vld [vmem:[#allocation2 + $0x20] sm:$0xff]  }
 0x72d   : > { %21114 = vmatprep.mubr.bf16.mxu0 %v15936_v47  ;;  %v16480_v47 = vrot.slane %v16478_v40, 2  ;;  %v16487_v19 = vshrl.u32 %v22829_v55, 16 }
 0x72f   : > { %v16484_v48 = vor.u32 %v16483_v36, %v16480_v47 }
 0x734   : > { %21115 = vmatmul.mubr.bf16.vlgmr.msra.gmra.mrb[36].mxu0 %v15938_v13  ;;  %v15969_v13 = vrot.slane %v22826_v43, 2  ;;  %v16546_v43 = vrot.slane %v16544_v24, 3 }
 0x735   : > { %21118 = vmatprep.mubr.bf16.mxu0 %v15940_v0  ;;  %21151 = vmatpush3.bf16.msra.mxu0 %v22803_v12  ;;  %v25678_v12 = vld [vmem:[%s25961_s5 + $0x200] sm:$0xff]   ;;  %v16490_v0 = vshll.u32 %v22829_v55, 16 }
 0x736   : > { %21152 = vmatprep.subr.bf16.mxu0 %v22807_v54  ;;  %v22841_v55 = vld [vmem:[#allocation2 + $0x60] sm:$0xff]  }
 0x737   : > { %v16492_v38 = vrot.slane %v16490_v0, 3 }
 0x739   : > { %21153 = vmatpush3.bf16.msra.mxu0 %v22807_v54  ;;  %v16475_v54 = vrot.slane %v16473_v44, 3 }
 0x73a   : > { %21154 = vmatprep.subr.bf16.mxu0 %v22810_v8 }
 0x73b   : > { %v16476_v39 = vor.u32 %v16475_v54, %v16472_v57  ;;  %v22849_v57 = vld [vmem:[%s25961_s5 + $0x230] sm:$0xff]  }
 0x73c   : > { %21119 = vmatmul.mubr.bf16.gmra.mrb[40].mxu0 %v15942_v60  ;;  %v16489_v60 = vrot.slane %v16487_v19, 2  ;;  %v16562_v19 = vshll.u32 %v22841_v55, 16 }
 0x73d   : > { %21122 = vmatprep.mubr.bf16.mxu0 %v15944_v6  ;;  %21155 = vmatpush3.bf16.msra.mxu0 %v22810_v8  ;;  %v16496_v8 = vshrl.u32 %v22831_v49, 16  ;;  %v22832_v6 = vld [vmem:[#allocation2 + $0x30] sm:$0xff]   ;;  %v16485_v23 = vsel %vm4479_vm4, %v16476_v39, %v16484_v48  ;;  %v22842_v49 = vld [vmem:[#allocation2 + $0x68] sm:$0xff]  }
 0x73e   : > { %21156 = vmatprep.subr.bf16.mxu0 %v22813_v33  ;;  %v16508_v4 = vshll.u32 %v22832_v6, 16 }
 0x741   : > { %21157 = vmatpush3.bf16.msra.mxu0 %v22813_v33  ;;  %v15970_v33 = vsel %vm3408_vm1, %v15967_v17, %v15969_v13  ;;  %v16559_v13 = vshrl.u32 %v22841_v55, 16 }
 0x742   : > { %21158 = vmatprep.subr.bf16.mxu0 %v22816_v29 }
 0x744   : > { %21123 = vmatmul.mubr.bf16.gmra.mrb[44].mxu0 %v15946_v15  ;;  %v16505_v15 = vshrl.u32 %v22832_v6, 16 }
 0x745   : > { %21126 = vmatprep.mubr.bf16.mxu0 %v15948_v59  ;;  %21159 = vmatpush3.bf16.msra.mxu0 %v22816_v29  ;;  %v16498_v29 = vrot.slane %v16496_v8, 2  ;;  %v16571_v8 = vshll.u32 %v22842_v49, 16 }
 0x746   : > { %21160 = vmatprep.subr.bf16.mxu0 %v22819_v9 }
 0x747   : > { %v16502_v59 = vor.u32 %v16501_v3, %v16498_v29  ;;  %v16573_v29 = vrot.slane %v16571_v8, 3  ;;  %v22845_v3 = vld [vmem:[#allocation2 + $0x78] sm:$0xff]  }
 0x748   : > { %v16589_v28 = vshll.u32 %v22845_v3, 16 }
 0x749   : > { %21161 = vmatpush3.bf16.msra.mxu0 %v22819_v9  ;;  %v16493_v9 = vor.u32 %v16492_v38, %v16489_v60  ;;  %v16564_v60 = vrot.slane %v16562_v19, 3  ;;  %v22844_v38 = vld [vmem:[#allocation2 + $0x70] sm:$0xff]  }
 0x74a   : > { %21162 = vmatprep.subr.bf16.mxu0 %v22822_v37 }
 0x74b   : > { %v16494_v10 = vsel %vm4479_vm4, %v16484_v48, %v16493_v9  ;;  %v16568_v48 = vshrl.u32 %v22842_v49, 16 }
 0x74c   : > { %21127 = vmatmul.mubr.bf16.gmra.mrb[48].mxu0 %v15950_v20  ;;  %v16510_v20 = vrot.slane %v16508_v4, 3 }
 0x74d   : > { %21130 = vmatprep.mubr.bf16.mxu0 %v15952_v22  ;;  %21163 = vmatpush3.bf16.msra.mxu0 %v22822_v37  ;;  %v16517_v37 = vshll.u32 %v22833_v34, 16  ;;  %v16503_v22 = vsel %vm4479_vm4, %v16493_v9, %v16502_v59  ;;  %v16577_v9 = vshrl.u32 %v22844_v38, 16 }
 0x74e   : > { %21164 = vmatprep.subr.bf16.mxu0 %v22825_v16 }
 0x74f   : > { %v16519_v61 = vrot.slane %v16517_v37, 3 }
 0x751   : > { %21165 = vmatpush3.bf16.msra.mxu0 %v22825_v16  ;;  %v16507_v16 = vrot.slane %v16505_v15, 2  ;;  %v16520_v27 = vor.u32 %v16519_v61, %v16516_v42  ;;  %v16580_v15 = vshll.u32 %v22844_v38, 16  ;;  %v22848_v42 = vld [vmem:[#allocation2 + $0x88] sm:$0xff]  }
 0x752   : > { %21202 = vmatprep.subr.bf16.mxu0 %v25678_v12  ;;  %v16607_v31 = vshll.u32 %v22848_v42, 16 }
 0x753   : > { %v16511_v11 = vor.u32 %v16510_v20, %v16507_v16  ;;  %v22847_v16 = vld [vmem:[#allocation2 + $0x80] sm:$0xff]  }
 0x754   : > { %21131 = vmatmul.mubr.bf16.gmra.mrb[52].mxu0 %v15954_v50  ;;  %v22837_v50 = vld [vmem:[%s25961_s5 + $0x210] sm:$0xff]  }
 0x755   : > { %21134 = vmatprep.mubr.bf16.mxu0 %v15956_v2  ;;  %v16523_v2 = vshrl.u32 %v22835_v63, 16  ;;  %v16521_v52 = vsel %vm4479_vm4, %v16511_v11, %v16520_v27 }
 0x75c   : > { %21135 = vmatmul.mubr.bf16.gmra.mrb[56].mxu0 %v15958_v30  ;;  %v16535_v30 = vshll.u32 %v22836_v1, 16  ;;  %v16595_v1 = vshrl.u32 %v22847_v16, 16 }
 0x75d   : > { %21138 = vmatprep.mubr.bf16.mxu0 %v15960_v51  ;;  %v16512_v51 = vsel %vm4479_vm4, %v16502_v59, %v16511_v11  ;;  %v16586_v59 = vshrl.u32 %v22845_v3, 16  ;;  %v22859_v3 = vld [vmem:[#allocation2 + $0x38] sm:$0xff]  }
 0x75e   : > { %v16537_v26 = vrot.slane %v16535_v30, 3 }
 0x75f   : > { %v16588_v63 = vrot.slane %v16586_v59, 2 }
 0x764   : > { %21139 = vmatmul.mubr.bf16.gmra.mrb[60].mxu0 %v15962_v18  ;;  %v16534_v18 = vrot.slane %v16532_v25, 2  ;;  %v16597_v25 = vrot.slane %v16595_v1, 2  ;;  %v22864_v1 = vld [vmem:[#allocation2 + $0x60] sm:$0xff]  }
 0x765   : > { %21142 = vmatprep.mubr.bf16.mxu0 %v15964_v46  ;;  %v22839_v46 = vld [vmem:[#allocation2 + $0x58] sm:$0xff]  }
 0x766   : > { %v16538_v17 = vor.u32 %v16537_v26, %v16534_v18  ;;  %v16550_v40 = vshrl.u32 %v22839_v46, 16  ;;  %v16553_v21 = vshll.u32 %v22839_v46, 16 }
 0x768   : > { %v16552_v47 = vrot.slane %v16550_v40, 2  ;;  %v16555_v36 = vrot.slane %v16553_v21, 3  ;;  %v22853_v40 = vld [vmem:[#allocation2 + $0xa0] ss:$0 sps:$4 sm:$0x77]  }
 0x769   : > { %v16634_v55 = vshll.u32 %v22853_v40, 16 }
 0x76a   : > { %v16556_v0 = vor.u32 %v16555_v36, %v16552_v47 }
 0x76b   : > { %v16636_v49 = vrot.slane %v16634_v55, 3  ;;  %v25752_v55 = vld [vmem:[%s25962_s6] ss:$0 sm:$0xff] }
 0x76c   : > { %21143 = vmatmul.mubr.bf16.gmra.mrb[64].mxu0 %v15966_v62  ;;  %v16543_v62 = vrot.slane %v16541_v58, 2 }
 0x76d   : > { %21146 = vmatprep.mubr.bf16.mxu0 %v15968_v5 }
 0x76e   : > { %v16547_v54 = vor.u32 %v16546_v43, %v16543_v62  ;;  %v16631_v43 = vshrl.u32 %v22853_v40, 16 }
 0x770   : > { %v16548_v39 = vsel %vm4479_vm4, %v16538_v17, %v16547_v54  ;;  %v16557_v6 = vsel %vm4479_vm4, %v16547_v54, %v16556_v0  ;;  %v16633_v36 = vrot.slane %v16631_v43, 2  ;;  %v22855_v54 = vld [vmem:[#allocation2 + $0x18] sm:$0xff]  }
 0x772   : > { %v16637_v19 = vor.u32 %v16636_v49, %v16633_v36 }
 0x774   : > { %21147 = vmatmul.mubr.bf16.gmra.mrb[68].mxu0 %v15970_v33  ;;  %v16561_v33 = vrot.slane %v16559_v13, 2  ;;  %v22854_v13 = vld [vmem:[#allocation2 + $0x10] sm:$0xf8]  }
 0x775   : > { %21166 = vmatprep.mubr.bf16.mxu0 %v16485_v23  ;;  %v16570_v23 = vrot.slane %v16568_v48, 2  ;;  %v17137_v48 = vrot.slane %v22854_v13, 3 }
 0x776   : > { %v16565_v34 = vor.u32 %v16564_v60, %v16561_v33  ;;  %v22857_v33 = vld [vmem:[#allocation2 + $0x28] sm:$0xff]  }
 0x777   : > { %v16574_v4 = vor.u32 %v16573_v29, %v16570_v23  ;;  %v17142_v38 = vrot.slane %v22857_v33, 3  ;;  %v22858_v23 = vld [vmem:[#allocation2 + $0x30] sm:$0xff]  }
 0x778   : > { %v16566_v37 = vsel %vm4479_vm4, %v16556_v0, %v16565_v34  ;;  %v17138_v0 = vrot.slane %v22855_v54, 3  ;;  %v25766_v54 = vld [vmem:[%s25963_s7] ss:$0 sm:$0xff] }
 0x779   : > { %v16575_v20 = vsel %vm4479_vm4, %v16565_v34, %v16574_v4  ;;  %v17144_v34 = vrot.slane %v22858_v23, 3 }
 0x77c   : > { %21167 = vmatmul.mubr.bf16.vlgmr.msra.gmra.mrb[36].mxu0 %v16494_v10  ;;  %v16582_v10 = vrot.slane %v16580_v15, 3  ;;  %v17145_v15 = vsel %vm5148_vm5, %v17142_v38, %v17144_v34 }
 0x77d   : > { %21170 = vmatprep.mubr.bf16.mxu0 %v16503_v22  ;;  %21203 = vmatpush3.bf16.msra.mxu0 %v25678_v12  ;;  %v16525_v12 = vrot.slane %v16523_v2, 2  ;;  %v16591_v22 = vrot.slane %v16589_v28, 3  ;;  %v16604_v2 = vshrl.u32 %v22848_v42, 16  ;;  %v22861_v28 = vld [vmem:[#allocation2 + $0x48] sm:$0xff]  }
 0x77e   : > { %21204 = vmatprep.subr.bf16.mxu0 %v22834_v7 }
 0x77f   : > { %v16529_v45 = vor.u32 %v16528_v41, %v16525_v12  ;;  %v16592_v11 = vor.u32 %v16591_v22, %v16588_v63  ;;  %v16606_v12 = vrot.slane %v16604_v2, 2  ;;  %v16609_v41 = vrot.slane %v16607_v31, 3  ;;  %v22863_v63 = vld [vmem:[#allocation2 + $0x58] sm:$0xff]  }
 0x780   : > { %v17154_v42 = vrot.slane %v22863_v63, 3  ;;  %v17156_v2 = vrot.slane %v22864_v1, 3 }
 0x781   : > { %21205 = vmatpush3.bf16.msra.mxu0 %v22834_v7  ;;  %v16530_v44 = vsel %vm4479_vm4, %v16520_v27, %v16529_v45  ;;  %v16539_v5 = vsel %vm4479_vm4, %v16529_v45, %v16538_v17  ;;  %v16579_v7 = vrot.slane %v16577_v9, 2  ;;  %v16610_v46 = vor.u32 %v16609_v41, %v16606_v12 }
 0x782   : > { %21206 = vmatprep.subr.bf16.mxu0 %v22837_v50  ;;  %v16625_v45 = vshll.u32 %v22851_v53, 16  ;;  %v17146_v9 = vrot.slane %v22859_v3, 3 }
 0x783   : > { %v16583_v61 = vor.u32 %v16582_v10, %v16579_v7  ;;  %v17150_v7 = vrot.slane %v22861_v28, 3 }
 0x784   : > { %21171 = vmatmul.mubr.bf16.gmra.mrb[40].mxu0 %v16512_v51  ;;  %v17147_v59 = vsel %vm5148_vm5, %v17144_v34, %v17146_v9 }
 0x785   : > { %21174 = vmatprep.mubr.bf16.mxu0 %v16521_v52  ;;  %21207 = vmatpush3.bf16.msra.mxu0 %v22837_v50  ;;  %v16598_v50 = vshll.u32 %v22847_v16, 16  ;;  %v16584_v27 = vsel %vm4479_vm4, %v16574_v4, %v16583_v61  ;;  %v16593_v51 = vsel %vm4479_vm4, %v16583_v61, %v16592_v11  ;;  %v22860_v4 = vld [vmem:[#allocation2 + $0x40] sm:$0xff]   ;;  %v22862_v16 = vld [vmem:[#allocation2 + $0x50] sm:$0xff]  }
 0x786   : > { %21208 = vmatprep.subr.bf16.mxu0 %v22840_v35  ;;  %v17152_v22 = vrot.slane %v22862_v16, 3 }
 0x787   : > { %v16600_v30 = vrot.slane %v16598_v50, 3 }
 0x788   : > { %v17153_v61 = vsel %vm5148_vm5, %v17150_v7, %v17152_v22  ;;  %v17155_v50 = vsel %vm5148_vm5, %v17152_v22, %v17154_v42 }
 0x789   : > { %21209 = vmatpush3.bf16.msra.mxu0 %v22840_v35  ;;  %v22850_v35 = vld [vmem:[#allocation2 + $0x90] sm:$0xff]   ;;  %v16601_v52 = vor.u32 %v16600_v30, %v16597_v25 }
 0x78a   : > { %21210 = vmatprep.subr.bf16.mxu0 %v22843_v32  ;;  %v16613_v18 = vshrl.u32 %v22850_v35, 16  ;;  %v16616_v26 = vshll.u32 %v22850_v35, 16  ;;  %v22866_v25 = vld [vmem:[#allocation2 + $0x70] sm:$0xff]   ;;  %v22867_v35 = vld [vmem:[#allocation2 + $0x78] sm:$0xff]  }
 0x78b   : > { %v16602_v58 = vsel %vm4479_vm4, %v16592_v11, %v16601_v52  ;;  %v16611_v21 = vsel %vm4479_vm4, %v16601_v52, %v16610_v46  ;;  %v22865_v11 = vld [vmem:[#allocation2 + $0x68] sm:$0xff]   ;;  %v17162_v12 = vrot.slane %v22867_v35, 3 }
 0x78c   : > { %21175 = vmatmul.mubr.bf16.gmra.mrb[44].mxu0 %v16530_v44  ;;  %v16615_v24 = vrot.slane %v16613_v18, 2  ;;  %v16618_v17 = vrot.slane %v16616_v26, 3  ;;  %v16627_v44 = vrot.slane %v16625_v45, 3  ;;  %v17158_v31 = vrot.slane %v22865_v11, 3  ;;  %v22869_v18 = vld [vmem:[#allocation2 + $0x88] sm:$0xff]   ;;  %v22870_v45 = vld [vmem:[#allocation2 + $0x90] sm:$0xff]  }
 0x78d   : > { %21178 = vmatprep.mubr.bf16.mxu0 %v16539_v5  ;;  %21211 = vmatpush3.bf16.msra.mxu0 %v22843_v32  ;;  %v16622_v32 = vshrl.u32 %v22851_v53, 16  ;;  %v22868_v53 = vld [vmem:[#allocation2 + $0x80] sm:$0xff]  }
 0x78e   : > { %21212 = vmatprep.subr.bf16.mxu0 %v22846_v14  ;;  %v16619_v62 = vor.u32 %v16618_v17, %v16615_v24  ;;  %v17159_v30 = vsel %vm5148_vm5, %v17156_v2, %v17158_v31  ;;  %v17164_v26 = vrot.slane %v22868_v53, 3  ;;  %v22871_v24 = vld [vmem:[#allocation2 + $0x98] sm:$0xff]   ;;  %v17168_v17 = vrot.slane %v22870_v45, 3 }
 0x78f   : > { %v17170_v40 = vrot.slane %v22871_v24, 3 }
 0x790   : > { %v16620_v47 = vsel %vm4479_vm4, %v16610_v46, %v16619_v62  ;;  %v17166_v46 = vrot.slane %v22869_v18, 3 }
 0x791   : > { %21213 = vmatpush3.bf16.msra.mxu0 %v22846_v14  ;;  %v16624_v14 = vrot.slane %v16622_v32, 2  ;;  %v17165_v32 = vsel %vm5148_vm5, %v17162_v12, %v17164_v26 }
 0x792   : > { %21214 = vmatprep.subr.bf16.mxu0 %v22849_v57 }
 0x793   : > { %v16628_v5 = vor.u32 %v16627_v44, %v16624_v14  ;;  %v22872_v14 = vld [vmem:[#allocation2 + $0xa0] ss:$0 sps:$4 sm:$0x77]   ;;  %v17171_v44 = vsel %vm5148_vm5, %v17168_v17, %v17170_v40 }
 0x794   : > { %21179 = vmatmul.mubr.bf16.gmra.mrb[48].mxu0 %v16548_v39  ;;  %v17139_v39 = vsel %vm5148_vm5, %v17137_v48, %v17138_v0 }
 0x795   : > { %21182 = vmatprep.mubr.bf16.mxu0 %v16557_v6  ;;  %21215 = vmatpush3.bf16.msra.mxu0 %v22849_v57  ;;  %v16629_v57 = vsel %vm4479_vm4, %v16619_v62, %v16628_v5  ;;  %v16638_v8 = vsel %vm4479_vm4, %v16628_v5, %v16637_v19  ;;  %v17172_v62 = vrot.slane %v22872_v14, 3 }
 0x796   : > { %21216 = vmatprep.subr.bf16.mxu0 %v22852_v56 }
 0x797   : > { %v17173_v43 = vsel %vm5148_vm5, %v17170_v40, %v17172_v62 }
 0x799   : > { %21217 = vmatpush3.bf16.msra.mxu0 %v22852_v56  ;;  %v22856_v56 = vld [vmem:[#allocation2 + $0x20] sm:$0xff]  }
 0x79a   : > { %v17140_v60 = vrot.slane %v22856_v56, 3 }
 0x79c   : > { %21183 = vmatmul.mubr.bf16.gmra.mrb[52].mxu0 %v16566_v37  ;;  %v17141_v6 = vsel %vm5148_vm5, %v17138_v0, %v17140_v60  ;;  %v17143_v29 = vsel %vm5148_vm5, %v17140_v60, %v17142_v38  ;;  %v17148_v37 = vrot.slane %v22860_v4, 3 }
 0x79d   : > { %21186 = vmatprep.mubr.bf16.mxu0 %v16575_v20 }
 0x79e   : > { %v17149_v10 = vsel %vm5148_vm5, %v17146_v9, %v17148_v37  ;;  %v17151_v20 = vsel %vm5148_vm5, %v17148_v37, %v17150_v7 }
 0x7a4   : > { %21187 = vmatmul.mubr.bf16.gmra.mrb[56].mxu0 %v16584_v27  ;;  %v17157_v27 = vsel %vm5148_vm5, %v17154_v42, %v17156_v2 }
 0x7a5   : > { %21190 = vmatprep.mubr.bf16.mxu0 %v16593_v51  ;;  %v17160_v51 = vrot.slane %v22866_v25, 3 }
 0x7a7   : > { %v17161_v41 = vsel %vm5148_vm5, %v17158_v31, %v17160_v51  ;;  %v17163_v52 = vsel %vm5148_vm5, %v17160_v51, %v17162_v12 }
 0x7ac   : > { %21191 = vmatmul.mubr.bf16.gmra.mrb[60].mxu0 %v16602_v58  ;;  %v17167_v58 = vsel %vm5148_vm5, %v17164_v26, %v17166_v46 }
 0x7ad   : > { %21194 = vmatprep.mubr.bf16.mxu0 %v16611_v21  ;;  %v17169_v21 = vsel %vm5148_vm5, %v17166_v46, %v17168_v17 }
 0x7b4   : > { %21195 = vmatmul.mubr.bf16.gmra.mrb[64].mxu0 %v16620_v47 }
 0x7b5   : > { %21198 = vmatprep.mubr.bf16.mxu0 %v16629_v57 }
 0x7bc   : > { %21199 = vmatmul.mubr.bf16.gmra.mrb[68].mxu0 %v16638_v8 }
 0x7bd   : > { %21218 = vmatprep.mubr.bf16.mxu0 %v17139_v39 }
 0x7c4   : > { %21219 = vmatmul.mubr.bf16.vlgmr.msra.gmra.mrb[36].mxu0 %v17141_v6 }
 0x7c5   : > { %21222 = vmatprep.mubr.bf16.mxu0 %v17143_v29 }
 0x7cc   : > { %21223 = vmatmul.mubr.bf16.gmra.mrb[40].mxu0 %v17145_v15 }
 0x7cd   : > { %21226 = vmatprep.mubr.bf16.mxu0 %v17147_v59 }
 0x7d4   : > { %21227 = vmatmul.mubr.bf16.gmra.mrb[44].mxu0 %v17149_v10 }
 0x7d5   : > { %21230 = vmatprep.mubr.bf16.mxu0 %v17151_v20 }
 0x7dc   : > { %21231 = vmatmul.mubr.bf16.gmra.mrb[48].mxu0 %v17153_v61 }
 0x7dd   : > { %21234 = vmatprep.mubr.bf16.mxu0 %v17155_v50 }
 0x7e4   : > { %21235 = vmatmul.mubr.bf16.gmra.mrb[52].mxu0 %v17157_v27 }
 0x7e5   : > { %21238 = vmatprep.mubr.bf16.mxu0 %v17159_v30 }
 0x7ec   : > { %21239 = vmatmul.mubr.bf16.gmra.mrb[56].mxu0 %v17161_v41 }
 0x7ed   : > { %21242 = vmatprep.mubr.bf16.mxu0 %v17163_v52 }
 0x7f4   : > { %21243 = vmatmul.mubr.bf16.gmra.mrb[60].mxu0 %v17165_v32 }
 0x7f5   : > { %21246 = vmatprep.mubr.bf16.mxu0 %v17167_v58 }
 0x7fc   : > { %21247 = vmatmul.mubr.bf16.gmra.mrb[64].mxu0 %v17169_v21 }
 0x7fd   : > { %21250 = vmatprep.mubr.bf16.mxu0 %v17171_v44 }
 0x804   : > { %21251 = vmatmul.mubr.bf16.gmra.mrb[68].mxu0 %v17173_v43 }
 0x897   : > { %v21220_v5 = vpop.f32.mrb[36].mxu0 }
 0x898   : > { %v17534_v47 = vadd.f32 %v21220_v5, %v25752_v55  ;;  %v17274_v36 = vpop.f32.mrb[37].mxu0 }
 0x899   : > { %v17532_v49 = vadd.f32 %v25752_v55, %v17274_v36  ;;  %v21221_v57 = vpop.f32.mrb[38].mxu0 }
 0x89a   : > { %v17570_v13 = vmax.f32 %v17534_v47, 0.0  ;;  %v17535_v19 = vadd.f32 %v21221_v57, %v25752_v55  ;;  %v17277_v0 = vpop.f32.mrb[39].mxu0 }
 0x89b   : > { %v17568_v48 = vmax.f32 %v17532_v49, 0.0  ;;  %v17533_v8 = vadd.f32 %v25752_v55, %v17277_v0 }
 0x89c   : > { %17606 = vst [vmem:[%s25760_s28 + $0x10] sm:$0xff] %v17570_v13  ;;  %v17571_v56 = vmax.f32 %v17535_v19, 0.0  ;;  %v17649_v39 = vmul.f32 %v25766_v54, %v17570_v13 }
 0x89d   : > { %17604 = vst [vmem:[%s25760_s28] sm:$0xff] %v17568_v48  ;;  %v17569_v33 = vmax.f32 %v17533_v8, 0.0  ;;  %v17647_v29 = vmul.f32 %v25766_v54, %v17568_v48 }
 0x89e   : > { %17607 = vst [vmem:[%s25760_s28 + $0x18] sm:$0xff] %v17571_v56  ;;  %17687 = vadd.xlane.f32.xlu0 %v17649_v39  ;;  %v17650_v7 = vmul.f32 %v25766_v54, %v17571_v56 }
 0x89f   : > { %17605 = vst [vmem:[%s25760_s28 + $0x8] sm:$0xff] %v17569_v33  ;;  %v21224_v60 = vpop.f32.mrb[40].mxu0  ;;  %v17648_v38 = vmul.f32 %v25766_v54, %v17569_v33 }
 0x8a0   : > { %v17538_v6 = vadd.f32 %v21224_v60, %v25752_v55  ;;  %v17290_v23 = vpop.f32.mrb[41].mxu0 }
 0x8a1   : > { %v17536_v3 = vadd.f32 %v25752_v55, %v17290_v23  ;;  %17685 = vadd.xlane.f32.xlu1 %v17648_v38  ;;  %v21225_v34 = vpop.f32.mrb[42].mxu0 }
 0x8a2   : > { %v17574_v9 = vmax.f32 %v17538_v6, 0.0  ;;  %v17539_v15 = vadd.f32 %v21225_v34, %v25752_v55  ;;  %17683 = vadd.xlane.f32.xlu0 %v17647_v29  ;;  %v17293_v4 = vpop.f32.mrb[43].mxu0 }
 0x8a3   : > { %v17572_v59 = vmax.f32 %v17536_v3, 0.0  ;;  %v17537_v28 = vadd.f32 %v25752_v55, %v17293_v4 }
 0x8a4   : > { %17610 = vst [vmem:[%s25760_s28 + $0x30] sm:$0xff] %v17574_v9  ;;  %v17575_v37 = vmax.f32 %v17539_v15, 0.0  ;;  %v17653_v10 = vmul.f32 %v25766_v54, %v17574_v9 }
 0x8a5   : > { %17608 = vst [vmem:[%s25760_s28 + $0x20] sm:$0xff] %v17572_v59  ;;  %v17573_v16 = vmax.f32 %v17537_v28, 0.0  ;;  %v17651_v42 = vmul.f32 %v25766_v54, %v17572_v59 }
 0x8a6   : > { %17611 = vst [vmem:[%s25760_s28 + $0x38] sm:$0xff] %v17575_v37  ;;  %17689 = vadd.xlane.f32.xlu0 %v17650_v7  ;;  %17695 = vadd.xlane.f32.xlu1 %v17653_v10  ;;  %v17654_v61 = vmul.f32 %v25766_v54, %v17575_v37 }
 0x8a7   : > { %17609 = vst [vmem:[%s25760_s28 + $0x28] sm:$0xff] %v17573_v16  ;;  %v21228_v20 = vpop.f32.mrb[44].mxu0  ;;  %v17652_v35 = vmul.f32 %v25766_v54, %v17573_v16 }
 0x8a8   : > { %v17542_v63 = vadd.f32 %v21228_v20, %v25752_v55  ;;  %v17306_v22 = vpop.f32.mrb[45].mxu0 }
 0x8a9   : > { %v17540_v1 = vadd.f32 %v25752_v55, %v17306_v22  ;;  %v21229_v50 = vpop.f32.mrb[46].mxu0 }
 0x8aa   : > { %v17578_v11 = vmax.f32 %v17542_v63, 0.0  ;;  %v17543_v2 = vadd.f32 %v21229_v50, %v25752_v55  ;;  %17691 = vadd.xlane.f32.xlu1 %v17651_v42  ;;  %17697 = vadd.xlane.f32.xlu0 %v17654_v61  ;;  %v17309_v31 = vpop.f32.mrb[47].mxu0 }
 0x8ab   : > { %v17576_v27 = vmax.f32 %v17540_v1, 0.0  ;;  %v17541_v25 = vadd.f32 %v25752_v55, %v17309_v31 }
 0x8ac   : > { %17614 = vst [vmem:[%s25760_s28 + $0x50] sm:$0xff] %v17578_v11  ;;  %v17579_v30 = vmax.f32 %v17543_v2, 0.0  ;;  %v17657_v51 = vmul.f32 %v25766_v54, %v17578_v11 }
 0x8ad   : > { %17612 = vst [vmem:[%s25760_s28 + $0x40] sm:$0xff] %v17576_v27  ;;  %v17577_v12 = vmax.f32 %v17541_v25, 0.0  ;;  %v17655_v18 = vmul.f32 %v25766_v54, %v17576_v27 }
 0x8ae   : > { %17615 = vst [vmem:[%s25760_s28 + $0x58] sm:$0xff] %v17579_v30  ;;  %17693 = vadd.xlane.f32.xlu0 %v17652_v35  ;;  %17703 = vadd.xlane.f32.xlu1 %v17657_v51  ;;  %v17658_v26 = vmul.f32 %v25766_v54, %v17579_v30 }
 0x8af   : > { %17613 = vst [vmem:[%s25760_s28 + $0x48] sm:$0xff] %v17577_v12  ;;  %v21232_v41 = vpop.f32.mrb[48].mxu0  ;;  %v17656_v14 = vmul.f32 %v25766_v54, %v17577_v12 }
 0x8b0   : > { %v17546_v53 = vadd.f32 %v21232_v41, %v25752_v55  ;;  %v17322_v52 = vpop.f32.mrb[49].mxu0 }
 0x8b1   : > { %v17544_v46 = vadd.f32 %v25752_v55, %v17322_v52  ;;  %v21233_v32 = vpop.f32.mrb[50].mxu0 }
 0x8b2   : > { %v17582_v45 = vmax.f32 %v17546_v53, 0.0  ;;  %v17547_v58 = vadd.f32 %v21233_v32, %v25752_v55  ;;  %17699 = vadd.xlane.f32.xlu1 %v17655_v18  ;;  %17705 = vadd.xlane.f32.xlu0 %v17658_v26  ;;  %v17325_v24 = vpop.f32.mrb[51].mxu0 }
 0x8b3   : > { %v17580_v17 = vmax.f32 %v17544_v46, 0.0  ;;  %v17545_v40 = vadd.f32 %v25752_v55, %v17325_v24 }
 0x8b4   : > { %17618 = vst [vmem:[%s25760_s28 + $0x70] sm:$0xff] %v17582_v45  ;;  %v17583_v21 = vmax.f32 %v17547_v58, 0.0  ;;  %v17661_v44 = vmul.f32 %v25766_v54, %v17582_v45 }
 0x8b5   : > { %17616 = vst [vmem:[%s25760_s28 + $0x60] sm:$0xff] %v17580_v17  ;;  %v17581_v62 = vmax.f32 %v17545_v40, 0.0  ;;  %v17659_v36 = vmul.f32 %v25766_v54, %v17580_v17 }
 0x8b6   : > { %17619 = vst [vmem:[%s25760_s28 + $0x78] sm:$0xff] %v17583_v21  ;;  %17701 = vadd.xlane.f32.xlu0 %v17656_v14  ;;  %17711 = vadd.xlane.f32.xlu1 %v17661_v44  ;;  %v17662_v49 = vmul.f32 %v25766_v54, %v17583_v21 }
 0x8b7   : > { %17617 = vst [vmem:[%s25760_s28 + $0x68] sm:$0xff] %v17581_v62  ;;  %v21236_v43 = vpop.f32.mrb[52].mxu0  ;;  %v17660_v33 = vmul.f32 %v25766_v54, %v17581_v62 }
 0x8b8   : > { %v17550_v5 = vadd.f32 %v21236_v43, %v25752_v55  ;;  %v17338_v47 = vpop.f32.mrb[53].mxu0 }
 0x8b9   : > { %v17548_v57 = vadd.f32 %v25752_v55, %v17338_v47  ;;  %v21237_v13 = vpop.f32.mrb[54].mxu0 }
 0x8ba   : > { %v17586_v19 = vmax.f32 %v17550_v5, 0.0  ;;  %v17551_v0 = vadd.f32 %v21237_v13, %v25752_v55  ;;  %17707 = vadd.xlane.f32.xlu1 %v17659_v36  ;;  %17713 = vadd.xlane.f32.xlu0 %v17662_v49  ;;  %v17341_v48 = vpop.f32.mrb[55].mxu0 }
 0x8bb   : > { %v17584_v8 = vmax.f32 %v17548_v57, 0.0  ;;  %v17549_v56 = vadd.f32 %v25752_v55, %v17341_v48 }
 0x8bc   : > { %17622 = vst [vmem:[%s25760_s28 + $0x90] sm:$0xff] %v17586_v19  ;;  %v17587_v39 = vmax.f32 %v17551_v0, 0.0  ;;  %v17665_v60 = vmul.f32 %v25766_v54, %v17586_v19 }
 0x8bd   : > { %17620 = vst [vmem:[%s25760_s28 + $0x80] sm:$0xff] %v17584_v8  ;;  %v17585_v38 = vmax.f32 %v17549_v56, 0.0  ;;  %v17663_v3 = vmul.f32 %v25766_v54, %v17584_v8 }
 0x8be   : > { %17623 = vst [vmem:[%s25760_s28 + $0x98] sm:$0xff] %v17587_v39  ;;  %17709 = vadd.xlane.f32.xlu0 %v17660_v33  ;;  %17719 = vadd.xlane.f32.xlu1 %v17665_v60  ;;  %v17666_v34 = vmul.f32 %v25766_v54, %v17587_v39 }
 0x8bf   : > { %17621 = vst [vmem:[%s25760_s28 + $0x88] sm:$0xff] %v17585_v38  ;;  %v21240_v6 = vpop.f32.mrb[56].mxu0  ;;  %v17664_v16 = vmul.f32 %v25766_v54, %v17585_v38 }
 0x8c0   : > { %v17554_v23 = vadd.f32 %v21240_v6, %v25752_v55  ;;  %v17354_v29 = vpop.f32.mrb[57].mxu0 }
 0x8c1   : > { %v17552_v9 = vadd.f32 %v25752_v55, %v17354_v29  ;;  %v21241_v15 = vpop.f32.mrb[58].mxu0 }
 0x8c2   : > { %v17590_v4 = vmax.f32 %v17554_v23, 0.0  ;;  %v17555_v59 = vadd.f32 %v21241_v15, %v25752_v55  ;;  %17715 = vadd.xlane.f32.xlu1 %v17663_v3  ;;  %17721 = vadd.xlane.f32.xlu0 %v17666_v34  ;;  %v17357_v28 = vpop.f32.mrb[59].mxu0 }
 0x8c3   : > { %v17588_v37 = vmax.f32 %v17552_v9, 0.0  ;;  %v17553_v7 = vadd.f32 %v25752_v55, %v17357_v28 }
 0x8c4   : > { %17626 = vst [vmem:[%s25760_s28 + $0xb0] sm:$0xff] %v17590_v4  ;;  %v17591_v10 = vmax.f32 %v17555_v59, 0.0  ;;  %v17669_v20 = vmul.f32 %v25766_v54, %v17590_v4 }
 0x8c5   : > { %17624 = vst [vmem:[%s25760_s28 + $0xa0] sm:$0xff] %v17588_v37  ;;  %v17589_v63 = vmax.f32 %v17553_v7, 0.0  ;;  %v17667_v1 = vmul.f32 %v25766_v54, %v17588_v37 }
 0x8c6   : > { %17627 = vst [vmem:[%s25760_s28 + $0xb8] sm:$0xff] %v17591_v10  ;;  %17717 = vadd.xlane.f32.xlu0 %v17664_v16  ;;  %17727 = vadd.xlane.f32.xlu1 %v17669_v20  ;;  %v17670_v50 = vmul.f32 %v25766_v54, %v17591_v10 }
 0x8c7   : > { %17625 = vst [vmem:[%s25760_s28 + $0xa8] sm:$0xff] %v17589_v63  ;;  %v21244_v22 = vpop.f32.mrb[60].mxu0  ;;  %v17668_v12 = vmul.f32 %v25766_v54, %v17589_v63 }
 0x8c8   : > { %v17558_v42 = vadd.f32 %v21244_v22, %v25752_v55  ;;  %v17370_v61 = vpop.f32.mrb[61].mxu0 }
 0x8c9   : > { %v17556_v11 = vadd.f32 %v25752_v55, %v17370_v61  ;;  %v21245_v2 = vpop.f32.mrb[62].mxu0 }
 0x8ca   : > { %v17594_v31 = vmax.f32 %v17558_v42, 0.0  ;;  %v17559_v27 = vadd.f32 %v21245_v2, %v25752_v55  ;;  %17723 = vadd.xlane.f32.xlu1 %v17667_v1  ;;  %17729 = vadd.xlane.f32.xlu0 %v17670_v50  ;;  %v17373_v25 = vpop.f32.mrb[63].mxu0 }
 0x8cb   : > { %v17592_v30 = vmax.f32 %v17556_v11, 0.0  ;;  %v17557_v35 = vadd.f32 %v25752_v55, %v17373_v25 }
 0x8cc   : > { %17630 = vst [vmem:[%s25760_s28 + $0xd0] sm:$0xff] %v17594_v31  ;;  %v17595_v51 = vmax.f32 %v17559_v27, 0.0  ;;  %v17673_v41 = vmul.f32 %v25766_v54, %v17594_v31 }
 0x8cd   : > { %17628 = vst [vmem:[%s25760_s28 + $0xc0] sm:$0xff] %v17592_v30  ;;  %v17593_v53 = vmax.f32 %v17557_v35, 0.0  ;;  %v17671_v32 = vmul.f32 %v25766_v54, %v17592_v30 }
 0x8ce   : > { %17631 = vst [vmem:[%s25760_s28 + $0xd8] sm:$0xff] %v17595_v51  ;;  %17725 = vadd.xlane.f32.xlu0 %v17668_v12  ;;  %17735 = vadd.xlane.f32.xlu1 %v17673_v41  ;;  %v17674_v18 = vmul.f32 %v25766_v54, %v17595_v51 }
 0x8cf   : > { %17629 = vst [vmem:[%s25760_s28 + $0xc8] sm:$0xff] %v17593_v53  ;;  %v21248_v52 = vpop.f32.mrb[64].mxu0  ;;  %v17672_v44 = vmul.f32 %v25766_v54, %v17593_v53 }
 0x8d0   : > { %v17562_v26 = vadd.f32 %v21248_v52, %v25752_v55  ;;  %v17386_v46 = vpop.f32.mrb[65].mxu0 }
 0x8d1   : > { %v17560_v45 = vadd.f32 %v25752_v55, %v17386_v46  ;;  %v21249_v58 = vpop.f32.mrb[66].mxu0 }
 0x8d2   : > { %v17598_v24 = vmax.f32 %v17562_v26, 0.0  ;;  %v17563_v17 = vadd.f32 %v21249_v58, %v25752_v55  ;;  %17731 = vadd.xlane.f32.xlu1 %v17671_v32  ;;  %17737 = vadd.xlane.f32.xlu0 %v17674_v18  ;;  %v17389_v40 = vpop.f32.mrb[67].mxu0 }
 0x8d3   : > { %v17596_v21 = vmax.f32 %v17560_v45, 0.0  ;;  %v17561_v14 = vadd.f32 %v25752_v55, %v17389_v40 }
 0x8d4   : > { %17634 = vst [vmem:[%s25760_s28 + $0xf0] sm:$0xff] %v17598_v24  ;;  %v17677_v62 = vmul.f32 %v25766_v54, %v17598_v24  ;;  %v17599_v43 = vmax.f32 %v17563_v17, 0.0 }
 0x8d5   : > { %17632 = vst [vmem:[%s25760_s28 + $0xe0] sm:$0xff] %v17596_v21  ;;  %v17597_v5 = vmax.f32 %v17561_v14, 0.0  ;;  %v17675_v36 = vmul.f32 %v25766_v54, %v17596_v21 }
 0x8d6   : > { %17635 = vst [vmem:[%s25760_s28 + $0xf8] sm:$0xff] %v17599_v43  ;;  %17733 = vadd.xlane.f32.xlu0 %v17672_v44  ;;  %17743 = vadd.xlane.f32.xlu1 %v17677_v62  ;;  %v17678_v49 = vmul.f32 %v25766_v54, %v17599_v43 }
 0x8d7   : > { %17633 = vst [vmem:[%s25760_s28 + $0xe8] sm:$0xff] %v17597_v5  ;;  %v21252_v47 = vpop.f32.mrb[68].mxu0  ;;  %v17676_v60 = vmul.f32 %v25766_v54, %v17597_v5 }
 0x8d8   : > { %v17566_v57 = vadd.f32 %v21252_v47, %v25752_v55  ;;  %v17402_v13 = vpop.f32.mrb[69].mxu0 }
 0x8d9   : > { %v17564_v19 = vadd.f32 %v25752_v55, %v17402_v13  ;;  %v21253_v0 = vpop.f32.mrb[70].mxu0 }
 0x8da   : > { %v17602_v48 = vmax.f32 %v17566_v57, 0.0  ;;  %v17567_v8 = vadd.f32 %v21253_v0, %v25752_v55  ;;  %17739 = vadd.xlane.f32.xlu1 %v17675_v36  ;;  %17745 = vadd.xlane.f32.xlu0 %v17678_v49  ;;  %v17405_v56 = vpop.f32.mrb[71].mxu0 }
 0x8db   : > { %v17600_v39 = vmax.f32 %v17564_v19, 0.0  ;;  %v17565_v33 = vadd.f32 %v25752_v55, %v17405_v56 }
 0x8dc   : > { %17638 = vst [vmem:[%s25760_s28 + $0x110] sm:$0xff] %v17602_v48  ;;  %v17603_v38 = vmax.f32 %v17567_v8, 0.0  ;;  %v17681_v3 = vmul.f32 %v25766_v54, %v17602_v48 }
 0x8dd   : > { %17636 = vst [vmem:[%s25760_s28 + $0x100] sm:$0xff] %v17600_v39  ;;  %v17679_v6 = vmul.f32 %v25766_v54, %v17600_v39  ;;  %v17601_v23 = vmax.f32 %v17565_v33, 0.0 }
 0x8de   : > { %17639 = vst [vmem:[%s25760_s28 + $0x118] sm:$0xff] %v17603_v38  ;;  %17741 = vadd.xlane.f32.xlu0 %v17676_v60  ;;  %v17682_v55 = vmul.f32 %v25766_v54, %v17603_v38 }
 0x8df   : > { %17637 = vst [vmem:[%s25760_s28 + $0x108] sm:$0xff] %v17601_v23  ;;  %v17680_v29 = vmul.f32 %v25766_v54, %v17601_v23  ;;  %17747 = vadd.xlane.f32.xlu1 %v17679_v6 }
 0x8e2   : > { %17749 = vadd.xlane.f32.xlu0 %v17680_v29 }
 0x8e3   : > { %17751 = vadd.xlane.f32.xlu1 %v17681_v3 }
 0x8e6   : > { %17753 = vadd.xlane.f32.xlu0 %v17682_v55 }
 0x92b   : > { %v17688_v34 = vpop.xlane.xlu0 %17687 }
 0x92c   : > { %17758 = vst.msk [vmem:[%s25879_s12 + $0x10] sm:$0xff] %vm17755_vm14, %v17688_v34 }
 0x92e   : > { %v17686_v54 = vpop.xlane.xlu1 %17685 }
 0x92f   : > { %17757 = vst.msk [vmem:[%s25879_s12 + $0x8] sm:$0xff] %vm17755_vm14, %v17686_v54  ;;  %v17684_v9 = vpop.xlane.xlu0 %17683 }
 0x930   : > { %17756 = vst.msk [vmem:[%s25879_s12] sm:$0xff] %vm17755_vm14, %v17684_v9 }
 0x933   : > { %v17690_v15 = vpop.xlane.xlu0 %17689  ;;  %v17696_v4 = vpop.xlane.xlu1 %17695 }
 0x934   : > { %17759 = vst.msk [vmem:[%s25879_s12 + $0x18] sm:$0xff] %vm17755_vm14, %v17690_v15  ;;  %17762 = vst.msk [vmem:[%s25879_s12 + $0x30] sm:$0xff] %vm17755_vm14, %v17696_v4 }
 0x937   : > { %v17692_v59 = vpop.xlane.xlu1 %17691  ;;  %v17698_v28 = vpop.xlane.xlu0 %17697 }
 0x938   : > { %17760 = vst.msk [vmem:[%s25879_s12 + $0x20] sm:$0xff] %vm17755_vm14, %v17692_v59  ;;  %17763 = vst.msk [vmem:[%s25879_s12 + $0x38] sm:$0xff] %vm17755_vm14, %v17698_v28 }
 0x93b   : > { %v17694_v37 = vpop.xlane.xlu0 %17693  ;;  %v17704_v7 = vpop.xlane.xlu1 %17703 }
 0x93c   : > { %17761 = vst.msk [vmem:[%s25879_s12 + $0x28] sm:$0xff] %vm17755_vm14, %v17694_v37  ;;  %17766 = vst.msk [vmem:[%s25879_s12 + $0x50] sm:$0xff] %vm17755_vm14, %v17704_v7 }
 0x93f   : > { %v17700_v10 = vpop.xlane.xlu1 %17699  ;;  %v17706_v16 = vpop.xlane.xlu0 %17705 }
 0x940   : > { %17764 = vst.msk [vmem:[%s25879_s12 + $0x40] sm:$0xff] %vm17755_vm14, %v17700_v10  ;;  %17767 = vst.msk [vmem:[%s25879_s12 + $0x58] sm:$0xff] %vm17755_vm14, %v17706_v16 }
 0x943   : > { %v17702_v20 = vpop.xlane.xlu0 %17701  ;;  %v17712_v63 = vpop.xlane.xlu1 %17711 }
 0x944   : > { %17765 = vst.msk [vmem:[%s25879_s12 + $0x48] sm:$0xff] %vm17755_vm14, %v17702_v20  ;;  %17770 = vst.msk [vmem:[%s25879_s12 + $0x70] sm:$0xff] %vm17755_vm14, %v17712_v63 }
 0x947   : > { %v17708_v22 = vpop.xlane.xlu1 %17707  ;;  %v17714_v42 = vpop.xlane.xlu0 %17713 }
 0x948   : > { %17768 = vst.msk [vmem:[%s25879_s12 + $0x60] sm:$0xff] %vm17755_vm14, %v17708_v22  ;;  %17771 = vst.msk [vmem:[%s25879_s12 + $0x78] sm:$0xff] %vm17755_vm14, %v17714_v42 }
 0x94b   : > { %v17710_v61 = vpop.xlane.xlu0 %17709  ;;  %v17720_v1 = vpop.xlane.xlu1 %17719 }
 0x94c   : > { %17769 = vst.msk [vmem:[%s25879_s12 + $0x68] sm:$0xff] %vm17755_vm14, %v17710_v61  ;;  %17774 = vst.msk [vmem:[%s25879_s12 + $0x90] sm:$0xff] %vm17755_vm14, %v17720_v1 }
 0x94f   : > { %v17716_v50 = vpop.xlane.xlu1 %17715  ;;  %v17722_v11 = vpop.xlane.xlu0 %17721 }
 0x950   : > { %17772 = vst.msk [vmem:[%s25879_s12 + $0x80] sm:$0xff] %vm17755_vm14, %v17716_v50  ;;  %17775 = vst.msk [vmem:[%s25879_s12 + $0x98] sm:$0xff] %vm17755_vm14, %v17722_v11 }
 0x953   : > { %v17718_v2 = vpop.xlane.xlu0 %17717  ;;  %v17728_v31 = vpop.xlane.xlu1 %17727 }
 0x954   : > { %17773 = vst.msk [vmem:[%s25879_s12 + $0x88] sm:$0xff] %vm17755_vm14, %v17718_v2  ;;  %17778 = vst.msk [vmem:[%s25879_s12 + $0xb0] sm:$0xff] %vm17755_vm14, %v17728_v31 }
 0x957   : > { %v17724_v27 = vpop.xlane.xlu1 %17723  ;;  %v17730_v25 = vpop.xlane.xlu0 %17729 }
 0x958   : > { %17776 = vst.msk [vmem:[%s25879_s12 + $0xa0] sm:$0xff] %vm17755_vm14, %v17724_v27  ;;  %17779 = vst.msk [vmem:[%s25879_s12 + $0xb8] sm:$0xff] %vm17755_vm14, %v17730_v25 }
 0x95b   : > { %v17726_v30 = vpop.xlane.xlu0 %17725  ;;  %v17736_v35 = vpop.xlane.xlu1 %17735 }
 0x95c   : > { %17777 = vst.msk [vmem:[%s25879_s12 + $0xa8] sm:$0xff] %vm17755_vm14, %v17726_v30  ;;  %17782 = vst.msk [vmem:[%s25879_s12 + $0xd0] sm:$0xff] %vm17755_vm14, %v17736_v35 }
 0x95f   : > { %v17732_v51 = vpop.xlane.xlu1 %17731  ;;  %v17738_v12 = vpop.xlane.xlu0 %17737 }
 0x960   : > { %17780 = vst.msk [vmem:[%s25879_s12 + $0xc0] sm:$0xff] %vm17755_vm14, %v17732_v51  ;;  %17783 = vst.msk [vmem:[%s25879_s12 + $0xd8] sm:$0xff] %vm17755_vm14, %v17738_v12 }
 0x963   : > { %v17734_v41 = vpop.xlane.xlu0 %17733  ;;  %v17744_v53 = vpop.xlane.xlu1 %17743 }
 0x964   : > { %17781 = vst.msk [vmem:[%s25879_s12 + $0xc8] sm:$0xff] %vm17755_vm14, %v17734_v41  ;;  %17786 = vst.msk [vmem:[%s25879_s12 + $0xf0] sm:$0xff] %vm17755_vm14, %v17744_v53 }
 0x967   : > { %v17740_v52 = vpop.xlane.xlu1 %17739  ;;  %v17746_v18 = vpop.xlane.xlu0 %17745 }
 0x968   : > { %17784 = vst.msk [vmem:[%s25879_s12 + $0xe0] sm:$0xff] %vm17755_vm14, %v17740_v52  ;;  %17787 = vst.msk [vmem:[%s25879_s12 + $0xf8] sm:$0xff] %vm17755_vm14, %v17746_v18 }
 0x96b   : > { %v17742_v26 = vpop.xlane.xlu0 %17741 }
 0x96c   : > { %17785 = vst.msk [vmem:[%s25879_s12 + $0xe8] sm:$0xff] %vm17755_vm14, %v17742_v26  ;;  %v17748_v46 = vpop.xlane.xlu1 %17747 }
 0x96d   : > { %17788 = vst.msk [vmem:[%s25879_s12 + $0x100] sm:$0xff] %vm17755_vm14, %v17748_v46 }
 0x96f   : > { %v17750_v32 = vpop.xlane.xlu0 %17749 }
 0x970   : > { %17789 = vst.msk [vmem:[%s25879_s12 + $0x108] sm:$0xff] %vm17755_vm14, %v17750_v32  ;;  %v17752_v45 = vpop.xlane.xlu1 %17751 }
 0x971   : > { %17790 = vst.msk [vmem:[%s25879_s12 + $0x110] sm:$0xff] %vm17755_vm14, %v17752_v45 }
 0x973   : > { %v17754_v58 = vpop.xlane.xlu0 %17753 }
 0x974   : > { %17791 = vst.msk [vmem:[%s25879_s12 + $0x118] sm:$0xff] %vm17755_vm14, %v17754_v58 }
 0x975 PF: > { %s21_s13 = sadd.s32 1, %s22891_s13  }
 0x976   : > { %p18_p4 = scmp.ge.s32.totalorder %s21_s13, 4  }
 0x978   :  { %20 = sbr.rel (!%p18_p4) target bundleno = 1 (0x1), region = 122 }

</bundles_post_ra>
